<compile_context>
chip_gen: v7x
topology: tpu7x:2x2x1
jax: 0.10.0
libtpu: 0.0.40
codegen_flags: <defaults>
</compile_context>

<pallas_src>
import functools
import math

import numpy as np
import jax
import jax.numpy as jnp
from jax.experimental import pallas as pl
from jax.experimental.pallas import tpu as pltpu

_MASK_VALUE = -1e30  # finite stand-in for -inf used by adj_to_attn_mask (exp underflows to 0)


# ---------------------------------------------------------------------------
# Fused kernel: pairwise messages MLP + invariant attention + equivariant attention
# ---------------------------------------------------------------------------
def _semla_fused_kernel(n_heads, d_head, d_equi,
                        q_msg_ref, k_msg_ref, q_equi_ref, k_equi_ref,
                        edges_ref, adj_ref, inv_heads_ref, proj_equi_ref,
                        w1q_ref, w1k_ref, w1p_ref, b1_ref, w2_ref, b2_ref,
                        inv_out_ref, equi_out_ref, edge_out_ref):
    q_msg = q_msg_ref[0]        # (TQ, d_message)
    k_msg = k_msg_ref[0]        # (N,  d_message)
    qe = q_equi_ref[0]          # (TQ, 3, d_equi)
    ke = k_equi_ref[0]          # (N,  3, d_equi)
    edges = edges_ref[0]        # (TQ, N, d_edge_in)
    adj = adj_ref[0]            # (TQ, N) float {0, 1}
    inv_h = inv_heads_ref[0]    # (N, d_inv)     = in_proj(invs)
    pe = proj_equi_ref[0]       # (N, 3, d_equi) = coord_proj(equis)

    tq = q_msg.shape[0]
    n = k_msg.shape[0]
    d_ff = w1q_ref.shape[1]
    n_attn = n_heads + d_equi

    # ---- first MLP layer, decomposed (node-level parts stay O(N)) ----
    hq = jnp.dot(q_msg, w1q_ref[...], preferred_element_type=jnp.float32) + b1_ref[...]  # (TQ, d_ff)
    hk = jnp.dot(k_msg, w1k_ref[...], preferred_element_type=jnp.float32)                # (N,  d_ff)

    # ---- pairwise features: equivariant dot products (+ edge features) ----
    # dots[q, k, e] = sum_c equi[q, c, e] * equi[k, c, e]
    dots = (qe[:, 0, :][:, None, :] * ke[:, 0, :][None, :, :]
            + qe[:, 1, :][:, None, :] * ke[:, 1, :][None, :, :]
            + qe[:, 2, :][:, None, :] * ke[:, 2, :][None, :, :])       # (TQ, N, d_equi)
    pair = jnp.concatenate([dots, edges], axis=-1)                     # (TQ, N, d_equi + d_edge_in)
    d_pair = pair.shape[-1]
    hp = jnp.dot(pair.reshape(tq * n, d_pair), w1p_ref[...],
                 preferred_element_type=jnp.float32)                   # (TQ*N, d_ff)  [MXU]

    hidden = hp.reshape(tq, n, d_ff) + hq[:, None, :] + hk[None, :, :]
    act = hidden * jax.nn.sigmoid(hidden)                              # SiLU

    msg = jnp.dot(act.reshape(tq * n, d_ff), w2_ref[...],
                  preferred_element_type=jnp.float32) + b2_ref[...]    # (TQ*N, d_out) [MXU]
    d_out = msg.shape[-1]
    msg = msg.reshape(tq, n, d_out)                                    # (TQ, N, d_out)

    # ---- edge-feature output slice of the messages ----
    edge_out_ref[0] = msg[:, :, n_attn:]                               # (TQ, N, d_edge_out)

    # ---- single softmax over the kv axis for ALL attention channels ----
    bias = jnp.where(adj > 0, 0.0, _MASK_VALUE)                        # (TQ, N)
    logits = msg[:, :, :n_attn] + bias[:, :, None]                     # (TQ, N, n_attn)
    m = jnp.max(logits, axis=1, keepdims=True)                         # (TQ, 1, n_attn)
    e = jnp.exp(logits - m)
    denom = jnp.sum(e, axis=1, keepdims=True)                          # (TQ, 1, n_attn)
    attn = e * (1.0 / denom)                                           # (TQ, N, n_attn)
    w = jnp.sqrt(jnp.sum(attn * attn, axis=1))                         # (TQ, n_attn)

    # ---- invariant (multi-head) attention: heads concatenated on lanes ----
    inv_cols = []
    for h in range(n_heads):
        attn_h = attn[:, :, h]                                         # (TQ, N)
        vh = inv_h[:, h * d_head:(h + 1) * d_head]                     # (N, d_head)
        inv_cols.append(jnp.dot(attn_h, vh, preferred_element_type=jnp.float32)
                        * w[:, h:h + 1])
    inv_out_ref[0] = jnp.concatenate(inv_cols, axis=-1)                # (TQ, d_inv)

    # ---- equivariant attention: elementwise contraction over kv (no tiny matmuls) ----
    attn_e = attn[:, :, n_heads:]                                      # (TQ, N, d_equi)
    w_e = w[:, n_heads:]                                               # (TQ, d_equi)
    rows = [jnp.sum(attn_e * pe[None, :, c, :], axis=1) * w_e          # (TQ, d_equi) per coord
            for c in range(3)]
    equi_out_ref[0] = jnp.concatenate(rows, axis=-1)                   # (TQ, 3*d_equi), coord-major


# ---------------------------------------------------------------------------
# Wrapper (node-level linear layers are XLA glue; the O(N^2) work is the kernel)
# ---------------------------------------------------------------------------
def semla_self_attention(params, equis, invs, edges, adj_matrix, *, n_heads, tq=None):
    """equis (B,N,3,d_equi), invs (B,N,d_inv), edges (B,N,N,d_edge_in),
    adj_matrix (B,N,N) -> (equi_updates, inv_updates, edge_feats)."""
    B, N, _, d_equi = equis.shape
    d_inv = invs.shape[-1]
    d_edge_in = edges.shape[-1]
    d_message = params["wq"].shape[0]
    d_ff = params["w1"].shape[0]
    d_out = params["w2"].shape[0]
    d_edge_out = d_out - n_heads - d_equi
    d_head = d_inv // n_heads
    assert d_inv % n_heads == 0 and d_edge_out > 0

    if tq is None:
        tq = N                     # small N: one row tile.  For large N pick a
    assert N % tq == 0             # multiple of 8 (smaller on v7x: ~64 MiB VMEM).
    assert tq == N or tq % 8 == 0
    grid = (B, N // tq)

    f32 = jnp.float32
    equis = equis.astype(f32)
    invs = invs.astype(f32)
    edges = edges.astype(f32)
    adj = adj_matrix.astype(f32)

    # node-level projections (glue)
    q_msg = invs @ params["wq"].T + params["bq"]                        # (B, N, d_message)
    k_msg = invs @ params["wk"].T + params["bk"]                        # (B, N, d_message)
    inv_heads = invs @ params["w_in"].T + params["b_in"]                # (B, N, d_inv)
    proj_equi = jnp.einsum("bncd,ed->bnce", equis, params["w_coord"])   # (B, N, 3, d_equi)

    # message-MLP weights, split by pairwise-feature block (q | k | [dot, edge])
    w1t = params["w1"].T.astype(f32)                                    # (in_feats, d_ff)
    w1q_t = w1t[:d_message]
    w1k_t = w1t[d_message:2 * d_message]
    w1p_t = w1t[2 * d_message:]                                         # (d_equi + d_edge_in, d_ff)
    b1 = params["b1"].astype(f32)[None, :]                              # (1, d_ff)
    w2_t = params["w2"].T.astype(f32)                                   # (d_ff, d_out)
    b2 = params["b2"].astype(f32)[None, :]                              # (1, d_out)

    kernel = functools.partial(_semla_fused_kernel, n_heads, d_head, d_equi)

    inv_raw, equi_raw, edge_out = pl.pallas_call(
        kernel,
        out_shape=(
            jax.ShapeDtypeStruct((B, N, d_inv), f32),
            jax.ShapeDtypeStruct((B, N, 3 * d_equi), f32),
            jax.ShapeDtypeStruct((B, N, N, d_edge_out), f32),
        ),
        grid=grid,
        in_specs=[
            pl.BlockSpec((1, tq, d_message), lambda b, qt: (b, qt, 0)),          # q_msg
            pl.BlockSpec((1, N, d_message), lambda b, qt: (b, 0, 0)),            # k_msg
            pl.BlockSpec((1, tq, 3, d_equi), lambda b, qt: (b, qt, 0, 0)),       # equis (q rows)
            pl.BlockSpec((1, N, 3, d_equi), lambda b, qt: (b, 0, 0, 0)),         # equis (kv rows)
            pl.BlockSpec((1, tq, N, d_edge_in), lambda b, qt: (b, qt, 0, 0)),    # edges
            pl.BlockSpec((1, tq, N), lambda b, qt: (b, qt, 0)),                  # adjacency
            pl.BlockSpec((1, N, d_inv), lambda b, qt: (b, 0, 0)),                # in_proj(invs)
            pl.BlockSpec((1, N, 3, d_equi), lambda b, qt: (b, 0, 0, 0)),         # coord_proj(equis)
            pl.BlockSpec((d_message, d_ff), lambda b, qt: (0, 0)),               # W1 (q slice)
            pl.BlockSpec((d_message, d_ff), lambda b, qt: (0, 0)),               # W1 (k slice)
            pl.BlockSpec((d_equi + d_edge_in, d_ff), lambda b, qt: (0, 0)),      # W1 (dot+edge)
            pl.BlockSpec((1, d_ff), lambda b, qt: (0, 0)),                       # b1
            pl.BlockSpec((d_ff, d_out), lambda b, qt: (0, 0)),                   # W2
            pl.BlockSpec((1, d_out), lambda b, qt: (0, 0)),                      # b2
        ],
        out_specs=(
            pl.BlockSpec((1, tq, d_inv), lambda b, qt: (b, qt, 0)),
            pl.BlockSpec((1, tq, 3 * d_equi), lambda b, qt: (b, qt, 0)),
            pl.BlockSpec((1, tq, N, d_edge_out), lambda b, qt: (b, qt, 0, 0)),
        ),
        compiler_params=pltpu.CompilerParams(
            dimension_semantics=("parallel", "parallel")),
    )(q_msg, k_msg, equis, equis, edges, adj, inv_heads, proj_equi,
      w1q_t, w1k_t, w1p_t, b1, w2_t, b2)

    # final node-level projections (glue)
    inv_updates = inv_raw @ params["w_out"].T + params["b_out"]              # (B, N, d_inv)
    equi_pre = equi_raw.reshape(B, N, 3, d_equi)                             # free (contiguous) view
    equi_updates = jnp.einsum("bncd,ed->bnce", equi_pre, params["w_attn"])   # attn_proj (no bias)

    return equi_updates, inv_updates, edge_out


# ---------------------------------------------------------------------------
# Pure-JAX reference (mirror of the PyTorch forward) for verification
# ---------------------------------------------------------------------------
def reference_forward(params, equis, invs, edges, adj, *, n_heads, d_equi):
    B, N, _, _ = equis.shape
    dm = params["wq"].shape[0]

    q_msg = invs @ params["wq"].T + params["bq"]
    k_msg = invs @ params["wk"].T + params["bk"]
    dot = jnp.einsum("bqcd,bkcd->bqkd", equis, equis)                        # (B,N,N,d_equi)
    pair = jnp.concatenate([
        jnp.broadcast_to(q_msg[:, :, None, :], (B, N, N, dm)),
        jnp.broadcast_to(k_msg[:, None, :, :], (B, N, N, dm)),
        dot, edges], axis=-1)
    hidden = pair @ params["w1"].T + params["b1"]
    act = hidden * jax.nn.sigmoid(hidden)
    messages = act @ params["w2"].T + params["b2"]                           # (B,N,N,d_out)

    bias = jnp.where(adj > 0, 0.0, _MASK_VALUE)[..., None]                   # (B,N,N,1)

    # invariant attention
    inv_msg = messages[..., :n_heads]
    attn = jax.nn.softmax(inv_msg + bias, axis=2)                            # (B,Nq,Nk,H)
    proj = invs @ params["w_in"].T + params["b_in"]
    d_head = proj.shape[-1] // n_heads
    heads = proj.reshape(B, N, n_heads, d_head)
    attn_out = jnp.einsum("bqkh,bkhd->bqhd", attn, heads)
    w = jnp.sqrt(jnp.sum(attn ** 2, axis=2))                                 # (B,Nq,H)
    attn_out = (attn_out * w[..., None]).reshape(B, N, n_heads * d_head)
    inv_updates = attn_out @ params["w_out"].T + params["b_out"]

    # equivariant attention
    equi_msg = messages[..., n_heads:n_heads + d_equi]
    attn_e = jax.nn.softmax(equi_msg + bias, axis=2)                         # (B,Nq,Nk,E)
    proj_equi = jnp.einsum("bkcd,ed->bkce", equis, params["w_coord"])
    out_e = jnp.einsum("bqke,bkce->bqce", attn_e, proj_equi)
    w_e = jnp.sqrt(jnp.sum(attn_e ** 2, axis=2))                             # (B,Nq,E)
    out_e = out_e * w_e[:, :, None, :]
    equi_updates = jnp.einsum("bqce,fe->bqcf", out_e, params["w_attn"])

    edge_feats = messages[..., n_heads + d_equi:]
    return equi_updates, inv_updates, edge_feats


# ---------------------------------------------------------------------------
def _make_params(key, d_equi, d_inv, d_message, n_heads, d_ff, d_edge_in, d_edge_out):
    in_feats = 2 * d_message + d_equi + d_edge_in
    d_out = n_heads + d_equi + d_edge_out

    def lin(k, o, i, bias=True):
        kw, kb = jax.random.split(k)
        w = jax.random.normal(kw, (o, i), jnp.float32) / math.sqrt(i)
        b = (jax.random.normal(kb, (o,), jnp.float32) * 0.1) if bias else None
        return w, b

    ks = jax.random.split(key, 8)
    wq, bq = lin(ks[0], d_message, d_inv)
    wk, bk = lin(ks[1], d_message, d_inv)
    w1, b1 = lin(ks[2], d_ff, in_feats)
    w2, b2 = lin(ks[3], d_out, d_ff)
    w_in, b_in = lin(ks[4], d_inv, d_inv)
    w_out, b_out = lin(ks[5], d_inv, d_inv)
    w_coord, _ = lin(ks[6], d_equi, d_equi, bias=False)
    w_attn, _ = lin(ks[7], d_equi, d_equi, bias=False)
    return dict(wq=wq, bq=bq, wk=wk, bk=bk, w1=w1, b1=b1, w2=w2, b2=b2,
                w_in=w_in, b_in=b_in, w_out=w_out, b_out=b_out,
                w_coord=w_coord, w_attn=w_attn)


if __name__ == "__main__":
    # keep kernel and reference matmuls at the same (full f32) precision
    jax.config.update("jax_default_matmul_precision", "highest")

    key = jax.random.PRNGKey(0)
    B, N = 2, 16
    d_equi, d_inv, d_message, n_heads, d_ff = 8, 32, 16, 4, 64
    d_edge_in, d_edge_out = 8, 4

    kp, ke_, ki, kd, ka = jax.random.split(key, 5)
    params = _make_params(kp, d_equi, d_inv, d_message, n_heads, d_ff, d_edge_in, d_edge_out)
    equis = jax.random.normal(ke_, (B, N, 3, d_equi), jnp.float32)
    invs = jax.random.normal(ki, (B, N, d_inv), jnp.float32)
    edges = jax.random.normal(kd, (B, N, N, d_edge_in), jnp.float32)
    adj = (jax.random.uniform(ka, (B, N, N)) > 0.35).astype(jnp.float32)
    adj = jnp.maximum(adj, jnp.eye(N, dtype=jnp.float32)[None])   # ensure self-connections

    equi_u, inv_u, edge_f = semla_self_attention(
        params, equis, invs, edges, adj, n_heads=n_heads)
    jax.block_until_ready((equi_u, inv_u, edge_f))

    equi_r, inv_r, edge_r = reference_forward(
        params, equis, invs, edges, adj, n_heads=n_heads, d_equi=d_equi)

    np.testing.assert_allclose(np.asarray(inv_u), np.asarray(inv_r), rtol=5e-3, atol=5e-3)
    np.testing.assert_allclose(np.asarray(equi_u), np.asarray(equi_r), rtol=5e-3, atol=5e-3)
    np.testing.assert_allclose(np.asarray(edge_f), np.asarray(edge_r), rtol=5e-3, atol=5e-3)
    print("KERNEL_OK")
</pallas_src>

<mosaic_0001>
module attributes {stable_mosaic.version = 11 : i64} {
  func.func @_semla_fused_kernel(%arg0: i32, %arg1: i32, %arg2: memref<1x16x16xf32, #tpu.memory_space<vmem>>, %arg3: memref<1x16x16xf32, #tpu.memory_space<vmem>>, %arg4: memref<1x16x3x8xf32, #tpu.memory_space<vmem>>, %arg5: memref<1x16x3x8xf32, #tpu.memory_space<vmem>>, %arg6: memref<1x16x16x8xf32, #tpu.memory_space<vmem>>, %arg7: memref<1x16x16xf32, #tpu.memory_space<vmem>>, %arg8: memref<1x16x32xf32, #tpu.memory_space<vmem>>, %arg9: memref<1x16x3x8xf32, #tpu.memory_space<vmem>>, %arg10: memref<16x64xf32, #tpu.memory_space<vmem>>, %arg11: memref<16x64xf32, #tpu.memory_space<vmem>>, %arg12: memref<16x64xf32, #tpu.memory_space<vmem>>, %arg13: memref<1x64xf32, #tpu.memory_space<vmem>>, %arg14: memref<64x16xf32, #tpu.memory_space<vmem>>, %arg15: memref<1x16xf32, #tpu.memory_space<vmem>>, %arg16: memref<1x16x32xf32, #tpu.memory_space<vmem>>, %arg17: memref<1x16x24xf32, #tpu.memory_space<vmem>>, %arg18: memref<1x16x16x4xf32, #tpu.memory_space<vmem>>) attributes {dimension_semantics = [#tpu.dimension_semantics<parallel>, #tpu.dimension_semantics<parallel>], iteration_bounds = array<i64: 2, 1>, scalar_prefetch = 0 : i64, scratch_operands = 0 : i64, tpu.core_type = #tpu.core_type<tc>, window_params = [{transform_indices = @transform_0, window_bounds = array<i64: 1, 16, 16>}, {transform_indices = @transform_1, window_bounds = array<i64: 1, 16, 16>}, {transform_indices = @transform_2, window_bounds = array<i64: 1, 16, 3, 8>}, {transform_indices = @transform_3, window_bounds = array<i64: 1, 16, 3, 8>}, {transform_indices = @transform_4, window_bounds = array<i64: 1, 16, 16, 8>}, {transform_indices = @transform_5, window_bounds = array<i64: 1, 16, 16>}, {transform_indices = @transform_6, window_bounds = array<i64: 1, 16, 32>}, {transform_indices = @transform_7, window_bounds = array<i64: 1, 16, 3, 8>}, {pipeline_mode = #tpu.pipeline_mode<synchronous>, transform_indices = @transform_8, window_bounds = array<i64: 16, 64>}, {pipeline_mode = #tpu.pipeline_mode<synchronous>, transform_indices = @transform_9, window_bounds = array<i64: 16, 64>}, {pipeline_mode = #tpu.pipeline_mode<synchronous>, transform_indices = @transform_10, window_bounds = array<i64: 16, 64>}, {pipeline_mode = #tpu.pipeline_mode<synchronous>, transform_indices = @transform_11, window_bounds = array<i64: 1, 64>}, {pipeline_mode = #tpu.pipeline_mode<synchronous>, transform_indices = @transform_12, window_bounds = array<i64: 64, 16>}, {pipeline_mode = #tpu.pipeline_mode<synchronous>, transform_indices = @transform_13, window_bounds = array<i64: 1, 16>}, {transform_indices = @transform_14, window_bounds = array<i64: 1, 16, 32>}, {transform_indices = @transform_15, window_bounds = array<i64: 1, 16, 24>}, {transform_indices = @transform_16, window_bounds = array<i64: 1, 16, 16, 4>}]} {
    %c0 = arith.constant 0 : index
    %c0_0 = arith.constant 0 : index
    %c0_1 = arith.constant 0 : index
    %0 = vector.load %arg2[%c0, %c0_0, %c0_1] : memref<1x16x16xf32, #tpu.memory_space<vmem>>, vector<1x16x16xf32>
    %1 = vector.shape_cast %0 : vector<1x16x16xf32> to vector<16x16xf32>
    %c0_2 = arith.constant 0 : index
    %c0_3 = arith.constant 0 : index
    %c0_4 = arith.constant 0 : index
    %2 = vector.load %arg3[%c0_2, %c0_3, %c0_4] : memref<1x16x16xf32, #tpu.memory_space<vmem>>, vector<1x16x16xf32>
    %3 = vector.shape_cast %2 : vector<1x16x16xf32> to vector<16x16xf32>
    %c0_5 = arith.constant 0 : index
    %c0_6 = arith.constant 0 : index
    %c0_7 = arith.constant 0 : index
    %c0_8 = arith.constant 0 : index
    %4 = vector.load %arg4[%c0_5, %c0_6, %c0_7, %c0_8] : memref<1x16x3x8xf32, #tpu.memory_space<vmem>>, vector<1x16x3x8xf32>
    %5 = vector.shape_cast %4 : vector<1x16x3x8xf32> to vector<16x3x8xf32>
    %c0_9 = arith.constant 0 : index
    %c0_10 = arith.constant 0 : index
    %c0_11 = arith.constant 0 : index
    %c0_12 = arith.constant 0 : index
    %6 = vector.load %arg5[%c0_9, %c0_10, %c0_11, %c0_12] : memref<1x16x3x8xf32, #tpu.memory_space<vmem>>, vector<1x16x3x8xf32>
    %7 = vector.shape_cast %6 : vector<1x16x3x8xf32> to vector<16x3x8xf32>
    %c0_13 = arith.constant 0 : index
    %c0_14 = arith.constant 0 : index
    %c0_15 = arith.constant 0 : index
    %c0_16 = arith.constant 0 : index
    %8 = vector.load %arg6[%c0_13, %c0_14, %c0_15, %c0_16] : memref<1x16x16x8xf32, #tpu.memory_space<vmem>>, vector<1x16x16x8xf32>
    %9 = vector.shape_cast %8 : vector<1x16x16x8xf32> to vector<16x16x8xf32>
    %c0_17 = arith.constant 0 : index
    %c0_18 = arith.constant 0 : index
    %c0_19 = arith.constant 0 : index
    %10 = vector.load %arg7[%c0_17, %c0_18, %c0_19] : memref<1x16x16xf32, #tpu.memory_space<vmem>>, vector<1x16x16xf32>
    %11 = vector.shape_cast %10 : vector<1x16x16xf32> to vector<16x16xf32>
    %c0_20 = arith.constant 0 : index
    %c0_21 = arith.constant 0 : index
    %c0_22 = arith.constant 0 : index
    %12 = vector.load %arg8[%c0_20, %c0_21, %c0_22] : memref<1x16x32xf32, #tpu.memory_space<vmem>>, vector<1x16x32xf32>
    %13 = vector.shape_cast %12 : vector<1x16x32xf32> to vector<16x32xf32>
    %c0_23 = arith.constant 0 : index
    %c0_24 = arith.constant 0 : index
    %c0_25 = arith.constant 0 : index
    %c0_26 = arith.constant 0 : index
    %14 = vector.load %arg9[%c0_23, %c0_24, %c0_25, %c0_26] : memref<1x16x3x8xf32, #tpu.memory_space<vmem>>, vector<1x16x3x8xf32>
    %15 = vector.shape_cast %14 : vector<1x16x3x8xf32> to vector<16x3x8xf32>
    %c0_27 = arith.constant 0 : index
    %c0_28 = arith.constant 0 : index
    %16 = vector.load %arg10[%c0_27, %c0_28] : memref<16x64xf32, #tpu.memory_space<vmem>>, vector<16x64xf32>
    %cst = arith.constant dense<0.000000e+00> : vector<16x64xf32>
    %17 = tpu.matmul %1, %16, %cst {dimension_numbers = #tpu.dot_dimension_numbers<[1], [0], [0], [1], [0, 0, 1, 1], [], []>, precision = #tpu.contract_precision<fp32>} : vector<16x16xf32>, vector<16x64xf32>, vector<16x64xf32> -> vector<16x64xf32>
    %c0_29 = arith.constant 0 : index
    %c0_30 = arith.constant 0 : index
    %18 = vector.load %arg13[%c0_29, %c0_30] : memref<1x64xf32, #tpu.memory_space<vmem>>, vector<1x64xf32>
    %19 = vector.broadcast %18 : vector<1x64xf32> to vector<16x64xf32>
    %20 = arith.addf %17, %19 : vector<16x64xf32>
    %c0_31 = arith.constant 0 : index
    %c0_32 = arith.constant 0 : index
    %21 = vector.load %arg11[%c0_31, %c0_32] : memref<16x64xf32, #tpu.memory_space<vmem>>, vector<16x64xf32>
    %cst_33 = arith.constant dense<0.000000e+00> : vector<16x64xf32>
    %22 = tpu.matmul %3, %21, %cst_33 {dimension_numbers = #tpu.dot_dimension_numbers<[1], [0], [0], [1], [0, 0, 1, 1], [], []>, precision = #tpu.contract_precision<fp32>} : vector<16x16xf32>, vector<16x64xf32>, vector<16x64xf32> -> vector<16x64xf32>
    %23 = vector.extract_strided_slice %5 {offsets = [0, 0, 0], sizes = [16, 1, 8], strides = [1, 1, 1]} : vector<16x3x8xf32> to vector<16x1x8xf32>
    %24 = vector.shape_cast %23 : vector<16x1x8xf32> to vector<16x8xf32>
    %25 = vector.shape_cast %24 : vector<16x8xf32> to vector<16x1x8xf32>
    %26 = vector.extract_strided_slice %7 {offsets = [0, 0, 0], sizes = [16, 1, 8], strides = [1, 1, 1]} : vector<16x3x8xf32> to vector<16x1x8xf32>
    %27 = vector.shape_cast %26 : vector<16x1x8xf32> to vector<16x8xf32>
    %28 = vector.shape_cast %27 : vector<16x8xf32> to vector<1x16x8xf32>
    %29 = vector.broadcast %25 : vector<16x1x8xf32> to vector<16x16x8xf32>
    %30 = vector.broadcast %28 : vector<1x16x8xf32> to vector<16x16x8xf32>
    %31 = arith.mulf %29, %30 : vector<16x16x8xf32>
    %32 = vector.extract_strided_slice %5 {offsets = [0, 1, 0], sizes = [16, 1, 8], strides = [1, 1, 1]} : vector<16x3x8xf32> to vector<16x1x8xf32>
    %33 = vector.shape_cast %32 : vector<16x1x8xf32> to vector<16x8xf32>
    %34 = vector.shape_cast %33 : vector<16x8xf32> to vector<16x1x8xf32>
    %35 = vector.extract_strided_slice %7 {offsets = [0, 1, 0], sizes = [16, 1, 8], strides = [1, 1, 1]} : vector<16x3x8xf32> to vector<16x1x8xf32>
    %36 = vector.shape_cast %35 : vector<16x1x8xf32> to vector<16x8xf32>
    %37 = vector.shape_cast %36 : vector<16x8xf32> to vector<1x16x8xf32>
    %38 = vector.broadcast %34 : vector<16x1x8xf32> to vector<16x16x8xf32>
    %39 = vector.broadcast %37 : vector<1x16x8xf32> to vector<16x16x8xf32>
    %40 = arith.mulf %38, %39 : vector<16x16x8xf32>
    %41 = arith.addf %31, %40 : vector<16x16x8xf32>
    %42 = vector.extract_strided_slice %5 {offsets = [0, 2, 0], sizes = [16, 1, 8], strides = [1, 1, 1]} : vector<16x3x8xf32> to vector<16x1x8xf32>
    %43 = vector.shape_cast %42 : vector<16x1x8xf32> to vector<16x8xf32>
    %44 = vector.shape_cast %43 : vector<16x8xf32> to vector<16x1x8xf32>
    %45 = vector.extract_strided_slice %7 {offsets = [0, 2, 0], sizes = [16, 1, 8], strides = [1, 1, 1]} : vector<16x3x8xf32> to vector<16x1x8xf32>
    %46 = vector.shape_cast %45 : vector<16x1x8xf32> to vector<16x8xf32>
    %47 = vector.shape_cast %46 : vector<16x8xf32> to vector<1x16x8xf32>
    %48 = vector.broadcast %44 : vector<16x1x8xf32> to vector<16x16x8xf32>
    %49 = vector.broadcast %47 : vector<1x16x8xf32> to vector<16x16x8xf32>
    %50 = arith.mulf %48, %49 : vector<16x16x8xf32>
    %51 = arith.addf %41, %50 : vector<16x16x8xf32>
    %52 = tpu.concatenate %51, %9 in 2 : vector<16x16x8xf32>, vector<16x16x8xf32> -> vector<16x16x16xf32>
    %53 = vector.shape_cast %52 : vector<16x16x16xf32> to vector<256x16xf32>
    %c0_34 = arith.constant 0 : index
    %c0_35 = arith.constant 0 : index
    %54 = vector.load %arg12[%c0_34, %c0_35] : memref<16x64xf32, #tpu.memory_space<vmem>>, vector<16x64xf32>
    %cst_36 = arith.constant dense<0.000000e+00> : vector<256x64xf32>
    %55 = tpu.matmul %53, %54, %cst_36 {dimension_numbers = #tpu.dot_dimension_numbers<[1], [0], [0], [1], [0, 0, 1, 1], [], []>, precision = #tpu.contract_precision<fp32>} : vector<256x16xf32>, vector<16x64xf32>, vector<256x64xf32> -> vector<256x64xf32>
    %56 = vector.shape_cast %55 : vector<256x64xf32> to vector<16x16x64xf32>
    %57 = vector.shape_cast %20 : vector<16x64xf32> to vector<16x1x64xf32>
    %58 = vector.broadcast %57 : vector<16x1x64xf32> to vector<16x16x64xf32>
    %59 = arith.addf %56, %58 : vector<16x16x64xf32>
    %60 = vector.shape_cast %22 : vector<16x64xf32> to vector<1x16x64xf32>
    %61 = vector.broadcast %60 : vector<1x16x64xf32> to vector<16x16x64xf32>
    %62 = arith.addf %59, %61 : vector<16x16x64xf32>
    %63 = arith.negf %62 : vector<16x16x64xf32>
    %64 = math.exp %63 : vector<16x16x64xf32>
    %cst_37 = arith.constant 1.000000e+00 : f32
    %65 = vector.broadcast %cst_37 : f32 to vector<16x16x64xf32>
    %66 = arith.addf %65, %64 : vector<16x16x64xf32>
    %67 = arith.divf %65, %66 : vector<16x16x64xf32>
    %68 = arith.mulf %62, %67 : vector<16x16x64xf32>
    %69 = vector.shape_cast %68 : vector<16x16x64xf32> to vector<256x64xf32>
    %c0_38 = arith.constant 0 : index
    %c0_39 = arith.constant 0 : index
    %70 = vector.load %arg14[%c0_38, %c0_39] : memref<64x16xf32, #tpu.memory_space<vmem>>, vector<64x16xf32>
    %cst_40 = arith.constant dense<0.000000e+00> : vector<256x16xf32>
    %71 = tpu.matmul %69, %70, %cst_40 {dimension_numbers = #tpu.dot_dimension_numbers<[1], [0], [0], [1], [0, 0, 1, 1], [], []>, precision = #tpu.contract_precision<fp32>} : vector<256x64xf32>, vector<64x16xf32>, vector<256x16xf32> -> vector<256x16xf32>
    %c0_41 = arith.constant 0 : index
    %c0_42 = arith.constant 0 : index
    %72 = vector.load %arg15[%c0_41, %c0_42] : memref<1x16xf32, #tpu.memory_space<vmem>>, vector<1x16xf32>
    %73 = vector.broadcast %72 : vector<1x16xf32> to vector<256x16xf32>
    %74 = arith.addf %71, %73 : vector<256x16xf32>
    %75 = vector.shape_cast %74 : vector<256x16xf32> to vector<16x16x16xf32>
    %76 = vector.extract_strided_slice %75 {offsets = [0, 0, 12], sizes = [16, 16, 4], strides = [1, 1, 1]} : vector<16x16x16xf32> to vector<16x16x4xf32>
    %c0_43 = arith.constant 0 : index
    %c0_44 = arith.constant 0 : index
    %c0_45 = arith.constant 0 : index
    %c0_46 = arith.constant 0 : index
    %77 = vector.load %arg18[%c0_43, %c0_44, %c0_45, %c0_46] : memref<1x16x16x4xf32, #tpu.memory_space<vmem>>, vector<1x16x16x4xf32>
    %78 = vector.shape_cast %77 : vector<1x16x16x4xf32> to vector<16x16x4xf32>
    %79 = vector.shape_cast %76 : vector<16x16x4xf32> to vector<1x16x16x4xf32>
    tpu.vector_store %arg18[%c0_43, %c0_44, %c0_45, %c0_46], %79 {strides = array<i32>} : memref<1x16x16x4xf32, #tpu.memory_space<vmem>>, vector<1x16x16x4xf32>,
    %cst_47 = arith.constant 0.000000e+00 : f32
    %80 = vector.broadcast %cst_47 : f32 to vector<16x16xf32>
    %81 = arith.cmpf ogt, %11, %80 : vector<16x16xf32>
    %cst_48 = arith.constant 0.000000e+00 : f32
    %cst_49 = arith.constant -1.000000e+30 : f32
    %82 = vector.broadcast %cst_48 : f32 to vector<16x16xf32>
    %83 = vector.broadcast %cst_49 : f32 to vector<16x16xf32>
    %84 = arith.select %81, %82, %83 : vector<16x16xi1>, vector<16x16xf32>
    %85 = vector.extract_strided_slice %75 {offsets = [0, 0, 0], sizes = [16, 16, 12], strides = [1, 1, 1]} : vector<16x16x16xf32> to vector<16x16x12xf32>
    %86 = vector.shape_cast %84 : vector<16x16xf32> to vector<16x16x1xf32>
    %87 = vector.broadcast %86 : vector<16x16x1xf32> to vector<16x16x12xf32>
    %88 = arith.addf %85, %87 : vector<16x16x12xf32>
    %cst_50 = arith.constant dense<0xFF800000> : vector<16x12xf32>
    %89 = vector.multi_reduction <maximumf>, %88, %cst_50 [1] : vector<16x16x12xf32> to vector<16x12xf32>
    %90 = vector.shape_cast %89 : vector<16x12xf32> to vector<16x1x12xf32>
    %91 = vector.broadcast %90 : vector<16x1x12xf32> to vector<16x16x12xf32>
    %92 = arith.subf %88, %91 : vector<16x16x12xf32>
    %93 = math.exp %92 : vector<16x16x12xf32>
    %cst_51 = arith.constant dense<0.000000e+00> : vector<16x12xf32>
    %94 = vector.multi_reduction <add>, %93, %cst_51 [1] : vector<16x16x12xf32> to vector<16x12xf32>
    %95 = vector.shape_cast %94 : vector<16x12xf32> to vector<16x1x12xf32>
    %cst_52 = arith.constant 1.000000e+00 : f32
    %96 = vector.broadcast %cst_52 : f32 to vector<16x1x12xf32>
    %97 = arith.divf %96, %95 : vector<16x1x12xf32>
    %98 = vector.broadcast %97 : vector<16x1x12xf32> to vector<16x16x12xf32>
    %99 = arith.mulf %93, %98 : vector<16x16x12xf32>
    %100 = arith.mulf %99, %99 : vector<16x16x12xf32>
    %cst_53 = arith.constant dense<0.000000e+00> : vector<16x12xf32>
    %101 = vector.multi_reduction <add>, %100, %cst_53 [1] : vector<16x16x12xf32> to vector<16x12xf32>
    %102 = math.sqrt %101 : vector<16x12xf32>
    %103 = vector.extract_strided_slice %99 {offsets = [0, 0, 0], sizes = [16, 16, 1], strides = [1, 1, 1]} : vector<16x16x12xf32> to vector<16x16x1xf32>
    %104 = vector.shape_cast %103 : vector<16x16x1xf32> to vector<16x16xf32>
    %105 = vector.extract_strided_slice %13 {offsets = [0, 0], sizes = [16, 8], strides = [1, 1]} : vector<16x32xf32> to vector<16x8xf32>
    %cst_54 = arith.constant dense<0.000000e+00> : vector<16x8xf32>
    %106 = tpu.matmul %104, %105, %cst_54 {dimension_numbers = #tpu.dot_dimension_numbers<[1], [0], [0], [1], [0, 0, 1, 1], [], []>, precision = #tpu.contract_precision<fp32>} : vector<16x16xf32>, vector<16x8xf32>, vector<16x8xf32> -> vector<16x8xf32>
    %107 = vector.extract_strided_slice %102 {offsets = [0, 0], sizes = [16, 1], strides = [1, 1]} : vector<16x12xf32> to vector<16x1xf32>
    %108 = vector.broadcast %107 : vector<16x1xf32> to vector<16x8xf32>
    %109 = arith.mulf %106, %108 : vector<16x8xf32>
    %110 = vector.extract_strided_slice %99 {offsets = [0, 0, 1], sizes = [16, 16, 1], strides = [1, 1, 1]} : vector<16x16x12xf32> to vector<16x16x1xf32>
    %111 = vector.shape_cast %110 : vector<16x16x1xf32> to vector<16x16xf32>
    %112 = vector.extract_strided_slice %13 {offsets = [0, 8], sizes = [16, 8], strides = [1, 1]} : vector<16x32xf32> to vector<16x8xf32>
    %cst_55 = arith.constant dense<0.000000e+00> : vector<16x8xf32>
    %113 = tpu.matmul %111, %112, %cst_55 {dimension_numbers = #tpu.dot_dimension_numbers<[1], [0], [0], [1], [0, 0, 1, 1], [], []>, precision = #tpu.contract_precision<fp32>} : vector<16x16xf32>, vector<16x8xf32>, vector<16x8xf32> -> vector<16x8xf32>
    %114 = vector.extract_strided_slice %102 {offsets = [0, 1], sizes = [16, 1], strides = [1, 1]} : vector<16x12xf32> to vector<16x1xf32>
    %115 = vector.broadcast %114 : vector<16x1xf32> to vector<16x8xf32>
    %116 = arith.mulf %113, %115 : vector<16x8xf32>
    %117 = vector.extract_strided_slice %99 {offsets = [0, 0, 2], sizes = [16, 16, 1], strides = [1, 1, 1]} : vector<16x16x12xf32> to vector<16x16x1xf32>
    %118 = vector.shape_cast %117 : vector<16x16x1xf32> to vector<16x16xf32>
    %119 = vector.extract_strided_slice %13 {offsets = [0, 16], sizes = [16, 8], strides = [1, 1]} : vector<16x32xf32> to vector<16x8xf32>
    %cst_56 = arith.constant dense<0.000000e+00> : vector<16x8xf32>
    %120 = tpu.matmul %118, %119, %cst_56 {dimension_numbers = #tpu.dot_dimension_numbers<[1], [0], [0], [1], [0, 0, 1, 1], [], []>, precision = #tpu.contract_precision<fp32>} : vector<16x16xf32>, vector<16x8xf32>, vector<16x8xf32> -> vector<16x8xf32>
    %121 = vector.extract_strided_slice %102 {offsets = [0, 2], sizes = [16, 1], strides = [1, 1]} : vector<16x12xf32> to vector<16x1xf32>
    %122 = vector.broadcast %121 : vector<16x1xf32> to vector<16x8xf32>
    %123 = arith.mulf %120, %122 : vector<16x8xf32>
    %124 = vector.extract_strided_slice %99 {offsets = [0, 0, 3], sizes = [16, 16, 1], strides = [1, 1, 1]} : vector<16x16x12xf32> to vector<16x16x1xf32>
    %125 = vector.shape_cast %124 : vector<16x16x1xf32> to vector<16x16xf32>
    %126 = vector.extract_strided_slice %13 {offsets = [0, 24], sizes = [16, 8], strides = [1, 1]} : vector<16x32xf32> to vector<16x8xf32>
    %cst_57 = arith.constant dense<0.000000e+00> : vector<16x8xf32>
    %127 = tpu.matmul %125, %126, %cst_57 {dimension_numbers = #tpu.dot_dimension_numbers<[1], [0], [0], [1], [0, 0, 1, 1], [], []>, precision = #tpu.contract_precision<fp32>} : vector<16x16xf32>, vector<16x8xf32>, vector<16x8xf32> -> vector<16x8xf32>
    %128 = vector.extract_strided_slice %102 {offsets = [0, 3], sizes = [16, 1], strides = [1, 1]} : vector<16x12xf32> to vector<16x1xf32>
    %129 = vector.broadcast %128 : vector<16x1xf32> to vector<16x8xf32>
    %130 = arith.mulf %127, %129 : vector<16x8xf32>
    %131 = tpu.concatenate %109, %116, %123, %130 in 1 : vector<16x8xf32>, vector<16x8xf32>, vector<16x8xf32>, vector<16x8xf32> -> vector<16x32xf32>
    %c0_58 = arith.constant 0 : index
    %c0_59 = arith.constant 0 : index
    %c0_60 = arith.constant 0 : index
    %132 = vector.load %arg16[%c0_58, %c0_59, %c0_60] : memref<1x16x32xf32, #tpu.memory_space<vmem>>, vector<1x16x32xf32>
    %133 = vector.shape_cast %132 : vector<1x16x32xf32> to vector<16x32xf32>
    %134 = vector.shape_cast %131 : vector<16x32xf32> to vector<1x16x32xf32>
    tpu.vector_store %arg16[%c0_58, %c0_59, %c0_60], %134 {strides = array<i32>} : memref<1x16x32xf32, #tpu.memory_space<vmem>>, vector<1x16x32xf32>,
    %135 = vector.extract_strided_slice %99 {offsets = [0, 0, 4], sizes = [16, 16, 8], strides = [1, 1, 1]} : vector<16x16x12xf32> to vector<16x16x8xf32>
    %136 = vector.extract_strided_slice %102 {offsets = [0, 4], sizes = [16, 8], strides = [1, 1]} : vector<16x12xf32> to vector<16x8xf32>
    %137 = vector.extract_strided_slice %15 {offsets = [0, 0, 0], sizes = [16, 1, 8], strides = [1, 1, 1]} : vector<16x3x8xf32> to vector<16x1x8xf32>
    %138 = vector.shape_cast %137 : vector<16x1x8xf32> to vector<16x8xf32>
    %139 = vector.shape_cast %138 : vector<16x8xf32> to vector<1x16x8xf32>
    %140 = vector.broadcast %139 : vector<1x16x8xf32> to vector<16x16x8xf32>
    %141 = arith.mulf %135, %140 : vector<16x16x8xf32>
    %cst_61 = arith.constant dense<0.000000e+00> : vector<16x8xf32>
    %142 = vector.multi_reduction <add>, %141, %cst_61 [1] : vector<16x16x8xf32> to vector<16x8xf32>
    %143 = arith.mulf %142, %136 : vector<16x8xf32>
    %144 = vector.extract_strided_slice %15 {offsets = [0, 1, 0], sizes = [16, 1, 8], strides = [1, 1, 1]} : vector<16x3x8xf32> to vector<16x1x8xf32>
    %145 = vector.shape_cast %144 : vector<16x1x8xf32> to vector<16x8xf32>
    %146 = vector.shape_cast %145 : vector<16x8xf32> to vector<1x16x8xf32>
    %147 = vector.broadcast %146 : vector<1x16x8xf32> to vector<16x16x8xf32>
    %148 = arith.mulf %135, %147 : vector<16x16x8xf32>
    %cst_62 = arith.constant dense<0.000000e+00> : vector<16x8xf32>
    %149 = vector.multi_reduction <add>, %148, %cst_62 [1] : vector<16x16x8xf32> to vector<16x8xf32>
    %150 = arith.mulf %149, %136 : vector<16x8xf32>
    %151 = vector.extract_strided_slice %15 {offsets = [0, 2, 0], sizes = [16, 1, 8], strides = [1, 1, 1]} : vector<16x3x8xf32> to vector<16x1x8xf32>
    %152 = vector.shape_cast %151 : vector<16x1x8xf32> to vector<16x8xf32>
    %153 = vector.shape_cast %152 : vector<16x8xf32> to vector<1x16x8xf32>
    %154 = vector.broadcast %153 : vector<1x16x8xf32> to vector<16x16x8xf32>
    %155 = arith.mulf %135, %154 : vector<16x16x8xf32>
    %cst_63 = arith.constant dense<0.000000e+00> : vector<16x8xf32>
    %156 = vector.multi_reduction <add>, %155, %cst_63 [1] : vector<16x16x8xf32> to vector<16x8xf32>
    %157 = arith.mulf %156, %136 : vector<16x8xf32>
    %158 = tpu.concatenate %143, %150, %157 in 1 : vector<16x8xf32>, vector<16x8xf32>, vector<16x8xf32> -> vector<16x24xf32>
    %c0_64 = arith.constant 0 : index
    %c0_65 = arith.constant 0 : index
    %c0_66 = arith.constant 0 : index
    %159 = vector.load %arg17[%c0_64, %c0_65, %c0_66] : memref<1x16x24xf32, #tpu.memory_space<vmem>>, vector<1x16x24xf32>
    %160 = vector.shape_cast %159 : vector<1x16x24xf32> to vector<16x24xf32>
    %161 = vector.shape_cast %158 : vector<16x24xf32> to vector<1x16x24xf32>
    tpu.vector_store %arg17[%c0_64, %c0_65, %c0_66], %161 {strides = array<i32>} : memref<1x16x24xf32, #tpu.memory_space<vmem>>, vector<1x16x24xf32>,
    return
  }
  func.func @transform_0(%arg0: i32, %arg1: i32) -> (i32, i32, i32) {
    %c0_i32 = arith.constant 0 : i32
    %c0_i32_0 = arith.constant 0 : i32
    return %arg0, %arg1, %c0_i32 : i32, i32, i32
  }
  func.func @transform_1(%arg0: i32, %arg1: i32) -> (i32, i32, i32) {
    %c0_i32 = arith.constant 0 : i32
    %c0_i32_0 = arith.constant 0 : i32
    %c0_i32_1 = arith.constant 0 : i32
    return %arg0, %c0_i32, %c0_i32_0 : i32, i32, i32
  }
  func.func @transform_2(%arg0: i32, %arg1: i32) -> (i32, i32, i32, i32) {
    %c0_i32 = arith.constant 0 : i32
    %c0_i32_0 = arith.constant 0 : i32
    %c0_i32_1 = arith.constant 0 : i32
    return %arg0, %arg1, %c0_i32, %c0_i32_0 : i32, i32, i32, i32
  }
  func.func @transform_3(%arg0: i32, %arg1: i32) -> (i32, i32, i32, i32) {
    %c0_i32 = arith.constant 0 : i32
    %c0_i32_0 = arith.constant 0 : i32
    %c0_i32_1 = arith.constant 0 : i32
    %c0_i32_2 = arith.constant 0 : i32
    return %arg0, %c0_i32, %c0_i32_0, %c0_i32_1 : i32, i32, i32, i32
  }
  func.func @transform_4(%arg0: i32, %arg1: i32) -> (i32, i32, i32, i32) {
    %c0_i32 = arith.constant 0 : i32
    %c0_i32_0 = arith.constant 0 : i32
    %c0_i32_1 = arith.constant 0 : i32
    return %arg0, %arg1, %c0_i32, %c0_i32_0 : i32, i32, i32, i32
  }
  func.func @transform_5(%arg0: i32, %arg1: i32) -> (i32, i32, i32) {
    %c0_i32 = arith.constant 0 : i32
    %c0_i32_0 = arith.constant 0 : i32
    return %arg0, %arg1, %c0_i32 : i32, i32, i32
  }
  func.func @transform_6(%arg0: i32, %arg1: i32) -> (i32, i32, i32) {
    %c0_i32 = arith.constant 0 : i32
    %c0_i32_0 = arith.constant 0 : i32
    %c0_i32_1 = arith.constant 0 : i32
    return %arg0, %c0_i32, %c0_i32_0 : i32, i32, i32
  }
  func.func @transform_7(%arg0: i32, %arg1: i32) -> (i32, i32, i32, i32) {
    %c0_i32 = arith.constant 0 : i32
    %c0_i32_0 = arith.constant 0 : i32
    %c0_i32_1 = arith.constant 0 : i32
    %c0_i32_2 = arith.constant 0 : i32
    return %arg0, %c0_i32, %c0_i32_0, %c0_i32_1 : i32, i32, i32, i32
  }
  func.func @transform_8(%arg0: i32, %arg1: i32) -> (i32, i32) {
    %c0_i32 = arith.constant 0 : i32
    %c0_i32_0 = arith.constant 0 : i32
    %c0_i32_1 = arith.constant 0 : i32
    return %c0_i32, %c0_i32_0 : i32, i32
  }
  func.func @transform_9(%arg0: i32, %arg1: i32) -> (i32, i32) {
    %c0_i32 = arith.constant 0 : i32
    %c0_i32_0 = arith.constant 0 : i32
    %c0_i32_1 = arith.constant 0 : i32
    return %c0_i32, %c0_i32_0 : i32, i32
  }
  func.func @transform_10(%arg0: i32, %arg1: i32) -> (i32, i32) {
    %c0_i32 = arith.constant 0 : i32
    %c0_i32_0 = arith.constant 0 : i32
    %c0_i32_1 = arith.constant 0 : i32
    return %c0_i32, %c0_i32_0 : i32, i32
  }
  func.func @transform_11(%arg0: i32, %arg1: i32) -> (i32, i32) {
    %c0_i32 = arith.constant 0 : i32
    %c0_i32_0 = arith.constant 0 : i32
    %c0_i32_1 = arith.constant 0 : i32
    return %c0_i32, %c0_i32_0 : i32, i32
  }
  func.func @transform_12(%arg0: i32, %arg1: i32) -> (i32, i32) {
    %c0_i32 = arith.constant 0 : i32
    %c0_i32_0 = arith.constant 0 : i32
    %c0_i32_1 = arith.constant 0 : i32
    return %c0_i32, %c0_i32_0 : i32, i32
  }
  func.func @transform_13(%arg0: i32, %arg1: i32) -> (i32, i32) {
    %c0_i32 = arith.constant 0 : i32
    %c0_i32_0 = arith.constant 0 : i32
    %c0_i32_1 = arith.constant 0 : i32
    return %c0_i32, %c0_i32_0 : i32, i32
  }
  func.func @transform_14(%arg0: i32, %arg1: i32) -> (i32, i32, i32) {
    %c0_i32 = arith.constant 0 : i32
    %c0_i32_0 = arith.constant 0 : i32
    return %arg0, %arg1, %c0_i32 : i32, i32, i32
  }
  func.func @transform_15(%arg0: i32, %arg1: i32) -> (i32, i32, i32) {
    %c0_i32 = arith.constant 0 : i32
    %c0_i32_0 = arith.constant 0 : i32
    return %arg0, %arg1, %c0_i32 : i32, i32, i32
  }
  func.func @transform_16(%arg0: i32, %arg1: i32) -> (i32, i32, i32, i32) {
    %c0_i32 = arith.constant 0 : i32
    %c0_i32_0 = arith.constant 0 : i32
    %c0_i32_1 = arith.constant 0 : i32
    return %arg0, %arg1, %c0_i32, %c0_i32_0 : i32, i32, i32, i32
  }
}

</mosaic_0001>

<bundles_post_ra>
// kernel: tpu_custom_call.1
= control target key start
LH: loop header
LB: loop body
LE: loop exit
PB: predicated region body
PF: predicated region fallthrough
CT: control target
= control target key end

     0   :  { %s20889_s0 = inlined_call_operand.vmem [shape: f32[2,16,16], index: 0, kind: input, shape index: {}]   ;;  %s20890_s1 = inlined_call_operand.vmem [shape: f32[2,16,16], index: 1, kind: input, shape index: {}]   ;;  %s20891_s2 = inlined_call_operand.vmem [shape: f32[2,16,3,8], index: 2, kind: input, shape index: {}]   ;;  %s20892_s3 = inlined_call_operand.vmem [shape: f32[2,16,3,8], index: 3, kind: input, shape index: {}]   ;;  %s20893_s4 = inlined_call_operand.vmem [shape: f32[2,16,16,8], index: 4, kind: input, shape index: {}]   ;;  %s20894_s5 = inlined_call_operand.vmem [shape: f32[2,16,16], index: 5, kind: input, shape index: {}]   ;;  %s20895_s6 = inlined_call_operand.vmem [shape: f32[2,16,32], index: 6, kind: input, shape index: {}]   ;;  %s20896_s7 = inlined_call_operand.vmem [shape: f32[2,16,3,8], index: 7, kind: input, shape index: {}]   ;;  %s20897_s8 = inlined_call_operand.vmem [shape: f32[16,64], index: 8, kind: input, shape index: {}]   ;;  %s20898_s9 = inlined_call_operand.vmem [shape: f32[16,64], index: 9, kind: input, shape index: {}]   ;;  %s20899_s10 = inlined_call_operand.vmem [shape: f32[16,64], index: 10, kind: input, shape index: {}]   ;;  %s20900_s11 = inlined_call_operand.vmem [shape: f32[1,64], index: 11, kind: input, shape index: {}]   ;;  %s20901_s12 = inlined_call_operand.vmem [shape: f32[64,16], index: 12, kind: input, shape index: {}]   ;;  %s20902_s13 = inlined_call_operand.vmem [shape: f32[1,16], index: 13, kind: input, shape index: {}]   ;;  %s20903_s14 = inlined_call_operand.hbm [shape: f32[2,16,32], index: 14, kind: output, shape index: {0}]   ;;  %s20904_s15 = inlined_call_operand.hbm [shape: f32[2,16,24], index: 15, kind: output, shape index: {1}]   ;;  %s20905_s16 = inlined_call_operand.vmem [shape: f32[2,16,16,4], index: 16, kind: output, shape index: {2}]  }
   0x1   :  { %21302 = sst [smem:[#allocation123_spill]] %s20889_s0 }
   0x2   :  { %21303 = sst [smem:[#allocation124_spill]] %s20890_s1 }
   0x3   :  { %21304 = sst [smem:[#allocation125_spill]] %s20891_s2 }
   0x4   :  { %21305 = sst [smem:[#allocation126_spill]] %s20892_s3 }
   0x5   :  { %21306 = sst [smem:[#allocation127_spill]] %s20893_s4 }
   0x6   :  { %21307 = sst [smem:[#allocation128_spill]] %s20894_s5 }
   0x7   :  { %21308 = sst [smem:[#allocation129_spill]] %s20895_s6 }
   0x8   :  { %22 = vsyncpa [#allocation3], 0 }
   0x9   :  { %24 = vsyncpa [#allocation3 + $0x1], 0 }
   0xa   :  { %25 = vsyncpa [#allocation5], 0 }
   0xb   :  { %27 = vsyncpa [#allocation5 + $0x1], 0  ;;  %s15488_s21 = smov 0   ;;  %s15490_s22 = smov 0  }
   0xc   :  { %s15492_s23 = smov 0   ;;  %s15494_s24 = smov 0  }
   0xd   :  { %s15496_s25 = smov 0   ;;  %s15498_s26 = smov 0  }
   0xe LB: > { %21309 = sst [smem:[#allocation8_spill]] %s15378_s25  ;;  %s12506_s27 = sadd.s32 4294967295, %s15382_s26   ;;  %s15382_s26 = sphi %s15498_s26, %s33_s26   ;;  %s15378_s25 = sphi %s15496_s25, %s21990_s25   ;;  %s15374_s24 = sphi %s15494_s24, %s21989_s24   ;;  %s15370_s23 = sphi %s15492_s23, %s21993_s23   ;;  %s15366_s22 = sphi %s15490_s22, %s21992_s22   ;;  %s15362_s21 = sphi %s15488_s21, %s21991_s21  }
   0xf   : > { %s12507_s28 = sadd.s32 4294967294, %s15382_s26   ;;  %s45_s29 = sadd.s32 1, %s15378_s25 }
  0x10   : > { %s396_s30 = sadd.s32 1, %s15370_s23  ;;  %p47_p0 = scmp.ge.s32.totalorder %s45_s29, 2 }
  0x11   : > { %p406_p1 = scmp.ne.s32.totalorder %s15370_s23, %s15366_s22  ;;  %p407_p2 = scmp.eq.s32.totalorder %s12506_s27, 1 }
  0x12   : > { %p412_p3 = scmp.ne.s32.totalorder %s15366_s22, %s15362_s21  ;;  %s21995_s29 = smov (%p47_p0, %s45_s29), 0 }
  0x13   : > { %21310 = sst [smem:[#allocation9_spill]] %s21995_s29  ;;  %p15528_p4 = por %p407_p2, %p406_p1 }
  0x14   : > { %p413_p5 = scmp.eq.s32.totalorder %s12507_s28, 1  ;;  %s391_s17 = ssub.s32 %s15378_s25, %s21995_s29 }
  0x15   : > { %p12510_p6 = scmp.ge.s32.totalorder %s15382_s26, 1  ;;  %p394_p7 = scmp.eq.s32.totalorder %s391_s17, 0 }
  0x16   : > { %p15535_p8 = por %p413_p5, %p412_p3  ;;  %p590_p9 = scmp.lt.s32.totalorder %s15382_s26, 3 }
  0x17   : > { %s15541_s19 = scalar_select %p394_p7, %s15370_s23, %s396_s30  }
  0x18   : > { %p591_p10 = pnand %p12510_p6, %p590_p9 }
  0x19   : > { %21313 = sst [smem:[#allocation10_spill]] %s15541_s19 }
  0x1a   : > { %594 = sbr.rel (%p591_p10) target bundleno = 2357 (0x935), region = 76 }
  0x21   : > { %p708_p11 = scmp.lt.s32.totalorder %s15374_s24, 1  ;;  %v869_v0 = vld [vmem:[%s20897_s8] sm:$0xff]  ;;  %v870_v1 = vld [vmem:[%s20897_s8 + $0x8] sm:$0xff]  ;;  %s21314_s4 = sld [smem:[#allocation127_spill]]  ;;  %vm878_vm0 = vcmask 130048   ;;  %vm1978_vm1 = vcmask 1041409  }
  0x22   : > { %v15553_v2 = vld [vmem:[%s20898_s9] sm:$0xff]  ;;  %v886_v3 = vand.u32 4294901760, %v869_v0  ;;  %v889_v4 = vand.u32 4294901760, %v870_v1  ;;  %v15558_v5 = vld [vmem:[%s20898_s9 + $0x8] sm:$0xff]  ;;  %s20995_s28 = smov 8   ;;  %s21315_s19 = sld [smem:[#allocation123_spill]] }
  0x23   : > { %v1396_v6 = vand.u32 4294901760, %v15553_v2  ;;  %s15562_s20 = scalar_select %p708_p11, %s15374_s24, 1  ;;  %v1399_v7 = vand.u32 4294901760, %v15558_v5  ;;  %vm1981_vm2 = vcmask 1042434   ;;  %vm1984_vm3 = vcmask 1043459  }
  0x24   : > { %v15565_v8 = vpack.c.bf16 %v889_v4, %v886_v3  ;;  %v15567_v9 = vsub.f32 %v869_v0, %v886_v3  ;;  %v15569_v10 = vsub.f32 %v870_v1, %v889_v4  ;;  %s21316_s1 = sld [smem:[#allocation124_spill]]  ;;  %s21317_s3 = sld [smem:[#allocation126_spill]]  ;;  %vm1987_vm4 = vcmask 1044484  }
  0x25   : > { %v15574_v11 = vsub.f32 %v15553_v2, %v1396_v6  ;;  %s20908_s25 = sshll.u32 %s15562_s20, 8  ;;  %v15580_v12 = vsub.f32 %v15558_v5, %v1399_v7  ;;  %s15608_s17 = sshll.u32 %s15562_s20, 4  ;;  %v15679_v62 = vpack.c.bf16 %v1399_v7, %v1396_v6  ;;  %vm1990_vm5 = vcmask 1045509  }
  0x26   : > { %14121 = vmatprep.subr.bf16.mxu0 %v15565_v8  ;;  %v975_v13 = vand.u32 4294901760, %v15567_v9  ;;  %v982_v14 = vand.u32 4294901760, %v15569_v10  ;;  %v14128_v61 = vpack.c.bf16 %v15569_v10, %v15567_v9  ;;  %s21320_s2 = sld [smem:[#allocation125_spill]]  ;;  %vm1993_vm6 = vcmask 1046534   ;;  %s21554_s5 = sld [smem:[#allocation128_spill]] }
  0x27   : > { %s15587_s27 = scalar_lea.vmem %s21314_s4, %s20908_s25  ;;  %v1485_v15 = vand.u32 4294901760, %v15574_v11  ;;  %14123 = vmatpush3.bf16.msra.mxu0 %v15565_v8  ;;  %v1492_v18 = vand.u32 4294901760, %v15580_v12  ;;  %v14152_v33 = vpack.c.bf16 %v15580_v12, %v15574_v11  ;;  %vm1996_vm7 = vcmask 1047559   ;;  %s21560_s6 = sld [smem:[#allocation129_spill]] }
  0x28   : > { %v819_v16 = vld [vmem:[%s15587_s27 + $0x10] sm:$0xff]  ;;  %v817_v17 = vld [vmem:[%s15587_s27] sm:$0xff]  ;;  %v976_v19 = vsub.f32 %v15567_v9, %v975_v13  ;;  %v983_v20 = vsub.f32 %v15569_v10, %v982_v14  ;;  %v820_v21 = vld [vmem:[%s15587_s27 + $0x18] sm:$0xff]  ;;  %s715_s25 = scalar_lea.vmem %s21315_s19, %s15608_s17  ;;  %s15712_s19 = sshll.u32 %s15562_s20, 6  ;;  %vm2490_vm8 = vcmask 64512   ;;  %vm4896_vm9 = vcmask 523264  }
  0x29   : > { %2398 = vrot.lane.b32.xlu1 %v819_v16, %s20995_s28  ;;  %2394 = vrot.lane.b32.xlu0 %v817_v17, %s20995_s28  ;;  %v818_v22 = vld [vmem:[%s15587_s27 + $0x8] sm:$0xff]  ;;  %v1486_v23 = vsub.f32 %v15574_v11, %v1485_v15  ;;  %v1493_v24 = vsub.f32 %v15580_v12, %v1492_v18  ;;  %v821_v31 = vld [vmem:[%s15587_s27 + $0x20] sm:$0xff]  ;;  %v14160_v5 = vpack.c.bf16 %v1492_v18, %v1485_v15  ;;  %v20909_v17 = vlaneseq }
  0x2a   : > { %v977_v25 = vand.u32 4294901760, %v976_v19  ;;  %v984_v26 = vand.u32 4294901760, %v983_v20  ;;  %v822_v30 = vld [vmem:[%s15587_s27 + $0x28] sm:$0xff]  ;;  %v781_v34 = vld [vmem:[%s715_s25] sm:$0xff]  ;;  %v824_v38 = vld [vmem:[%s15587_s27 + $0x38] sm:$0xff]  ;;  %s721_s29 = scalar_lea.vmem %s21316_s1, %s15608_s17  ;;  %v14136_v16 = vpack.c.bf16 %v982_v14, %v975_v13  ;;  %vm7236_vm12 = vcmask 97280  }
  0x2b   : > { %v1487_v27 = vand.u32 4294901760, %v1486_v23  ;;  %v1494_v28 = vand.u32 4294901760, %v1493_v24  ;;  %v782_v35 = vld [vmem:[%s715_s25 + $0x8] sm:$0xff]  ;;  %v880_v36 = vsel %vm878_vm0, %v781_v34, 0  ;;  %v823_v39 = vld [vmem:[%s15587_s27 + $0x30] sm:$0xff]  ;;  %v783_v44 = vld [vmem:[%s721_s29] sm:$0xff] }
  0x2c   : > { %v14124_v29 = vpack.c.bf16 %v984_v26, %v977_v25  ;;  %v883_v37 = vsel %vm878_vm0, %v782_v35, 0  ;;  %v15632_v40 = vand.u32 4294901760, %v880_v36  ;;  %v784_v45 = vld [vmem:[%s721_s29 + $0x8] sm:$0xff]  ;;  %v825_v47 = vld [vmem:[%s15587_s27 + $0x40] sm:$0xff]  ;;  %v1390_v50 = vsel %vm878_vm0, %v783_v44, 0  ;;  %v828_v56 = vld [vmem:[%s15587_s27 + $0x58] sm:$0xff]  ;;  %s15723_s29 = scalar_lea.vmem %s21317_s3, %s15712_s19  ;;  %s15781_s30 = scalar_lea.vmem %s21320_s2, %s15712_s19 }
  0x2d   : > { %2400 = vrot.lane.b32.xlu1 %v820_v21, %s20995_s28  ;;  %2396 = vrot.lane.b32.xlu0 %v818_v22, %s20995_s28  ;;  %v14148_v32 = vpack.c.bf16 %v1494_v28, %v1487_v27  ;;  %v15634_v41 = vand.u32 4294901760, %v883_v37  ;;  %v826_v46 = vld [vmem:[%s15587_s27 + $0x48] sm:$0xff]  ;;  %v1393_v51 = vsel %vm878_vm0, %v784_v45, 0  ;;  %v15654_v52 = vand.u32 4294901760, %v1390_v50  ;;  %v827_v57 = vld [vmem:[%s15587_s27 + $0x50] sm:$0xff]  ;;  %s17776_s25 = scalar_lea.vmem %s21560_s6, %s15608_s17  ;;  %s18792_s3 = scalar_lea.vmem %s20896_s7, %s15712_s19 }
  0x2e   : > { %14125 = vmatprep.subr.bf16.mxu0 %v14124_v29  ;;  %v15641_v42 = vsub.f32 %v880_v36, %v15632_v40  ;;  %v15656_v53 = vand.u32 4294901760, %v1393_v51  ;;  %v830_v63 = vld [vmem:[%s15587_s27 + $0x68] sm:$0xff]  ;;  %v829_v0 = vld [vmem:[%s15587_s27 + $0x60] sm:$0xff]  ;;  %v832_v3 = vld [vmem:[%s15587_s27 + $0x78] sm:$0xff]  ;;  %v15751_v13 = vshrl.u32 %v20909_v17, 7  ;;  %vm6991_vm13 = vcmask 31744  }
  0x2f   : > { %14149 = vmatprep.subr.bf16.mxu1 %v14148_v32  ;;  %v15644_v43 = vsub.f32 %v883_v37, %v15634_v41  ;;  %13225 = vmatprep.mubr.f32.mxu1 %v15654_v52  ;;  %v15670_v60 = vsub.f32 %v1390_v50, %v15654_v52  ;;  %v831_v4 = vld [vmem:[%s15587_s27 + $0x70] sm:$0xff]  ;;  %v834_v6 = vld [vmem:[%s15587_s27 + $0x88] sm:$0xff]  ;;  %v833_v7 = vld [vmem:[%s15587_s27 + $0x80] sm:$0xff]  ;;  %s15393_s19 = smov 112   ;;  %s20762_s1 = sand.u32 1, %s15366_s22  }
  0x30   : > { %14151 = vmatpush3.bf16.msra.mxu1 %v14148_v32  ;;  %v954_v48 = vand.u32 4294901760, %v15641_v42  ;;  %v15688_v1 = vsub.f32 %v1393_v51, %v15656_v53  ;;  %v836_v12 = vld [vmem:[%s15587_s27 + $0x98] sm:$0xff]  ;;  %v835_v15 = vld [vmem:[%s15587_s27 + $0x90] sm:$0xff]  ;;  %v15735_v18 = vld [vmem:[%s15723_s29 + $0x4] sm:$0x7]  ;;  %21318 = vst [vmem:[#allocation11_spill] sm:$0xff] %v15751_v13 }
  0x31   : > { %2404 = vrot.lane.b32.xlu1 %v822_v30, %s20995_s28  ;;  %2402 = vrot.lane.b32.xlu0 %v821_v31, %s20995_s28  ;;  %v964_v49 = vand.u32 4294901760, %v15644_v43  ;;  %v1464_v2 = vand.u32 4294901760, %v15670_v60  ;;  %v838_v19 = vld [vmem:[%s15587_s27 + $0xa8] sm:$0xff]  ;;  %v837_v20 = vld [vmem:[%s15587_s27 + $0xa0] sm:$0xff]  ;;  %v1977_v10 = vrot.slane %v15735_v18, 7  ;;  %v15775_v28 = vsub.s32 0, %v15751_v13 }
  0x32   : > { %14153 = vmatprep.subr.bf16.mxu1 %v14152_v33  ;;  %v955_v54 = vsub.f32 %v15641_v42, %v954_v48  ;;  %v1474_v11 = vand.u32 4294901760, %v15688_v1  ;;  %v15745_v9 = vld [vmem:[%s15723_s29 + $0x8] sm:$0x7]  ;;  %v2523_v14 = vld [vmem:[%s20899_s10] sm:$0xff]  ;;  %v840_v21 = vld [vmem:[%s15587_s27 + $0xb8] sm:$0xff]  ;;  %v15793_v35 = vsub.s32 1, %v15751_v13 }
  0x33   : > { %v965_v55 = vsub.f32 %v15644_v43, %v964_v49  ;;  %13226 = vmatmul.mubr.f32.vlgmr.msra.gmra.mrb[0].mxu1 %v15656_v53  ;;  %v839_v22 = vld [vmem:[%s15587_s27 + $0xb0] sm:$0xff]  ;;  %v2524_v23 = vld [vmem:[%s20899_s10 + $0x8] sm:$0xff]  ;;  %v15762_v24 = vld [vmem:[%s15723_s29] sm:$0x7]  ;;  %v1980_v26 = vrot.slane %v15745_v9, 6  ;;  %21319 = vst [vmem:[#allocation12_spill] sm:$0xff] %v15775_v28 }
  0x34   : > { %v956_v58 = vand.u32 4294901760, %v955_v54  ;;  %14155 = vmatpush3.bf16.msra.mxu1 %v14152_v33  ;;  %13232 = vmatprep.mubr.f32.mxu1 %v15670_v60  ;;  %v15765_v25 = vld [vmem:[%s15723_s29 + $0xc] sm:$0x7]  ;;  %v1979_v27 = vsel %vm1978_vm1, %v1977_v10, %v15762_v24  ;;  %v2625_v30 = vand.u32 4294901760, %v2524_v23  ;;  %v841_v32 = vld [vmem:[%s15587_s27 + $0xc0] sm:$0xff]  ;;  %21321 = vst [vmem:[#allocation13_spill] sm:$0xff] %v15793_v35 }
  0x35   : > { %2408 = vrot.lane.b32.xlu1 %v824_v38, %s20995_s28  ;;  %2406 = vrot.lane.b32.xlu0 %v823_v39, %s20995_s28  ;;  %v966_v59 = vand.u32 4294901760, %v965_v55  ;;  %v842_v31 = vld [vmem:[%s15587_s27 + $0xc8] sm:$0xff]  ;;  %v15788_v33 = vld [vmem:[%s15723_s29 + $0x10] sm:$0x7]  ;;  %v1983_v34 = vrot.slane %v15765_v25, 5  ;;  %v1982_v36 = vsel %vm1981_vm2, %v1980_v26, %v1979_v27  ;;  %v2110_v37 = vrot.slane %v15762_v24, 1 }
  0x36   : > { %13176 = vmatprep.mubr.f32.mxu0 %v956_v58  ;;  %14157 = vmatprep.subr.bf16.mxu1 %v15679_v62  ;;  %v15799_v38 = vld [vmem:[%s15781_s30 + $0x4] sm:$0x7]  ;;  %v15802_v39 = vld [vmem:[%s15723_s29 + $0x20] sm:$0x7]  ;;  %v15814_v44 = vld [vmem:[%s15723_s29 + $0x14] sm:$0x7]  ;;  %v15831_v55 = vsub.f32 %v2524_v23, %v2625_v30  ;;  %v1465_v23 = vsub.f32 %v15670_v60, %v1464_v2 }
  0x37   : > { %13177 = vmatmul.mubr.f32.vlgmr.msra.gmra.mrb[0].mxu0 %v966_v59  ;;  %v15817_v45 = vld [vmem:[%s15723_s29 + $0x18] sm:$0x7]  ;;  %v15825_v50 = vld [vmem:[%s15723_s29 + $0x1c] sm:$0x7]  ;;  %v1985_v51 = vsel %vm1984_vm3, %v1983_v34, %v1982_v36  ;;  %v15840_v58 = vld [vmem:[%s15723_s29 + $0x28] sm:$0x7] }
  0x38   : > { %14127 = vmatpush3.bf16.msra.mxu0 %v14124_v29  ;;  %13183 = vmatprep.mubr.f32.mxu0 %v15632_v40  ;;  %v2622_v29 = vand.u32 4294901760, %v2523_v14  ;;  %21325 = vst [vmem:[#allocation17_spill] sm:$0xff] %v15831_v55  ;;  %v15877_v26 = vld [vmem:[%s15723_s29 + $0x30] sm:$0x7]  ;;  %v20910_v27 = vand.u32 4294901760, %v15831_v55 }
  0x39   : > { %2412 = vrot.lane.b32.xlu1 %v826_v46, %s20995_s28  ;;  %2410 = vrot.lane.b32.xlu0 %v825_v47, %s20995_s28  ;;  %v1986_v46 = vrot.slane %v15788_v33, 4 }
  0x3a   : > { %14129 = vmatprep.subr.bf16.mxu0 %v14128_v61  ;;  %v15820_v47 = vpack.c.bf16 %v2625_v30, %v2622_v29  ;;  %v15829_v54 = vsub.f32 %v2523_v14, %v2622_v29  ;;  %v2118_v14 = vrot.slane %v15814_v44, 4 }
  0x3b   : > { %13233 = vmatmul.mubr.f32.vlgmr.msra.gmra.mrb[0].mxu1 %v15688_v1 }
  0x3c   : > { %14159 = vmatpush3.bf16.msra.mxu1 %v15679_v62  ;;  %13239 = vmatprep.mubr.f32.mxu1 %v1464_v2  ;;  %21323 = vst [vmem:[#allocation15_spill] sm:$0xff] %v15820_v47  ;;  %21324 = vst [vmem:[#allocation16_spill] sm:$0xff] %v15829_v54  ;;  %v20911_v10 = vand.u32 4294901760, %v15829_v54 }
  0x3d   : > { %2416 = vrot.lane.b32.xlu1 %v828_v56, %s20995_s28  ;;  %2414 = vrot.lane.b32.xlu0 %v827_v57, %s20995_s28  ;;  %v15835_v56 = vrot.slane %v15799_v38, %v15775_v28  ;;  %v2111_v57 = vsel %vm1978_vm1, %v15735_v18, %v2110_v37  ;;  %v1475_v37 = vsub.f32 %v15688_v1, %v1474_v11 }
  0x3e   : > { %14161 = vmatprep.subr.bf16.mxu1 %v14160_v5 }
  0x3f   : > { %13184 = vmatmul.mubr.f32.vlgmr.msra.gmra.mrb[0].mxu0 %v15634_v41 }
  0x40   : > { %14131 = vmatpush3.bf16.msra.mxu0 %v14128_v61  ;;  %13190 = vmatprep.mubr.f32.mxu0 %v15641_v42  ;;  %v15805_v42 = vld [vmem:[%s15723_s29 + $0x24] sm:$0x7]  ;;  %v2124_v61 = vrot.slane %v15802_v39, 1 }
  0x41   : > { %2420 = vrot.lane.b32.xlu1 %v830_v63, %s20995_s28  ;;  %2418 = vrot.lane.b32.xlu0 %v829_v0, %s20995_s28  ;;  %v1998_v59 = vrot.slane %v15805_v42, 7  ;;  %v1989_v63 = vrot.slane %v15814_v44, 3  ;;  %v1992_v0 = vrot.slane %v15817_v45, 2 }
  0x42   : > { %14133 = vmatprep.subr.bf16.mxu0 %v15565_v8 }
  0x43   : > { %13240 = vmatmul.mubr.f32.vlgmr.msra.gmra.mrb[0].mxu1 %v1474_v11  ;;  %v3019_v11 = vsub.f32 %v15831_v55, %v20910_v27 }
  0x44   : > { %14163 = vmatpush3.bf16.msra.mxu1 %v14160_v5  ;;  %13246 = vmatprep.mubr.f32.mxu1 %v15654_v52  ;;  %v846_v5 = vld [vmem:[%s15587_s27 + $0xe8] sm:$0xff] }
  0x45   : > { %2424 = vrot.lane.b32.xlu1 %v832_v3, %s20995_s28  ;;  %2422 = vrot.lane.b32.xlu0 %v831_v4, %s20995_s28  ;;  %v2268_v3 = vrot.slane %v15762_v24, 2  ;;  %v2269_v4 = vrot.slane %v15735_v18, 1  ;;  %v15860_v18 = vld [vmem:[%s15723_s29 + $0x2c] sm:$0x7] }
  0x46   : > { %14165 = vmatprep.subr.bf16.mxu1 %v15679_v62  ;;  %v2002_v29 = vrot.slane %v15860_v18, 5  ;;  %v2128_v30 = vrot.slane %v15860_v18, 6 }
  0x47   : > { %13191 = vmatmul.mubr.f32.vlgmr.msra.gmra.mrb[0].mxu0 %v15644_v43  ;;  %v15811_v43 = vsub.s32 2, %v15751_v13  ;;  %v2270_v24 = vsel %vm1978_vm1, %v2269_v4, %v2268_v3  ;;  %v2286_v3 = vrot.slane %v15860_v18, 7  ;;  %v1476_v4 = vand.u32 4294901760, %v1475_v37 }
  0x48   : > { %14135 = vmatpush3.bf16.msra.mxu0 %v15565_v8  ;;  %13197 = vmatprep.mubr.f32.mxu0 %v954_v48  ;;  %v844_v48 = vld [vmem:[%s15587_s27 + $0xd8] sm:$0xff] }
  0x49   : > { %2428 = vrot.lane.b32.xlu1 %v834_v6, %s20995_s28  ;;  %2426 = vrot.lane.b32.xlu0 %v833_v7, %s20995_s28  ;;  %21322 = vst [vmem:[#allocation14_spill] sm:$0xff] %v15811_v43  ;;  %v1988_v6 = vsel %vm1987_vm4, %v1986_v46, %v1985_v51  ;;  %v1995_v7 = vrot.slane %v15825_v50, 1  ;;  %v2272_v46 = vrot.slane %v15765_v25, 7  ;;  %v15904_v51 = vld [vmem:[%s15723_s29 + $0x34] sm:$0x7] }
  0x4a   : > { %14137 = vmatprep.subr.bf16.mxu0 %v14136_v16  ;;  %v1991_v60 = vsel %vm1990_vm5, %v1989_v63, %v1988_v6  ;;  %v2274_v63 = vrot.slane %v15788_v33, 6 }
  0x4b   : > { %13247 = vmatmul.mubr.f32.vlgmr.msra.gmra.mrb[0].mxu1 %v15656_v53 }
  0x4c   : > { %14167 = vmatpush3.bf16.msra.mxu1 %v15679_v62  ;;  %13253 = vmatprep.mubr.f32.mxu1 %v15654_v52  ;;  %v2112_v52 = vrot.slane %v15745_v9, 7 }
  0x4d   : > { %2432 = vrot.lane.b32.xlu1 %v836_v12, %s20995_s28  ;;  %2430 = vrot.lane.b32.xlu0 %v835_v15, %s20995_s28  ;;  %v2116_v12 = vrot.slane %v15788_v33, 5  ;;  %v845_v15 = vld [vmem:[%s15587_s27 + $0xe0] sm:$0xff] }
  0x4f   : > { %13198 = vmatmul.mubr.f32.vlgmr.msra.gmra.mrb[0].mxu0 %v964_v49  ;;  %v843_v49 = vld [vmem:[%s15587_s27 + $0xd0] sm:$0xff] }
  0x50   : > { %14139 = vmatpush3.bf16.msra.mxu0 %v14136_v16  ;;  %13204 = vmatprep.mubr.f32.mxu0 %v15632_v40  ;;  %v2113_v16 = vsel %vm1981_vm2, %v2112_v52, %v2111_v57  ;;  %v2130_v52 = vrot.slane %v15877_v26, 5 }
  0x51   : > { %2436 = vrot.lane.b32.xlu1 %v838_v19, %s20995_s28  ;;  %2434 = vrot.lane.b32.xlu0 %v837_v20, %s20995_s28  ;;  %v2000_v19 = vrot.slane %v15840_v58, 6  ;;  %v2126_v20 = vrot.slane %v15840_v58, 7 }
  0x52   : > { %14141 = vmatprep.subr.bf16.mxu0 %v15565_v8 }
  0x53   : > { %13254 = vmatmul.mubr.f32.vlgmr.msra.gmra.mrb[0].mxu1 %v15656_v53  ;;  %v2114_v53 = vrot.slane %v15765_v25, 6  ;;  %v2120_v25 = vrot.slane %v15817_v45, 3 }
  0x55   : > { %2440 = vrot.lane.b32.xlu1 %v840_v21, %s20995_s28  ;;  %2438 = vrot.lane.b32.xlu0 %v839_v22, %s20995_s28  ;;  %v1999_v21 = vsel %vm1978_vm1, %v1998_v59, %v15802_v39  ;;  %v2125_v22 = vsel %vm1978_vm1, %v15805_v42, %v2124_v61  ;;  %v2115_v2 = vsel %vm1984_vm3, %v2114_v53, %v2113_v16  ;;  %v815_v53 = vld [vmem:[%s15723_s29 + $0x38] sm:$0x7] }
  0x56   : > { %v2001_v34 = vsel %vm1981_vm2, %v2000_v19, %v1999_v21  ;;  %v2127_v36 = vsel %vm1981_vm2, %v2126_v20, %v2125_v22  ;;  %v1994_v20 = vsel %vm1993_vm6, %v1992_v0, %v1991_v60  ;;  %v2122_v21 = vrot.slane %v15825_v50, 2 }
  0x57   : > { %13205 = vmatmul.mubr.f32.vlgmr.msra.gmra.mrb[0].mxu0 %v15634_v41  ;;  %v2003_v59 = vsel %vm1984_vm3, %v2002_v29, %v2001_v34  ;;  %v2129_v61 = vsel %vm1984_vm3, %v2128_v30, %v2127_v36  ;;  %v2288_v22 = vrot.slane %v15877_v26, 6  ;;  %v2278_v29 = vrot.slane %v15817_v45, 4 }
  0x58   : > { %14143 = vmatpush3.bf16.msra.mxu0 %v15565_v8  ;;  %13211 = vmatprep.mubr.f32.mxu0 %v15632_v40  ;;  %v2282_v8 = vrot.slane %v15802_v39, 2  ;;  %v2283_v40 = vrot.slane %v15805_v42, 1  ;;  %v3012_v39 = vsub.f32 %v15829_v54, %v20911_v10  ;;  %v2271_v42 = vsel %vm1981_vm2, %v15745_v9, %v2270_v24 }
  0x59   : > { %2444 = vrot.lane.b32.xlu1 %v842_v31, %s20995_s28  ;;  %2442 = vrot.lane.b32.xlu0 %v841_v32, %s20995_s28  ;;  %v848_v31 = vld [vmem:[%s15587_s27 + $0xf8] sm:$0xff]  ;;  %v847_v32 = vld [vmem:[%s15587_s27 + $0xf0] sm:$0xff]  ;;  %v2117_v9 = vsel %vm1987_vm4, %v2116_v12, %v2115_v2  ;;  %v2273_v6 = vsel %vm1984_vm3, %v2272_v46, %v2271_v42  ;;  %v2006_v12 = vrot.slane %v15904_v51, 3  ;;  %v2131_v18 = vsel %vm1987_vm4, %v2130_v52, %v2129_v61  ;;  %s21952_s27 = smov 8  }
  0x5a   : > { %14145 = vmatprep.subr.bf16.mxu0 %v15679_v62  ;;  %v2284_v57 = vsel %vm1978_vm1, %v2283_v40, %v2282_v8  ;;  %v3013_v1 = vand.u32 4294901760, %v3012_v39  ;;  %v2008_v24 = vrot.slane %v815_v53, 2  ;;  %v2134_v8 = vrot.slane %v815_v53, 3 }
  0x5b   : > { %v2285_v16 = vsel %vm1981_vm2, %v15840_v58, %v2284_v57  ;;  %v2276_v58 = vrot.slane %v15814_v44, 5  ;;  %v2053_v2 = vrot.slane %v15799_v38, %v15793_v35  ;;  %v2280_v46 = vrot.slane %v15825_v50, 3  ;;  %v787_v57 = vld [vmem:[%s15781_s30 + $0x8] sm:$0x7] }
  0x5c   : > { %v2287_v40 = vsel %vm1984_vm3, %v2286_v3, %v2285_v16 }
  0x5d   : > { %2448 = vrot.lane.b32.xlu1 %v844_v48, %s20995_s28  ;;  %2446 = vrot.lane.b32.xlu0 %v843_v49, %s20995_s28  ;;  %v2004_v48 = vrot.slane %v15877_v26, 4  ;;  %v1466_v49 = vand.u32 4294901760, %v1465_v23  ;;  %v816_v23 = vld [vmem:[%s15723_s29 + $0x3c] sm:$0x7]  ;;  %v15952_v26 = vsel %vm1996_vm7, %v1995_v7, %v1994_v20  ;;  %v2289_v37 = vsel %vm1987_vm4, %v2288_v22, %v2287_v40  ;;  %s15397_s29 = smov 16  }
  0x5e   : > { %v2010_v34 = vrot.slane %v816_v23, 1  ;;  %v2136_v36 = vrot.slane %v816_v23, 2  ;;  %v2294_v61 = vrot.slane %v816_v23, 3 }
  0x5f   : > { %13212 = vmatmul.mubr.f32.vlgmr.msra.gmra.mrb[0].mxu0 %v15634_v41  ;;  %v2119_v41 = vsel %vm1990_vm5, %v2118_v14, %v2117_v9  ;;  %v2005_v33 = vsel %vm1987_vm4, %v2004_v48, %v2003_v59  ;;  %v2275_v14 = vsel %vm1987_vm4, %v2274_v63, %v2273_v6  ;;  %v2292_v48 = vrot.slane %v815_v53, 4  ;;  %v788_v63 = vld [vmem:[%s15781_s30 + $0xc] sm:$0x7] }
  0x60   : > { %14147 = vmatpush3.bf16.msra.mxu0 %v15679_v62  ;;  %13218 = vmatprep.mubr.f32.mxu0 %v1466_v49  ;;  %v785_v62 = vld [vmem:[%s15781_s30] sm:$0x7]  ;;  %v2121_v0 = vsel %vm1993_vm6, %v2120_v25, %v2119_v41  ;;  %v2007_v60 = vsel %vm1990_vm5, %v2006_v12, %v2005_v33  ;;  %v2211_v49 = vrot.slane %v15799_v38, %v15811_v43 }
  0x61   : > { %2452 = vrot.lane.b32.xlu1 %v846_v5, %s20995_s28  ;;  %2450 = vrot.lane.b32.xlu0 %v845_v15, %s20995_s28  ;;  %v3020_v5 = vand.u32 4294901760, %v3019_v11  ;;  %v2132_v15 = vrot.slane %v15904_v51, 4  ;;  %v1900_v30 = vrot.slane %v785_v62, %v15775_v28  ;;  %v15961_v39 = vsel %vm1996_vm7, %v2122_v21, %v2121_v0 }
  0x62   : > { %14169 = vmatprep.subr.bf16.mxu0 %v15820_v47  ;;  %v2049_v7 = vrot.slane %v785_v62, %v15793_v35  ;;  %v2009_v45 = vsel %vm1993_vm6, %v2008_v24, %v2007_v60  ;;  %v2142_v11 = vmul.f32 %v15961_v39, %v2053_v2  ;;  %v2207_v59 = vrot.slane %v785_v62, %v15811_v43 }
  0x63   : > { %v15931_v19 = vpack.c.bf16 %v3020_v5, %v3013_v1  ;;  %13219 = vmatmul.mubr.f32.vlgmr.msra.gmra.mrb[2].mxu0 %v1476_v4  ;;  %v2133_v44 = vsel %vm1990_vm5, %v2132_v15, %v2131_v18  ;;  %v2016_v1 = vmul.f32 %v15952_v26, %v15835_v56  ;;  %v15976_v9 = vsel %vm1996_vm7, %v2010_v34, %v2009_v45  ;;  %v790_v45 = vld [vmem:[%s15781_s30 + $0x14] sm:$0x7] }
  0x64   : > { %14171 = vmatpush3.bf16.msra.mxu0 %v15820_v47  ;;  %v2135_v42 = vsel %vm1993_vm6, %v2134_v8, %v2133_v44  ;;  %v2014_v50 = vmul.f32 %v15952_v26, %v1900_v30  ;;  %v2140_v38 = vmul.f32 %v15961_v39, %v2049_v7  ;;  %v1908_v5 = vrot.slane %v787_v57, %v15775_v28 }
  0x65   : > { %2456 = vrot.lane.b32.xlu1 %v848_v31, %s20995_s28  ;;  %2454 = vrot.lane.b32.xlu0 %v847_v32, %s20995_s28  ;;  %v2290_v31 = vrot.slane %v15904_v51, 5  ;;  %v2277_v32 = vsel %vm1990_vm5, %v2276_v58, %v2275_v14  ;;  %v15979_v25 = vsel %vm1996_vm7, %v2136_v36, %v2135_v42  ;;  %v2057_v6 = vrot.slane %v787_v57, %v15793_v35  ;;  %v789_v14 = vld [vmem:[%s15781_s30 + $0x10] sm:$0x7]  ;;  %s15389_s28 = smov 116  }
  0x66   : > { %14173 = vmatprep.subr.bf16.mxu0 %v15931_v19  ;;  %v2279_v51 = vsel %vm1993_vm6, %v2278_v29, %v2277_v32  ;;  %v2017_v53 = vmul.f32 %v15976_v9, %v15835_v56  ;;  %v2143_v12 = vmul.f32 %v15979_v25, %v2053_v2  ;;  %v2174_v15 = vadd.f32 %v2142_v11, %v2016_v1  ;;  %v791_v11 = vld [vmem:[%s15781_s30 + $0x18] sm:$0x7] }
  0x67   : > { %v2291_v52 = vsel %vm1990_vm5, %v2290_v31, %v2289_v37  ;;  %v15986_v3 = vsel %vm1996_vm7, %v2280_v46, %v2279_v51  ;;  %v1912_v16 = vrot.slane %v788_v63, %v15775_v28  ;;  %v2061_v41 = vrot.slane %v788_v63, %v15793_v35 }
  0x68   : > { %v2293_v4 = vsel %vm1993_vm6, %v2292_v48, %v2291_v52  ;;  %v2300_v33 = vmul.f32 %v15986_v3, %v2211_v49  ;;  %v2172_v18 = vadd.f32 %v2140_v38, %v2014_v50  ;;  %v2298_v20 = vmul.f32 %v15986_v3, %v2207_v59 }
  0x69   : > { %v15999_v21 = vsel %vm1996_vm7, %v2294_v61, %v2293_v4  ;;  %v2015_v58 = vmul.f32 %v15976_v9, %v1900_v30  ;;  %v2141_v62 = vmul.f32 %v15979_v25, %v2049_v7  ;;  %v2019_v56 = vmul.f32 %v15976_v9, %v1908_v5 }
  0x6a   : > { %v2145_v22 = vmul.f32 %v15979_v25, %v2057_v6  ;;  %v2175_v23 = vadd.f32 %v2143_v12, %v2017_v53  ;;  %v2215_v24 = vrot.slane %v787_v57, %v15811_v43  ;;  %v2018_v8 = vmul.f32 %v15952_v26, %v1908_v5 }
  0x6b   : > { %v2144_v40 = vmul.f32 %v15961_v39, %v2057_v6  ;;  %v2301_v2 = vmul.f32 %v15999_v21, %v2211_v49  ;;  %v2021_v0 = vmul.f32 %v15976_v9, %v1912_v16  ;;  %v2147_v60 = vmul.f32 %v15979_v25, %v2061_v41 }
  0x6c   : > { %v2219_v44 = vrot.slane %v788_v63, %v15811_v43  ;;  %v16013_v29 = vadd.f32 %v2300_v33, %v2174_v15  ;;  %v16015_v30 = vadd.f32 %v2298_v20, %v2172_v18  ;;  %v1916_v31 = vrot.slane %v789_v14, %v15775_v28 }
  0x6d   : > { %v2065_v32 = vrot.slane %v789_v14, %v15793_v35  ;;  %v2173_v34 = vadd.f32 %v2141_v62, %v2015_v58  ;;  %v2177_v36 = vadd.f32 %v2145_v22, %v2019_v56  ;;  %v2020_v37 = vmul.f32 %v15952_v26, %v1912_v16 }
  0x6e   : > { %v2146_v7 = vmul.f32 %v15961_v39, %v2061_v41  ;;  %v2299_v42 = vmul.f32 %v15999_v21, %v2207_v59  ;;  %v2303_v46 = vmul.f32 %v15999_v21, %v2215_v24  ;;  %v2176_v48 = vadd.f32 %v2144_v40, %v2018_v8  ;;  %v792_v41 = vld [vmem:[%s15781_s30 + $0x1c] sm:$0x7] }
  0x6f   : > { %v2302_v49 = vmul.f32 %v15986_v3, %v2215_v24  ;;  %v16025_v51 = vadd.f32 %v2301_v2, %v2175_v23  ;;  %v2179_v52 = vadd.f32 %v2147_v60, %v2021_v0  ;;  %v2305_v57 = vmul.f32 %v15999_v21, %v2219_v44 }
  0x70   : > { %v2223_v1 = vrot.slane %v789_v14, %v15811_v43  ;;  %v2023_v50 = vmul.f32 %v15976_v9, %v1916_v31  ;;  %v2149_v38 = vmul.f32 %v15979_v25, %v2065_v32  ;;  %v1920_v59 = vrot.slane %v790_v45, %v15775_v28 }
  0x71   : > { %v2069_v61 = vrot.slane %v790_v45, %v15793_v35  ;;  %v2178_v63 = vadd.f32 %v2146_v7, %v2020_v37  ;;  %v2304_v4 = vmul.f32 %v15986_v3, %v2219_v44  ;;  %v2022_v5 = vmul.f32 %v15952_v26, %v1916_v31  ;;  %v793_v31 = vld [vmem:[%s15781_s30 + $0x20] sm:$0x7] }
  0x72   : > { %v2148_v6 = vmul.f32 %v15961_v39, %v2065_v32  ;;  %v16037_v53 = vadd.f32 %v2299_v42, %v2173_v34  ;;  %v16039_v12 = vadd.f32 %v2303_v46, %v2177_v36  ;;  %v16041_v15 = vadd.f32 %v2302_v49, %v2176_v48 }
  0x73   : > { %v1924_v16 = vrot.slane %v791_v11, %v15775_v28  ;;  %v16045_v33 = vadd.f32 %v2305_v57, %v2179_v52  ;;  %v2307_v18 = vmul.f32 %v15999_v21, %v2223_v1  ;;  %v2306_v20 = vmul.f32 %v15986_v3, %v2223_v1 }
  0x74   : > { %v2073_v58 = vrot.slane %v791_v11, %v15793_v35  ;;  %v2181_v62 = vadd.f32 %v2149_v38, %v2023_v50  ;;  %v2025_v56 = vmul.f32 %v15976_v9, %v1920_v59  ;;  %v2151_v22 = vmul.f32 %v15979_v25, %v2069_v61 }
  0x75   : > { %v2227_v14 = vrot.slane %v790_v45, %v15811_v43  ;;  %v16053_v23 = vadd.f32 %v2304_v4, %v2178_v63  ;;  %v2180_v24 = vadd.f32 %v2148_v6, %v2022_v5  ;;  %v1928_v8 = vrot.slane %v792_v41, %v15775_v28  ;;  %v794_v5 = vld [vmem:[%s15781_s30 + $0x24] sm:$0x7] }
  0x76   : > { %v2077_v40 = vrot.slane %v792_v41, %v15793_v35  ;;  %v2024_v2 = vmul.f32 %v15952_v26, %v1920_v59  ;;  %v2150_v0 = vmul.f32 %v15961_v39, %v2069_v61  ;;  %v2027_v60 = vmul.f32 %v15976_v9, %v1924_v16 }
  0x77   : > { %v2231_v44 = vrot.slane %v791_v11, %v15811_v43  ;;  %v2153_v32 = vmul.f32 %v15979_v25, %v2073_v58  ;;  %v2026_v34 = vmul.f32 %v15952_v26, %v1924_v16  ;;  %v2152_v36 = vmul.f32 %v15961_v39, %v2073_v58 }
  0x78   : > { %v16067_v37 = vpack.c.bf16 %v15831_v55, %v15829_v54  ;;  %v16069_v7 = vadd.f32 %v2307_v18, %v2181_v62  ;;  %v2183_v45 = vadd.f32 %v2151_v22, %v2025_v56  ;;  %v2309_v42 = vmul.f32 %v15999_v21, %v2227_v14  ;;  %v798_v55 = vld [vmem:[%s15781_s30 + $0x34] sm:$0x7] }
  0x79   : > { %v2235_v46 = vrot.slane %v792_v41, %v15811_v43  ;;  %v2029_v48 = vmul.f32 %v15976_v9, %v1928_v8  ;;  %v2155_v49 = vmul.f32 %v15979_v25, %v2077_v40  ;;  %v1932_v52 = vrot.slane %v793_v31, %v15775_v28 }
  0x7a   : > { %v2081_v57 = vrot.slane %v793_v31, %v15793_v35  ;;  %v2182_v1 = vadd.f32 %v2150_v0, %v2024_v2  ;;  %v2308_v11 = vmul.f32 %v15986_v3, %v2227_v14  ;;  %v2028_v50 = vmul.f32 %v15952_v26, %v1928_v8  ;;  %v795_v14 = vld [vmem:[%s15781_s30 + $0x28] sm:$0x7]  ;;  %v796_v2 = vld [vmem:[%s15781_s30 + $0x2c] sm:$0x7] }
  0x7b   : > { %v2154_v38 = vmul.f32 %v15961_v39, %v2077_v40  ;;  %v2185_v59 = vadd.f32 %v2153_v32, %v2027_v60  ;;  %v2311_v61 = vmul.f32 %v15999_v21, %v2231_v44  ;;  %v2184_v63 = vadd.f32 %v2152_v36, %v2026_v34 }
  0x7c   : > { %v2310_v4 = vmul.f32 %v15986_v3, %v2231_v44  ;;  %v16083_v6 = vadd.f32 %v2306_v20, %v2180_v24  ;;  %v16085_v16 = vadd.f32 %v2309_v42, %v2183_v45  ;;  %v2313_v41 = vmul.f32 %v15999_v21, %v2235_v46 }
  0x7d   : > { %v2239_v18 = vrot.slane %v793_v31, %v15811_v43  ;;  %v2187_v58 = vadd.f32 %v2155_v49, %v2029_v48  ;;  %v2312_v62 = vmul.f32 %v15986_v3, %v2235_v46  ;;  %v2031_v56 = vmul.f32 %v15976_v9, %v1932_v52 }
  0x7e   : > { %v2157_v22 = vmul.f32 %v15979_v25, %v2081_v57  ;;  %v2186_v8 = vadd.f32 %v2154_v38, %v2028_v50  ;;  %v2030_v40 = vmul.f32 %v15952_v26, %v1932_v52  ;;  %v2156_v20 = vmul.f32 %v15961_v39, %v2081_v57  ;;  %v797_v52 = vld [vmem:[%s15781_s30 + $0x30] sm:$0x7] }
  0x7f   : > { %v1936_v24 = vrot.slane %v794_v5, %v15775_v28  ;;  %v16097_v0 = vadd.f32 %v2308_v11, %v2182_v1  ;;  %v16099_v60 = vadd.f32 %v2311_v61, %v2185_v59  ;;  %v16101_v44 = vadd.f32 %v2310_v4, %v2184_v63 }
  0x80   : > { %v2085_v31 = vrot.slane %v794_v5, %v15793_v35  ;;  %v2315_v32 = vmul.f32 %v15999_v21, %v2239_v18  ;;  %v2314_v34 = vmul.f32 %v15986_v3, %v2239_v18  ;;  %v1940_v36 = vrot.slane %v795_v14, %v15775_v28 }
  0x81   : > { %v2089_v45 = vrot.slane %v795_v14, %v15793_v35  ;;  %v16108_v42 = vadd.f32 %v2313_v41, %v2187_v58  ;;  %v2189_v46 = vadd.f32 %v2157_v22, %v2031_v56  ;;  %v2243_v48 = vrot.slane %v794_v5, %v15811_v43 }
  0x82   : > { %v1944_v49 = vrot.slane %v796_v2, %v15775_v28  ;;  %v16113_v57 = vadd.f32 %v2312_v62, %v2186_v8  ;;  %v2188_v1 = vadd.f32 %v2156_v20, %v2030_v40  ;;  %v2033_v11 = vmul.f32 %v15976_v9, %v1936_v24 }
  0x83   : > { %v2093_v50 = vrot.slane %v796_v2, %v15793_v35  ;;  %v2159_v38 = vmul.f32 %v15979_v25, %v2085_v31  ;;  %v2032_v59 = vmul.f32 %v15952_v26, %v1936_v24  ;;  %v2158_v61 = vmul.f32 %v15961_v39, %v2085_v31 }
  0x84   : > { %v2247_v63 = vrot.slane %v795_v14, %v15811_v43  ;;  %v2035_v4 = vmul.f32 %v15976_v9, %v1940_v36  ;;  %v2161_v5 = vmul.f32 %v15979_v25, %v2089_v45  ;;  %v1948_v41 = vrot.slane %v797_v52, %v15775_v28 }
  0x85   : > { %v2097_v18 = vrot.slane %v797_v52, %v15793_v35  ;;  %v2317_v58 = vmul.f32 %v15999_v21, %v2243_v48  ;;  %v2034_v62 = vmul.f32 %v15952_v26, %v1940_v36  ;;  %v2160_v56 = vmul.f32 %v15961_v39, %v2089_v45 }
  0x86   : > { %v2037_v22 = vmul.f32 %v15976_v9, %v1944_v49  ;;  %v2163_v8 = vmul.f32 %v15979_v25, %v2093_v50  ;;  %v2251_v14 = vrot.slane %v796_v2, %v15811_v43  ;;  %v2036_v40 = vmul.f32 %v15952_v26, %v1944_v49 }
  0x87   : > { %v2162_v20 = vmul.f32 %v15961_v39, %v2093_v50  ;;  %v2191_v24 = vadd.f32 %v2159_v38, %v2033_v11  ;;  %v2190_v31 = vadd.f32 %v2158_v61, %v2032_v59  ;;  %v2316_v17 = vmul.f32 %v15986_v3, %v2243_v48 }
  0x88   : > { %v2319_v27 = vmul.f32 %v15999_v21, %v2247_v63  ;;  %v2193_v10 = vadd.f32 %v2161_v5, %v2035_v4  ;;  %v2039_v36 = vmul.f32 %v15976_v9, %v1948_v41  ;;  %v2165_v45 = vmul.f32 %v15979_v25, %v2097_v18 }
  0x89   : > { %v2255_v13 = vrot.slane %v797_v52, %v15811_v43  ;;  %v2192_v54 = vadd.f32 %v2160_v56, %v2034_v62  ;;  %v2318_v2 = vmul.f32 %v15986_v3, %v2247_v63  ;;  %v2038_v49 = vmul.f32 %v15952_v26, %v1948_v41 }
  0x8a   : > { %v2164_v11 = vmul.f32 %v15961_v39, %v2097_v18  ;;  %v2195_v50 = vadd.f32 %v2163_v8, %v2037_v22  ;;  %v2321_v48 = vmul.f32 %v15999_v21, %v2251_v14  ;;  %v2194_v38 = vadd.f32 %v2162_v20, %v2036_v40 }
  0x8b   : > { %v2320_v59 = vmul.f32 %v15986_v3, %v2251_v14  ;;  %v16144_v61 = vadd.f32 %v2315_v32, %v2189_v46  ;;  %v16146_v4 = vadd.f32 %v2314_v34, %v2188_v1  ;;  %v16148_v5 = vadd.f32 %v2317_v58, %v2191_v24  ;;  %v799_v58 = vld [vmem:[%s15781_s30 + $0x38] sm:$0x7] }
  0x8c   : > { %v1952_v52 = vrot.slane %v798_v55, %v15775_v28  ;;  %v16151_v63 = vadd.f32 %v2316_v17, %v2190_v31  ;;  %v16153_v41 = vadd.f32 %v2319_v27, %v2193_v10  ;;  %v2197_v18 = vadd.f32 %v2165_v45, %v2039_v36 }
  0x8d   : > { %v2323_v62 = vmul.f32 %v15999_v21, %v2255_v13  ;;  %v16156_v8 = vadd.f32 %v2318_v2, %v2192_v54  ;;  %v2196_v32 = vadd.f32 %v2164_v11, %v2038_v49  ;;  %v2322_v34 = vmul.f32 %v15986_v3, %v2255_v13 }
  0x8e   : > { %v2101_v46 = vrot.slane %v798_v55, %v15793_v35  ;;  %v16164_v10 = vadd.f32 %v2321_v48, %v2195_v50  ;;  %v16166_v27 = vadd.f32 %v2320_v59, %v2194_v38  ;;  %v2041_v40 = vmul.f32 %v15976_v9, %v1952_v52 }
  0x8f   : > { %v2259_v13 = vrot.slane %v798_v55, %v15811_v43  ;;  %v16180_v45 = vadd.f32 %v2322_v34, %v2196_v32  ;;  %v1956_v49 = vrot.slane %v799_v58, %v15775_v28  ;;  %v2105_v11 = vrot.slane %v799_v58, %v15793_v35 }
  0x90   : > { %v2167_v2 = vmul.f32 %v15979_v25, %v2101_v46 }
  0x9b   : > { %v2399_v56 = vpop.permute.xlu1 %2398  ;;  %v2395_v22 = vpop.permute.xlu0 %2394 }
  0x9c   : > { %v2493_v1 = vsel %vm2490_vm8, %v16013_v29, %v2399_v56  ;;  %v2491_v17 = vsel %vm2490_vm8, %v16015_v30, %v2395_v22  ;;  %v16177_v29 = vadd.f32 %v2323_v62, %v2197_v18  ;;  %v2040_v30 = vmul.f32 %v15952_v26, %v1952_v52 }
  0x9d   : > { %v2532_v14 = vsel %vm878_vm0, %v2493_v1, 0  ;;  %v2526_v54 = vsel %vm878_vm0, %v2491_v17, 0  ;;  %v16198_v18 = vmul.f32 %v15999_v21, %v2259_v13  ;;  %v2166_v62 = vmul.f32 %v15961_v39, %v2101_v46 }
  0x9e   : > { %v16173_v20 = vand.u32 4294901760, %v2532_v14  ;;  %v16175_v24 = vand.u32 4294901760, %v2526_v54  ;;  %v2043_v17 = vmul.f32 %v15976_v9, %v1956_v49  ;;  %v16228_v1 = vadd.f32 %v2167_v2, %v2041_v40 }
  0x9f   : > { %v2401_v31 = vpop.permute.xlu1 %2400  ;;  %v2397_v36 = vpop.permute.xlu0 %2396  ;;  %v16242_v40 = vmul.f32 %v15952_v26, %v1956_v49 }
  0xa0   : > { %v16186_v55 = vsub.f32 %v2532_v14, %v16173_v20  ;;  %v16189_v50 = vsub.f32 %v2526_v54, %v16175_v24  ;;  %v2494_v48 = vsel %vm2490_vm8, %v16025_v51, %v2401_v31  ;;  %v2492_v38 = vsel %vm2490_vm8, %v16037_v53, %v2397_v36 }
  0xa1   : > { %v2535_v59 = vsel %vm878_vm0, %v2494_v48, 0  ;;  %v2529_v52 = vsel %vm878_vm0, %v2492_v38, 0  ;;  %v16207_v51 = vmul.f32 %v15986_v3, %v2259_v13  ;;  %v2169_v14 = vmul.f32 %v15979_v25, %v2105_v11 }
  0xa2   : > { %21326 = vst [vmem:[#allocation18_spill] sm:$0xff] %v16186_v55  ;;  %v16201_v56 = vand.u32 4294901760, %v2535_v59  ;;  %v16203_v22 = vand.u32 4294901760, %v2529_v52  ;;  %v20920_v32 = vand.u32 4294901760, %v16189_v50  ;;  %v2263_v54 = vrot.slane %v799_v58, %v15811_v43 }
  0xa3   : > { %v2405_v34 = vpop.permute.xlu1 %2404  ;;  %v2403_v53 = vpop.permute.xlu0 %2402 }
  0xa4   : > { %21327 = vst [vmem:[#allocation19_spill] sm:$0xff] %v16201_v56  ;;  %v16214_v46 = vsub.f32 %v2535_v59, %v16201_v56  ;;  %v16217_v31 = vsub.f32 %v2529_v52, %v16203_v22  ;;  %v2496_v13 = vsel %vm2490_vm8, %v16039_v12, %v2405_v34  ;;  %v2495_v36 = vsel %vm2490_vm8, %v16041_v15, %v2403_v53 }
  0xa5   : > { %v2541_v48 = vsel %vm878_vm0, %v2496_v13, 0  ;;  %v2538_v38 = vsel %vm878_vm0, %v2495_v36, 0  ;;  %v2691_v58 = vsub.f32 %v16189_v50, %v20920_v32  ;;  %v16235_v12 = vadd.f32 %v2166_v62, %v2040_v30 }
  0xa6   : > { %21328 = vst [vmem:[#allocation20_spill] sm:$0xff] %v16214_v46  ;;  %21329 = vst [vmem:[#allocation21_spill] sm:$0xff] %v16217_v31  ;;  %v20923_v59 = vand.u32 4294901760, %v16217_v31  ;;  %v16231_v52 = vand.u32 4294901760, %v2541_v48  ;;  %v16233_v56 = vand.u32 4294901760, %v2538_v38  ;;  %v21330_v13 = vand.u32 4294901760, %v16186_v55 }
  0xa7   : > { %v2409_v34 = vpop.permute.xlu1 %2408  ;;  %v2407_v15 = vpop.permute.xlu0 %2406  ;;  %v2692_v53 = vand.u32 4294901760, %v2691_v58 }
  0xa8   : > { %v2711_v36 = vsub.f32 %v16186_v55, %v21330_v13  ;;  %v16245_v2 = vsub.f32 %v2541_v48, %v16231_v52  ;;  %v16248_v32 = vsub.f32 %v2538_v38, %v16233_v56  ;;  %v2498_v30 = vsel %vm2490_vm8, %v16045_v33, %v2409_v34 }
  0xa9   : > { %v2497_v62 = vsel %vm2490_vm8, %v16053_v23, %v2407_v15  ;;  %v2547_v58 = vsel %vm878_vm0, %v2498_v30, 0  ;;  %13260 = vmatprep.mubr.f32.mxu0 %v2692_v53  ;;  %v2701_v49 = vsub.f32 %v16217_v31, %v20923_v59  ;;  %v16260_v48 = vmul.f32 %v15961_v39, %v2105_v11 }
  0xaa   : > { %21331 = vst [vmem:[#allocation22_spill] sm:$0xff] %v16245_v2  ;;  %21332 = vst [vmem:[#allocation23_spill] sm:$0xff] %v16248_v32  ;;  %v2544_v13 = vsel %vm878_vm0, %v2497_v62, 0  ;;  %v16262_v38 = vand.u32 4294901760, %v2547_v58  ;;  %v20926_v33 = vand.u32 4294901760, %v16248_v32  ;;  %v16267_v34 = vadd.f32 %v2169_v14, %v2043_v17 }
  0xab   : > { %v16264_v47 = vand.u32 4294901760, %v2544_v13  ;;  %v2413_v23 = vpop.permute.xlu1 %2412  ;;  %v2411_v15 = vpop.permute.xlu0 %2410  ;;  %v2702_v30 = vand.u32 4294901760, %v2701_v49  ;;  %v2712_v62 = vand.u32 4294901760, %v2711_v36  ;;  %v21333_v53 = vand.u32 4294901760, %v16214_v46 }
  0xac   : > { %v16274_v11 = vsub.f32 %v2547_v58, %v16262_v38  ;;  %v2500_v17 = vsel %vm2490_vm8, %v16069_v7, %v2413_v23  ;;  %v2499_v14 = vsel %vm2490_vm8, %v16083_v6, %v2411_v15  ;;  %v16289_v58 = vmul.f32 %v15999_v21, %v2263_v54  ;;  %v16301_v23 = vld [vmem:[%s15781_s30 + $0x3c] sm:$0x7]  ;;  %s17759_s30 = scalar_lea.vmem %s21554_s5, %s15608_s17  ;;  %s15387_s17 = smov 120  }
  0xad   : > { %v2721_v55 = vsub.f32 %v16214_v46, %v21333_v53  ;;  %v16277_v31 = vsub.f32 %v2544_v13, %v16264_v47  ;;  %v2553_v36 = vsel %vm878_vm0, %v2500_v17, 0  ;;  %v2550_v49 = vsel %vm878_vm0, %v2499_v14, 0  ;;  %13261 = vmatmul.mubr.f32.vlgmr.msra.gmra.mrb[4].mxu0 %v2702_v30  ;;  %s15400_s5 = smov [#allocation2]  }
  0xae   : > { %v2731_v53 = vsub.f32 %v16248_v32, %v20926_v33  ;;  %v16291_v13 = vand.u32 4294901760, %v2553_v36  ;;  %v16293_v59 = vand.u32 4294901760, %v2550_v49  ;;  %13263 = vmatprep.mubr.f32.mxu0 %v2712_v62  ;;  %14175 = vmatpush3.bf16.msra.mxu0 %v15931_v19  ;;  %v16298_v6 = vmul.f32 %v15986_v3, %v2263_v54 }
  0xaf   : > { %21334 = vst [vmem:[#allocation24_spill] sm:$0xff] %v16277_v31  ;;  %v20933_v7 = vand.u32 4294901760, %v16277_v31  ;;  %v2417_v15 = vpop.permute.xlu1 %2416  ;;  %v2415_v30 = vpop.permute.xlu0 %2414  ;;  %v2722_v17 = vand.u32 4294901760, %v2721_v55  ;;  %v21335_v33 = vand.u32 4294901760, %v16245_v2  ;;  %14177 = vmatprep.subr.bf16.mxu0 %v16067_v37 }
  0xb0   : > { %v2732_v14 = vand.u32 4294901760, %v2731_v53  ;;  %v16309_v19 = vsub.f32 %v2553_v36, %v16291_v13  ;;  %v16312_v54 = vsub.f32 %v2550_v49, %v16293_v59  ;;  %v2502_v62 = vsel %vm2490_vm8, %v16085_v16, %v2417_v15 }
  0xb1   : > { %v2741_v32 = vsub.f32 %v16245_v2, %v21335_v33  ;;  %v2501_v55 = vsel %vm2490_vm8, %v16097_v0, %v2415_v30  ;;  %v2559_v53 = vsel %vm878_vm0, %v2502_v62, 0  ;;  %13264 = vmatmul.mubr.f32.gmra.mrb[6].mxu0 %v2722_v17  ;;  %v2751_v46 = vsub.f32 %v16277_v31, %v20933_v7 }
  0xb2   : > { %v2556_v33 = vsel %vm878_vm0, %v2501_v55, 0  ;;  %v16325_v36 = vrot.slane %v16301_v23, %v15775_v28  ;;  %v16327_v49 = vand.u32 4294901760, %v2559_v53  ;;  %13266 = vmatprep.mubr.f32.mxu0 %v2732_v14  ;;  %v20938_v16 = vand.u32 4294901760, %v16312_v54 }
  0xb3   : > { %v16329_v2 = vand.u32 4294901760, %v2556_v33  ;;  %v16334_v0 = vadd.f32 %v16198_v18, %v16228_v1  ;;  %v2421_v15 = vpop.permute.xlu1 %2420  ;;  %v2419_v30 = vpop.permute.xlu0 %2418  ;;  %v2742_v17 = vand.u32 4294901760, %v2741_v32  ;;  %v2752_v62 = vand.u32 4294901760, %v2751_v46 }
  0xb4   : > { %v21336_v55 = vand.u32 4294901760, %v16274_v11  ;;  %v16341_v31 = vsub.f32 %v2559_v53, %v16327_v49  ;;  %v2504_v18 = vsel %vm2490_vm8, %v16099_v60, %v2421_v15  ;;  %v2503_v1 = vsel %vm2490_vm8, %v16101_v44, %v2419_v30 }
  0xb5   : > { %v16344_v14 = vsub.f32 %v2556_v33, %v16329_v2  ;;  %v2565_v32 = vsel %vm878_vm0, %v2504_v18, 0  ;;  %v2562_v46 = vsel %vm878_vm0, %v2503_v1, 0  ;;  %13267 = vmatmul.mubr.f32.gmra.mrb[8].mxu0 %v2742_v17  ;;  %v16357_v53 = vadd.f32 %v16207_v51, %v16235_v12 }
  0xb6   : > { %v2761_v7 = vsub.f32 %v16274_v11, %v21336_v55  ;;  %v2771_v55 = vsub.f32 %v16312_v54, %v20938_v16  ;;  %v16359_v33 = vand.u32 4294901760, %v2565_v32  ;;  %v16361_v28 = vand.u32 4294901760, %v2562_v46  ;;  %13269 = vmatprep.mubr.f32.mxu0 %v2752_v62 }
  0xb7   : > { %21337 = vst [vmem:[#allocation25_spill] sm:$0xff] %v16344_v14  ;;  %v2200_v44 = vadd.f32 %v16260_v48, %v16242_v40  ;;  %v2425_v15 = vpop.permute.xlu1 %2424  ;;  %v2423_v30 = vpop.permute.xlu0 %2422  ;;  %v21338_v1 = vand.u32 4294901760, %v16309_v19 }
  0xb8   : > { %v2762_v17 = vand.u32 4294901760, %v2761_v7  ;;  %v2772_v18 = vand.u32 4294901760, %v2771_v55  ;;  %v16371_v12 = vsub.f32 %v2565_v32, %v16359_v33  ;;  %v16374_v62 = vsub.f32 %v2562_v46, %v16361_v28 }
  0xb9   : > { %v2781_v16 = vsub.f32 %v16309_v19, %v21338_v1  ;;  %v2506_v60 = vsel %vm2490_vm8, %v16108_v42, %v2425_v15  ;;  %v2505_v40 = vsel %vm2490_vm8, %v16113_v57, %v2423_v30  ;;  %v21340_v55 = vand.u32 4294901760, %v16344_v14 }
  0xba   : > { %21339 = vst [vmem:[#allocation26_spill] sm:$0xff] %v16374_v62  ;;  %v2571_v48 = vsel %vm878_vm0, %v2506_v60, 0  ;;  %v2568_v7 = vsel %vm878_vm0, %v2505_v40, 0  ;;  %13270 = vmatmul.mubr.f32.gmra.mrb[10].mxu0 %v2762_v17  ;;  %v16387_v32 = vrot.slane %v16301_v23, %v15793_v35  ;;  %v20943_v42 = vand.u32 4294901760, %v16374_v62 }
  0xbb   : > { %v2791_v1 = vsub.f32 %v16344_v14, %v21340_v55  ;;  %v16389_v46 = vand.u32 4294901760, %v2571_v48  ;;  %v16391_v51 = vand.u32 4294901760, %v2568_v7  ;;  %13272 = vmatprep.mubr.f32.mxu0 %v2772_v18  ;;  %v16396_v57 = vadd.f32 %v16289_v58, %v16267_v34  ;;  %v2429_v60 = vpop.permute.xlu1 %2428  ;;  %v2427_v15 = vpop.permute.xlu0 %2426 }
  0xbc   : > { %v2782_v30 = vand.u32 4294901760, %v2781_v16  ;;  %v21341_v40 = vand.u32 4294901760, %v16341_v31  ;;  %v2508_v34 = vsel %vm2490_vm8, %v16144_v61, %v2429_v60  ;;  %v2507_v58 = vsel %vm2490_vm8, %v16146_v4, %v2427_v15 }
  0xbd   : > { %v2792_v17 = vand.u32 4294901760, %v2791_v1  ;;  %v16403_v14 = vsub.f32 %v2571_v48, %v16389_v46  ;;  %v16406_v18 = vsub.f32 %v2568_v7, %v16391_v51  ;;  %v2577_v16 = vsel %vm878_vm0, %v2508_v34, 0 }
  0xbe   : > { %v2801_v55 = vsub.f32 %v16341_v31, %v21341_v40  ;;  %v2574_v1 = vsel %vm878_vm0, %v2507_v58, 0  ;;  %13273 = vmatmul.mubr.f32.gmra.mrb[12].mxu0 %v2782_v30  ;;  %v2811_v40 = vsub.f32 %v16374_v62, %v20943_v42  ;;  %v16419_v48 = vmul.f32 %v15976_v9, %v16325_v36 }
  0xbf   : > { %v16421_v7 = vand.u32 4294901760, %v2577_v16  ;;  %v16423_v35 = vand.u32 4294901760, %v2574_v1  ;;  %13275 = vmatprep.mubr.f32.mxu0 %v2792_v17  ;;  %v2267_v4 = vrot.slane %v16301_v23, %v15811_v43  ;;  %v2433_v60 = vpop.permute.xlu1 %2432  ;;  %v2431_v15 = vpop.permute.xlu0 %2430  ;;  %v21342_v58 = vand.u32 4294901760, %v16371_v12 }
  0xc0   : > { %v2802_v30 = vand.u32 4294901760, %v2801_v55  ;;  %v2812_v34 = vand.u32 4294901760, %v2811_v40  ;;  %v2510_v61 = vsel %vm2490_vm8, %v16148_v5, %v2433_v60  ;;  %v2509_v23 = vsel %vm2490_vm8, %v16151_v63, %v2431_v15 }
  0xc1   : > { %v2821_v42 = vsub.f32 %v16371_v12, %v21342_v58  ;;  %v16433_v62 = vsub.f32 %v2577_v16, %v16421_v7  ;;  %v16436_v17 = vsub.f32 %v2574_v1, %v16423_v35  ;;  %v2583_v55 = vsel %vm878_vm0, %v2510_v61, 0 }
  0xc2   : > { %v2580_v40 = vsel %vm878_vm0, %v2509_v23, 0  ;;  %13276 = vmatmul.mubr.f32.gmra.mrb[14].mxu0 %v2802_v30  ;;  %v21345_v58 = vand.u32 4294901760, %v16406_v18  ;;  %v16449_v16 = vmul.f32 %v15952_v26, %v16325_v36  ;;  %v16451_v1 = vand.u32 4294901760, %v2583_v55 }
  0xc3   : > { %21343 = vst [vmem:[#allocation27_spill] sm:$0xff] %v16433_v62  ;;  %21344 = vst [vmem:[#allocation28_spill] sm:$0xff] %v16436_v17  ;;  %v16453_v43 = vand.u32 4294901760, %v2580_v40  ;;  %13278 = vmatprep.mubr.f32.mxu0 %v2812_v34  ;;  %v20948_v5 = vand.u32 4294901760, %v16436_v17  ;;  %v16457_v63 = vadd.f32 %v16298_v6, %v2200_v44  ;;  %v2437_v61 = vpop.permute.xlu1 %2436  ;;  %v2435_v60 = vpop.permute.xlu0 %2434  ;;  %v2822_v15 = vand.u32 4294901760, %v2821_v42 }
  0xc4   : > { %v2831_v9 = vsub.f32 %v16406_v18, %v21345_v58  ;;  %v21346_v23 = vand.u32 4294901760, %v16403_v14  ;;  %v16464_v36 = vsub.f32 %v2583_v55, %v16451_v1  ;;  %v2512_v6 = vsel %vm2490_vm8, %v16153_v41, %v2437_v61 }
  0xc5   : > { %v16467_v34 = vsub.f32 %v2580_v40, %v16453_v43  ;;  %v2511_v44 = vsel %vm2490_vm8, %v16156_v8, %v2435_v60  ;;  %v2589_v42 = vsel %vm878_vm0, %v2512_v6, 0  ;;  %v2171_v55 = vmul.f32 %v15979_v25, %v16387_v32 }
  0xc6   : > { %v2832_v30 = vand.u32 4294901760, %v2831_v9  ;;  %v2841_v58 = vsub.f32 %v16403_v14, %v21346_v23  ;;  %v2586_v9 = vsel %vm878_vm0, %v2511_v44, 0  ;;  %13279 = vmatmul.mubr.f32.gmra.mrb[16].mxu0 %v2822_v15  ;;  %v2851_v23 = vsub.f32 %v16436_v17, %v20948_v5 }
  0xc7   : > { %21347 = vst [vmem:[#allocation29_spill] sm:$0xff] %v16467_v34  ;;  %v16480_v40 = vand.u32 4294901760, %v2589_v42  ;;  %v16482_v26 = vand.u32 4294901760, %v2586_v9  ;;  %v2170_v8 = vmul.f32 %v15961_v39, %v16387_v32  ;;  %v2441_v61 = vpop.permute.xlu1 %2440  ;;  %v2439_v60 = vpop.permute.xlu0 %2438  ;;  %v21349_v44 = vand.u32 4294901760, %v16433_v62 }
  0xc8   : > { %13281 = vmatprep.mubr.f32.mxu0 %v2832_v30  ;;  %v2842_v15 = vand.u32 4294901760, %v2841_v58  ;;  %v2852_v6 = vand.u32 4294901760, %v2851_v23  ;;  %v2514_v41 = vsel %vm2490_vm8, %v16164_v10, %v2441_v61  ;;  %v2513_v39 = vsel %vm2490_vm8, %v16166_v27, %v2439_v60 }
  0xc9   : > { %21348 = vst [vmem:[#allocation30_spill] sm:$0xff] %v16480_v40  ;;  %v2861_v5 = vsub.f32 %v16433_v62, %v21349_v44  ;;  %v16492_v17 = vsub.f32 %v2589_v42, %v16480_v40  ;;  %v16495_v30 = vsub.f32 %v2586_v9, %v16482_v26  ;;  %v2595_v32 = vsel %vm878_vm0, %v2514_v41, 0 }
  0xca   : > { %v2592_v58 = vsel %vm878_vm0, %v2513_v39, 0  ;;  %13282 = vmatmul.mubr.f32.gmra.mrb[18].mxu0 %v2842_v15  ;;  %v21351_v23 = vand.u32 4294901760, %v16467_v34  ;;  %v2329_v42 = vmul.f32 %v15999_v21, %v2267_v4  ;;  %v16507_v25 = vand.u32 4294901760, %v2595_v32 }
  0xcb   : > { %21350 = vst [vmem:[#allocation31_spill] sm:$0xff] %v16492_v17  ;;  %v16509_v9 = vand.u32 4294901760, %v2592_v58  ;;  %13284 = vmatprep.mubr.f32.mxu0 %v2852_v6  ;;  %v20955_v10 = vand.u32 4294901760, %v16495_v30  ;;  %v2328_v27 = vmul.f32 %v15986_v3, %v2267_v4  ;;  %v2445_v61 = vpop.permute.xlu1 %2444  ;;  %v2443_v41 = vpop.permute.xlu0 %2442  ;;  %v2862_v60 = vand.u32 4294901760, %v2861_v5 }
  0xcc   : > { %v2871_v44 = vsub.f32 %v16467_v34, %v21351_v23  ;;  %21352 = vst [vmem:[#allocation32_spill] sm:$0xff] %v16507_v25  ;;  %v21354_v15 = vand.u32 4294901760, %v16464_v36  ;;  %v20956_v23 = vand.u32 4294901760, %v16492_v17  ;;  %v16518_v21 = vsub.f32 %v2595_v32, %v16507_v25 }
  0xcd   : > { %21353 = vst [vmem:[#allocation33_spill] sm:$0xff] %v16509_v9  ;;  %v16521_v34 = vsub.f32 %v2592_v58, %v16509_v9  ;;  %v2516_v6 = vsel %vm2490_vm8, %v16177_v29, %v2445_v61  ;;  %v2515_v3 = vsel %vm2490_vm8, %v16180_v45, %v2443_v41  ;;  %v2203_v32 = vadd.f32 %v2171_v55, %v16419_v48 }
  0xce   : > { %v2872_v39 = vand.u32 4294901760, %v2871_v44  ;;  %v2881_v62 = vsub.f32 %v16464_v36, %v21354_v15  ;;  %v2601_v4 = vsel %vm878_vm0, %v2516_v6, 0  ;;  %v2598_v5 = vsel %vm878_vm0, %v2515_v3, 0  ;;  %13285 = vmatmul.mubr.f32.gmra.mrb[20].mxu0 %v2862_v60 }
  0xcf   : > { %v2891_v44 = vsub.f32 %v16495_v30, %v20955_v10  ;;  %v16533_v15 = vand.u32 4294901760, %v2601_v4  ;;  %v16535_v58 = vand.u32 4294901760, %v2598_v5  ;;  %v20959_v29 = vand.u32 4294901760, %v16521_v34  ;;  %v2449_v61 = vpop.permute.xlu1 %2448  ;;  %v2447_v41 = vpop.permute.xlu0 %2446 }
  0xd0   : > { %13287 = vmatprep.mubr.f32.mxu0 %v2872_v39  ;;  %v2202_v45 = vadd.f32 %v2170_v8, %v16449_v16  ;;  %v2882_v6 = vand.u32 4294901760, %v2881_v62  ;;  %v2901_v60 = vsub.f32 %v16492_v17, %v20956_v23  ;;  %v2518_v39 = vsel %vm2490_vm8, %v16334_v0, %v2449_v61 }
  0xd1   : > { %21355 = vst [vmem:[#allocation34_spill] sm:$0xff] %v16533_v15  ;;  %21356 = vst [vmem:[#allocation35_spill] sm:$0xff] %v16535_v58  ;;  %v2892_v3 = vand.u32 4294901760, %v2891_v44  ;;  %v16544_v48 = vsub.f32 %v2601_v4, %v16533_v15  ;;  %v16547_v55 = vsub.f32 %v2598_v5, %v16535_v58  ;;  %v2517_v16 = vsel %vm2490_vm8, %v16357_v53, %v2447_v41 }
  0xd2   : > { %v2607_v62 = vsel %vm878_vm0, %v2518_v39, 0  ;;  %v2604_v8 = vsel %vm878_vm0, %v2517_v16, 0  ;;  %13288 = vmatmul.mubr.f32.gmra.mrb[22].mxu0 %v2882_v6  ;;  %v2911_v44 = vsub.f32 %v16521_v34, %v20959_v29  ;;  %v2361_v4 = vadd.f32 %v2329_v42, %v2203_v32 }
  0xd3   : > { %21357 = vst [vmem:[#allocation36_spill] sm:$0xff] %v16544_v48  ;;  %v16558_v23 = vand.u32 4294901760, %v2607_v62  ;;  %v16560_v5 = vand.u32 4294901760, %v2604_v8  ;;  %13290 = vmatprep.mubr.f32.mxu0 %v2892_v3  ;;  %v2360_v10 = vadd.f32 %v2328_v27, %v2202_v45  ;;  %v20960_v0 = vand.u32 4294901760, %v16547_v55  ;;  %v2453_v61 = vpop.permute.xlu1 %2452  ;;  %v2451_v53 = vpop.permute.xlu0 %2450 }
  0xd4   : > { %v2902_v41 = vand.u32 4294901760, %v2901_v60  ;;  %v2912_v39 = vand.u32 4294901760, %v2911_v44  ;;  %v21360_v16 = vand.u32 4294901760, %v16518_v21  ;;  %v20961_v17 = vand.u32 4294901760, %v16544_v48 }
  0xd5   : > { %21358 = vst [vmem:[#allocation37_spill] sm:$0xff] %v16558_v23  ;;  %21359 = vst [vmem:[#allocation38_spill] sm:$0xff] %v16560_v5  ;;  %v16568_v42 = vsub.f32 %v2607_v62, %v16558_v23  ;;  %v16571_v32 = vsub.f32 %v2604_v8, %v16560_v5  ;;  %v2520_v27 = vsel %vm2490_vm8, %v16396_v57, %v2453_v61 }
  0xd6   : > { %v2921_v6 = vsub.f32 %v16518_v21, %v21360_v16  ;;  %v2519_v45 = vsel %vm2490_vm8, %v16457_v63, %v2451_v53  ;;  %v2613_v3 = vsel %vm878_vm0, %v2520_v27, 0  ;;  %13291 = vmatmul.mubr.f32.gmra.mrb[24].mxu0 %v2902_v41  ;;  %v2931_v44 = vsub.f32 %v16547_v55, %v20960_v0 }
  0xd7   : > { %v2610_v60 = vsel %vm878_vm0, %v2519_v45, 0  ;;  %v16582_v62 = vand.u32 4294901760, %v2613_v3  ;;  %13293 = vmatprep.mubr.f32.mxu0 %v2912_v39  ;;  %v2457_v57 = vpop.permute.xlu1 %2456  ;;  %v2455_v61 = vpop.permute.xlu0 %2454  ;;  %v2941_v53 = vsub.f32 %v16544_v48, %v20961_v17 }
  0xd8   : > { %v16584_v16 = vand.u32 4294901760, %v2610_v60  ;;  %v2922_v29 = vand.u32 4294901760, %v2921_v6  ;;  %v2932_v63 = vand.u32 4294901760, %v2931_v44  ;;  %v2522_v39 = vsel %vm2490_vm8, %v2361_v4, %v2457_v57 }
  0xd9   : > { %21361 = vst [vmem:[#allocation39_spill] sm:$0xff] %v16582_v62  ;;  %v16592_v27 = vsub.f32 %v2613_v3, %v16582_v62  ;;  %v2521_v0 = vsel %vm2490_vm8, %v2360_v10, %v2455_v61  ;;  %v2619_v8 = vsel %vm878_vm0, %v2522_v39, 0  ;;  %v21363_v44 = vand.u32 4294901760, %v16571_v32 }
  0xda   : > { %21362 = vst [vmem:[#allocation40_spill] sm:$0xff] %v16584_v16  ;;  %v16595_v45 = vsub.f32 %v2610_v60, %v16584_v16  ;;  %v2616_v6 = vsel %vm878_vm0, %v2521_v0, 0  ;;  %13294 = vmatmul.mubr.f32.gmra.mrb[26].mxu0 %v2922_v29  ;;  %v16604_v41 = vand.u32 4294901760, %v2619_v8  ;;  %v2942_v48 = vand.u32 4294901760, %v2941_v53 }
  0xdb   : > { %v2951_v17 = vsub.f32 %v16571_v32, %v21363_v44  ;;  %v16606_v3 = vand.u32 4294901760, %v2616_v6  ;;  %13296 = vmatprep.mubr.f32.mxu0 %v2932_v63  ;;  %v21366_v10 = vand.u32 4294901760, %v16568_v42  ;;  %v20967_v0 = vand.u32 4294901760, %v16592_v27 }
  0xdc   : > { %21364 = vst [vmem:[#allocation41_spill] sm:$0xff] %v16604_v41  ;;  %v20964_v60 = vand.u32 4294901760, %v16595_v45  ;;  %v16614_v29 = vsub.f32 %v2619_v8, %v16604_v41 }
  0xdd   : > { %21365 = vst [vmem:[#allocation42_spill] sm:$0xff] %v16606_v3  ;;  %v2952_v4 = vand.u32 4294901760, %v2951_v17  ;;  %v2961_v57 = vsub.f32 %v16568_v42, %v21366_v10  ;;  %v16617_v61 = vsub.f32 %v2616_v6, %v16606_v3  ;;  %v2981_v44 = vsub.f32 %v16592_v27, %v20967_v0  ;;  %v21377_v0 = vld [vmem:[#allocation22_spill] sm:$0xff] }
  0xde   : > { %v2971_v63 = vsub.f32 %v16595_v45, %v20964_v60  ;;  %13297 = vmatmul.mubr.f32.gmra.mrb[28].mxu0 %v2942_v48  ;;  %v20965_v8 = vand.u32 4294901760, %v16614_v29 }
  0xdf   : > { %13299 = vmatprep.mubr.f32.mxu0 %v2952_v4  ;;  %v20966_v17 = vand.u32 4294901760, %v16617_v61  ;;  %v2962_v39 = vand.u32 4294901760, %v2961_v57  ;;  %v2982_v60 = vand.u32 4294901760, %v2981_v44  ;;  %v21367_v57 = vld [vmem:[#allocation15_spill] sm:$0xff] }
  0xe0   : > { %v2972_v53 = vand.u32 4294901760, %v2971_v63  ;;  %v3001_v48 = vsub.f32 %v16614_v29, %v20965_v8  ;;  %v21368_v63 = vld [vmem:[#allocation19_spill] sm:$0xff]  ;;  %v21375_v8 = vld [vmem:[#allocation20_spill] sm:$0xff] }
  0xe1   : > { %v2991_v6 = vsub.f32 %v16617_v61, %v20966_v17  ;;  %v21376_v17 = vld [vmem:[#allocation23_spill] sm:$0xff] }
  0xe2   : > { %13300 = vmatmul.mubr.f32.gmra.mrb[30].mxu0 %v2962_v39  ;;  %v3002_v4 = vand.u32 4294901760, %v3001_v48 }
  0xe3   : > { %13302 = vmatprep.mubr.f32.mxu0 %v2972_v53  ;;  %v2992_v10 = vand.u32 4294901760, %v2991_v6  ;;  %v21371_v53 = vld [vmem:[#allocation17_spill] sm:$0xff] }
  0xe4   : > { %v21372_v39 = vand.u32 4294901760, %v21371_v53  ;;  %v21373_v6 = vld [vmem:[#allocation21_spill] sm:$0xff] }
  0xe6   : > { %13303 = vmatmul.mubr.f32.gmra.mrb[32].mxu0 %v2982_v60 }
  0xe7   : > { %13305 = vmatprep.mubr.f32.mxu0 %v2992_v10  ;;  %v21374_v10 = vld [vmem:[#allocation18_spill] sm:$0xff] }
  0xea   : > { %13306 = vmatmul.mubr.f32.gmra.mrb[34].mxu0 %v3002_v4 }
  0xeb   : > { %13312 = vmatprep.mubr.f32.mxu0 %v16175_v24 }
  0xee   : > { %13313 = vmatmul.mubr.f32.vlgmr.msra.gmra.mrb[4].mxu0 %v16203_v22 }
  0xef   : > { %13315 = vmatprep.mubr.f32.mxu0 %v16173_v20  ;;  %14179 = vmatpush3.bf16.msra.mxu0 %v16067_v37  ;;  %v21369_v37 = vld [vmem:[#allocation16_spill] sm:$0xff] }
  0xf0   : > { %14181 = vmatprep.subr.bf16.mxu0 %v21367_v57  ;;  %v21370_v60 = vand.u32 4294901760, %v21369_v37  ;;  %v16682_v37 = vld [vmem:[%s20900_s11] ss:$0 sm:$0xff] }
  0xf2   : > { %13316 = vmatmul.mubr.f32.gmra.mrb[6].mxu0 %v21368_v63  ;;  %v14184_v44 = vpack.c.bf16 %v21372_v39, %v21370_v60  ;;  %v15385_v60 = vmov 1966171168  }
  0xf3   : > { %13318 = vmatprep.mubr.f32.mxu0 %v16233_v56  ;;  %v4417_v53 = vunpack.c.l.s4 %v15385_v60 }
  0xf6   : > { %13319 = vmatmul.mubr.f32.gmra.mrb[8].mxu0 %v16231_v52 }
  0xf7   : > { %13321 = vmatprep.mubr.f32.mxu0 %v16264_v47 }
  0xfa   : > { %13322 = vmatmul.mubr.f32.gmra.mrb[10].mxu0 %v16262_v38 }
  0xfb   : > { %13324 = vmatprep.mubr.f32.mxu0 %v16293_v59 }
  0xfe   : > { %13325 = vmatmul.mubr.f32.gmra.mrb[12].mxu0 %v16291_v13 }
  0xff   : > { %13327 = vmatprep.mubr.f32.mxu0 %v16329_v2 }
 0x102   : > { %13328 = vmatmul.mubr.f32.gmra.mrb[14].mxu0 %v16327_v49 }
 0x103   : > { %13330 = vmatprep.mubr.f32.mxu0 %v16361_v28 }
 0x106   : > { %13331 = vmatmul.mubr.f32.gmra.mrb[16].mxu0 %v16359_v33 }
 0x107   : > { %13333 = vmatprep.mubr.f32.mxu0 %v16391_v51 }
 0x10a   : > { %13334 = vmatmul.mubr.f32.gmra.mrb[18].mxu0 %v16389_v46 }
 0x10b   : > { %13336 = vmatprep.mubr.f32.mxu0 %v16423_v35 }
 0x10e   : > { %13337 = vmatmul.mubr.f32.gmra.mrb[20].mxu0 %v16421_v7 }
 0x10f   : > { %13339 = vmatprep.mubr.f32.mxu0 %v16453_v43 }
 0x112   : > { %13340 = vmatmul.mubr.f32.gmra.mrb[22].mxu0 %v16451_v1 }
 0x113   : > { %13342 = vmatprep.mubr.f32.mxu0 %v16482_v26 }
 0x116   : > { %13343 = vmatmul.mubr.f32.gmra.mrb[24].mxu0 %v16480_v40 }
 0x117   : > { %13345 = vmatprep.mubr.f32.mxu0 %v16509_v9 }
 0x11a   : > { %13346 = vmatmul.mubr.f32.gmra.mrb[26].mxu0 %v16507_v25  ;;  %v21382_v25 = vld [vmem:[#allocation11_spill] sm:$0xff] }
 0x11b   : > { %13348 = vmatprep.mubr.f32.mxu0 %v16535_v58 }
 0x11e   : > { %13349 = vmatmul.mubr.f32.gmra.mrb[28].mxu0 %v16533_v15  ;;  %v21380_v15 = vld [vmem:[#allocation25_spill] sm:$0xff] }
 0x11f   : > { %13351 = vmatprep.mubr.f32.mxu0 %v16560_v5 }
 0x122   : > { %13352 = vmatmul.mubr.f32.gmra.mrb[30].mxu0 %v16558_v23 }
 0x123   : > { %13354 = vmatprep.mubr.f32.mxu0 %v16584_v16  ;;  %v4418_v16 = vunpack.c.0.s8 %v4417_v53 }
 0x125   : > { %v16698_v9 = vsub.s32 %v4418_v16, %v21382_v25  ;;  %v21388_v16 = vld [vmem:[#allocation27_spill] sm:$0xff]  ;;  %v21393_v25 = vand.u32 4294901760, %v21373_v6 }
 0x126   : > { %13355 = vmatmul.mubr.f32.gmra.mrb[32].mxu0 %v16582_v62  ;;  %v13255_v48 = vpop.f32.mrb[0].mxu1 }
 0x127   : > { %13357 = vmatprep.mubr.f32.mxu0 %v16606_v3  ;;  %v1887_v4 = vpop.f32.mrb[1].mxu1 }
 0x12a   : > { %13358 = vmatmul.mubr.f32.gmra.mrb[34].mxu0 %v16604_v41  ;;  %v21378_v41 = vld [vmem:[#allocation24_spill] sm:$0xff] }
 0x12b   : > { %13364 = vmatprep.mubr.f32.mxu0 %v16189_v50 }
 0x12e   : > { %13365 = vmatmul.mubr.f32.vlgmr.msra.gmra.mrb[4].mxu0 %v21373_v6  ;;  %v21400_v6 = vand.u32 4294901760, %v16312_v54 }
 0x12f   : > { %13367 = vmatprep.mubr.f32.mxu0 %v21374_v10  ;;  %14183 = vmatpush3.bf16.msra.mxu0 %v21367_v57 }
 0x130   : > { %14185 = vmatprep.subr.bf16.mxu0 %v14184_v44 }
 0x132   : > { %13368 = vmatmul.mubr.f32.gmra.mrb[6].mxu0 %v21375_v8  ;;  %v13213_v39 = vpop.f32.mrb[0].mxu0 }
 0x133   : > { %13370 = vmatprep.mubr.f32.mxu0 %v21376_v17  ;;  %v16687_v3 = vadd.f32 %v13213_v39, %v16682_v37  ;;  %v16689_v62 = vpop.f32.mrb[1].mxu0  ;;  %v21385_v39 = vld [vmem:[#allocation26_spill] sm:$0xff] }
 0x135   : > { %21379 = vst [vmem:[#allocation15_spill] sm:$0xff] %v16687_v3  ;;  %v4464_v23 = vcombine.high %v16687_v3, %v16687_v3 }
 0x136   : > { %13371 = vmatmul.mubr.f32.gmra.mrb[8].mxu0 %v21377_v0  ;;  %v13220_v5 = vpop.f32.mrb[2].mxu0 }
 0x137   : > { %13373 = vmatprep.mubr.f32.mxu0 %v21378_v41  ;;  %v16695_v60 = vadd.f32 %v13255_v48, %v13220_v5  ;;  %v1468_v58 = vpop.f32.mrb[3].mxu0  ;;  %v16704_v53 = vrot.slane %v4464_v23, %v16698_v9  ;;  %v21389_v23 = vld [vmem:[#allocation29_spill] sm:$0xff]  ;;  %v21390_v48 = vld [vmem:[#allocation31_spill] sm:$0xff] }
 0x138   : > { %v16700_v40 = vadd.f32 %v1887_v4, %v1468_v58  ;;  %v21387_v58 = vld [vmem:[#allocation28_spill] sm:$0xff]  ;;  %v21392_v4 = vand.u32 4294901760, %v16189_v50  ;;  %v21398_v50 = vand.u32 4294901760, %v21378_v41  ;;  %v21405_v41 = vand.u32 4294901760, %v16371_v12 }
 0x139   : > { %21381 = vst [vmem:[#allocation19_spill] sm:$0xff] %v16695_v60  ;;  %21384 = vst [vmem:[#allocation17_spill] sm:$0xff] %v16704_v53  ;;  %v4480_v3 = vcombine.high %v16704_v53, %v16704_v53  ;;  %v21395_v53 = vand.u32 4294901760, %v21375_v8  ;;  %v21397_v60 = vand.u32 4294901760, %v21377_v0  ;;  %v21402_v8 = vand.u32 4294901760, %v21380_v15 }
 0x13a   : > { %13374 = vmatmul.mubr.f32.gmra.mrb[10].mxu0 %v16274_v11  ;;  %21383 = vst [vmem:[#allocation16_spill] sm:$0xff] %v16700_v40  ;;  %v21396_v40 = vand.u32 4294901760, %v21376_v17  ;;  %v21404_v0 = vand.u32 4294901760, %v21385_v39  ;;  %v21411_v17 = vand.u32 4294901760, %v16464_v36 }
 0x13b   : > { %13376 = vmatprep.mubr.f32.mxu0 %v16312_v54  ;;  %v16712_v5 = vrot.slane %v4480_v3, %v16698_v9  ;;  %v21391_v3 = vld [vmem:[#allocation36_spill] sm:$0xff]  ;;  %v21407_v54 = vand.u32 4294901760, %v16403_v14 }
 0x13d   : > { %21386 = vst [vmem:[#allocation21_spill] sm:$0xff] %v16712_v5  ;;  %v21394_v5 = vand.u32 4294901760, %v21374_v10  ;;  %v21415_v10 = vand.u32 4294901760, %v16518_v21 }
 0x13e   : > { %13377 = vmatmul.mubr.f32.gmra.mrb[12].mxu0 %v16309_v19 }
 0x13f   : > { %13379 = vmatprep.mubr.f32.mxu0 %v21380_v15  ;;  %v21409_v15 = vand.u32 4294901760, %v21388_v16 }
 0x142   : > { %13380 = vmatmul.mubr.f32.gmra.mrb[14].mxu0 %v16341_v31 }
 0x143   : > { %13382 = vmatprep.mubr.f32.mxu0 %v21385_v39  ;;  %v21420_v39 = vand.u32 4294901760, %v16595_v45 }
 0x146   : > { %13383 = vmatmul.mubr.f32.gmra.mrb[16].mxu0 %v16371_v12  ;;  %v21412_v12 = vand.u32 4294901760, %v16495_v30 }
 0x147   : > { %13385 = vmatprep.mubr.f32.mxu0 %v16406_v18 }
 0x14a   : > { %13386 = vmatmul.mubr.f32.gmra.mrb[18].mxu0 %v16403_v14  ;;  %v21414_v14 = vand.u32 4294901760, %v16521_v34 }
 0x14b   : > { %13388 = vmatprep.mubr.f32.mxu0 %v21387_v58 }
 0x14e   : > { %13389 = vmatmul.mubr.f32.gmra.mrb[20].mxu0 %v21388_v16  ;;  %v21433_v16 = vld [vmem:[#allocation42_spill] sm:$0xff] }
 0x14f   : > { %13391 = vmatprep.mubr.f32.mxu0 %v21389_v23 }
 0x152   : > { %13392 = vmatmul.mubr.f32.gmra.mrb[22].mxu0 %v16464_v36  ;;  %v21418_v36 = vand.u32 4294901760, %v16571_v32 }
 0x153   : > { %13394 = vmatprep.mubr.f32.mxu0 %v16495_v30  ;;  %v21419_v30 = vand.u32 4294901760, %v16568_v42 }
 0x156   : > { %13395 = vmatmul.mubr.f32.gmra.mrb[24].mxu0 %v21390_v48 }
 0x157   : > { %13397 = vmatprep.mubr.f32.mxu0 %v16521_v34  ;;  %v21421_v34 = vand.u32 4294901760, %v16592_v27 }
 0x15a   : > { %13398 = vmatmul.mubr.f32.gmra.mrb[26].mxu0 %v16518_v21  ;;  %v21422_v21 = vand.u32 4294901760, %v16617_v61 }
 0x15b   : > { %13400 = vmatprep.mubr.f32.mxu0 %v16547_v55 }
 0x15e   : > { %13401 = vmatmul.mubr.f32.gmra.mrb[28].mxu0 %v21391_v3 }
 0x15f   : > { %13403 = vmatprep.mubr.f32.mxu0 %v16571_v32  ;;  %v21425_v32 = vld [vmem:[#allocation33_spill] sm:$0xff] }
 0x162   : > { %13404 = vmatmul.mubr.f32.gmra.mrb[30].mxu0 %v16568_v42  ;;  %v21424_v42 = vld [vmem:[#allocation30_spill] sm:$0xff] }
 0x163   : > { %13406 = vmatprep.mubr.f32.mxu0 %v16595_v45  ;;  %v21427_v45 = vld [vmem:[#allocation35_spill] sm:$0xff] }
 0x166   : > { %13407 = vmatmul.mubr.f32.gmra.mrb[32].mxu0 %v16592_v27  ;;  %v21426_v27 = vld [vmem:[#allocation32_spill] sm:$0xff] }
 0x167   : > { %13409 = vmatprep.mubr.f32.mxu0 %v16617_v61  ;;  %v21429_v61 = vld [vmem:[#allocation38_spill] sm:$0xff] }
 0x16a   : > { %13410 = vmatmul.mubr.f32.gmra.mrb[34].mxu0 %v16614_v29 }
 0x16b   : > { %13416 = vmatprep.mubr.f32.mxu0 %v21392_v4 }
 0x16e   : > { %13417 = vmatmul.mubr.f32.vlgmr.msra.gmra.mrb[4].mxu0 %v21393_v25  ;;  %v21399_v25 = vand.u32 4294901760, %v16274_v11  ;;  %v21406_v11 = vand.u32 4294901760, %v16406_v18  ;;  %v21413_v18 = vand.u32 4294901760, %v21390_v48 }
 0x16f   : > { %13419 = vmatprep.mubr.f32.mxu0 %v21394_v5  ;;  %14187 = vmatpush3.bf16.msra.mxu0 %v14184_v44  ;;  %v21401_v44 = vand.u32 4294901760, %v16309_v19  ;;  %v21408_v19 = vand.u32 4294901760, %v21387_v58  ;;  %v21431_v5 = vld [vmem:[#allocation40_spill] sm:$0xff]  ;;  %v21432_v58 = vld [vmem:[#allocation39_spill] sm:$0xff] }
 0x170   : > { %14189 = vmatprep.subr.bf16.mxu0 %v21367_v57 }
 0x172   : > { %13420 = vmatmul.mubr.f32.gmra.mrb[6].mxu0 %v21395_v53  ;;  %v21417_v53 = vand.u32 4294901760, %v21391_v3 }
 0x173   : > { %13422 = vmatprep.mubr.f32.mxu0 %v21396_v40  ;;  %v21403_v40 = vand.u32 4294901760, %v16341_v31  ;;  %v21410_v31 = vand.u32 4294901760, %v21389_v23  ;;  %v21434_v23 = vld [vmem:[#allocation41_spill] sm:$0xff] }
 0x176   : > { %13423 = vmatmul.mubr.f32.gmra.mrb[8].mxu0 %v21397_v60  ;;  %v21416_v60 = vand.u32 4294901760, %v16547_v55  ;;  %v21423_v55 = vand.u32 4294901760, %v16614_v29  ;;  %v21428_v29 = vld [vmem:[#allocation34_spill] sm:$0xff] }
 0x177   : > { %13425 = vmatprep.mubr.f32.mxu0 %v21398_v50 }
 0x17a   : > { %13426 = vmatmul.mubr.f32.gmra.mrb[10].mxu0 %v21399_v25 }
 0x17b   : > { %13428 = vmatprep.mubr.f32.mxu0 %v21400_v6 }
 0x17e   : > { %13429 = vmatmul.mubr.f32.gmra.mrb[12].mxu0 %v21401_v44 }
 0x17f   : > { %13431 = vmatprep.mubr.f32.mxu0 %v21402_v8 }
 0x182   : > { %13432 = vmatmul.mubr.f32.gmra.mrb[14].mxu0 %v21403_v40  ;;  %v14385_v40 = vadd.f32 %v16682_v37, %v16689_v62  ;;  %v21443_v37 = vld [vmem:[#allocation19_spill] sm:$0xff] }
 0x183   : > { %13434 = vmatprep.mubr.f32.mxu0 %v21404_v0 }
 0x184   : > { %v4422_v0 = vrot.slane %v14385_v40, %v16698_v9 }
 0x186   : > { %13435 = vmatmul.mubr.f32.gmra.mrb[16].mxu0 %v21405_v41  ;;  %v4430_v41 = vcombine.high %v4422_v0, %v4422_v0 }
 0x187   : > { %13437 = vmatprep.mubr.f32.mxu0 %v21406_v11  ;;  %v4438_v11 = vrot.slane %v4422_v0, %v16698_v9 }
 0x18a   : > { %13438 = vmatmul.mubr.f32.gmra.mrb[18].mxu0 %v21407_v54  ;;  %v4415_v54 = vcombine.high %v14385_v40, %v14385_v40 }
 0x18b   : > { %13440 = vmatprep.mubr.f32.mxu0 %v21408_v19  ;;  %v21441_v19 = vld [vmem:[#allocation15_spill] sm:$0xff] }
 0x18e   : > { %13441 = vmatmul.mubr.f32.gmra.mrb[20].mxu0 %v21409_v15  ;;  %v4471_v15 = vrot.slane %v21441_v19, %v16698_v9 }
 0x18f   : > { %13443 = vmatprep.mubr.f32.mxu0 %v21410_v31  ;;  %v21442_v31 = vld [vmem:[#allocation12_spill] sm:$0xff] }
 0x192   : > { %13444 = vmatmul.mubr.f32.gmra.mrb[22].mxu0 %v21411_v17  ;;  %v4516_v17 = vrot.slane %v4438_v11, %v21442_v31 }
 0x193   : > { %13446 = vmatprep.mubr.f32.mxu0 %v21412_v12  ;;  %v4452_v12 = vrot.slane %v4430_v41, %v16698_v9 }
 0x196   : > { %13447 = vmatmul.mubr.f32.gmra.mrb[24].mxu0 %v21413_v18  ;;  %v4429_v18 = vrot.slane %v4415_v54, %v16698_v9 }
 0x197   : > { %13449 = vmatprep.mubr.f32.mxu0 %v21414_v14 }
 0x19a   : > { %13450 = vmatmul.mubr.f32.gmra.mrb[26].mxu0 %v21415_v10 }
 0x19b   : > { %13452 = vmatprep.mubr.f32.mxu0 %v21416_v60 }
 0x19e   : > { %13453 = vmatmul.mubr.f32.gmra.mrb[28].mxu0 %v21417_v53  ;;  %v4479_v53 = vcombine.high %v4471_v15, %v4471_v15 }
 0x19f   : > { %13455 = vmatprep.mubr.f32.mxu0 %v21418_v36 }
 0x1a2   : > { %13456 = vmatmul.mubr.f32.gmra.mrb[30].mxu0 %v21419_v30  ;;  %v4520_v30 = vrot.slane %v4452_v12, %v21442_v31 }
 0x1a3   : > { %13458 = vmatprep.mubr.f32.mxu0 %v21420_v39  ;;  %v4460_v39 = vcombine.high %v4438_v11, %v4438_v11 }
 0x1a6   : > { %13459 = vmatmul.mubr.f32.gmra.mrb[32].mxu0 %v21421_v34  ;;  %v21444_v34 = vld [vmem:[#allocation16_spill] sm:$0xff] }
 0x1a7   : > { %13461 = vmatprep.mubr.f32.mxu0 %v21422_v21 }
 0x1aa   : > { %13462 = vmatmul.mubr.f32.gmra.mrb[34].mxu0 %v21423_v55 }
 0x1ab   : > { %13468 = vmatprep.mubr.f32.mxu0 %v16175_v24 }
 0x1ae   : > { %13469 = vmatmul.mubr.f32.vlgmr.msra.gmra.mrb[4].mxu0 %v16203_v22 }
 0x1af   : > { %13471 = vmatprep.mubr.f32.mxu0 %v16173_v20  ;;  %14191 = vmatpush3.bf16.msra.mxu0 %v21367_v57  ;;  %v21430_v57 = vld [vmem:[#allocation37_spill] sm:$0xff] }
 0x1b2   : > { %13472 = vmatmul.mubr.f32.gmra.mrb[6].mxu0 %v21368_v63 }
 0x1b3   : > { %13474 = vmatprep.mubr.f32.mxu0 %v16233_v56 }
 0x1b6   : > { %13475 = vmatmul.mubr.f32.gmra.mrb[8].mxu0 %v16231_v52 }
 0x1b7   : > { %13477 = vmatprep.mubr.f32.mxu0 %v16264_v47 }
 0x1ba   : > { %13478 = vmatmul.mubr.f32.gmra.mrb[10].mxu0 %v16262_v38 }
 0x1bb   : > { %13480 = vmatprep.mubr.f32.mxu0 %v16293_v59 }
 0x1be   : > { %13481 = vmatmul.mubr.f32.gmra.mrb[12].mxu0 %v16291_v13 }
 0x1bf   : > { %13483 = vmatprep.mubr.f32.mxu0 %v16329_v2 }
 0x1c2   : > { %13484 = vmatmul.mubr.f32.gmra.mrb[14].mxu0 %v16327_v49 }
 0x1c3   : > { %13486 = vmatprep.mubr.f32.mxu0 %v16361_v28 }
 0x1c6   : > { %13487 = vmatmul.mubr.f32.gmra.mrb[16].mxu0 %v16359_v33 }
 0x1c7   : > { %13489 = vmatprep.mubr.f32.mxu0 %v16391_v51 }
 0x1ca   : > { %13490 = vmatmul.mubr.f32.gmra.mrb[18].mxu0 %v16389_v46 }
 0x1cb   : > { %13492 = vmatprep.mubr.f32.mxu0 %v16423_v35 }
 0x1ce   : > { %13493 = vmatmul.mubr.f32.gmra.mrb[20].mxu0 %v16421_v7 }
 0x1cf   : > { %13495 = vmatprep.mubr.f32.mxu0 %v16453_v43 }
 0x1d2   : > { %13496 = vmatmul.mubr.f32.gmra.mrb[22].mxu0 %v16451_v1 }
 0x1d3   : > { %13498 = vmatprep.mubr.f32.mxu0 %v16482_v26 }
 0x1d6   : > { %13499 = vmatmul.mubr.f32.gmra.mrb[24].mxu0 %v21424_v42 }
 0x1d7   : > { %13501 = vmatprep.mubr.f32.mxu0 %v21425_v32 }
 0x1da   : > { %13502 = vmatmul.mubr.f32.gmra.mrb[26].mxu0 %v21426_v27 }
 0x1db   : > { %13504 = vmatprep.mubr.f32.mxu0 %v21427_v45 }
 0x1de   : > { %13505 = vmatmul.mubr.f32.gmra.mrb[28].mxu0 %v21428_v29 }
 0x1df   : > { %13507 = vmatprep.mubr.f32.mxu0 %v21429_v61 }
 0x1e2   : > { %13508 = vmatmul.mubr.f32.gmra.mrb[30].mxu0 %v21430_v57 }
 0x1e3   : > { %13510 = vmatprep.mubr.f32.mxu0 %v21431_v5 }
 0x1e6   : > { %13511 = vmatmul.mubr.f32.gmra.mrb[32].mxu0 %v21432_v58 }
 0x1e7   : > { %13513 = vmatprep.mubr.f32.mxu0 %v21433_v16 }
 0x1ea   : > { %13514 = vmatmul.mubr.f32.gmra.mrb[34].mxu0 %v21434_v23 }
 0x1eb   : > { %13520 = vmatprep.mubr.f32.mxu0 %v16175_v24  ;;  %v16874_v24 = vld [vmem:[%s20901_s12 + $0x10] sm:$0xff] }
 0x1ee   : > { %13521 = vmatmul.mubr.f32.vlgmr.msra.gmra.mrb[4].mxu0 %v16203_v22  ;;  %v5000_v22 = vand.u32 4294901760, %v16874_v24 }
 0x1ef   : > { %13523 = vmatprep.mubr.f32.mxu0 %v16173_v20 }
 0x1f2   : > { %13524 = vmatmul.mubr.f32.gmra.mrb[6].mxu0 %v21368_v63 }
 0x1f3   : > { %13526 = vmatprep.mubr.f32.mxu0 %v16233_v56  ;;  %v16879_v56 = vld [vmem:[%s20901_s12 + $0x18] sm:$0xff] }
 0x1f6   : > { %13527 = vmatmul.mubr.f32.gmra.mrb[8].mxu0 %v16231_v52 }
 0x1f7   : > { %13529 = vmatprep.mubr.f32.mxu0 %v16264_v47 }
 0x1fa   : > { %13530 = vmatmul.mubr.f32.gmra.mrb[10].mxu0 %v16262_v38  ;;  %v16898_v38 = vld [vmem:[%s20901_s12 + $0x28] sm:$0xff] }
 0x1fb   : > { %13532 = vmatprep.mubr.f32.mxu0 %v16293_v59  ;;  %v5003_v59 = vand.u32 4294901760, %v16879_v56 }
 0x1fd   : > { %v16887_v52 = vpack.c.bf16 %v5003_v59, %v5000_v22 }
 0x1fe   : > { %13533 = vmatmul.mubr.f32.gmra.mrb[12].mxu0 %v16291_v13 }
 0x1ff   : > { %13535 = vmatprep.mubr.f32.mxu0 %v16329_v2  ;;  %21436 = vst [vmem:[#allocation20_spill] sm:$0xff] %v16887_v52  ;;  %v16893_v2 = vld [vmem:[%s20901_s12 + $0x20] sm:$0xff] }
 0x200   : > { %v5006_v13 = vand.u32 4294901760, %v16893_v2 }
 0x202   : > { %13536 = vmatmul.mubr.f32.gmra.mrb[14].mxu0 %v16327_v49  ;;  %v5009_v49 = vand.u32 4294901760, %v16898_v38 }
 0x203   : > { %13538 = vmatprep.mubr.f32.mxu0 %v16361_v28  ;;  %v4881_v28 = vld [vmem:[%s20901_s12] sm:$0xff] }
 0x206   : > { %13539 = vmatmul.mubr.f32.gmra.mrb[16].mxu0 %v16359_v33  ;;  %v16907_v33 = vpack.c.bf16 %v5009_v49, %v5006_v13 }
 0x207   : > { %13541 = vmatprep.mubr.f32.mxu0 %v16391_v51  ;;  %v16913_v51 = vld [vmem:[%s20901_s12 + $0x30] sm:$0xff] }
 0x208   : > { %21437 = vst [vmem:[#allocation23_spill] sm:$0xff] %v16907_v33 }
 0x20a   : > { %13542 = vmatmul.mubr.f32.gmra.mrb[18].mxu0 %v16389_v46  ;;  %v16918_v46 = vld [vmem:[%s20901_s12 + $0x38] sm:$0xff] }
 0x20b   : > { %13544 = vmatprep.mubr.f32.mxu0 %v16423_v35  ;;  %v4882_v35 = vld [vmem:[%s20901_s12 + $0x8] sm:$0xff] }
 0x20c   : > { %v4997_v47 = vand.u32 4294901760, %v4882_v35 }
 0x20e   : > { %13545 = vmatmul.mubr.f32.gmra.mrb[20].mxu0 %v16421_v7  ;;  %v5012_v7 = vand.u32 4294901760, %v16913_v51  ;;  %v16933_v48 = vsub.f32 %v4882_v35, %v4997_v47 }
 0x20f   : > { %13547 = vmatprep.mubr.f32.mxu0 %v16453_v43  ;;  %v4994_v43 = vand.u32 4294901760, %v4881_v28 }
 0x210   : > { %21440 = vst [vmem:[#allocation25_spill] sm:$0xff] %v16933_v48  ;;  %v21001_v4 = vand.u32 4294901760, %v16933_v48 }
 0x211   : > { %v16867_v20 = vpack.c.bf16 %v4997_v47, %v4994_v43  ;;  %v16931_v63 = vsub.f32 %v4881_v28, %v4994_v43  ;;  %v4462_v28 = vcombine.high %v4452_v12, %v4452_v12 }
 0x212   : > { %13548 = vmatmul.mubr.f32.gmra.mrb[22].mxu0 %v16451_v1  ;;  %v5015_v1 = vand.u32 4294901760, %v16918_v46  ;;  %v5397_v25 = vsub.f32 %v16933_v48, %v21001_v4 }
 0x213   : > { %13550 = vmatprep.mubr.f32.mxu0 %v16482_v26  ;;  %21435 = vst [vmem:[#allocation18_spill] sm:$0xff] %v16867_v20  ;;  %14193 = vmatprep.subr.bf16.mxu1 %v16867_v20  ;;  %21439 = vst [vmem:[#allocation24_spill] sm:$0xff] %v16931_v63  ;;  %v21002_v3 = vand.u32 4294901760, %v16931_v63 }
 0x214   : > { %14195 = vmatpush3.bf16.msra.mxu1 %v16867_v20  ;;  %v16927_v26 = vpack.c.bf16 %v5015_v1, %v5012_v7  ;;  %v5398_v44 = vand.u32 4294901760, %v5397_v25 }
 0x215   : > { %14197 = vmatprep.subr.bf16.mxu1 %v16887_v52  ;;  %v5390_v50 = vsub.f32 %v16931_v63, %v21002_v3 }
 0x216   : > { %13551 = vmatmul.mubr.f32.gmra.mrb[24].mxu0 %v21424_v42  ;;  %21438 = vst [vmem:[#allocation22_spill] sm:$0xff] %v16927_v26  ;;  %v4431_v42 = vcombine.high %v4429_v18, %v4429_v18 }
 0x217   : > { %13553 = vmatprep.mubr.f32.mxu0 %v21425_v32  ;;  %v5391_v6 = vand.u32 4294901760, %v5390_v50  ;;  %v21445_v50 = vld [vmem:[#allocation17_spill] sm:$0xff] }
 0x218   : > { %14199 = vmatpush3.bf16.msra.mxu1 %v16887_v52  ;;  %v4459_v47 = vrot.slane %v4431_v42, %v16698_v9  ;;  %v4494_v25 = vrot.slane %v21445_v50, %v16698_v9 }
 0x219   : > { %14201 = vmatprep.subr.bf16.mxu1 %v16907_v33  ;;  %v16943_v8 = vpack.c.bf16 %v5398_v44, %v5391_v6 }
 0x21a   : > { %13554 = vmatmul.mubr.f32.gmra.mrb[26].mxu0 %v21426_v27 }
 0x21b   : > { %13556 = vmatprep.mubr.f32.mxu0 %v21427_v45 }
 0x21c   : > { %14203 = vmatpush3.bf16.msra.mxu1 %v16907_v33 }
 0x21d   : > { %14205 = vmatprep.subr.bf16.mxu1 %v16927_v26 }
 0x21e   : > { %13557 = vmatmul.mubr.f32.gmra.mrb[28].mxu0 %v21428_v29  ;;  %v4487_v29 = vrot.slane %v4471_v15, %v16698_v9 }
 0x21f   : > { %13559 = vmatprep.mubr.f32.mxu0 %v21429_v61 }
 0x220   : > { %14207 = vmatpush3.bf16.msra.mxu1 %v16927_v26  ;;  %v16979_v0 = vrot.slane %v4487_v29, %v21442_v31  ;;  %v4509_v41 = vcombine.high %v4487_v29, %v4487_v29 }
 0x221   : > { %14209 = vmatprep.subr.bf16.mxu1 %v16943_v8 }
 0x222   : > { %13560 = vmatmul.mubr.f32.gmra.mrb[30].mxu0 %v21430_v57 }
 0x223   : > { %13562 = vmatprep.mubr.f32.mxu0 %v21431_v5  ;;  %v4445_v5 = vrot.slane %v4429_v18, %v16698_v9 }
 0x225   : > { %v4461_v12 = vcombine.high %v4445_v5, %v4445_v5 }
 0x226   : > { %13563 = vmatmul.mubr.f32.gmra.mrb[32].mxu0 %v21432_v58  ;;  %v4501_v58 = vrot.slane %v4479_v53, %v16698_v9  ;;  %v4528_v9 = vrot.slane %v4462_v28, %v21442_v31 }
 0x227   : > { %13565 = vmatprep.mubr.f32.mxu0 %v21433_v16 }
 0x228   : > { %v16983_v19 = vrot.slane %v4501_v58, %v21442_v31  ;;  %v4511_v15 = vcombine.high %v4501_v58, %v4501_v58 }
 0x22a   : > { %13566 = vmatmul.mubr.f32.gmra.mrb[34].mxu0 %v21434_v23  ;;  %v4524_v23 = vrot.slane %v4460_v39, %v21442_v31  ;;  %v4532_v39 = vrot.slane %v4445_v5, %v21442_v31 }
 0x2c1   : > { %v13522_v14 = vpop.f32.mrb[4].mxu0 }
 0x2c2   : > { %v4594_v10 = vadd.f32 %v13522_v14, %v4516_v17  ;;  %v4223_v60 = vpop.f32.mrb[5].mxu0 }
 0x2c3   : > { %v4593_v62 = vadd.f32 %v4516_v17, %v4223_v60  ;;  %v4510_v60 = vcombine.high %v4494_v25, %v4494_v25 }
 0x2c4   : > { %v16956_v36 = vadd.f32 %v21443_v37, %v4594_v10  ;;  %v4463_v10 = vcombine.high %v4459_v47, %v4459_v47 }
 0x2c5   : > { %v16960_v21 = vadd.f32 %v21444_v34, %v4593_v62  ;;  %v13525_v55 = vpop.f32.mrb[6].mxu0  ;;  %v17016_v28 = vrot.slane %v4510_v60, %v21442_v31  ;;  %v17045_v60 = vsub.f32 %v16893_v2, %v5006_v13 }
 0x2c6   : > { %v12533_v32 = vmul.f32 -1.442695, %v16956_v36  ;;  %v4596_v27 = vadd.f32 %v13525_v55, %v4520_v30  ;;  %v4235_v45 = vpop.f32.mrb[7].mxu0  ;;  %v16995_v55 = vrot.slane %v4509_v41, %v21442_v31 }
 0x2c7   : > { %v12532_v61 = vmul.f32 -1.442695, %v16960_v21  ;;  %v4595_v57 = vadd.f32 %v4520_v30, %v4235_v45  ;;  %v17002_v45 = vrot.slane %v4494_v25, %v21442_v31  ;;  %21449 = vst [vmem:[#allocation27_spill] sm:$0xff] %v17045_v60 }
 0x2c8   : > { %15014 = vpow2.f32 %v12533_v32  ;;  %v16968_v16 = vadd.f32 %v21443_v37, %v4596_v27  ;;  %v16999_v27 = vrot.slane %v4511_v15, %v21442_v31 }
 0x2c9   : > { %15016 = vpow2.f32 %v12532_v61  ;;  %v16972_v35 = vadd.f32 %v21444_v34, %v4595_v57  ;;  %v13528_v43 = vpop.f32.mrb[8].mxu0  ;;  %v4536_v61 = vrot.slane %v4459_v47, %v21442_v31  ;;  %v4540_v57 = vrot.slane %v4461_v12, %v21442_v31 }
 0x2ca   : > { %v12535_v6 = vmul.f32 -1.442695, %v16968_v16  ;;  %v4598_v44 = vadd.f32 %v13528_v43, %v4524_v23  ;;  %v4247_v40 = vpop.f32.mrb[9].mxu0 }
 0x2cb   : > { %v12534_v11 = vmul.f32 -1.442695, %v16972_v35  ;;  %v4597_v54 = vadd.f32 %v4524_v23, %v4247_v40  ;;  %v17013_v23 = vrot.slane %v4463_v10, %v21442_v31  ;;  %v17024_v40 = vsub.f32 %v16874_v24, %v5000_v22 }
 0x2cc   : > { %15018 = vpow2.f32 %v12535_v6  ;;  %v16986_v17 = vadd.f32 %v21443_v37, %v4598_v44  ;;  %v21446_v44 = vld [vmem:[#allocation21_spill] sm:$0xff]  ;;  %v17037_v10 = vpack.c.bf16 %v16933_v48, %v16931_v63 }
 0x2cd   : > { %15020 = vpow2.f32 %v12534_v11  ;;  %v16990_v18 = vadd.f32 %v21444_v34, %v4597_v54  ;;  %v13531_v14 = vpop.f32.mrb[10].mxu0  ;;  %21447 = vst [vmem:[#allocation26_spill] sm:$0xff] %v17024_v40 }
 0x2ce   : > { %v12537_v53 = vmul.f32 -1.442695, %v16986_v17  ;;  %v4600_v62 = vadd.f32 %v13531_v14, %v4528_v9  ;;  %v4259_v30 = vpop.f32.mrb[11].mxu0 }
 0x2cf   : > { %v12536_v42 = vmul.f32 -1.442695, %v16990_v18  ;;  %v4599_v32 = vadd.f32 %v4528_v9, %v4259_v30  ;;  %v17030_v9 = vsub.f32 %v16879_v56, %v5003_v59  ;;  %v17050_v56 = vsub.f32 %v16898_v38, %v5009_v49 }
 0x2d0   : > { %15022 = vpow2.f32 %v12537_v53  ;;  %v17005_v29 = vadd.f32 %v21443_v37, %v4600_v62 }
 0x2d1   : > { %15024 = vpow2.f32 %v12536_v42  ;;  %v17010_v5 = vadd.f32 %v21444_v34, %v4599_v32  ;;  %v13534_v58 = vpop.f32.mrb[12].mxu0  ;;  %21448 = vst [vmem:[#allocation28_spill] sm:$0xff] %v17030_v9  ;;  %21450 = vst [vmem:[#allocation29_spill] sm:$0xff] %v17050_v56  ;;  %v20997_v38 = vand.u32 4294901760, %v17030_v9 }
 0x2d2   : > { %v15015_v43 = vpop.eup %15014  ;;  %v12539_v50 = vmul.f32 -1.442695, %v17005_v29  ;;  %v4602_v25 = vadd.f32 %v13534_v58, %v4532_v39  ;;  %v4271_v6 = vpop.f32.mrb[13].mxu0 }
 0x2d3   : > { %v15017_v41 = vpop.eup %15016  ;;  %v4754_v11 = vadd.f32 1.0, %v15015_v43  ;;  %v12538_v54 = vmul.f32 -1.442695, %v17010_v5  ;;  %v4601_v15 = vadd.f32 %v4532_v39, %v4271_v6  ;;  %v20998_v39 = vand.u32 4294901760, %v17024_v40 }
 0x2d4   : > { %v4753_v12 = vadd.f32 1.0, %v15017_v41  ;;  %15026 = vpow2.f32 %v12539_v50  ;;  %v17033_v14 = vadd.f32 %v21443_v37, %v4602_v25  ;;  %v20999_v25 = vand.u32 4294901760, %v17045_v60 }
 0x2d5   : > { %15028 = vrcp.f32 %v4754_v11  ;;  %v17040_v24 = vadd.f32 %v21444_v34, %v4601_v15  ;;  %v13537_v22 = vpop.f32.mrb[14].mxu0  ;;  %v17066_v6 = vsub.f32 %v16913_v51, %v5012_v7  ;;  %v17072_v15 = vsub.f32 %v16918_v46, %v5015_v1 }
 0x2d6   : > { %v15019_v59 = vpop.eup %15018  ;;  %15030 = vrcp.f32 %v4753_v12  ;;  %v12541_v53 = vmul.f32 -1.442695, %v17033_v14  ;;  %v4604_v62 = vadd.f32 %v13537_v22, %v4536_v61  ;;  %v4283_v30 = vpop.f32.mrb[15].mxu0  ;;  %v21000_v7 = vand.u32 4294901760, %v17050_v56 }
 0x2d7   : > { %v15021_v42 = vpop.eup %15020  ;;  %v4756_v32 = vadd.f32 1.0, %v15019_v59  ;;  %15032 = vpow2.f32 %v12538_v54  ;;  %v12540_v58 = vmul.f32 -1.442695, %v17040_v24  ;;  %v4603_v2 = vadd.f32 %v4536_v61, %v4283_v30  ;;  %21451 = vst [vmem:[#allocation31_spill] sm:$0xff] %v17066_v6  ;;  %21452 = vst [vmem:[#allocation36_spill] sm:$0xff] %v17072_v15 }
 0x2d8   : > { %v4755_v13 = vadd.f32 1.0, %v15021_v42  ;;  %15034 = vpow2.f32 %v12541_v53  ;;  %v17056_v43 = vadd.f32 %v21443_v37, %v4604_v62  ;;  %v17085_v46 = vsub.f32 %v17024_v40, %v20998_v39 }
 0x2d9   : > { %15036 = vrcp.f32 %v4756_v32  ;;  %v17060_v49 = vadd.f32 %v21444_v34, %v4603_v2  ;;  %v13540_v50 = vpop.f32.mrb[16].mxu0  ;;  %v21004_v1 = vand.u32 4294901760, %v17066_v6 }
 0x2da   : > { %v15023_v61 = vpop.eup %15022  ;;  %15038 = vrcp.f32 %v4755_v13  ;;  %v12543_v41 = vmul.f32 -1.442695, %v17056_v43  ;;  %v4606_v11 = vadd.f32 %v13540_v50, %v4540_v57  ;;  %v4295_v54 = vpop.f32.mrb[17].mxu0  ;;  %v21008_v13 = vand.u32 4294901760, %v17072_v15 }
 0x2db   : > { %v15025_v12 = vpop.eup %15024  ;;  %v4758_v22 = vadd.f32 1.0, %v15023_v61  ;;  %15040 = vpow2.f32 %v12540_v58  ;;  %v12542_v59 = vmul.f32 -1.442695, %v17060_v49  ;;  %v4605_v53 = vadd.f32 %v4540_v57, %v4295_v54 }
 0x2dc   : > { %v4757_v62 = vadd.f32 1.0, %v15025_v12  ;;  %15042 = vpow2.f32 %v12543_v41  ;;  %v17076_v51 = vadd.f32 %v21443_v37, %v4606_v11 }
 0x2dd   : > { %15044 = vrcp.f32 %v4758_v22  ;;  %v17080_v30 = vadd.f32 %v21444_v34, %v4605_v53  ;;  %v13543_v42 = vpop.f32.mrb[18].mxu0  ;;  %v5411_v22 = vsub.f32 %v17030_v9, %v20997_v38 }
 0x2de   : > { %v15027_v57 = vpop.eup %15026  ;;  %15046 = vrcp.f32 %v4757_v62  ;;  %v12545_v32 = vmul.f32 -1.442695, %v17076_v51  ;;  %v4608_v58 = vadd.f32 %v13543_v42, %v17013_v23  ;;  %v4307_v2 = vpop.f32.mrb[19].mxu0  ;;  %v5425_v42 = vsub.f32 %v17050_v56, %v21000_v7 }
 0x2df   : > { %v15029_v50 = vpop.eup %15028  ;;  %v4760_v61 = vadd.f32 1.0, %v15027_v57  ;;  %15048 = vpow2.f32 %v12542_v59  ;;  %v12544_v41 = vmul.f32 -1.442695, %v17080_v30  ;;  %v4607_v11 = vadd.f32 %v17013_v23, %v4307_v2 }
 0x2e0   : > { %v15031_v54 = vpop.eup %15030  ;;  %15050 = vpow2.f32 %v12545_v32  ;;  %v17094_v12 = vadd.f32 %v21443_v37, %v4608_v58  ;;  %v5418_v23 = vsub.f32 %v17045_v60, %v20999_v25  ;;  %v5432_v25 = vsub.f32 %v17066_v6, %v21004_v1 }
 0x2e1   : > { %v15033_v53 = vpop.eup %15032  ;;  %15052 = vrcp.f32 %v4760_v61  ;;  %v17100_v62 = vadd.f32 %v21444_v34, %v4607_v11  ;;  %v13546_v59 = vpop.f32.mrb[20].mxu0  ;;  %v5405_v61 = vand.u32 4294901760, %v17085_v46  ;;  %v5439_v7 = vsub.f32 %v17072_v15, %v21008_v13 }
 0x2e2   : > { %v15035_v57 = vpop.eup %15034  ;;  %v4759_v32 = vadd.f32 1.0, %v15033_v53  ;;  %15054 = vpow2.f32 %v12544_v41  ;;  %v12547_v58 = vmul.f32 -1.442695, %v17094_v12  ;;  %v4319_v2 = vpop.f32.mrb[21].mxu0  ;;  %v4850_v41 = vmul.f32 %v15029_v50, %v16956_v36 }
 0x2e3   : > { %v15037_v38 = vpop.eup %15036  ;;  %v4762_v11 = vadd.f32 1.0, %v15035_v57  ;;  %v12546_v39 = vmul.f32 -1.442695, %v17100_v62  ;;  %v4610_v53 = vadd.f32 %v13546_v59, %v16979_v0  ;;  %v5412_v3 = vand.u32 4294901760, %v5411_v22 }
 0x2e4   : > { %v15039_v4 = vpop.eup %15038  ;;  %15056 = vrcp.f32 %v4759_v32  ;;  %v4849_v57 = vmul.f32 %v15031_v54, %v16960_v21  ;;  %v4852_v47 = vmul.f32 %v15037_v38, %v16968_v16  ;;  %v4609_v48 = vadd.f32 %v16979_v0, %v4319_v2 }
 0x2e5   : > { %v15041_v46 = vpop.eup %15040  ;;  %15058 = vrcp.f32 %v4762_v11  ;;  %v13549_v1 = vpop.f32.mrb[22].mxu0  ;;  %v5419_v33 = vand.u32 4294901760, %v5418_v23  ;;  %v5426_v52 = vand.u32 4294901760, %v5425_v42  ;;  %v5433_v59 = vand.u32 4294901760, %v5432_v25 }
 0x2e6   : > { %v15043_v63 = vpop.eup %15042  ;;  %v4761_v26 = vadd.f32 1.0, %v15041_v46  ;;  %15060 = vpow2.f32 %v12547_v58  ;;  %v4331_v13 = vpop.f32.mrb[23].mxu0  ;;  %v5440_v22 = vand.u32 4294901760, %v5439_v7  ;;  %v4901_v21 = vsel %vm4896_vm9, %v4850_v41, 0 }
 0x2e7   : > { %v15045_v36 = vpop.eup %15044  ;;  %v4764_v50 = vadd.f32 1.0, %v15043_v63  ;;  %15062 = vpow2.f32 %v12546_v39  ;;  %v17124_v16 = vadd.f32 %v21443_v37, %v4610_v53  ;;  %v17128_v0 = vrot.slane %v21446_v44, %v21442_v31 }
 0x2e8   : > { %v15047_v32 = vpop.eup %15046  ;;  %15064 = vrcp.f32 %v4761_v26  ;;  %v4898_v54 = vsel %vm4896_vm9, %v4849_v57, 0  ;;  %v4907_v23 = vsel %vm4896_vm9, %v4852_v47, 0  ;;  %v17133_v63 = vadd.f32 %v21444_v34, %v4609_v48 }
 0x2e9   : > { %v15049_v38 = vpop.eup %15048  ;;  %15066 = vrcp.f32 %v4764_v50  ;;  %v13552_v39 = vpop.f32.mrb[24].mxu0  ;;  %v4851_v26 = vmul.f32 %v15039_v4, %v16972_v35  ;;  %v12549_v42 = vmul.f32 -1.442695, %v17124_v16  ;;  %v21453_v2 = vcombine.high %v21446_v44, %v21446_v44 }
 0x2ea   : > { %v15051_v25 = vpop.eup %15050  ;;  %v4763_v7 = vadd.f32 1.0, %v15049_v38  ;;  %v4343_v58 = vpop.f32.mrb[25].mxu0  ;;  %v17143_v53 = vpack.c.bf16 %v5412_v3, %v5405_v61  ;;  %v17145_v48 = vpack.c.bf16 %v5426_v52, %v5419_v33  ;;  %v17147_v46 = vpack.c.bf16 %v5440_v22, %v5433_v59 }
 0x2eb   : > { %v17141_v11 = vrot.slane %v21453_v2, %v21442_v31  ;;  %v15053_v41 = vpop.eup %15052  ;;  %v4766_v47 = vadd.f32 1.0, %v15051_v25  ;;  %v17149_v4 = vand.u32 4294901760, %v4901_v21  ;;  %v17151_v35 = vand.u32 4294901760, %v4898_v54 }
 0x2ec   : > { %v15055_v57 = vpop.eup %15054  ;;  %v17153_v50 = vand.u32 4294901760, %v4907_v23  ;;  %v4612_v38 = vadd.f32 %v13549_v1, %v16983_v19  ;;  %15068 = vrcp.f32 %v4763_v7  ;;  %v12548_v2 = vmul.f32 -1.442695, %v17133_v63 }
 0x2ed   : > { %21454 = vst [vmem:[#allocation30_spill] sm:$0xff] %v17149_v4  ;;  %v4765_v44 = vadd.f32 1.0, %v15055_v57  ;;  %v4611_v3 = vadd.f32 %v16983_v19, %v4331_v13  ;;  %v13555_v61 = vpop.f32.mrb[26].mxu0  ;;  %v4904_v33 = vsel %vm4896_vm9, %v4851_v26, 0  ;;  %v4854_v59 = vmul.f32 %v15045_v36, %v16986_v17 }
 0x2ee   : > { %21455 = vst [vmem:[#allocation33_spill] sm:$0xff] %v17153_v50  ;;  %v15057_v52 = vpop.eup %15056  ;;  %15070 = vpow2.f32 %v12549_v42  ;;  %v17161_v22 = vadd.f32 %v21443_v37, %v4612_v38  ;;  %v4355_v25 = vpop.f32.mrb[27].mxu0  ;;  %v4853_v1 = vmul.f32 %v15047_v32, %v16990_v18  ;;  %v4856_v7 = vmul.f32 %v15053_v41, %v17005_v29 }
 0x2ef   : > { %v15059_v31 = vpop.eup %15058  ;;  %15072 = vrcp.f32 %v4766_v47  ;;  %v17166_v57 = vadd.f32 %v21444_v34, %v4611_v3  ;;  %v4855_v13 = vmul.f32 %v15057_v52, %v17010_v5  ;;  %v4614_v36 = vadd.f32 %v13552_v39, %v16995_v55 }
 0x2f0   : > { %v15061_v19 = vpop.eup %15060  ;;  %15074 = vrcp.f32 %v4765_v44  ;;  %v12551_v17 = vmul.f32 -1.442695, %v17161_v22  ;;  %v17172_v42 = vsub.f32 %v4901_v21, %v17149_v4  ;;  %v17175_v18 = vsub.f32 %v4898_v54, %v17151_v35 }
 0x2f1   : > { %v15063_v26 = vpop.eup %15062  ;;  %15076 = vpow2.f32 %v12548_v2  ;;  %v12550_v29 = vmul.f32 -1.442695, %v17166_v57  ;;  %v17178_v32 = vpop.f32.mrb[28].mxu0  ;;  %v17181_v5 = vsub.f32 %v4907_v23, %v17153_v50  ;;  %v17183_v47 = vand.u32 4294901760, %v4904_v33 }
 0x2f2   : > { %v15065_v41 = vpop.eup %15064  ;;  %v4913_v39 = vsel %vm4896_vm9, %v4854_v59, 0  ;;  %15078 = vpow2.f32 %v12551_v17  ;;  %v17186_v38 = vpop.f32.mrb[29].mxu0  ;;  %v4910_v54 = vsel %vm4896_vm9, %v4853_v1, 0  ;;  %v4919_v44 = vsel %vm4896_vm9, %v4856_v7, 0 }
 0x2f3   : > { %21456 = vst [vmem:[#allocation32_spill] sm:$0xff] %v17183_v47  ;;  %v15067_v21 = vpop.eup %15066  ;;  %v4768_v2 = vadd.f32 1.0, %v15061_v19  ;;  %v17191_v3 = vadd.f32 %v21443_v37, %v4614_v36  ;;  %v4916_v52 = vsel %vm4896_vm9, %v4855_v13, 0  ;;  %v4858_v23 = vmul.f32 %v15059_v31, %v17033_v14 }
 0x2f4   : > { %v4767_v20 = vadd.f32 1.0, %v15063_v26  ;;  %v4613_v15 = vadd.f32 %v16995_v55, %v4343_v58  ;;  %v17196_v59 = vand.u32 4294901760, %v4913_v39  ;;  %v4857_v17 = vmul.f32 %v15065_v41, %v17040_v24 }
 0x2f5   : > { %15080 = vpow2.f32 %v12550_v29  ;;  %v12553_v1 = vmul.f32 -1.442695, %v17191_v3  ;;  %v17200_v6 = vpop.f32.mrb[30].mxu0  ;;  %v17202_v7 = vand.u32 4294901760, %v4910_v54  ;;  %v4860_v19 = vmul.f32 %v15067_v21, %v17056_v43 }
 0x2f6   : > { %21457 = vst [vmem:[#allocation35_spill] sm:$0xff] %v17196_v59  ;;  %v17206_v13 = vadd.f32 %v21444_v34, %v4613_v15  ;;  %v4616_v31 = vadd.f32 %v13555_v61, %v16999_v27  ;;  %v17209_v14 = vpop.f32.mrb[31].mxu0  ;;  %v15069_v55 = vpop.eup %15068  ;;  %v17211_v58 = vand.u32 4294901760, %v4919_v44  ;;  %v17213_v24 = vand.u32 4294901760, %v4916_v52 }
 0x2f7   : > { %21458 = vst [vmem:[#allocation34_spill] sm:$0xff] %v17202_v7  ;;  %15082 = vrcp.f32 %v4768_v2  ;;  %v4615_v36 = vadd.f32 %v16999_v27, %v4355_v25  ;;  %v4925_v29 = vsel %vm4896_vm9, %v4858_v23, 0  ;;  %v17222_v41 = vsub.f32 %v4904_v33, %v17183_v47 }
 0x2f8   : > { %21459 = vst [vmem:[#allocation38_spill] sm:$0xff] %v17211_v58  ;;  %21460 = vst [vmem:[#allocation37_spill] sm:$0xff] %v17213_v24  ;;  %v15071_v26 = vpop.eup %15070  ;;  %15084 = vrcp.f32 %v4767_v20  ;;  %v12552_v43 = vmul.f32 -1.442695, %v17206_v13  ;;  %v17219_v15 = vadd.f32 %v21443_v37, %v4616_v31  ;;  %v4922_v21 = vsel %vm4896_vm9, %v4857_v17, 0 }
 0x2f9   : > { %v15073_v61 = vpop.eup %15072  ;;  %15086 = vpow2.f32 %v12553_v1  ;;  %v17226_v2 = vadd.f32 %v21444_v34, %v4615_v36  ;;  %v17228_v27 = vpop.f32.mrb[32].mxu0  ;;  %v17231_v20 = vsub.f32 %v4913_v39, %v17196_v59  ;;  %v4931_v23 = vsel %vm4896_vm9, %v4860_v19, 0 }
 0x2fa   : > { %v15075_v25 = vpop.eup %15074  ;;  %v4770_v31 = vadd.f32 1.0, %v15071_v26  ;;  %15088 = vpow2.f32 %v12552_v43  ;;  %v17234_v50 = vpop.f32.mrb[33].mxu0  ;;  %v17237_v56 = vsub.f32 %v4910_v54, %v17202_v7  ;;  %v17240_v17 = vsub.f32 %v4919_v44, %v17211_v58 }
 0x2fb   : > { %v15077_v33 = vpop.eup %15076  ;;  %v17242_v1 = vand.u32 4294901760, %v4925_v29  ;;  %v12555_v36 = vmul.f32 -1.442695, %v17219_v15  ;;  %v17246_v39 = vsub.f32 %v4916_v52, %v17213_v24  ;;  %v17248_v19 = vand.u32 4294901760, %v4922_v21 }
 0x2fc   : > { %v15079_v60 = vpop.eup %15078  ;;  %v12554_v26 = vmul.f32 -1.442695, %v17226_v2  ;;  %v21046_v43 = vand.u32 4294901760, %v17175_v18  ;;  %v17252_v59 = vand.u32 4294901760, %v4931_v23  ;;  %v4859_v54 = vmul.f32 %v15069_v55, %v17060_v49 }
 0x2fd   : > { %v4862_v44 = vmul.f32 %v15073_v61, %v17076_v51  ;;  %v4861_v58 = vmul.f32 %v15075_v25, %v17080_v30  ;;  %v17257_v7 = vpop.f32.mrb[34].mxu0  ;;  %15090 = vrcp.f32 %v4770_v31  ;;  %v4769_v47 = vadd.f32 1.0, %v15077_v33 }
 0x2fe   : > { %v5069_v52 = vsub.f32 %v17175_v18, %v21046_v43  ;;  %v21042_v24 = vand.u32 4294901760, %v17172_v42  ;;  %v17263_v4 = vpop.f32.mrb[35].mxu0  ;;  %v17266_v40 = vsub.f32 %v4925_v29, %v17242_v1  ;;  %v4772_v49 = vadd.f32 1.0, %v15079_v60 }
 0x2ff   : > { %v15081_v9 = vpop.eup %15080  ;;  %15092 = vpow2.f32 %v12555_v36  ;;  %v4618_v51 = vadd.f32 %v17178_v32, %v17002_v45  ;;  %v17271_v30 = vsub.f32 %v4922_v21, %v17248_v19  ;;  %v17274_v31 = vsub.f32 %v4931_v23, %v17252_v59 }
 0x300   : > { %21461 = vst [vmem:[#allocation40_spill] sm:$0xff] %v17266_v40  ;;  %v4771_v55 = vadd.f32 1.0, %v15081_v9  ;;  %15094 = vpow2.f32 %v12554_v26  ;;  %v5070_v61 = vand.u32 4294901760, %v5069_v52  ;;  %v4928_v33 = vsel %vm4896_vm9, %v4859_v54, 0 }
 0x301   : > { %21462 = vst [vmem:[#allocation39_spill] sm:$0xff] %v17271_v30  ;;  %v15083_v25 = vpop.eup %15082  ;;  %21463 = vst [vmem:[#allocation42_spill] sm:$0xff] %v17274_v31  ;;  %v5079_v60 = vsub.f32 %v17172_v42, %v21042_v24  ;;  %v17281_v29 = vadd.f32 %v21443_v37, %v4618_v51  ;;  %v4937_v21 = vsel %vm4896_vm9, %v4862_v44, 0  ;;  %v17285_v9 = vsel %vm4896_vm9, %v4861_v58, 0 }
 0x302   : > { %v15085_v32 = vpop.eup %15084  ;;  %15096 = vrcp.f32 %v4769_v47  ;;  %13584 = vmatprep.mubr.f32.mxu1 %v5070_v61  ;;  %v4617_v23 = vadd.f32 %v17002_v45, %v17186_v38  ;;  %v21044_v52 = vand.u32 4294901760, %v17222_v41  ;;  %v4864_v24 = vmul.f32 %v15083_v25, %v17094_v12 }
 0x303   : > { %v15087_v36 = vpop.eup %15086  ;;  %15098 = vrcp.f32 %v4772_v49  ;;  %v5080_v26 = vand.u32 4294901760, %v5079_v60  ;;  %v12557_v54 = vmul.f32 -1.442695, %v17281_v29  ;;  %v21043_v47 = vand.u32 4294901760, %v17181_v5 }
 0x304   : > { %v15089_v51 = vpop.eup %15088  ;;  %15100 = vrcp.f32 %v4771_v55  ;;  %v17293_v44 = vadd.f32 %v21444_v34, %v4617_v23  ;;  %v4863_v58 = vmul.f32 %v15085_v32, %v17100_v62  ;;  %v5089_v45 = vsub.f32 %v17222_v41, %v21044_v52 }
 0x305   : > { %13585 = vmatmul.mubr.f32.vlgmr.msra.gmra.mrb[2].mxu1 %v5080_v26  ;;  %15102 = vpow2.f32 %v12557_v54  ;;  %v4620_v38 = vadd.f32 %v17200_v6, %v17128_v0  ;;  %v4774_v49 = vadd.f32 1.0, %v15087_v36  ;;  %v5099_v55 = vsub.f32 %v17181_v5, %v21043_v47 }
 0x306   : > { %v12556_v12 = vmul.f32 -1.442695, %v17293_v44  ;;  %14211 = vmatpush3.bf16.msra.mxu1 %v16943_v8  ;;  %v4619_v62 = vadd.f32 %v17128_v0, %v17209_v14  ;;  %v4773_v61 = vadd.f32 1.0, %v15089_v51  ;;  %v5090_v25 = vand.u32 4294901760, %v5089_v45 }
 0x307   : > { %v17310_v60 = vadd.f32 %v21443_v37, %v4620_v38  ;;  %v21045_v32 = vand.u32 4294901760, %v17237_v56  ;;  %14213 = vmatprep.subr.bf16.mxu1 %v17143_v53  ;;  %v15091_v6 = vpop.eup %15090  ;;  %v17314_v23 = vand.u32 4294901760, %v4928_v33  ;;  %v4943_v36 = vsel %vm4896_vm9, %v4864_v24, 0 }
 0x308   : > { %15104 = vpow2.f32 %v12556_v12  ;;  %v5100_v26 = vand.u32 4294901760, %v5099_v55  ;;  %v17317_v54 = vand.u32 4294901760, %v4937_v21  ;;  %v17320_v0 = vand.u32 4294901760, %v17285_v9  ;;  %13587 = vmatprep.mubr.f32.mxu1 %v5090_v25 }
 0x309   : > { %v15093_v8 = vpop.eup %15092  ;;  %v12559_v14 = vmul.f32 -1.442695, %v17310_v60  ;;  %v17324_v51 = vadd.f32 %v21444_v34, %v4619_v62  ;;  %v4940_v38 = vsel %vm4896_vm9, %v4863_v58, 0  ;;  %15106 = vrcp.f32 %v4774_v49 }
 0x30a   : > { %v15095_v45 = vpop.eup %15094  ;;  %13588 = vmatmul.mubr.f32.gmra.mrb[4].mxu1 %v5100_v26  ;;  %v5109_v24 = vsub.f32 %v17237_v56, %v21045_v32  ;;  %v21054_v12 = vand.u32 4294901760, %v17231_v20  ;;  %v17331_v55 = vand.u32 4294901760, %v4943_v36  ;;  %v4866_v25 = vmul.f32 %v15091_v6, %v17124_v16 }
 0x30b   : > { %15108 = vrcp.f32 %v4773_v61  ;;  %v4775_v47 = vadd.f32 1.0, %v15095_v45  ;;  %14215 = vmatpush3.bf16.msra.mxu1 %v17143_v53  ;;  %v17336_v52 = vsub.f32 %v4928_v33, %v17314_v23  ;;  %v12558_v58 = vmul.f32 -1.442695, %v17324_v51 }
 0x30c   : > { %21464 = vst [vmem:[#allocation41_spill] sm:$0xff] %v17331_v55  ;;  %v15097_v62 = vpop.eup %15096  ;;  %15110 = vpow2.f32 %v12559_v14  ;;  %v5110_v49 = vand.u32 4294901760, %v5109_v24  ;;  %14217 = vmatprep.subr.bf16.mxu1 %v17145_v48  ;;  %v17341_v32 = vsub.f32 %v4937_v21, %v17317_v54  ;;  %v17343_v43 = vand.u32 4294901760, %v4940_v38 }
 0x30d   : > { %21465 = vst [vmem:[#allocation15_spill] sm:$0xff] %v17336_v52  ;;  %v15099_v26 = vpop.eup %15098  ;;  %v4776_v16 = vadd.f32 1.0, %v15093_v8  ;;  %15112 = vrcp.f32 %v4775_v47  ;;  %v5119_v53 = vsub.f32 %v17231_v20, %v21054_v12  ;;  %v4622_v33 = vadd.f32 %v17228_v27, %v17016_v28 }
 0x30e   : > { %21466 = vst [vmem:[#allocation19_spill] sm:$0xff] %v17343_v43  ;;  %v15101_v61 = vpop.eup %15100  ;;  %15114 = vpow2.f32 %v12558_v58  ;;  %13590 = vmatprep.mubr.f32.mxu1 %v5110_v49  ;;  %v4621_v6 = vadd.f32 %v17016_v28, %v17234_v50  ;;  %v17354_v21 = vsub.f32 %v17285_v9, %v17320_v0  ;;  %v17357_v47 = vsub.f32 %v4943_v36, %v17331_v55 }
 0x30f   : > { %v15103_v14 = vpop.eup %15102  ;;  %v17360_v8 = vsel %vm4896_vm9, %v4866_v25, 0  ;;  %v21048_v45 = vand.u32 4294901760, %v17246_v39  ;;  %14219 = vmatpush3.bf16.msra.mxu1 %v17145_v48  ;;  %v4865_v27 = vmul.f32 %v15097_v62, %v17133_v63  ;;  %v5120_v58 = vand.u32 4294901760, %v5119_v53 }
 0x310   : > { %21467 = vst [vmem:[#allocation16_spill] sm:$0xff] %v17354_v21  ;;  %v4778_v24 = vadd.f32 1.0, %v15103_v14  ;;  %v17366_v28 = vadd.f32 %v21443_v37, %v4622_v33  ;;  %14221 = vmatprep.subr.bf16.mxu1 %v17147_v46  ;;  %v4868_v50 = vmul.f32 %v15099_v26, %v17161_v22  ;;  %v17371_v9 = vadd.f32 %v21444_v34, %v4621_v6 }
 0x311   : > { %v5129_v36 = vsub.f32 %v17246_v39, %v21048_v45  ;;  %v21047_v48 = vand.u32 4294901760, %v17240_v17  ;;  %v17378_v63 = vsub.f32 %v4940_v38, %v17343_v43  ;;  %v17381_v62 = vand.u32 4294901760, %v17360_v8  ;;  %13591 = vmatmul.mubr.f32.gmra.mrb[6].mxu1 %v5120_v58 }
 0x312   : > { %v15105_v25 = vpop.eup %15104  ;;  %v4867_v49 = vmul.f32 %v15101_v61, %v17166_v57  ;;  %15116 = vrcp.f32 %v4776_v16  ;;  %v12561_v26 = vmul.f32 -1.442695, %v17366_v28  ;;  %v12560_v53 = vmul.f32 -1.442695, %v17371_v9 }
 0x313   : > { %21468 = vst [vmem:[#allocation17_spill] sm:$0xff] %v17381_v62  ;;  %v4777_v22 = vadd.f32 1.0, %v15105_v25  ;;  %v5130_v33 = vand.u32 4294901760, %v5129_v36  ;;  %14223 = vmatpush3.bf16.msra.mxu1 %v17147_v46  ;;  %v15107_v6 = vpop.eup %15106  ;;  %v4946_v14 = vsel %vm4896_vm9, %v4865_v27, 0  ;;  %15118 = vrcp.f32 %v4778_v24 }
 0x314   : > { %v5139_v38 = vsub.f32 %v17240_v17, %v21047_v48  ;;  %v4624_v57 = vadd.f32 %v17257_v7, %v17141_v11  ;;  %14225 = vmatprep.subr.bf16.mxu1 %v17037_v10  ;;  %v4955_v61 = vsel %vm4896_vm9, %v4868_v50, 0  ;;  %v4623_v46 = vadd.f32 %v17141_v11, %v17263_v4 }
 0x315   : > { %v15109_v16 = vpop.eup %15108  ;;  %15120 = vrcp.f32 %v4777_v22  ;;  %13593 = vmatprep.mubr.f32.mxu1 %v5130_v33  ;;  %v21052_v27 = vand.u32 4294901760, %v17271_v30  ;;  %v4952_v58 = vsel %vm4896_vm9, %v4867_v49, 0  ;;  %v4870_v48 = vmul.f32 %v15107_v6, %v17191_v3 }
 0x316   : > { %v15111_v24 = vpop.eup %15110  ;;  %15122 = vpow2.f32 %v12561_v26  ;;  %v5140_v36 = vand.u32 4294901760, %v5139_v38  ;;  %v17400_v25 = vadd.f32 %v21443_v37, %v4624_v57  ;;  %v17404_v50 = vadd.f32 %v21444_v34, %v4623_v46 }
 0x317   : > { %v15113_v7 = vpop.eup %15112  ;;  %v4780_v45 = vadd.f32 1.0, %v15111_v24  ;;  %15124 = vpow2.f32 %v12560_v53  ;;  %v17406_v11 = vand.u32 4294901760, %v4946_v14  ;;  %v17408_v4 = vand.u32 4294901760, %v4955_v61 }
 0x318   : > { %v15115_v22 = vpop.eup %15114  ;;  %13594 = vmatmul.mubr.f32.gmra.mrb[8].mxu1 %v5140_v36  ;;  %v12563_v49 = vmul.f32 -1.442695, %v17400_v25  ;;  %v5149_v37 = vsub.f32 %v17271_v30, %v21052_v27  ;;  %v4869_v26 = vmul.f32 %v15109_v16, %v17206_v13  ;;  %v12562_v53 = vmul.f32 -1.442695, %v17404_v50 }
 0x319   : > { %21469 = vst [vmem:[#allocation21_spill] sm:$0xff] %v17406_v11  ;;  %21470 = vst [vmem:[#allocation43_spill] sm:$0xff] %v17408_v4  ;;  %15126 = vrcp.f32 %v4780_v45  ;;  %v4779_v3 = vadd.f32 1.0, %v15115_v22  ;;  %v17416_v34 = vand.u32 4294901760, %v4952_v58  ;;  %v21050_v6 = vand.u32 4294901760, %v17266_v40 }
 0x31a   : > { %15128 = vpow2.f32 %v12563_v49  ;;  %v5150_v33 = vand.u32 4294901760, %v5149_v37  ;;  %v4961_v38 = vsel %vm4896_vm9, %v4870_v48, 0  ;;  %v4871_v57 = vmul.f32 %v15113_v7, %v17226_v2 }
 0x31b   : > { %21471 = vst [vmem:[#allocation44_spill] sm:$0xff] %v17416_v34  ;;  %15130 = vrcp.f32 %v4779_v3  ;;  %v21049_v46 = vand.u32 4294901760, %v17336_v52  ;;  %v5159_v13 = vsub.f32 %v17266_v40, %v21050_v6  ;;  %v21051_v45 = vand.u32 4294901760, %v17274_v31 }
 0x31c   : > { %v15117_v24 = vpop.eup %15116  ;;  %15132 = vpow2.f32 %v12562_v53  ;;  %13596 = vmatprep.mubr.f32.mxu1 %v5150_v33  ;;  %v21053_v16 = vand.u32 4294901760, %v17354_v21  ;;  %v17428_v36 = vsub.f32 %v4946_v14, %v17406_v11  ;;  %v4958_v48 = vsel %vm4896_vm9, %v4869_v26, 0 }
 0x31d   : > { %v5169_v2 = vsub.f32 %v17336_v52, %v21049_v46  ;;  %v21065_v7 = vand.u32 4294901760, %v17341_v32  ;;  %v15119_v22 = vpop.eup %15118  ;;  %v5160_v49 = vand.u32 4294901760, %v5159_v13  ;;  %v5179_v37 = vsub.f32 %v17274_v31, %v21051_v45 }
 0x31e   : > { %v5189_v3 = vsub.f32 %v17354_v21, %v21053_v16  ;;  %v17444_v26 = vsub.f32 %v17360_v8, %v17381_v62  ;;  %v17447_v33 = vsub.f32 %v4955_v61, %v17408_v4  ;;  %v17449_v46 = vand.u32 4294901760, %v4961_v38 }
 0x31f   : > { %v15121_v53 = vpop.eup %15120  ;;  %v5170_v13 = vand.u32 4294901760, %v5169_v2  ;;  %v17452_v45 = vsub.f32 %v4952_v58, %v17416_v34  ;;  %v17454_v27 = vand.u32 4294901760, %v4958_v48  ;;  %v4964_v16 = vsel %vm4896_vm9, %v4871_v57, 0  ;;  %13597 = vmatmul.mubr.f32.gmra.mrb[10].mxu1 %v5160_v49 }
 0x320   : > { %21472 = vst [vmem:[#allocation45_spill] sm:$0xff] %v17449_v46  ;;  %v15123_v6 = vpop.eup %15122  ;;  %v5199_v8 = vsub.f32 %v17341_v32, %v21065_v7  ;;  %v4873_v61 = vmul.f32 %v15121_v53, %v17293_v44  ;;  %v5190_v21 = vand.u32 4294901760, %v5189_v3  ;;  %v21474_v2 = vand.u32 4294901760, %v17378_v63 }
 0x321   : > { %21473 = vst [vmem:[#allocation46_spill] sm:$0xff] %v17454_v27  ;;  %v15125_v12 = vpop.eup %15124  ;;  %v4782_v14 = vadd.f32 1.0, %v15123_v6  ;;  %13599 = vmatprep.mubr.f32.mxu1 %v5170_v13  ;;  %v5180_v52 = vand.u32 4294901760, %v5179_v37  ;;  %v21070_v40 = vand.u32 4294901760, %v17357_v47  ;;  %v21068_v57 = vand.u32 4294901760, %v17428_v36 }
 0x322   : > { %v5209_v58 = vsub.f32 %v17378_v63, %v21474_v2  ;;  %v4781_v31 = vadd.f32 1.0, %v15125_v12  ;;  %v17467_v30 = vsub.f32 %v4961_v38, %v17449_v46  ;;  %v4872_v7 = vmul.f32 %v15117_v24, %v17219_v15 }
 0x323   : > { %v15127_v49 = vpop.eup %15126  ;;  %v17470_v44 = vand.u32 4294901760, %v4964_v16  ;;  %15134 = vrcp.f32 %v4782_v14  ;;  %v17473_v3 = vsub.f32 %v4958_v48, %v17454_v27  ;;  %v4874_v12 = vmul.f32 %v15119_v22, %v17281_v29  ;;  %13600 = vmatmul.mubr.f32.gmra.mrb[12].mxu1 %v5180_v52 }
 0x324   : > { %v15129_v6 = vpop.eup %15128  ;;  %15136 = vrcp.f32 %v4781_v31  ;;  %v5229_v37 = vsub.f32 %v17428_v36, %v21068_v57  ;;  %v4970_v38 = vsel %vm4896_vm9, %v4873_v61, 0  ;;  %13602 = vmatprep.mubr.f32.mxu1 %v5190_v21  ;;  %v5210_v15 = vand.u32 4294901760, %v5209_v58 }
 0x325   : > { %21475 = vst [vmem:[#allocation47_spill] sm:$0xff] %v17470_v44  ;;  %v15131_v53 = vpop.eup %15130  ;;  %v4784_v13 = vadd.f32 1.0, %v15129_v6  ;;  %v21066_v24 = vand.u32 4294901760, %v17452_v45  ;;  %v5200_v2 = vand.u32 4294901760, %v5199_v8  ;;  %v5219_v31 = vsub.f32 %v17357_v47, %v21070_v40 }
 0x326   : > { %v15133_v14 = vpop.eup %15132  ;;  %v4875_v48 = vmul.f32 %v15131_v53, %v17324_v51  ;;  %v21067_v29 = vand.u32 4294901760, %v17444_v26  ;;  %v4967_v52 = vsel %vm4896_vm9, %v4872_v7, 0  ;;  %v17488_v22 = vsub.f32 %v4964_v16, %v17470_v44 }
 0x327   : > { %15138 = vrcp.f32 %v4784_v13  ;;  %v4783_v21 = vadd.f32 1.0, %v15133_v14  ;;  %v4973_v61 = vsel %vm4896_vm9, %v4874_v12, 0  ;;  %v17491_v58 = vand.u32 4294901760, %v4970_v38  ;;  %13603 = vmatmul.mubr.f32.gmra.mrb[14].mxu1 %v5200_v2 }
 0x328   : > { %21476 = vst [vmem:[#allocation48_spill] sm:$0xff] %v17488_v22  ;;  %v4876_v51 = vmul.f32 %v15127_v49, %v17310_v60  ;;  %v5230_v8 = vand.u32 4294901760, %v5229_v37  ;;  %v4976_v6 = vsel %vm4896_vm9, %v4875_v48, 0  ;;  %13605 = vmatprep.mubr.f32.mxu1 %v5210_v15  ;;  %v5249_v7 = vsub.f32 %v17452_v45, %v21066_v24 }
 0x329   : > { %21477 = vst [vmem:[#allocation49_spill] sm:$0xff] %v17491_v58  ;;  %15140 = vrcp.f32 %v4783_v21  ;;  %v21069_v16 = vand.u32 4294901760, %v17473_v3  ;;  %v17499_v53 = vand.u32 4294901760, %v4967_v52  ;;  %v5220_v13 = vand.u32 4294901760, %v5219_v31 }
 0x32a   : > { %v5239_v12 = vsub.f32 %v17444_v26, %v21067_v29  ;;  %v21071_v60 = vand.u32 4294901760, %v17447_v33  ;;  %v17505_v49 = vand.u32 4294901760, %v4973_v61  ;;  %v17508_v37 = vsub.f32 %v4970_v38, %v17491_v58 }
 0x32b   : > { %21478 = vst [vmem:[#allocation50_spill] sm:$0xff] %v17499_v53  ;;  %v17510_v15 = vand.u32 4294901760, %v4976_v6  ;;  %13606 = vmatmul.mubr.f32.gmra.mrb[16].mxu1 %v5220_v13  ;;  %v4979_v48 = vsel %vm4896_vm9, %v4876_v51, 0  ;;  %v5250_v2 = vand.u32 4294901760, %v5249_v7  ;;  %v5269_v31 = vsub.f32 %v17473_v3, %v21069_v16 }
 0x32c   : > { %21479 = vst [vmem:[#allocation51_spill] sm:$0xff] %v17505_v49  ;;  %21480 = vst [vmem:[#allocation52_spill] sm:$0xff] %v17508_v37  ;;  %13608 = vmatprep.mubr.f32.mxu1 %v5230_v8  ;;  %v21072_v21 = vand.u32 4294901760, %v17488_v22  ;;  %v17518_v29 = vsub.f32 %v4967_v52, %v17499_v53  ;;  %v5240_v38 = vand.u32 4294901760, %v5239_v12  ;;  %v5259_v13 = vsub.f32 %v17447_v33, %v21071_v60 }
 0x32d   : > { %21481 = vst [vmem:[#allocation53_spill] sm:$0xff] %v17510_v15  ;;  %v15135_v14 = vpop.eup %15134  ;;  %v21073_v57 = vand.u32 4294901760, %v17467_v30  ;;  %v17527_v7 = vsub.f32 %v4973_v61, %v17505_v49  ;;  %v17529_v16 = vand.u32 4294901760, %v4979_v48  ;;  %v17532_v40 = vsub.f32 %v4976_v6, %v17510_v15 }
 0x32e   : > { %v15137_v24 = vpop.eup %15136  ;;  %v4878_v51 = vmul.f32 %v15135_v14, %v17366_v28  ;;  %v5270_v60 = vand.u32 4294901760, %v5269_v31  ;;  %v5289_v28 = vsub.f32 %v17488_v22, %v21072_v21  ;;  %v5260_v61 = vand.u32 4294901760, %v5259_v13 }
 0x32f   : > { %v4877_v8 = vmul.f32 %v15137_v24, %v17371_v9  ;;  %21482 = vst [vmem:[#allocation54_spill] sm:$0xff] %v17529_v16  ;;  %21483 = vst [vmem:[#allocation55_spill] sm:$0xff] %v17532_v40  ;;  %13609 = vmatmul.mubr.f32.gmra.mrb[18].mxu1 %v5240_v38  ;;  %v5279_v6 = vsub.f32 %v17467_v30, %v21073_v57  ;;  %v17548_v31 = vsub.f32 %v4979_v48, %v17529_v16 }
 0x330   : > { %13611 = vmatprep.mubr.f32.mxu1 %v5250_v2  ;;  %v5290_v57 = vand.u32 4294901760, %v5289_v28  ;;  %v21485_v14 = vand.u32 4294901760, %v17508_v37 }
 0x331   : > { %v15139_v52 = vpop.eup %15138  ;;  %v4982_v12 = vsel %vm4896_vm9, %v4877_v8, 0  ;;  %v4985_v8 = vsel %vm4896_vm9, %v4878_v51, 0  ;;  %v21076_v51 = vand.u32 4294901760, %v17532_v40 }
 0x332   : > { %v17539_v24 = vand.u32 4294901760, %v4982_v12  ;;  %v4880_v2 = vmul.f32 %v15139_v52, %v17400_v25  ;;  %v5309_v22 = vsub.f32 %v17508_v37, %v21485_v14  ;;  %v17559_v25 = vand.u32 4294901760, %v4985_v8 }
 0x333   : > { %v15141_v38 = vpop.eup %15140  ;;  %13612 = vmatmul.mubr.f32.gmra.mrb[20].mxu1 %v5260_v61  ;;  %v5280_v52 = vand.u32 4294901760, %v5279_v6 }
 0x334   : > { %21484 = vst [vmem:[#allocation56_spill] sm:$0xff] %v17539_v24  ;;  %v4879_v21 = vmul.f32 %v15141_v38, %v17404_v50  ;;  %v17553_v13 = vsub.f32 %v4982_v12, %v17539_v24  ;;  %13614 = vmatprep.mubr.f32.mxu1 %v5270_v60  ;;  %21486 = vst [vmem:[#allocation57_spill] sm:$0xff] %v17559_v25  ;;  %v21487_v50 = vand.u32 4294901760, %v17518_v29  ;;  %v4991_v12 = vsel %vm4896_vm9, %v4880_v2, 0 }
 0x335   : > { %v5310_v14 = vand.u32 4294901760, %v5309_v22  ;;  %v17579_v2 = vand.u32 4294901760, %v4991_v12 }
 0x336   : > { %v4988_v48 = vsel %vm4896_vm9, %v4879_v21, 0  ;;  %v5299_v61 = vsub.f32 %v17518_v29, %v21487_v50  ;;  %v5329_v21 = vsub.f32 %v17532_v40, %v21076_v51  ;;  %v21083_v6 = vand.u32 4294901760, %v17553_v13 }
 0x337   : > { %v17566_v38 = vand.u32 4294901760, %v4988_v48  ;;  %13615 = vmatmul.mubr.f32.gmra.mrb[22].mxu1 %v5280_v52  ;;  %v17577_v50 = vsub.f32 %v4985_v8, %v17559_v25  ;;  %21489 = vst [vmem:[#allocation59_spill] sm:$0xff] %v17579_v2  ;;  %v21490_v52 = vand.u32 4294901760, %v17527_v7  ;;  %v17589_v51 = vsub.f32 %v4991_v12, %v17579_v2 }
 0x338   : > { %13617 = vmatprep.mubr.f32.mxu1 %v5290_v57  ;;  %v5300_v9 = vand.u32 4294901760, %v5299_v61  ;;  %v5330_v57 = vand.u32 4294901760, %v5329_v21  ;;  %v5349_v22 = vsub.f32 %v17553_v13, %v21083_v6  ;;  %v21491_v40 = vand.u32 4294901760, %v17548_v31  ;;  %v21495_v6 = vld [vmem:[#allocation32_spill] sm:$0xff] }
 0x339   : > { %21488 = vst [vmem:[#allocation58_spill] sm:$0xff] %v17566_v38  ;;  %v17570_v28 = vsub.f32 %v4988_v48, %v17566_v38  ;;  %v5319_v60 = vsub.f32 %v17527_v7, %v21490_v52  ;;  %v21082_v37 = vand.u32 4294901760, %v17577_v50 }
 0x33a   : > { %v5339_v61 = vsub.f32 %v17548_v31, %v21491_v40 }
 0x33b   : > { %13618 = vmatmul.mubr.f32.gmra.mrb[24].mxu1 %v5300_v9  ;;  %v21081_v48 = vand.u32 4294901760, %v17570_v28  ;;  %v5320_v8 = vand.u32 4294901760, %v5319_v60  ;;  %v5350_v9 = vand.u32 4294901760, %v5349_v22  ;;  %v5359_v12 = vsub.f32 %v17577_v50, %v21082_v37  ;;  %v21494_v37 = vld [vmem:[#allocation30_spill] sm:$0xff] }
 0x33c   : > { %13620 = vmatprep.mubr.f32.mxu1 %v5310_v14  ;;  %v5340_v21 = vand.u32 4294901760, %v5339_v61  ;;  %v21084_v60 = vand.u32 4294901760, %v17589_v51  ;;  %v21493_v61 = vld [vmem:[#allocation28_spill] sm:$0xff] }
 0x33d   : > { %v5369_v14 = vsub.f32 %v17570_v28, %v21081_v48  ;;  %v5360_v40 = vand.u32 4294901760, %v5359_v12  ;;  %v21498_v12 = vld [vmem:[#allocation33_spill] sm:$0xff] }
 0x33f   : > { %13621 = vmatmul.mubr.f32.gmra.mrb[26].mxu1 %v5320_v8  ;;  %v5370_v52 = vand.u32 4294901760, %v5369_v14  ;;  %v21492_v8 = vld [vmem:[#allocation26_spill] sm:$0xff]  ;;  %v21497_v14 = vld [vmem:[#allocation29_spill] sm:$0xff] }
 0x340   : > { %13623 = vmatprep.mubr.f32.mxu1 %v5330_v57  ;;  %v5379_v57 = vsub.f32 %v17589_v51, %v21084_v60  ;;  %v14228_v48 = vpack.c.bf16 %v21493_v61, %v21492_v8  ;;  %v21502_v60 = vld [vmem:[#allocation35_spill] sm:$0xff] }
 0x342   : > { %v5380_v22 = vand.u32 4294901760, %v5379_v57  ;;  %v21501_v57 = vld [vmem:[#allocation36_spill] sm:$0xff] }
 0x343   : > { %13624 = vmatmul.mubr.f32.gmra.mrb[28].mxu1 %v5340_v21 }
 0x344   : > { %13626 = vmatprep.mubr.f32.mxu1 %v5350_v9  ;;  %v21496_v9 = vld [vmem:[#allocation27_spill] sm:$0xff] }
 0x345   : > { %v14232_v21 = vpack.c.bf16 %v21497_v14, %v21496_v9 }
 0x347   : > { %13627 = vmatmul.mubr.f32.gmra.mrb[30].mxu1 %v5360_v40  ;;  %v21500_v40 = vld [vmem:[#allocation31_spill] sm:$0xff] }
 0x348   : > { %13629 = vmatprep.mubr.f32.mxu1 %v5370_v52  ;;  %v21499_v52 = vld [vmem:[#allocation34_spill] sm:$0xff] }
 0x34b   : > { %13630 = vmatmul.mubr.f32.gmra.mrb[32].mxu1 %v5380_v22  ;;  %v14236_v22 = vpack.c.bf16 %v21501_v57, %v21500_v40 }
 0x34c   : > { %13648 = vmatprep.mubr.f32.mxu1 %v17151_v35 }
 0x34f   : > { %13649 = vmatmul.mubr.f32.vlgmr.msra.gmra.mrb[2].mxu1 %v21494_v37  ;;  %v21503_v37 = vld [vmem:[#allocation37_spill] sm:$0xff] }
 0x350   : > { %13651 = vmatprep.mubr.f32.mxu1 %v21495_v6  ;;  %14227 = vmatpush3.bf16.msra.mxu1 %v17037_v10  ;;  %v21504_v10 = vld [vmem:[#allocation38_spill] sm:$0xff] }
 0x351   : > { %14229 = vmatprep.subr.bf16.mxu1 %v14228_v48  ;;  %v21505_v6 = vld [vmem:[#allocation18_spill] sm:$0xff] }
 0x353   : > { %13652 = vmatmul.mubr.f32.gmra.mrb[4].mxu1 %v21498_v12 }
 0x354   : > { %13654 = vmatprep.mubr.f32.mxu1 %v21499_v52  ;;  %14231 = vmatpush3.bf16.msra.mxu1 %v14228_v48  ;;  %v21506_v48 = vld [vmem:[#allocation20_spill] sm:$0xff] }
 0x355   : > { %14233 = vmatprep.subr.bf16.mxu1 %v14232_v21 }
 0x357   : > { %13655 = vmatmul.mubr.f32.gmra.mrb[6].mxu1 %v21502_v60 }
 0x358   : > { %13657 = vmatprep.mubr.f32.mxu1 %v21503_v37  ;;  %14235 = vmatpush3.bf16.msra.mxu1 %v14232_v21  ;;  %v21507_v21 = vld [vmem:[#allocation23_spill] sm:$0xff] }
 0x359   : > { %14237 = vmatprep.subr.bf16.mxu1 %v14236_v22 }
 0x35b   : > { %13658 = vmatmul.mubr.f32.gmra.mrb[8].mxu1 %v21504_v10 }
 0x35c   : > { %13660 = vmatprep.mubr.f32.mxu1 %v17248_v19  ;;  %14239 = vmatpush3.bf16.msra.mxu1 %v14236_v22  ;;  %v21508_v22 = vld [vmem:[#allocation22_spill] sm:$0xff] }
 0x35d   : > { %14241 = vmatprep.subr.bf16.mxu1 %v21505_v6 }
 0x35f   : > { %13661 = vmatmul.mubr.f32.gmra.mrb[10].mxu1 %v17242_v1 }
 0x360   : > { %13663 = vmatprep.mubr.f32.mxu1 %v17314_v23 }
 0x363   : > { %13664 = vmatmul.mubr.f32.gmra.mrb[12].mxu1 %v17252_v59 }
 0x364   : > { %13666 = vmatprep.mubr.f32.mxu1 %v17320_v0 }
 0x367   : > { %13667 = vmatmul.mubr.f32.gmra.mrb[14].mxu1 %v17317_v54 }
 0x368   : > { %13669 = vmatprep.mubr.f32.mxu1 %v17343_v43 }
 0x36b   : > { %13670 = vmatmul.mubr.f32.gmra.mrb[16].mxu1 %v17331_v55  ;;  %v21527_v55 = vand.u32 4294901760, %v21497_v14 }
 0x36c   : > { %13672 = vmatprep.mubr.f32.mxu1 %v17406_v11  ;;  %v21526_v11 = vand.u32 4294901760, %v21496_v9 }
 0x36e   : > { %v14264_v43 = vpack.c.bf16 %v21527_v55, %v21526_v11  ;;  %v21541_v11 = vand.u32 4294901760, %v17378_v63 }
 0x36f   : > { %13673 = vmatmul.mubr.f32.gmra.mrb[18].mxu1 %v17381_v62  ;;  %v21525_v62 = vand.u32 4294901760, %v17222_v41 }
 0x370   : > { %13675 = vmatprep.mubr.f32.mxu1 %v17416_v34  ;;  %v21524_v34 = vand.u32 4294901760, %v17172_v42 }
 0x373   : > { %13676 = vmatmul.mubr.f32.gmra.mrb[20].mxu1 %v17408_v4 }
 0x374   : > { %13678 = vmatprep.mubr.f32.mxu1 %v17454_v27  ;;  %v21523_v27 = vand.u32 4294901760, %v21493_v61  ;;  %v17781_v61 = vld [vmem:[%s17776_s25 + $0x8] sm:$0xff] }
 0x375   : > { %21562 = vst [vmem:[#allocation26_spill] sm:$0xff] %v17781_v61  ;;  %v21123_v14 = vand.u32 4294901760, %v17781_v61 }
 0x377   : > { %13679 = vmatmul.mubr.f32.gmra.mrb[22].mxu1 %v17449_v46  ;;  %v21522_v46 = vand.u32 4294901760, %v21492_v8  ;;  %v21529_v8 = vand.u32 4294901760, %v17237_v56 }
 0x378   : > { %13681 = vmatprep.mubr.f32.mxu1 %v17470_v44  ;;  %v21517_v44 = vld [vmem:[#allocation16_spill] sm:$0xff] }
 0x379   : > { %v14260_v4 = vpack.c.bf16 %v21523_v27, %v21522_v46  ;;  %v21532_v27 = vand.u32 4294901760, %v17231_v20  ;;  %v21543_v46 = vand.u32 4294901760, %v17428_v36 }
 0x37b   : > { %13682 = vmatmul.mubr.f32.gmra.mrb[24].mxu1 %v17499_v53  ;;  %v21516_v53 = vld [vmem:[#allocation42_spill] sm:$0xff] }
 0x37c   : > { %13684 = vmatprep.mubr.f32.mxu1 %v17491_v58  ;;  %v21515_v58 = vld [vmem:[#allocation15_spill] sm:$0xff] }
 0x37f   : > { %13685 = vmatmul.mubr.f32.gmra.mrb[26].mxu1 %v17505_v49  ;;  %v21514_v49 = vld [vmem:[#allocation40_spill] sm:$0xff] }
 0x380   : > { %13687 = vmatprep.mubr.f32.mxu1 %v17510_v15  ;;  %v21513_v15 = vld [vmem:[#allocation39_spill] sm:$0xff]  ;;  %v21536_v55 = vand.u32 4294901760, %v21514_v49 }
 0x383   : > { %13688 = vmatmul.mubr.f32.gmra.mrb[28].mxu1 %v17529_v16 }
 0x384   : > { %13690 = vmatprep.mubr.f32.mxu1 %v17539_v24 }
 0x387   : > { %13691 = vmatmul.mubr.f32.gmra.mrb[30].mxu1 %v17559_v25  ;;  %v21511_v25 = vld [vmem:[#allocation25_spill] sm:$0xff] }
 0x388   : > { %13693 = vmatprep.mubr.f32.mxu1 %v17566_v38  ;;  %v21512_v24 = vand.u32 4294901760, %v21511_v25  ;;  %v21519_v25 = vld [vmem:[#allocation52_spill] sm:$0xff] }
 0x38b   : > { %13694 = vmatmul.mubr.f32.gmra.mrb[32].mxu1 %v17579_v2  ;;  %v21509_v2 = vld [vmem:[#allocation24_spill] sm:$0xff] }
 0x38c   : > { %13712 = vmatprep.mubr.f32.mxu1 %v17175_v18  ;;  %v21510_v38 = vand.u32 4294901760, %v21509_v2  ;;  %v21521_v2 = vand.u32 4294901760, %v17175_v18  ;;  %v21528_v18 = vand.u32 4294901760, %v17181_v5 }
 0x38e   : > { %v14256_v16 = vpack.c.bf16 %v21512_v24, %v21510_v38  ;;  %v21518_v24 = vld [vmem:[#allocation48_spill] sm:$0xff]  ;;  %v21520_v38 = vld [vmem:[#allocation55_spill] sm:$0xff] }
 0x38f   : > { %13713 = vmatmul.mubr.f32.vlgmr.msra.gmra.mrb[2].mxu1 %v17172_v42  ;;  %v21530_v42 = vand.u32 4294901760, %v21500_v40  ;;  %v17787_v40 = vld [vmem:[%s17776_s25] sm:$0xff] }
 0x390   : > { %13715 = vmatprep.mubr.f32.mxu1 %v17222_v41  ;;  %14243 = vmatpush3.bf16.msra.mxu1 %v21505_v6  ;;  %v21531_v41 = vand.u32 4294901760, %v21501_v57  ;;  %21565 = vst [vmem:[#allocation28_spill] sm:$0xff] %v17787_v40  ;;  %v21566_v57 = vld [vmem:[#allocation32_spill] sm:$0xff] }
 0x391   : > { %14245 = vmatprep.subr.bf16.mxu1 %v21506_v48 }
 0x393   : > { %13716 = vmatmul.mubr.f32.gmra.mrb[4].mxu1 %v17181_v5  ;;  %v21534_v5 = vand.u32 4294901760, %v17240_v17 }
 0x394   : > { %13718 = vmatprep.mubr.f32.mxu1 %v17237_v56  ;;  %14247 = vmatpush3.bf16.msra.mxu1 %v21506_v48  ;;  %v21535_v56 = vand.u32 4294901760, %v21513_v15 }
 0x395   : > { %14249 = vmatprep.subr.bf16.mxu1 %v21507_v21 }
 0x397   : > { %13719 = vmatmul.mubr.f32.gmra.mrb[6].mxu1 %v17231_v20  ;;  %v21537_v20 = vand.u32 4294901760, %v21515_v58 }
 0x398   : > { %13721 = vmatprep.mubr.f32.mxu1 %v17246_v39  ;;  %14251 = vmatpush3.bf16.msra.mxu1 %v21507_v21 }
 0x399   : > { %14253 = vmatprep.subr.bf16.mxu1 %v21508_v22 }
 0x39b   : > { %13722 = vmatmul.mubr.f32.gmra.mrb[8].mxu1 %v17240_v17  ;;  %v21540_v17 = vand.u32 4294901760, %v17341_v32 }
 0x39c   : > { %13724 = vmatprep.mubr.f32.mxu1 %v21513_v15  ;;  %14255 = vmatpush3.bf16.msra.mxu1 %v21508_v22  ;;  %v21559_v15 = vand.u32 4294901760, %v17589_v51 }
 0x39d   : > { %14257 = vmatprep.subr.bf16.mxu1 %v14256_v16 }
 0x39f   : > { %13725 = vmatmul.mubr.f32.gmra.mrb[10].mxu1 %v21514_v49  ;;  %v21558_v49 = vand.u32 4294901760, %v17570_v28 }
 0x3a0   : > { %13727 = vmatprep.mubr.f32.mxu1 %v21515_v58  ;;  %v21544_v58 = vand.u32 4294901760, %v17444_v26 }
 0x3a3   : > { %13728 = vmatmul.mubr.f32.gmra.mrb[12].mxu1 %v21516_v53 }
 0x3a4   : > { %13730 = vmatprep.mubr.f32.mxu1 %v21517_v44 }
 0x3a7   : > { %13731 = vmatmul.mubr.f32.gmra.mrb[14].mxu1 %v17341_v32  ;;  %v21547_v32 = vand.u32 4294901760, %v17473_v3 }
 0x3a8   : > { %13733 = vmatprep.mubr.f32.mxu1 %v17378_v63  ;;  %v21548_v63 = vand.u32 4294901760, %v17467_v30 }
 0x3ab   : > { %13734 = vmatmul.mubr.f32.gmra.mrb[16].mxu1 %v17357_v47 }
 0x3ac   : > { %13736 = vmatprep.mubr.f32.mxu1 %v17428_v36  ;;  %v21550_v36 = vand.u32 4294901760, %v17518_v29 }
 0x3af   : > { %13737 = vmatmul.mubr.f32.gmra.mrb[18].mxu1 %v17444_v26  ;;  %v21551_v26 = vand.u32 4294901760, %v21519_v25 }
 0x3b0   : > { %13739 = vmatprep.mubr.f32.mxu1 %v17452_v45 }
 0x3b3   : > { %13740 = vmatmul.mubr.f32.gmra.mrb[20].mxu1 %v17447_v33 }
 0x3b4   : > { %13742 = vmatprep.mubr.f32.mxu1 %v17473_v3  ;;  %v21556_v3 = vand.u32 4294901760, %v17553_v13 }
 0x3b7   : > { %13743 = vmatmul.mubr.f32.gmra.mrb[22].mxu1 %v17467_v30  ;;  %v21555_v30 = vand.u32 4294901760, %v17548_v31 }
 0x3b8   : > { %13745 = vmatprep.mubr.f32.mxu1 %v21518_v24 }
 0x3bb   : > { %13746 = vmatmul.mubr.f32.gmra.mrb[24].mxu1 %v17518_v29  ;;  %v849_v29 = vld [vmem:[%s17759_s30] sm:$0xff] }
 0x3bc   : > { %13748 = vmatprep.mubr.f32.mxu1 %v21519_v25  ;;  %vm7024_vm10 = vcmp.gt.f32.partialorder %v849_v29, 0.0 }
 0x3bf   : > { %13749 = vmatmul.mubr.f32.gmra.mrb[26].mxu1 %v17527_v7 }
 0x3c0   : > { %13751 = vmatprep.mubr.f32.mxu1 %v21520_v38 }
 0x3c3   : > { %13752 = vmatmul.mubr.f32.gmra.mrb[28].mxu1 %v17548_v31 }
 0x3c4   : > { %13754 = vmatprep.mubr.f32.mxu1 %v17553_v13  ;;  %v21561_v13 = vld [vmem:[#allocation12_spill] sm:$0xff] }
 0x3c7   : > { %13755 = vmatmul.mubr.f32.gmra.mrb[30].mxu1 %v17577_v50 }
 0x3c8   : > { %13757 = vmatprep.mubr.f32.mxu1 %v17570_v28  ;;  %v21563_v28 = vld [vmem:[#allocation30_spill] sm:$0xff] }
 0x3cb   : > { %13758 = vmatmul.mubr.f32.gmra.mrb[32].mxu1 %v17589_v51  ;;  %v21564_v51 = vld [vmem:[#allocation13_spill] sm:$0xff] }
 0x3cc   : > { %13776 = vmatprep.mubr.f32.mxu1 %v21521_v2 }
 0x3cf   : > { %13777 = vmatmul.mubr.f32.vlgmr.msra.gmra.mrb[2].mxu1 %v21524_v34  ;;  %v21533_v34 = vand.u32 4294901760, %v17246_v39  ;;  %v21538_v39 = vand.u32 4294901760, %v21516_v53  ;;  %v21557_v53 = vand.u32 4294901760, %v17577_v50 }
 0x3d0   : > { %13779 = vmatprep.mubr.f32.mxu1 %v21525_v62  ;;  %14259 = vmatpush3.bf16.msra.mxu1 %v14256_v16  ;;  %v14268_v62 = vpack.c.bf16 %v21531_v41, %v21530_v42  ;;  %v21545_v16 = vand.u32 4294901760, %v17452_v45  ;;  %v21552_v45 = vand.u32 4294901760, %v17527_v7  ;;  %v15386_v7 = vmov -1e+30  }
 0x3d1   : > { %14261 = vmatprep.subr.bf16.mxu1 %v14260_v4  ;;  %v7026_v31 = vsel %vm7024_vm10, 0.0, %v15386_v7 }
 0x3d2   : > { %v7031_v50 = vrot.slane %v7026_v31, %v21561_v13  ;;  %v7042_v9 = vrot.slane %v7026_v31, %v21564_v51 }
 0x3d3   : > { %13780 = vmatmul.mubr.f32.gmra.mrb[4].mxu1 %v21528_v18  ;;  %v21569_v18 = vld [vmem:[#allocation11_spill] sm:$0xff] }
 0x3d4   : > { %13782 = vmatprep.mubr.f32.mxu1 %v21529_v8  ;;  %14263 = vmatpush3.bf16.msra.mxu1 %v14260_v4  ;;  %v21542_v4 = vand.u32 4294901760, %v17357_v47  ;;  %v21549_v47 = vand.u32 4294901760, %v21518_v24  ;;  %v21124_v24 = vand.u32 4294901760, %v17787_v40  ;;  %v7063_v8 = vsub.s32 3, %v21569_v18 }
 0x3d5   : > { %14265 = vmatprep.subr.bf16.mxu1 %v14264_v43  ;;  %7037 = vbcast.lane.b32.xlu1 %v7031_v50, 264  ;;  %v7074_v42 = vsub.s32 4, %v21569_v18  ;;  %v7085_v41 = vsub.s32 5, %v21569_v18 }
 0x3d6   : > { %7033 = vbcast.lane.b32.xlu0 %v7031_v50, 256  ;;  %v17797_v25 = vpack.c.bf16 %v21123_v14, %v21124_v24 }
 0x3d7   : > { %13783 = vmatmul.mubr.f32.gmra.mrb[6].mxu1 %v21532_v27  ;;  %v850_v27 = vld [vmem:[%s17759_s30 + $0x8] sm:$0xff]  ;;  %s21607_s30 = sshll.u32 %s15562_s20, 8  ;;  %s15399_s20 = smov 12  }
 0x3d8   : > { %13785 = vmatprep.mubr.f32.mxu1 %v21533_v34  ;;  %14267 = vmatpush3.bf16.msra.mxu1 %v14264_v43  ;;  %v21539_v43 = vand.u32 4294901760, %v21517_v44  ;;  %v21546_v44 = vand.u32 4294901760, %v17447_v33  ;;  %v21553_v33 = vand.u32 4294901760, %v21520_v38  ;;  %21567 = vst [vmem:[#allocation27_spill] sm:$0xff] %v17797_v25  ;;  %v21568_v38 = vld [vmem:[#allocation14_spill] sm:$0xff]  ;;  %vm7025_vm11 = vcmp.gt.f32.partialorder %v850_v27, 0.0 }
 0x3d9   : > { %14269 = vmatprep.subr.bf16.mxu1 %v14268_v62  ;;  %7048 = vbcast.lane.b32.xlu1 %v7042_v9, 264  ;;  %v7053_v2 = vrot.slane %v7026_v31, %v21568_v38 }
 0x3da   : > { %7044 = vbcast.lane.b32.xlu0 %v7042_v9, 256  ;;  %14289 = vmatprep.subr.bf16.mxu0 %v17797_v25 }
 0x3db   : > { %13786 = vmatmul.mubr.f32.gmra.mrb[8].mxu1 %v21534_v5  ;;  %14291 = vmatpush3.bf16.msra.mxu0 %v17797_v25  ;;  %v7107_v5 = vsub.s32 7, %v21569_v18 }
 0x3dc   : > { %13788 = vmatprep.mubr.f32.mxu1 %v21535_v56  ;;  %14271 = vmatpush3.bf16.msra.mxu1 %v14268_v62  ;;  %v7096_v62 = vsub.s32 6, %v21569_v18  ;;  %v21570_v56 = vld [vmem:[#allocation19_spill] sm:$0xff] }
 0x3dd   : > { %14273 = vmatprep.subr.bf16.mxu1 %v21505_v6  ;;  %7059 = vbcast.lane.b32.xlu1 %v7053_v2, 264 }
 0x3de   : > { %7055 = vbcast.lane.b32.xlu0 %v7053_v2, 256  ;;  %v7097_v34 = vrot.slane %v7026_v31, %v7096_v62 }
 0x3df   : > { %13789 = vmatmul.mubr.f32.gmra.mrb[10].mxu1 %v21536_v55  ;;  %v7027_v55 = vsel %vm7025_vm11, 0.0, %v15386_v7  ;;  %v21586_v7 = vld [vmem:[#allocation58_spill] sm:$0xff] }
 0x3e0   : > { %13791 = vmatprep.mubr.f32.mxu1 %v21537_v20  ;;  %v21571_v20 = vld [vmem:[#allocation41_spill] sm:$0xff]  ;;  %v7185_v29 = vrot.slane %v7027_v55, %v7096_v62 }
 0x3e3   : > { %13792 = vmatmul.mubr.f32.gmra.mrb[12].mxu1 %v21538_v39  ;;  %v7119_v39 = vrot.slane %v7027_v55, %v21561_v13 }
 0x3e4   : > { %13794 = vmatprep.mubr.f32.mxu1 %v21539_v43  ;;  %v21572_v43 = vld [vmem:[#allocation21_spill] sm:$0xff] }
 0x3e7   : > { %13795 = vmatmul.mubr.f32.gmra.mrb[14].mxu1 %v21540_v17  ;;  %v21573_v17 = vld [vmem:[#allocation17_spill] sm:$0xff] }
 0x3e8   : > { %13797 = vmatprep.mubr.f32.mxu1 %v21541_v11  ;;  %v7130_v11 = vrot.slane %v7027_v55, %v21564_v51 }
 0x3eb   : > { %13798 = vmatmul.mubr.f32.gmra.mrb[16].mxu1 %v21542_v4  ;;  %v21574_v4 = vld [vmem:[#allocation44_spill] sm:$0xff] }
 0x3ec   : > { %13800 = vmatprep.mubr.f32.mxu1 %v21543_v46  ;;  %v21575_v46 = vld [vmem:[#allocation43_spill] sm:$0xff] }
 0x3ef   : > { %13801 = vmatmul.mubr.f32.gmra.mrb[18].mxu1 %v21544_v58  ;;  %v7141_v58 = vrot.slane %v7027_v55, %v21568_v38 }
 0x3f0   : > { %13803 = vmatprep.mubr.f32.mxu1 %v21545_v16  ;;  %v21576_v16 = vld [vmem:[#allocation46_spill] sm:$0xff] }
 0x3f3   : > { %13804 = vmatmul.mubr.f32.gmra.mrb[20].mxu1 %v21546_v44  ;;  %v21577_v44 = vld [vmem:[#allocation45_spill] sm:$0xff] }
 0x3f4   : > { %13806 = vmatprep.mubr.f32.mxu1 %v21547_v32  ;;  %v7152_v32 = vrot.slane %v7027_v55, %v7063_v8 }
 0x3f7   : > { %13807 = vmatmul.mubr.f32.gmra.mrb[22].mxu1 %v21548_v63  ;;  %v21578_v63 = vld [vmem:[#allocation47_spill] sm:$0xff] }
 0x3f8   : > { %13809 = vmatprep.mubr.f32.mxu1 %v21549_v47  ;;  %v21579_v47 = vld [vmem:[#allocation50_spill] sm:$0xff] }
 0x3fb   : > { %13810 = vmatmul.mubr.f32.gmra.mrb[24].mxu1 %v21550_v36  ;;  %v7163_v36 = vrot.slane %v7027_v55, %v7074_v42 }
 0x3fc   : > { %13812 = vmatprep.mubr.f32.mxu1 %v21551_v26  ;;  %v21580_v26 = vld [vmem:[#allocation49_spill] sm:$0xff] }
 0x3ff   : > { %13813 = vmatmul.mubr.f32.gmra.mrb[26].mxu1 %v21552_v45  ;;  %v21581_v45 = vld [vmem:[#allocation51_spill] sm:$0xff] }
 0x400   : > { %13815 = vmatprep.mubr.f32.mxu1 %v21553_v33  ;;  %v7174_v33 = vrot.slane %v7027_v55, %v7085_v41 }
 0x403   : > { %13816 = vmatmul.mubr.f32.gmra.mrb[28].mxu1 %v21555_v30  ;;  %v21582_v30 = vld [vmem:[#allocation53_spill] sm:$0xff] }
 0x404   : > { %13818 = vmatprep.mubr.f32.mxu1 %v21556_v3  ;;  %v21583_v3 = vld [vmem:[#allocation54_spill] sm:$0xff] }
 0x407   : > { %13819 = vmatmul.mubr.f32.gmra.mrb[30].mxu1 %v21557_v53  ;;  %v21584_v53 = vld [vmem:[#allocation56_spill] sm:$0xff] }
 0x408   : > { %13821 = vmatprep.mubr.f32.mxu1 %v21558_v49  ;;  %v21585_v49 = vld [vmem:[#allocation57_spill] sm:$0xff] }
 0x40b   : > { %13822 = vmatmul.mubr.f32.gmra.mrb[32].mxu1 %v21559_v15  ;;  %v7196_v15 = vrot.slane %v7027_v55, %v7107_v5 }
 0x40c   : > { %13840 = vmatprep.mubr.f32.mxu1 %v17151_v35 }
 0x40f   : > { %13841 = vmatmul.mubr.f32.vlgmr.msra.gmra.mrb[2].mxu1 %v21563_v28 }
 0x410   : > { %13843 = vmatprep.mubr.f32.mxu1 %v21566_v57  ;;  %14275 = vmatpush3.bf16.msra.mxu1 %v21505_v6  ;;  %v7064_v6 = vrot.slane %v7026_v31, %v7063_v8 }
 0x411   : > { %14277 = vmatprep.subr.bf16.mxu1 %v21506_v48 }
 0x412   : > { %7070 = vbcast.lane.b32.xlu1 %v7064_v6, 264  ;;  %7066 = vbcast.lane.b32.xlu0 %v7064_v6, 256 }
 0x413   : > { %13844 = vmatmul.mubr.f32.gmra.mrb[4].mxu1 %v21498_v12 }
 0x414   : > { %13846 = vmatprep.mubr.f32.mxu1 %v21499_v52  ;;  %14279 = vmatpush3.bf16.msra.mxu1 %v21506_v48  ;;  %v7075_v48 = vrot.slane %v7026_v31, %v7074_v42 }
 0x415   : > { %14281 = vmatprep.subr.bf16.mxu1 %v21507_v21 }
 0x416   : > { %7081 = vbcast.lane.b32.xlu1 %v7075_v48, 264  ;;  %7077 = vbcast.lane.b32.xlu0 %v7075_v48, 256 }
 0x417   : > { %13847 = vmatmul.mubr.f32.gmra.mrb[6].mxu1 %v21502_v60 }
 0x418   : > { %13849 = vmatprep.mubr.f32.mxu1 %v21503_v37  ;;  %14283 = vmatpush3.bf16.msra.mxu1 %v21507_v21  ;;  %v7086_v21 = vrot.slane %v7026_v31, %v7085_v41 }
 0x419   : > { %14285 = vmatprep.subr.bf16.mxu1 %v21508_v22 }
 0x41a   : > { %7092 = vbcast.lane.b32.xlu1 %v7086_v21, 264  ;;  %7088 = vbcast.lane.b32.xlu0 %v7086_v21, 256 }
 0x41b   : > { %13850 = vmatmul.mubr.f32.gmra.mrb[8].mxu1 %v21504_v10 }
 0x41c   : > { %13852 = vmatprep.mubr.f32.mxu1 %v17248_v19  ;;  %14287 = vmatpush3.bf16.msra.mxu1 %v21508_v22  ;;  %v7108_v22 = vrot.slane %v7026_v31, %v7107_v5  ;;  %v21587_v31 = vld [vmem:[#allocation59_spill] sm:$0xff] }
 0x41e   : > { %7103 = vbcast.lane.b32.xlu1 %v7097_v34, 264  ;;  %7099 = vbcast.lane.b32.xlu0 %v7097_v34, 256 }
 0x41f   : > { %13853 = vmatmul.mubr.f32.gmra.mrb[10].mxu1 %v17242_v1 }
 0x420   : > { %13855 = vmatprep.mubr.f32.mxu1 %v17314_v23 }
 0x422   : > { %7114 = vbcast.lane.b32.xlu1 %v7108_v22, 264  ;;  %7110 = vbcast.lane.b32.xlu0 %v7108_v22, 256 }
 0x423   : > { %13856 = vmatmul.mubr.f32.gmra.mrb[12].mxu1 %v17252_v59 }
 0x424   : > { %13858 = vmatprep.mubr.f32.mxu1 %v17320_v0 }
 0x426   : > { %7125 = vbcast.lane.b32.xlu1 %v7119_v39, 264  ;;  %7121 = vbcast.lane.b32.xlu0 %v7119_v39, 256 }
 0x427   : > { %13859 = vmatmul.mubr.f32.gmra.mrb[14].mxu1 %v17317_v54 }
 0x428   : > { %13861 = vmatprep.mubr.f32.mxu1 %v21570_v56 }
 0x42a   : > { %7136 = vbcast.lane.b32.xlu1 %v7130_v11, 264  ;;  %7132 = vbcast.lane.b32.xlu0 %v7130_v11, 256 }
 0x42b   : > { %13862 = vmatmul.mubr.f32.gmra.mrb[16].mxu1 %v21571_v20 }
 0x42c   : > { %13864 = vmatprep.mubr.f32.mxu1 %v21572_v43 }
 0x42e   : > { %7147 = vbcast.lane.b32.xlu1 %v7141_v58, 264  ;;  %7143 = vbcast.lane.b32.xlu0 %v7141_v58, 256 }
 0x42f   : > { %13865 = vmatmul.mubr.f32.gmra.mrb[18].mxu1 %v21573_v17 }
 0x430   : > { %13867 = vmatprep.mubr.f32.mxu1 %v21574_v4 }
 0x432   : > { %7158 = vbcast.lane.b32.xlu1 %v7152_v32, 264  ;;  %7154 = vbcast.lane.b32.xlu0 %v7152_v32, 256 }
 0x433   : > { %13868 = vmatmul.mubr.f32.gmra.mrb[20].mxu1 %v21575_v46 }
 0x434   : > { %13870 = vmatprep.mubr.f32.mxu1 %v21576_v16 }
 0x436   : > { %7169 = vbcast.lane.b32.xlu1 %v7163_v36, 264  ;;  %7165 = vbcast.lane.b32.xlu0 %v7163_v36, 256 }
 0x437   : > { %13871 = vmatmul.mubr.f32.gmra.mrb[22].mxu1 %v21577_v44 }
 0x438   : > { %13873 = vmatprep.mubr.f32.mxu1 %v21578_v63 }
 0x43a   : > { %7180 = vbcast.lane.b32.xlu1 %v7174_v33, 264  ;;  %7176 = vbcast.lane.b32.xlu0 %v7174_v33, 256 }
 0x43b   : > { %13874 = vmatmul.mubr.f32.gmra.mrb[24].mxu1 %v21579_v47 }
 0x43c   : > { %13876 = vmatprep.mubr.f32.mxu1 %v21580_v26 }
 0x43e   : > { %7191 = vbcast.lane.b32.xlu1 %v7185_v29, 264  ;;  %7187 = vbcast.lane.b32.xlu0 %v7185_v29, 256 }
 0x43f   : > { %13877 = vmatmul.mubr.f32.gmra.mrb[26].mxu1 %v21581_v45 }
 0x440   : > { %13879 = vmatprep.mubr.f32.mxu1 %v21582_v30 }
 0x442   : > { %7202 = vbcast.lane.b32.xlu1 %v7196_v15, 264  ;;  %7198 = vbcast.lane.b32.xlu0 %v7196_v15, 256 }
 0x443   : > { %13880 = vmatmul.mubr.f32.gmra.mrb[28].mxu1 %v21583_v3 }
 0x444   : > { %13882 = vmatprep.mubr.f32.mxu1 %v21584_v53 }
 0x446   : > { %9109 = vrot.lane.b32.xlu1 %v17781_v61, %s15387_s17  ;;  %9107 = vrot.lane.b32.xlu0 %v17787_v40, %s15387_s17  ;;  %s18315_s17 = scalar_lea.vmem %s20905_s16, %s21607_s30  ;;  %s15395_s30 = smov 4  }
 0x447   : > { %13883 = vmatmul.mubr.f32.gmra.mrb[30].mxu1 %v21585_v49 }
 0x448   : > { %13885 = vmatprep.mubr.f32.mxu1 %v21586_v7 }
 0x44b   : > { %13886 = vmatmul.mubr.f32.gmra.mrb[32].mxu1 %v21587_v31 }
 0x44c   : > { %13904 = vmatprep.mubr.f32.mxu1 %v17151_v35  ;;  %v21129_v35 = vmov 0  }
 0x44d   : > { %14876 = vset.pattern.permute.xlu1 %v21129_v35  ;;  %14875 = vset.pattern.permute.xlu0 %v21129_v35 }
 0x44f   : > { %13905 = vmatmul.mubr.f32.vlgmr.msra.gmra.mrb[2].mxu1 %v21563_v28 }
 0x450   : > { %13907 = vmatprep.mubr.f32.mxu1 %v21566_v57 }
 0x453   : > { %13908 = vmatmul.mubr.f32.gmra.mrb[4].mxu1 %v21498_v12 }
 0x454   : > { %13910 = vmatprep.mubr.f32.mxu1 %v21499_v52 }
 0x457   : > { %13911 = vmatmul.mubr.f32.gmra.mrb[6].mxu1 %v21502_v60 }
 0x458   : > { %13913 = vmatprep.mubr.f32.mxu1 %v21503_v37 }
 0x45b   : > { %13914 = vmatmul.mubr.f32.gmra.mrb[8].mxu1 %v21504_v10 }
 0x45c   : > { %13916 = vmatprep.mubr.f32.mxu1 %v17248_v19 }
 0x45f   : > { %13917 = vmatmul.mubr.f32.gmra.mrb[10].mxu1 %v17242_v1  ;;  %v7034_v1 = vpop.permute.xlu0 %7033 }
 0x460   : > { %13919 = vmatprep.mubr.f32.mxu1 %v17314_v23 }
 0x463   : > { %13920 = vmatmul.mubr.f32.gmra.mrb[12].mxu1 %v17252_v59  ;;  %v7038_v59 = vpop.permute.xlu1 %7037  ;;  %v7045_v23 = vpop.permute.xlu0 %7044 }
 0x464   : > { %13922 = vmatprep.mubr.f32.mxu1 %v17320_v0 }
 0x467   : > { %13923 = vmatmul.mubr.f32.gmra.mrb[14].mxu1 %v17317_v54  ;;  %v7049_v19 = vpop.permute.xlu1 %7048  ;;  %v17884_v54 = vld [vmem:[%s20902_s13] ss:$0 sm:$0xff]  ;;  %v7056_v10 = vpop.permute.xlu0 %7055 }
 0x468   : > { %13925 = vmatprep.mubr.f32.mxu1 %v21570_v56 }
 0x46b   : > { %13926 = vmatmul.mubr.f32.gmra.mrb[16].mxu1 %v21571_v20  ;;  %v7060_v12 = vpop.permute.xlu1 %7059 }
 0x46c   : > { %13928 = vmatprep.mubr.f32.mxu1 %v21572_v43 }
 0x46f   : > { %13929 = vmatmul.mubr.f32.gmra.mrb[18].mxu1 %v21573_v17 }
 0x470   : > { %13931 = vmatprep.mubr.f32.mxu1 %v21574_v4 }
 0x473   : > { %13932 = vmatmul.mubr.f32.gmra.mrb[20].mxu1 %v21575_v46 }
 0x474   : > { %13934 = vmatprep.mubr.f32.mxu1 %v21576_v16 }
 0x477   : > { %13935 = vmatmul.mubr.f32.gmra.mrb[22].mxu1 %v21577_v44 }
 0x478   : > { %13937 = vmatprep.mubr.f32.mxu1 %v21578_v63 }
 0x47b   : > { %13938 = vmatmul.mubr.f32.gmra.mrb[24].mxu1 %v21579_v47 }
 0x47c   : > { %13940 = vmatprep.mubr.f32.mxu1 %v21580_v26 }
 0x47f   : > { %13941 = vmatmul.mubr.f32.gmra.mrb[26].mxu1 %v21581_v45 }
 0x480   : > { %13943 = vmatprep.mubr.f32.mxu1 %v21582_v30 }
 0x483   : > { %13944 = vmatmul.mubr.f32.gmra.mrb[28].mxu1 %v21583_v3 }
 0x484   : > { %13946 = vmatprep.mubr.f32.mxu1 %v21584_v53  ;;  %v7071_v42 = vpop.permute.xlu1 %7070  ;;  %v7067_v21 = vpop.permute.xlu0 %7066 }
 0x487   : > { %13947 = vmatmul.mubr.f32.gmra.mrb[30].mxu1 %v21585_v49 }
 0x488   : > { %13949 = vmatprep.mubr.f32.mxu1 %v21586_v7  ;;  %v7082_v44 = vpop.permute.xlu1 %7081  ;;  %v7078_v47 = vpop.permute.xlu0 %7077 }
 0x48b   : > { %13950 = vmatmul.mubr.f32.gmra.mrb[32].mxu1 %v21587_v31 }
 0x522   : > { %v13906_v0 = vpop.f32.mrb[2].mxu1 }
 0x523   : > { %v14388_v37 = vadd.f32 %v13906_v0, %v17884_v54  ;;  %v6673_v60 = vpop.f32.mrb[3].mxu1 }
 0x524   : > { %v14389_v52 = vadd.f32 %v17884_v54, %v6673_v60  ;;  %v7093_v60 = vpop.permute.xlu1 %7092 }
 0x525   : > { %v17888_v13 = vadd.f32 %v14388_v37, %v7038_v59  ;;  %6897 = vrot.lane.b32.xlu1 %v14388_v37, %s15389_s28 }
 0x526   : > { %v17891_v50 = vadd.f32 %v14389_v52, %v7034_v1  ;;  %v13909_v28 = vpop.f32.mrb[4].mxu1  ;;  %6895 = vrot.lane.b32.xlu0 %v14389_v52, %s15389_s28 }
 0x527   : > { %v7238_v51 = vsel %vm7236_vm12, %v17888_v13, -inf  ;;  %v14390_v9 = vadd.f32 %v13909_v28, %v17884_v54  ;;  %v6685_v57 = vpop.f32.mrb[5].mxu1  ;;  %v7089_v28 = vpop.permute.xlu0 %7088 }
 0x528   : > { %v7237_v38 = vsel %vm7236_vm12, %v17891_v50, -inf  ;;  %v14391_v2 = vadd.f32 %v17884_v54, %v6685_v57 }
 0x529   : > { %v7239_v8 = vmax.f32 %v7237_v38, %v7238_v51  ;;  %v17900_v6 = vadd.f32 %v14390_v9, %v7049_v19  ;;  %6901 = vrot.lane.b32.xlu1 %v14390_v9, %s15389_s28 }
 0x52a   : > { %v17903_v48 = vadd.f32 %v14391_v2, %v7045_v23  ;;  %v13912_v41 = vpop.f32.mrb[6].mxu1  ;;  %6899 = vrot.lane.b32.xlu0 %v14391_v2, %s15389_s28 }
 0x52b   : > { %v7240_v62 = vrot.slane %v7239_v8, 4  ;;  %v7247_v27 = vsel %vm7236_vm12, %v17900_v6, -inf  ;;  %v14392_v34 = vadd.f32 %v13912_v41, %v17884_v54  ;;  %v6697_v5 = vpop.f32.mrb[7].mxu1 }
 0x52c   : > { %v7246_v22 = vsel %vm7236_vm12, %v17903_v48, -inf  ;;  %v14393_v56 = vadd.f32 %v17884_v54, %v6697_v5 }
 0x52d   : > { %v7241_v55 = vmax.f32 %v7239_v8, %v7240_v62  ;;  %v7248_v20 = vmax.f32 %v7246_v22, %v7247_v27  ;;  %v17912_v39 = vadd.f32 %v14392_v34, %v7060_v12  ;;  %6905 = vrot.lane.b32.xlu1 %v14392_v34, %s15389_s28 }
 0x52e   : > { %v17915_v43 = vadd.f32 %v14393_v56, %v7056_v10  ;;  %v13915_v17 = vpop.f32.mrb[8].mxu1  ;;  %6903 = vrot.lane.b32.xlu0 %v14393_v56, %s15389_s28 }
 0x52f   : > { %v7242_v11 = vrot.slane %v7241_v55, 2  ;;  %v7249_v4 = vrot.slane %v7248_v20, 4  ;;  %v7256_v46 = vsel %vm7236_vm12, %v17912_v39, -inf  ;;  %v14394_v58 = vadd.f32 %v13915_v17, %v17884_v54  ;;  %v6709_v16 = vpop.f32.mrb[9].mxu1 }
 0x530   : > { %v7255_v32 = vsel %vm7236_vm12, %v17915_v43, -inf  ;;  %v14395_v63 = vadd.f32 %v17884_v54, %v6709_v16 }
 0x531   : > { %v7243_v36 = vmax.f32 %v7241_v55, %v7242_v11  ;;  %v7250_v26 = vmax.f32 %v7248_v20, %v7249_v4  ;;  %v7257_v45 = vmax.f32 %v7255_v32, %v7256_v46  ;;  %v17924_v33 = vadd.f32 %v14394_v58, %v7071_v42  ;;  %6909 = vrot.lane.b32.xlu1 %v14394_v58, %s15389_s28  ;;  %v7104_v46 = vpop.permute.xlu1 %7103  ;;  %v7100_v32 = vpop.permute.xlu0 %7099 }
 0x532   : > { %v17927_v30 = vadd.f32 %v14395_v63, %v7067_v21  ;;  %v13918_v3 = vpop.f32.mrb[10].mxu1  ;;  %6907 = vrot.lane.b32.xlu0 %v14395_v63, %s15389_s28 }
 0x533   : > { %v7244_v29 = vrot.slane %v7243_v36, 1  ;;  %v7251_v53 = vrot.slane %v7250_v26, 2  ;;  %v7258_v49 = vrot.slane %v7257_v45, 4  ;;  %v7265_v15 = vsel %vm7236_vm12, %v17924_v33, -inf  ;;  %v6721_v7 = vpop.f32.mrb[11].mxu1 }
 0x534   : > { %v7264_v31 = vsel %vm7236_vm12, %v17927_v30, -inf  ;;  %v14396_v59 = vadd.f32 %v13918_v3, %v17884_v54  ;;  %v14397_v1 = vadd.f32 %v17884_v54, %v6721_v7 }
 0x535   : > { %v7245_v19 = vmax.f32 %v7243_v36, %v7244_v29  ;;  %v7252_v23 = vmax.f32 %v7250_v26, %v7251_v53  ;;  %v7259_v0 = vmax.f32 %v7257_v45, %v7258_v49  ;;  %v7266_v37 = vmax.f32 %v7264_v31, %v7265_v15 }
 0x536   : > { %v17936_v12 = vadd.f32 %v14396_v59, %v7082_v44  ;;  %v17938_v52 = vadd.f32 %v14397_v1, %v7078_v47  ;;  %6913 = vrot.lane.b32.xlu1 %v14396_v59, %s15389_s28  ;;  %v13921_v10 = vpop.f32.mrb[12].mxu1  ;;  %6911 = vrot.lane.b32.xlu0 %v14397_v1, %s15389_s28 }
 0x537   : > { %v7381_v51 = vsub.f32 %v17891_v50, %v7245_v19  ;;  %v7382_v9 = vsub.f32 %v17888_v13, %v7245_v19  ;;  %v7253_v57 = vrot.slane %v7252_v23, 1  ;;  %v7260_v38 = vrot.slane %v7259_v0, 2  ;;  %v6733_v2 = vpop.f32.mrb[13].mxu1 }
 0x538   : > { %v7267_v8 = vrot.slane %v7266_v37, 4  ;;  %v7274_v42 = vsel %vm7236_vm12, %v17936_v12, -inf  ;;  %v7273_v41 = vsel %vm7236_vm12, %v17938_v52, -inf  ;;  %v14398_v21 = vadd.f32 %v13921_v10, %v17884_v54 }
 0x539   : > { %v7413_v62 = vmul.f32 1.442695, %v7381_v51  ;;  %v7415_v27 = vmul.f32 1.442695, %v7382_v9  ;;  %v7254_v34 = vmax.f32 %v7252_v23, %v7253_v57  ;;  %v7261_v5 = vmax.f32 %v7259_v0, %v7260_v38  ;;  %v7111_v51 = vpop.permute.xlu0 %7110 }
 0x53a   : > { %v7268_v22 = vmax.f32 %v7266_v37, %v7267_v8  ;;  %v7275_v50 = vmax.f32 %v7273_v41, %v7274_v42  ;;  %v14399_v13 = vadd.f32 %v17884_v54, %v6733_v2  ;;  %v17950_v56 = vadd.f32 %v14398_v21, %v7093_v60  ;;  %6917 = vrot.lane.b32.xlu1 %v14398_v21, %s15389_s28  ;;  %v13924_v55 = vpop.f32.mrb[14].mxu1 }
 0x53b   : > { %15142 = vpow2.f32 %v7413_v62  ;;  %v7383_v20 = vsub.f32 %v17903_v48, %v7254_v34  ;;  %v7384_v17 = vsub.f32 %v17900_v6, %v7254_v34  ;;  %v7262_v11 = vrot.slane %v7261_v5, 1  ;;  %v6745_v4 = vpop.f32.mrb[15].mxu1 }
 0x53c   : > { %15144 = vpow2.f32 %v7415_v27  ;;  %v7269_v58 = vrot.slane %v7268_v22, 2  ;;  %v7276_v16 = vrot.slane %v7275_v50, 4  ;;  %v7283_v44 = vsel %vm7236_vm12, %v17950_v56, -inf  ;;  %6915 = vrot.lane.b32.xlu0 %v14399_v13, %s15389_s28 }
 0x53d   : > { %v7417_v63 = vmul.f32 1.442695, %v7383_v20  ;;  %v7419_v47 = vmul.f32 1.442695, %v7384_v17  ;;  %v7263_v36 = vmax.f32 %v7261_v5, %v7262_v11  ;;  %v17958_v26 = vadd.f32 %v14399_v13, %v7089_v28 }
 0x53e   : > { %v7270_v48 = vmax.f32 %v7268_v22, %v7269_v58  ;;  %v7277_v45 = vmax.f32 %v7275_v50, %v7276_v16  ;;  %v14400_v6 = vadd.f32 %v13924_v55, %v17884_v54  ;;  %v14401_v3 = vadd.f32 %v17884_v54, %v6745_v4  ;;  %v13927_v29 = vpop.f32.mrb[16].mxu1 }
 0x53f   : > { %15146 = vpow2.f32 %v7417_v63  ;;  %v7385_v53 = vsub.f32 %v17915_v43, %v7263_v36  ;;  %v7386_v49 = vsub.f32 %v17912_v39, %v7263_v36  ;;  %v7282_v15 = vsel %vm7236_vm12, %v17958_v26, -inf  ;;  %v6757_v7 = vpop.f32.mrb[17].mxu1  ;;  %v7115_v43 = vpop.permute.xlu1 %7114 }
 0x540   : > { %15148 = vpow2.f32 %v7419_v47  ;;  %v7271_v31 = vrot.slane %v7270_v48, 1  ;;  %v7278_v59 = vrot.slane %v7277_v45, 2  ;;  %v7284_v1 = vmax.f32 %v7282_v15, %v7283_v44  ;;  %6921 = vrot.lane.b32.xlu1 %v14400_v6, %s15389_s28  ;;  %6919 = vrot.lane.b32.xlu0 %v14401_v3, %s15389_s28 }
 0x541   : > { %v7421_v19 = vmul.f32 1.442695, %v7385_v53  ;;  %v7423_v23 = vmul.f32 1.442695, %v7386_v49  ;;  %v17968_v0 = vadd.f32 %v14400_v6, %v7104_v46  ;;  %v17970_v37 = vadd.f32 %v14401_v3, %v7100_v32 }
 0x542   : > { %v7272_v39 = vmax.f32 %v7270_v48, %v7271_v31  ;;  %v7279_v60 = vmax.f32 %v7277_v45, %v7278_v59  ;;  %v7285_v10 = vrot.slane %v7284_v1, 4  ;;  %v14402_v28 = vadd.f32 %v13927_v29, %v17884_v54  ;;  %v13930_v9 = vpop.f32.mrb[18].mxu1 }
 0x543   : > { %15150 = vpow2.f32 %v7421_v19  ;;  %v7292_v57 = vsel %vm7236_vm12, %v17968_v0, -inf  ;;  %v7291_v38 = vsel %vm7236_vm12, %v17970_v37, -inf  ;;  %v14403_v2 = vadd.f32 %v17884_v54, %v6757_v7  ;;  %v6769_v8 = vpop.f32.mrb[19].mxu1 }
 0x544   : > { %15152 = vpow2.f32 %v7423_v23  ;;  %v7387_v42 = vsub.f32 %v17927_v30, %v7272_v39  ;;  %v7388_v41 = vsub.f32 %v17924_v33, %v7272_v39  ;;  %v7280_v21 = vrot.slane %v7279_v60, 1  ;;  %6925 = vrot.lane.b32.xlu1 %v14402_v28, %s15389_s28 }
 0x545   : > { %v17981_v62 = vpop.eup %15142  ;;  %v7286_v27 = vmax.f32 %v7284_v1, %v7285_v10  ;;  %v7293_v34 = vmax.f32 %v7291_v38, %v7292_v57  ;;  %v17983_v5 = vadd.f32 %v14402_v28, %v7115_v43  ;;  %v17985_v22 = vadd.f32 %v14403_v2, %v7111_v51  ;;  %6923 = vrot.lane.b32.xlu0 %v14403_v2, %s15389_s28  ;;  %v7126_v2 = vpop.permute.xlu1 %7125 }
 0x546   : > { %v17988_v50 = vpop.eup %15144  ;;  %v7477_v30 = vsel %vm7236_vm12, %v17981_v62, 0.0  ;;  %v7425_v13 = vmul.f32 1.442695, %v7387_v42  ;;  %v7427_v33 = vmul.f32 1.442695, %v7388_v41  ;;  %v7281_v55 = vmax.f32 %v7279_v60, %v7280_v21  ;;  %v17992_v20 = vpop.f32.mrb[20].mxu1 }
 0x547   : > { %v7478_v17 = vsel %vm7236_vm12, %v17988_v50, 0.0  ;;  %v7287_v11 = vrot.slane %v7286_v27, 2  ;;  %v7294_v4 = vrot.slane %v7293_v34, 4  ;;  %v7301_v46 = vsel %vm7236_vm12, %v17983_v5, -inf  ;;  %v17998_v58 = vpop.f32.mrb[21].mxu1 }
 0x548   : > { %v7479_v16 = vadd.f32 %v7478_v17, %v7477_v30  ;;  %15154 = vpow2.f32 %v7425_v13  ;;  %v7389_v44 = vsub.f32 %v17938_v52, %v7281_v55  ;;  %v7390_v32 = vsub.f32 %v17936_v12, %v7281_v55 }
 0x549   : > { %v18002_v63 = vpop.eup %15146  ;;  %15156 = vpow2.f32 %v7427_v33  ;;  %v7288_v47 = vmax.f32 %v7286_v27, %v7287_v11  ;;  %v7295_v36 = vmax.f32 %v7293_v34, %v7294_v4  ;;  %v7300_v48 = vsel %vm7236_vm12, %v17985_v22, -inf }
 0x54a   : > { %v18006_v45 = vpop.eup %15148  ;;  %v7480_v6 = vrot.slane %v7479_v16, 4  ;;  %v7486_v3 = vsel %vm7236_vm12, %v18002_v63, 0.0  ;;  %v7429_v29 = vmul.f32 1.442695, %v7389_v44  ;;  %v7431_v53 = vmul.f32 1.442695, %v7390_v32 }
 0x54b   : > { %v7487_v52 = vsel %vm7236_vm12, %v18006_v45, 0.0  ;;  %v7289_v12 = vrot.slane %v7288_v47, 1  ;;  %v7296_v49 = vrot.slane %v7295_v36, 2  ;;  %v7302_v15 = vmax.f32 %v7300_v48, %v7301_v46  ;;  %v18012_v7 = vpop.f32.mrb[22].mxu1 }
 0x54c   : > { %v7481_v31 = vadd.f32 %v7480_v6, %v7479_v16  ;;  %v7488_v59 = vadd.f32 %v7487_v52, %v7486_v3  ;;  %15158 = vpow2.f32 %v7429_v29  ;;  %v14404_v1 = vadd.f32 %v13930_v9, %v17884_v54  ;;  %v18015_v19 = vpop.f32.mrb[23].mxu1  ;;  %v7122_v3 = vpop.permute.xlu0 %7121 }
 0x54d   : > { %v18017_v23 = vpop.eup %15150  ;;  %15160 = vpow2.f32 %v7431_v53  ;;  %v7290_v43 = vmax.f32 %v7288_v47, %v7289_v12  ;;  %v7297_v39 = vmax.f32 %v7295_v36, %v7296_v49  ;;  %v7303_v60 = vrot.slane %v7302_v15, 4 }
 0x54e   : > { %v18019_v10 = vpop.eup %15152  ;;  %v7482_v28 = vrot.slane %v7481_v31, 2  ;;  %v7489_v51 = vrot.slane %v7488_v59, 4  ;;  %v7495_v57 = vsel %vm7236_vm12, %v18017_v23, 0.0  ;;  %v14405_v38 = vadd.f32 %v17884_v54, %v6769_v8  ;;  %6929 = vrot.lane.b32.xlu1 %v14404_v1, %s15389_s28  ;;  %v18025_v9 = vpop.f32.mrb[24].mxu1 }
 0x54f   : > { %v7496_v42 = vsel %vm7236_vm12, %v18019_v10, 0.0  ;;  %v7391_v41 = vsub.f32 %v17958_v26, %v7290_v43  ;;  %v7392_v21 = vsub.f32 %v17950_v56, %v7290_v43  ;;  %v7298_v27 = vrot.slane %v7297_v39, 1  ;;  %v18031_v34 = vpop.f32.mrb[25].mxu1 }
 0x550   : > { %v7483_v30 = vadd.f32 %v7482_v28, %v7481_v31  ;;  %v7490_v13 = vadd.f32 %v7489_v51, %v7488_v59  ;;  %v7497_v33 = vadd.f32 %v7496_v42, %v7495_v57  ;;  %v7304_v55 = vmax.f32 %v7302_v15, %v7303_v60  ;;  %6927 = vrot.lane.b32.xlu0 %v14405_v38, %s15389_s28 }
 0x551   : > { %v7433_v8 = vmul.f32 1.442695, %v7391_v41  ;;  %v7435_v17 = vmul.f32 1.442695, %v7392_v21  ;;  %v7299_v11 = vmax.f32 %v7297_v39, %v7298_v27  ;;  %v18034_v4 = vadd.f32 %v14404_v1, %v7126_v2 }
 0x552   : > { %v18036_v46 = vpop.eup %15154  ;;  %v7484_v16 = vrot.slane %v7483_v30, 1  ;;  %v7491_v26 = vrot.slane %v7490_v13, 2  ;;  %v7498_v44 = vrot.slane %v7497_v33, 4  ;;  %v7305_v56 = vrot.slane %v7304_v55, 2  ;;  %v18038_v32 = vpop.f32.mrb[26].mxu1 }
 0x553   : > { %v18040_v47 = vpop.eup %15156  ;;  %v7504_v36 = vsel %vm7236_vm12, %v18036_v46, 0.0  ;;  %15162 = vpow2.f32 %v7433_v8  ;;  %v7393_v48 = vsub.f32 %v17970_v37, %v7299_v11  ;;  %v7394_v6 = vsub.f32 %v17968_v0, %v7299_v11  ;;  %v18046_v29 = vpop.f32.mrb[27].mxu1 }
 0x554   : > { %v7485_v53 = vadd.f32 %v7484_v16, %v7483_v30  ;;  %v7492_v52 = vadd.f32 %v7491_v26, %v7490_v13  ;;  %v7499_v12 = vadd.f32 %v7498_v44, %v7497_v33  ;;  %v7505_v49 = vsel %vm7236_vm12, %v18040_v47, 0.0  ;;  %v7133_v8 = vpop.permute.xlu0 %7132 }
 0x555   : > { %v7506_v15 = vadd.f32 %v7505_v49, %v7504_v36  ;;  %15164 = vpow2.f32 %v7435_v17  ;;  %v7437_v31 = vmul.f32 1.442695, %v7393_v48  ;;  %v7439_v59 = vmul.f32 1.442695, %v7394_v6 }
 0x556   : > { %v18050_v1 = vpop.eup %15158  ;;  %15166 = vrcp.f32 %v7485_v53  ;;  %v7493_v43 = vrot.slane %v7492_v52, 1  ;;  %v7500_v37 = vrot.slane %v7499_v12, 2  ;;  %v7306_v39 = vmax.f32 %v7304_v55, %v7305_v56  ;;  %v18052_v0 = vpop.f32.mrb[28].mxu1 }
 0x557   : > { %v18054_v60 = vpop.eup %15160  ;;  %v7507_v28 = vrot.slane %v7506_v15, 4  ;;  %v7513_v51 = vsel %vm7236_vm12, %v18050_v1, 0.0  ;;  %15168 = vpow2.f32 %v7437_v31  ;;  %v7310_v57 = vsel %vm7236_vm12, %v18034_v4, -inf  ;;  %v18060_v2 = vpop.f32.mrb[29].mxu1 }
 0x558   : > { %v7494_v42 = vadd.f32 %v7493_v43, %v7492_v52  ;;  %v7501_v41 = vadd.f32 %v7500_v37, %v7499_v12  ;;  %v7514_v21 = vsel %vm7236_vm12, %v18054_v60, 0.0  ;;  %15170 = vpow2.f32 %v7439_v59  ;;  %v7137_v55 = vpop.permute.xlu1 %7136 }
 0x559   : > { %v7508_v27 = vadd.f32 %v7507_v28, %v7506_v15  ;;  %v7515_v30 = vadd.f32 %v7514_v21, %v7513_v51  ;;  %v7307_v13 = vrot.slane %v7306_v39, 1  ;;  %v18064_v33 = vadd.f32 %v14405_v38, %v7122_v3 }
 0x55a   : > { %15172 = vrcp.f32 %v7494_v42  ;;  %v7502_v17 = vrot.slane %v7501_v41, 1  ;;  %v14406_v11 = vadd.f32 %v17992_v20, %v17884_v54  ;;  %v14407_v16 = vadd.f32 %v17884_v54, %v17998_v58  ;;  %v18070_v26 = vpop.f32.mrb[30].mxu1 }
 0x55b   : > { %v7509_v44 = vrot.slane %v7508_v27, 2  ;;  %v7516_v56 = vrot.slane %v7515_v30, 4  ;;  %v7308_v36 = vmax.f32 %v7306_v39, %v7307_v13  ;;  %v7309_v48 = vsel %vm7236_vm12, %v18064_v33, -inf  ;;  %v18074_v38 = vpop.f32.mrb[31].mxu1 }
 0x55c   : > { %v7503_v6 = vadd.f32 %v7502_v17, %v7501_v41  ;;  %v7311_v3 = vmax.f32 %v7309_v48, %v7310_v57  ;;  %v18076_v53 = vadd.f32 %v14406_v11, %v7137_v55  ;;  %v18078_v52 = vadd.f32 %v14407_v16, %v7133_v8  ;;  %6933 = vrot.lane.b32.xlu1 %v14406_v11, %s15389_s28  ;;  %v7144_v48 = vpop.permute.xlu0 %7143 }
 0x55d   : > { %v18081_v20 = vpop.eup %15162  ;;  %v7510_v58 = vadd.f32 %v7509_v44, %v7508_v27  ;;  %v7517_v12 = vadd.f32 %v7516_v56, %v7515_v30  ;;  %v7395_v49 = vsub.f32 %v17985_v22, %v7308_v36  ;;  %v7396_v15 = vsub.f32 %v17983_v5, %v7308_v36  ;;  %6931 = vrot.lane.b32.xlu0 %v14407_v16, %s15389_s28  ;;  %v7148_v36 = vpop.permute.xlu1 %7147 }
 0x55e   : > { %15174 = vrcp.f32 %v7503_v6  ;;  %v7522_v31 = vsel %vm7236_vm12, %v18081_v20, 0.0  ;;  %v7312_v59 = vrot.slane %v7311_v3, 4  ;;  %v7319_v43 = vsel %vm7236_vm12, %v18076_v53, -inf  ;;  %v18090_v37 = vpop.f32.mrb[32].mxu1 }
 0x55f   : > { %v18092_v39 = vpop.eup %15164  ;;  %v7511_v28 = vrot.slane %v7510_v58, 1  ;;  %v7518_v51 = vrot.slane %v7517_v12, 2  ;;  %v7441_v57 = vmul.f32 1.442695, %v7395_v49  ;;  %v7443_v22 = vmul.f32 1.442695, %v7396_v15 }
 0x560   : > { %v15167_v42 = vpop.eup %15166  ;;  %v7523_v5 = vsel %vm7236_vm12, %v18092_v39, 0.0  ;;  %v7313_v41 = vmax.f32 %v7311_v3, %v7312_v59  ;;  %v7318_v21 = vsel %vm7236_vm12, %v18078_v52, -inf  ;;  %v14408_v27 = vadd.f32 %v18012_v7, %v17884_v54  ;;  %v18100_v30 = vpop.f32.mrb[33].mxu1 }
 0x561   : > { %v18102_v13 = vpop.eup %15168  ;;  %v18105_v55 = vmul.f32 %v15167_v42, %v17981_v62  ;;  %v18108_v8 = vmul.f32 %v15167_v42, %v17988_v50  ;;  %v7512_v17 = vadd.f32 %v7511_v28, %v7510_v58  ;;  %v7519_v11 = vadd.f32 %v7518_v51, %v7517_v12 }
 0x562   : > { %v18110_v16 = vpop.eup %15170  ;;  %v7524_v44 = vadd.f32 %v7523_v5, %v7522_v31  ;;  %v7531_v56 = vsel %vm7236_vm12, %v18102_v13, 0.0  ;;  %15176 = vpow2.f32 %v7441_v57  ;;  %v7314_v7 = vrot.slane %v7313_v41, 2  ;;  %6937 = vrot.lane.b32.xlu1 %v14408_v27, %s15389_s28 }
 0x563   : > { %21588 = vst [vmem:[#allocation29_spill] sm:$0xff] %v18105_v55  ;;  %21589 = vst [vmem:[#allocation33_spill] sm:$0xff] %v18108_v8  ;;  %15178 = vrcp.f32 %v7512_v17  ;;  %v7520_v62 = vrot.slane %v7519_v11, 1  ;;  %v7532_v50 = vsel %vm7236_vm12, %v18110_v16, 0.0  ;;  %v7320_v6 = vmax.f32 %v7318_v21, %v7319_v43 }
 0x564   : > { %v15173_v3 = vpop.eup %15172  ;;  %v7525_v58 = vrot.slane %v7524_v44, 4  ;;  %v7533_v12 = vadd.f32 %v7532_v50, %v7531_v56  ;;  %15180 = vpow2.f32 %v7443_v22  ;;  %v7315_v49 = vmax.f32 %v7313_v41, %v7314_v7 }
 0x565   : > { %v18118_v15 = vmul.f32 %v15173_v3, %v18002_v63  ;;  %v18121_v31 = vmul.f32 %v15173_v3, %v18006_v45  ;;  %v7521_v59 = vadd.f32 %v7520_v62, %v7519_v11  ;;  %v7321_v28 = vrot.slane %v7320_v6, 4  ;;  %v7159_v11 = vpop.permute.xlu1 %7158 }
 0x566   : > { %v7526_v51 = vadd.f32 %v7525_v58, %v7524_v44  ;;  %v7534_v57 = vrot.slane %v7533_v12, 4  ;;  %v7316_v42 = vrot.slane %v7315_v49, 1  ;;  %v14409_v5 = vadd.f32 %v17884_v54, %v18015_v19  ;;  %v7155_v44 = vpop.permute.xlu0 %7154 }
 0x567   : > { %21590 = vst [vmem:[#allocation34_spill] sm:$0xff] %v18118_v15  ;;  %21591 = vst [vmem:[#allocation31_spill] sm:$0xff] %v18121_v31  ;;  %15182 = vrcp.f32 %v7521_v59  ;;  %v7322_v43 = vmax.f32 %v7320_v6, %v7321_v28  ;;  %v18125_v21 = vadd.f32 %v14408_v27, %v7148_v36  ;;  %v14410_v22 = vadd.f32 %v18025_v9, %v17884_v54 }
 0x568   : > { %v15175_v63 = vpop.eup %15174  ;;  %v7527_v41 = vrot.slane %v7526_v51, 2  ;;  %v7535_v17 = vadd.f32 %v7534_v57, %v7533_v12  ;;  %v7317_v45 = vmax.f32 %v7315_v49, %v7316_v42  ;;  %v18129_v56 = vadd.f32 %v14409_v5, %v7144_v48  ;;  %6935 = vrot.lane.b32.xlu0 %v14409_v5, %s15389_s28 }
 0x569   : > { %v18133_v7 = vmul.f32 %v15175_v63, %v18017_v23  ;;  %v18136_v19 = vmul.f32 %v15175_v63, %v18019_v10  ;;  %v7323_v27 = vrot.slane %v7322_v43, 2  ;;  %v7328_v9 = vsel %vm7236_vm12, %v18125_v21, -inf  ;;  %6941 = vrot.lane.b32.xlu1 %v14410_v22, %s15389_s28 }
 0x56a   : > { %v7528_v36 = vadd.f32 %v7527_v41, %v7526_v51  ;;  %v7536_v62 = vrot.slane %v7535_v17, 2  ;;  %v7397_v48 = vsub.f32 %v18064_v33, %v7317_v45  ;;  %v7398_v50 = vsub.f32 %v18034_v4, %v7317_v45  ;;  %v7170_v41 = vpop.permute.xlu1 %7169 }
 0x56b   : > { %21592 = vst [vmem:[#allocation36_spill] sm:$0xff] %v18133_v7  ;;  %21593 = vst [vmem:[#allocation35_spill] sm:$0xff] %v18136_v19  ;;  %v7324_v6 = vmax.f32 %v7322_v43, %v7323_v27  ;;  %v7327_v23 = vsel %vm7236_vm12, %v18129_v56, -inf  ;;  %v14411_v10 = vadd.f32 %v17884_v54, %v18031_v34  ;;  %v18147_v3 = vadd.f32 %v14410_v22, %v7159_v11 }
 0x56c   : > { %v18149_v58 = vpop.eup %15176  ;;  %v7529_v12 = vrot.slane %v7528_v36, 1  ;;  %v7537_v49 = vadd.f32 %v7536_v62, %v7535_v17  ;;  %v7445_v59 = vmul.f32 1.442695, %v7397_v48  ;;  %v7447_v28 = vmul.f32 1.442695, %v7398_v50  ;;  %v7166_v17 = vpop.permute.xlu0 %7165 }
 0x56d   : > { %v15179_v51 = vpop.eup %15178  ;;  %v7540_v33 = vsel %vm7236_vm12, %v18149_v58, 0.0  ;;  %v7325_v4 = vrot.slane %v7324_v6, 1  ;;  %v7329_v57 = vmax.f32 %v7327_v23, %v7328_v9  ;;  %v7337_v42 = vsel %vm7236_vm12, %v18147_v3, -inf  ;;  %6939 = vrot.lane.b32.xlu0 %v14411_v10, %s15389_s28 }
 0x56e   : > { %v18156_v34 = vpop.eup %15180  ;;  %v18159_v5 = vmul.f32 %v15179_v51, %v18036_v46  ;;  %v18162_v43 = vmul.f32 %v15179_v51, %v18040_v47  ;;  %v7530_v22 = vadd.f32 %v7529_v12, %v7528_v36  ;;  %v7538_v63 = vrot.slane %v7537_v49, 1 }
 0x56f   : > { %v7541_v45 = vsel %vm7236_vm12, %v18156_v34, 0.0  ;;  %15184 = vpow2.f32 %v7445_v59  ;;  %v7326_v11 = vmax.f32 %v7324_v6, %v7325_v4  ;;  %v7330_v27 = vrot.slane %v7329_v57, 4 }
 0x570   : > { %21594 = vst [vmem:[#allocation37_spill] sm:$0xff] %v18159_v5  ;;  %21595 = vst [vmem:[#allocation38_spill] sm:$0xff] %v18162_v43  ;;  %15186 = vrcp.f32 %v7530_v22  ;;  %v7539_v9 = vadd.f32 %v7538_v63, %v7537_v49  ;;  %v7542_v62 = vadd.f32 %v7541_v45, %v7540_v33  ;;  %v18166_v48 = vadd.f32 %v14411_v10, %v7155_v44  ;;  %v7177_v33 = vpop.permute.xlu0 %7176 }
 0x571   : > { %v15183_v46 = vpop.eup %15182  ;;  %15188 = vpow2.f32 %v7447_v28  ;;  %v7399_v47 = vsub.f32 %v18078_v52, %v7326_v11  ;;  %v7400_v36 = vsub.f32 %v18076_v53, %v7326_v11  ;;  %v7331_v50 = vmax.f32 %v7329_v57, %v7330_v27  ;;  %v7181_v52 = vpop.permute.xlu1 %7180 }
 0x572   : > { %v18171_v23 = vmul.f32 %v15183_v46, %v18050_v1  ;;  %v18174_v12 = vmul.f32 %v15183_v46, %v18054_v60  ;;  %15190 = vrcp.f32 %v7539_v9  ;;  %v7543_v6 = vrot.slane %v7542_v62, 4 }
 0x573   : > { %v7449_v59 = vmul.f32 1.442695, %v7399_v47  ;;  %v7451_v49 = vmul.f32 1.442695, %v7400_v36  ;;  %v7332_v51 = vrot.slane %v7331_v50, 2  ;;  %v7336_v44 = vsel %vm7236_vm12, %v18166_v48, -inf }
 0x574   : > { %21596 = vst [vmem:[#allocation18_spill] sm:$0xff] %v18171_v23  ;;  %21597 = vst [vmem:[#allocation20_spill] sm:$0xff] %v18174_v12  ;;  %v7544_v10 = vadd.f32 %v7543_v6, %v7542_v62  ;;  %v7338_v28 = vmax.f32 %v7336_v44, %v7337_v42  ;;  %v14412_v53 = vadd.f32 %v18038_v32, %v17884_v54 }
 0x575   : > { %v14413_v1 = vadd.f32 %v17884_v54, %v18046_v29  ;;  %15192 = vpow2.f32 %v7449_v59  ;;  %v7333_v60 = vmax.f32 %v7331_v50, %v7332_v51  ;;  %v14414_v4 = vadd.f32 %v18052_v0, %v17884_v54 }
 0x576   : > { %v14415_v57 = vadd.f32 %v17884_v54, %v18060_v2  ;;  %v7545_v22 = vrot.slane %v7544_v10, 2  ;;  %15194 = vpow2.f32 %v7451_v49  ;;  %v7339_v63 = vrot.slane %v7338_v28, 4  ;;  %6945 = vrot.lane.b32.xlu1 %v14412_v53, %s15389_s28 }
 0x577   : > { %v18186_v42 = vadd.f32 %v14412_v53, %v7170_v41  ;;  %6943 = vrot.lane.b32.xlu0 %v14413_v1, %s15389_s28  ;;  %v7334_v32 = vrot.slane %v7333_v60, 1  ;;  %v18190_v29 = vadd.f32 %v14413_v1, %v7166_v17  ;;  %v18192_v45 = vadd.f32 %v14414_v4, %v7181_v52 }
 0x578   : > { %v18194_v11 = vadd.f32 %v14415_v57, %v7177_v33  ;;  %v7546_v0 = vadd.f32 %v7545_v22, %v7544_v10  ;;  %v7340_v27 = vmax.f32 %v7338_v28, %v7339_v63  ;;  %v14416_v41 = vadd.f32 %v18070_v26, %v17884_v54 }
 0x579   : > { %v7346_v2 = vsel %vm7236_vm12, %v18186_v42, -inf  ;;  %v18200_v9 = vpop.eup %15184  ;;  %v7335_v62 = vmax.f32 %v7333_v60, %v7334_v32  ;;  %v7345_v46 = vsel %vm7236_vm12, %v18190_v29, -inf  ;;  %v7355_v17 = vsel %vm7236_vm12, %v18192_v45, -inf }
 0x57a   : > { %v7354_v47 = vsel %vm7236_vm12, %v18194_v11, -inf  ;;  %v15187_v36 = vpop.eup %15186  ;;  %v7547_v50 = vrot.slane %v7546_v0, 1  ;;  %v7549_v6 = vsel %vm7236_vm12, %v18200_v9, 0.0  ;;  %v7341_v59 = vrot.slane %v7340_v27, 2  ;;  %6949 = vrot.lane.b32.xlu1 %v14414_v4, %s15389_s28 }
 0x57b   : > { %v7347_v49 = vmax.f32 %v7345_v46, %v7346_v2  ;;  %6947 = vrot.lane.b32.xlu0 %v14415_v57, %s15389_s28  ;;  %v18212_v26 = vpop.eup %15188  ;;  %v18215_v51 = vmul.f32 %v15187_v36, %v18081_v20  ;;  %v18218_v44 = vmul.f32 %v15187_v36, %v18092_v39  ;;  %v7401_v10 = vsub.f32 %v18129_v56, %v7335_v62  ;;  %v7188_v36 = vpop.permute.xlu0 %7187 }
 0x57c   : > { %v7402_v28 = vsub.f32 %v18125_v21, %v7335_v62  ;;  %v15191_v53 = vpop.eup %15190  ;;  %v7548_v1 = vadd.f32 %v7547_v50, %v7546_v0  ;;  %v7550_v52 = vsel %vm7236_vm12, %v18212_v26, 0.0  ;;  %v7342_v33 = vmax.f32 %v7340_v27, %v7341_v59  ;;  %v7192_v21 = vpop.permute.xlu1 %7191 }
 0x57d   : > { %21598 = vst [vmem:[#allocation23_spill] sm:$0xff] %v18215_v51  ;;  %21599 = vst [vmem:[#allocation22_spill] sm:$0xff] %v18218_v44  ;;  %v7348_v60 = vrot.slane %v7347_v49, 4  ;;  %v18225_v4 = vmul.f32 %v15191_v53, %v18102_v13  ;;  %v18228_v20 = vmul.f32 %v15191_v53, %v18110_v16  ;;  %v7551_v57 = vadd.f32 %v7550_v52, %v7549_v6 }
 0x57e   : > { %v7453_v39 = vmul.f32 1.442695, %v7401_v10  ;;  %15196 = vrcp.f32 %v7548_v1  ;;  %v7455_v22 = vmul.f32 1.442695, %v7402_v28  ;;  %v7343_v56 = vrot.slane %v7342_v33, 1  ;;  %6953 = vrot.lane.b32.xlu1 %v14416_v41, %s15389_s28 }
 0x57f   : > { %21600 = vst [vmem:[#allocation24_spill] sm:$0xff] %v18225_v4  ;;  %21601 = vst [vmem:[#allocation25_spill] sm:$0xff] %v18228_v20  ;;  %v7349_v63 = vmax.f32 %v7347_v49, %v7348_v60  ;;  %v18231_v32 = vpop.eup %15192  ;;  %v7552_v0 = vrot.slane %v7551_v57, 4  ;;  %v7356_v27 = vmax.f32 %v7354_v47, %v7355_v17  ;;  %v14417_v13 = vadd.f32 %v17884_v54, %v18074_v38 }
 0x580   : > { %15198 = vpow2.f32 %v7453_v39  ;;  %v18235_v2 = vpop.eup %15194  ;;  %v7558_v16 = vsel %vm7236_vm12, %v18231_v32, 0.0  ;;  %v7344_v62 = vmax.f32 %v7342_v33, %v7343_v56  ;;  %v18241_v49 = vadd.f32 %v14416_v41, %v7192_v21 }
 0x581   : > { %15200 = vpow2.f32 %v7455_v22  ;;  %v7350_v46 = vrot.slane %v7349_v63, 2  ;;  %v7553_v50 = vadd.f32 %v7552_v0, %v7551_v57  ;;  %v7559_v6 = vsel %vm7236_vm12, %v18235_v2, 0.0  ;;  %6951 = vrot.lane.b32.xlu0 %v14417_v13, %s15389_s28 }
 0x582   : > { %v7357_v59 = vrot.slane %v7356_v27, 4  ;;  %v7560_v17 = vadd.f32 %v7559_v6, %v7558_v16  ;;  %v7403_v38 = vsub.f32 %v18166_v48, %v7344_v62  ;;  %v7404_v47 = vsub.f32 %v18147_v3, %v7344_v62 }
 0x583   : > { %v7351_v10 = vmax.f32 %v7349_v63, %v7350_v46  ;;  %v7554_v28 = vrot.slane %v7553_v50, 2  ;;  %v7364_v1 = vsel %vm7236_vm12, %v18241_v49, -inf  ;;  %v18248_v52 = vadd.f32 %v14417_v13, %v7188_v36 }
 0x584   : > { %v7358_v53 = vmax.f32 %v7356_v27, %v7357_v59  ;;  %v7561_v33 = vrot.slane %v7560_v17, 4  ;;  %v7457_v60 = vmul.f32 1.442695, %v7403_v38  ;;  %v7459_v57 = vmul.f32 1.442695, %v7404_v47 }
 0x585   : > { %v7352_v41 = vrot.slane %v7351_v10, 1  ;;  %v7555_v39 = vadd.f32 %v7554_v28, %v7553_v50  ;;  %v7363_v56 = vsel %vm7236_vm12, %v18248_v52, -inf  ;;  %v14418_v3 = vadd.f32 %v18090_v37, %v17884_v54  ;;  %v7203_v37 = vpop.permute.xlu1 %7202 }
 0x586   : > { %v7359_v22 = vrot.slane %v7358_v53, 2  ;;  %v7562_v48 = vadd.f32 %v7561_v33, %v7560_v17  ;;  %15202 = vpow2.f32 %v7457_v60  ;;  %v7365_v21 = vmax.f32 %v7363_v56, %v7364_v1 }
 0x587   : > { %v7353_v63 = vmax.f32 %v7351_v10, %v7352_v41  ;;  %v7556_v0 = vrot.slane %v7555_v39, 1  ;;  %15204 = vpow2.f32 %v7459_v57  ;;  %v14419_v13 = vadd.f32 %v17884_v54, %v18100_v30  ;;  %6957 = vrot.lane.b32.xlu1 %v14418_v3, %s15389_s28  ;;  %v7199_v30 = vpop.permute.xlu0 %7198 }
 0x588   : > { %v7360_v27 = vmax.f32 %v7358_v53, %v7359_v22  ;;  %v15197_v16 = vpop.eup %15196  ;;  %v7563_v62 = vrot.slane %v7562_v48, 2  ;;  %v7366_v50 = vrot.slane %v7365_v21, 4  ;;  %v18275_v60 = vadd.f32 %v14418_v3, %v7203_v37 }
 0x589   : > { %v7405_v46 = vsub.f32 %v18190_v29, %v7353_v63  ;;  %v7406_v36 = vsub.f32 %v18186_v42, %v7353_v63  ;;  %v18262_v59 = vmul.f32 %v15197_v16, %v18149_v58  ;;  %v18265_v17 = vmul.f32 %v15197_v16, %v18156_v34  ;;  %6955 = vrot.lane.b32.xlu0 %v14419_v13, %s15389_s28  ;;  %v9110_v57 = vpop.permute.xlu1 %9109  ;;  %s15394_s28 = smov 104  }
 0x58a   : > { %v18259_v6 = vpop.eup %15198  ;;  %v7557_v38 = vadd.f32 %v7556_v0, %v7555_v39  ;;  %v7361_v54 = vrot.slane %v7360_v27, 1  ;;  %v7564_v29 = vadd.f32 %v7563_v62, %v7562_v48  ;;  %v7367_v34 = vmax.f32 %v7365_v21, %v7366_v50 }
 0x58b   : > { %21602 = vst [vmem:[#allocation39_spill] sm:$0xff] %v18262_v59  ;;  %21603 = vst [vmem:[#allocation40_spill] sm:$0xff] %v18265_v17  ;;  %v18268_v47 = vpop.eup %15200  ;;  %v7567_v42 = vsel %vm7236_vm12, %v18259_v6, 0.0  ;;  %v7461_v10 = vmul.f32 1.442695, %v7405_v46  ;;  %8009 = vperm.xlu1 %14876, %v18108_v8   ;;  %v9108_v56 = vpop.permute.xlu0 %9107  ;;  %v7373_v21 = vsel %vm7236_vm12, %v18275_v60, -inf  ;;  %v18282_v0 = vadd.f32 %v14419_v13, %v7199_v30 }
 0x58c   : > { %v7463_v28 = vmul.f32 1.442695, %v7406_v36  ;;  %15206 = vrcp.f32 %v7557_v38  ;;  %v7568_v58 = vsel %vm7236_vm12, %v18268_v47, 0.0  ;;  %v7362_v53 = vmax.f32 %v7360_v27, %v7361_v54 }
 0x58d   : > { %v7565_v1 = vrot.slane %v7564_v29, 1  ;;  %v7569_v33 = vadd.f32 %v7568_v58, %v7567_v42  ;;  %15208 = vpow2.f32 %v7461_v10  ;;  %v7368_v22 = vrot.slane %v7367_v34, 2  ;;  %8006 = vperm.xlu0 %14875, %v18105_v55  }
 0x58e   : > { %15210 = vpow2.f32 %v7463_v28  ;;  %v7407_v41 = vsub.f32 %v18194_v11, %v7362_v53  ;;  %v7408_v39 = vsub.f32 %v18192_v45, %v7362_v53  ;;  %v21146_v62 = vmov 1  }
 0x58f   : > { %v7566_v48 = vadd.f32 %v7565_v1, %v7564_v29  ;;  %v7570_v63 = vrot.slane %v7569_v33, 4  ;;  %v7369_v16 = vmax.f32 %v7367_v34, %v7368_v22  ;;  %14877 = vset.pattern.permute.xlu1 %v21146_v62  ;;  %v9121_v11 = vand.u32 4294901760, %v9110_v57 }
 0x590   : > { %v7465_v27 = vmul.f32 1.442695, %v7407_v41  ;;  %v7467_v3 = vmul.f32 1.442695, %v7408_v39  ;;  %v18285_v46 = vpop.eup %15202  ;;  %v7372_v36 = vsel %vm7236_vm12, %v18282_v0, -inf  ;;  %8852 = vperm.xlu1 %14877, %v18105_v55   ;;  %v9118_v50 = vand.u32 4294901760, %v9108_v56 }
 0x591   : > { %15212 = vrcp.f32 %v7566_v48  ;;  %v7571_v45 = vadd.f32 %v7570_v63, %v7569_v33  ;;  %v18290_v37 = vpop.eup %15204  ;;  %v7576_v13 = vsel %vm7236_vm12, %v18285_v46, 0.0  ;;  %v7370_v38 = vrot.slane %v7369_v16, 1  ;;  %14878 = vset.pattern.permute.xlu0 %v21146_v62 }
 0x592   : > { %15214 = vpow2.f32 %v7465_v27  ;;  %v7374_v54 = vmax.f32 %v7372_v36, %v7373_v21  ;;  %v7577_v29 = vsel %vm7236_vm12, %v18290_v37, 0.0  ;;  %8855 = vperm.xlu0 %14878, %v18108_v8   ;;  %v18298_v42 = vsub.f32 %v9110_v57, %v9121_v11 }
 0x593   : > { %v7572_v30 = vrot.slane %v7571_v45, 2  ;;  %15216 = vpow2.f32 %v7467_v3  ;;  %v7578_v10 = vadd.f32 %v7577_v29, %v7576_v13  ;;  %v7371_v28 = vmax.f32 %v7369_v16, %v7370_v38 }
 0x594   : > { %21604 = vst [vmem:[#allocation15_spill] sm:$0xff] %v18298_v42  ;;  %v7375_v58 = vrot.slane %v7374_v54, 4  ;;  %v18300_v53 = vpack.c.bf16 %v9121_v11, %v9118_v50  ;;  %v21127_v1 = vmov 2   ;;  %v21121_v33 = vand.u32 4294901760, %v18298_v42 }
 0x595   : > { %v7573_v34 = vadd.f32 %v7572_v30, %v7571_v45  ;;  %14879 = vset.pattern.permute.xlu1 %v21127_v1  ;;  %v18304_v41 = vsub.f32 %v9108_v56, %v9118_v50  ;;  %v7579_v22 = vrot.slane %v7578_v10, 4  ;;  %v7409_v57 = vsub.f32 %v18248_v52, %v7371_v28 }
 0x596   : > { %21605 = vst [vmem:[#allocation42_spill] sm:$0xff] %v18300_v53  ;;  %v15207_v39 = vpop.eup %15206  ;;  %v7410_v48 = vsub.f32 %v18241_v49, %v7371_v28  ;;  %v7376_v63 = vmax.f32 %v7374_v54, %v7375_v58  ;;  %9689 = vperm.xlu1 %14879, %v18108_v8   ;;  %14313 = vmatprep.subr.bf16.mxu1 %v18300_v53  ;;  %v21125_v27 = vmov 3  }
 0x597   : > { %21606 = vst [vmem:[#allocation16_spill] sm:$0xff] %v18304_v41  ;;  %v18317_v56 = vpop.eup %15208  ;;  %v18320_v21 = vmul.f32 %v15207_v39, %v18200_v9  ;;  %v18323_v52 = vmul.f32 %v15207_v39, %v18212_v26  ;;  %v7574_v49 = vrot.slane %v7573_v34, 1  ;;  %14880 = vset.pattern.permute.xlu0 %v21125_v27  ;;  %v21122_v3 = vand.u32 4294901760, %v18304_v41  ;;  %14315 = vmatpush3.bf16.msra.mxu1 %v18300_v53  ;;  %v6898_v26 = vpop.permute.xlu1 %6897 }
 0x598   : > { %v18328_v16 = vpop.eup %15210  ;;  %v7580_v11 = vadd.f32 %v7579_v22, %v7578_v10  ;;  %v7585_v9 = vsel %vm7236_vm12, %v18317_v56, 0.0  ;;  %v7469_v45 = vmul.f32 1.442695, %v7409_v57  ;;  %v7471_v36 = vmul.f32 1.442695, %v7410_v48  ;;  %10518 = vperm.xlu0 %14880, %v18105_v55   ;;  %6993 = vst.msk [vmem:[%s18315_s17 + $0x8] sm:$0xff] %vm6991_vm13, %v6898_v26  ;;  %v6896_v54 = vpop.permute.xlu0 %6895 }
 0x599   : > { %21608 = vst [vmem:[#allocation48_spill] sm:$0xff] %v18320_v21  ;;  %21609 = vst [vmem:[#allocation52_spill] sm:$0xff] %v18323_v52  ;;  %v7575_v50 = vadd.f32 %v7574_v49, %v7573_v34  ;;  %v7586_v13 = vsel %vm7236_vm12, %v18328_v16, 0.0  ;;  %v7377_v38 = vrot.slane %v7376_v63, 2  ;;  %v9208_v30 = vsub.f32 %v18304_v41, %v21122_v3 }
 0x59a   : > { %v7581_v29 = vrot.slane %v7580_v11, 2  ;;  %v7587_v10 = vadd.f32 %v7586_v13, %v7585_v9  ;;  %15218 = vpow2.f32 %v7469_v45  ;;  %14881 = vset.pattern.permute.xlu1 %v21125_v27  ;;  %6992 = vst.msk [vmem:[%s18315_s17] sm:$0xff] %vm6991_vm13, %v6896_v54  ;;  %v9215_v28 = vsub.f32 %v18298_v42, %v21121_v33 }
 0x59b   : > { %v15213_v58 = vpop.eup %15212  ;;  %15220 = vrcp.f32 %v7575_v50  ;;  %v7378_v34 = vmax.f32 %v7376_v63, %v7377_v38  ;;  %10521 = vperm.xlu1 %14881, %v18108_v8   ;;  %v9209_v39 = vand.u32 4294901760, %v9208_v30  ;;  %v6902_v45 = vpop.permute.xlu1 %6901  ;;  %v7689_v24 = vmul.f32 %v18133_v7, %v18133_v7 }
 0x59c   : > { %v18347_v22 = vpop.eup %15214  ;;  %v18350_v57 = vmul.f32 %v15213_v58, %v18231_v32  ;;  %v18353_v48 = vmul.f32 %v15213_v58, %v18235_v2  ;;  %v7582_v49 = vadd.f32 %v7581_v29, %v7580_v11  ;;  %v7588_v9 = vrot.slane %v7587_v10, 4  ;;  %14883 = vset.pattern.permute.xlu0 %v21129_v35  ;;  %6995 = vst.msk [vmem:[%s18315_s17 + $0x18] sm:$0xff] %vm6991_vm13, %v6902_v45  ;;  %v6900_v2 = vpop.permute.xlu0 %6899 }
 0x59d   : > { %v18356_v26 = vpop.eup %15216  ;;  %v7594_v63 = vsel %vm7236_vm12, %v18347_v22, 0.0  ;;  %15222 = vpow2.f32 %v7471_v36  ;;  %v7379_v50 = vrot.slane %v7378_v34, 1  ;;  %8015 = vperm.xlu0 %14883, %v18121_v31   ;;  %v9216_v32 = vand.u32 4294901760, %v9215_v28  ;;  %6994 = vst.msk [vmem:[%s18315_s17 + $0x10] sm:$0xff] %vm6991_vm13, %v6900_v2 }
 0x59e   : > { %21610 = vst [vmem:[#allocation55_spill] sm:$0xff] %v18350_v57  ;;  %21611 = vst [vmem:[#allocation12_spill] sm:$0xff] %v18353_v48  ;;  %v7583_v13 = vrot.slane %v7582_v49, 1  ;;  %v7589_v38 = vadd.f32 %v7588_v9, %v7587_v10  ;;  %v7595_v11 = vsel %vm7236_vm12, %v18356_v26, 0.0  ;;  %v21630_v53 = vmov 0  }
 0x59f   : > { %v7596_v54 = vadd.f32 %v7595_v11, %v7594_v63  ;;  %v7380_v30 = vmax.f32 %v7378_v34, %v7379_v50  ;;  %14882 = vset.pattern.permute.xlu1 %v21129_v35  ;;  %v18368_v36 = vpack.c.bf16 %v9216_v32, %v9209_v39  ;;  %v6906_v28 = vpop.permute.xlu1 %6905 }
 0x5a0   : > { %v7584_v29 = vadd.f32 %v7583_v13, %v7582_v49  ;;  %v7590_v58 = vrot.slane %v7589_v38, 2  ;;  %8012 = vperm.xlu1 %14882, %v18118_v15   ;;  %6997 = vst.msk [vmem:[%s18315_s17 + $0x28] sm:$0xff] %vm6991_vm13, %v6906_v28  ;;  %v6904_v34 = vpop.permute.xlu0 %6903 }
 0x5a1   : > { %21612 = vst [vmem:[#allocation30_spill] sm:$0xff] %v18368_v36  ;;  %v7597_v45 = vrot.slane %v7596_v54, 4  ;;  %v7411_v10 = vsub.f32 %v18282_v0, %v7380_v30  ;;  %v7412_v9 = vsub.f32 %v18275_v60, %v7380_v30  ;;  %14887 = vset.pattern.permute.xlu0 %v21125_v27  ;;  %14317 = vmatprep.subr.bf16.mxu1 %v18368_v36  ;;  %6996 = vst.msk [vmem:[%s18315_s17 + $0x20] sm:$0xff] %vm6991_vm13, %v6904_v34  ;;  %v21635_v36 = vmov 3  }
 0x5a2   : > { %15224 = vrcp.f32 %v7584_v29  ;;  %v7591_v39 = vadd.f32 %v7590_v58, %v7589_v38  ;;  %10527 = vperm.xlu0 %14887, %v18121_v31  }
 0x5a3   : > { %v7598_v49 = vadd.f32 %v7597_v45, %v7596_v54  ;;  %v7473_v63 = vmul.f32 1.442695, %v7411_v10  ;;  %v7475_v50 = vmul.f32 1.442695, %v7412_v9  ;;  %v6910_v32 = vpop.permute.xlu1 %6909 }
 0x5a4   : > { %v18380_v0 = vpop.eup %15218  ;;  %v7592_v60 = vrot.slane %v7591_v39, 1  ;;  %14884 = vset.pattern.permute.xlu1 %v21146_v62  ;;  %6999 = vst.msk [vmem:[%s18315_s17 + $0x38] sm:$0xff] %vm6991_vm13, %v6910_v32  ;;  %v6908_v38 = vpop.permute.xlu0 %6907 }
 0x5a5   : > { %v15221_v2 = vpop.eup %15220  ;;  %v7599_v13 = vrot.slane %v7598_v49, 2  ;;  %v7603_v11 = vsel %vm7236_vm12, %v18380_v0, 0.0  ;;  %15226 = vpow2.f32 %v7473_v63  ;;  %8858 = vperm.xlu1 %14884, %v18118_v15   ;;  %6998 = vst.msk [vmem:[%s18315_s17 + $0x30] sm:$0xff] %vm6991_vm13, %v6908_v38 }
 0x5a6   : > { %v18389_v54 = vmul.f32 %v15221_v2, %v18259_v6  ;;  %v18392_v30 = vmul.f32 %v15221_v2, %v18268_v47  ;;  %v7593_v29 = vadd.f32 %v7592_v60, %v7591_v39  ;;  %15228 = vpow2.f32 %v7475_v50  ;;  %14889 = vset.pattern.permute.xlu0 %v21129_v35 }
 0x5a7   : > { %v18397_v58 = vpop.eup %15222  ;;  %v7600_v28 = vadd.f32 %v7599_v13, %v7598_v49  ;;  %8021 = vperm.xlu0 %14889, %v18136_v19  }
 0x5a8   : > { %21613 = vst [vmem:[#allocation13_spill] sm:$0xff] %v18389_v54  ;;  %21614 = vst [vmem:[#allocation32_spill] sm:$0xff] %v18392_v30  ;;  %15230 = vrcp.f32 %v7593_v29  ;;  %v7604_v6 = vsel %vm7236_vm12, %v18397_v58, 0.0  ;;  %v6914_v47 = vpop.permute.xlu1 %6913  ;;  %v6912_v9 = vpop.permute.xlu0 %6911 }
 0x5a9   : > { %v7601_v45 = vrot.slane %v7600_v28, 1  ;;  %v7605_v10 = vadd.f32 %v7604_v6, %v7603_v11  ;;  %8861 = vperm.xlu1 %14884, %v18121_v31   ;;  %7001 = vst.msk [vmem:[%s18315_s17 + $0x48] sm:$0xff] %vm6991_vm13, %v6914_v47  ;;  %7000 = vst.msk [vmem:[%s18315_s17 + $0x40] sm:$0xff] %vm6991_vm13, %v6912_v9 }
 0x5ab   : > { %v7602_v34 = vadd.f32 %v7601_v45, %v7600_v28  ;;  %v7606_v39 = vrot.slane %v7605_v10, 4  ;;  %14890 = vset.pattern.permute.xlu0 %v21146_v62 }
 0x5ac   : > { %v15225_v49 = vpop.eup %15224  ;;  %8864 = vperm.xlu0 %14890, %v18133_v7   ;;  %v6918_v32 = vpop.permute.xlu1 %6917 }
 0x5ad   : > { %v18410_v63 = vmul.f32 %v15225_v49, %v18285_v46  ;;  %v18413_v50 = vmul.f32 %v15225_v49, %v18290_v37  ;;  %15232 = vrcp.f32 %v7602_v34  ;;  %v7607_v60 = vadd.f32 %v7606_v39, %v7605_v10  ;;  %14885 = vset.pattern.permute.xlu1 %v21127_v1  ;;  %7003 = vst.msk [vmem:[%s18315_s17 + $0x58] sm:$0xff] %vm6991_vm13, %v6918_v32 }
 0x5ae   : > { %9692 = vperm.xlu1 %14885, %v18118_v15   ;;  %v6916_v11 = vpop.permute.xlu0 %6915 }
 0x5af   : > { %21615 = vst [vmem:[#allocation14_spill] sm:$0xff] %v18410_v63  ;;  %21616 = vst [vmem:[#allocation11_spill] sm:$0xff] %v18413_v50  ;;  %v18419_v2 = vpop.eup %15226  ;;  %v7608_v13 = vrot.slane %v7607_v60, 2 }
 0x5b0   : > { %v15229_v38 = vpop.eup %15228  ;;  %v7612_v46 = vsel %vm7236_vm12, %v18419_v2, 0.0  ;;  %14894 = vset.pattern.permute.xlu0 %v21125_v27  ;;  %7002 = vst.msk [vmem:[%s18315_s17 + $0x50] sm:$0xff] %vm6991_vm13, %v6916_v11 }
 0x5b1   : > { %v7609_v37 = vadd.f32 %v7608_v13, %v7607_v60  ;;  %v7613_v29 = vsel %vm7236_vm12, %v15229_v38, 0.0  ;;  %10533 = vperm.xlu0 %14894, %v18136_v19  }
 0x5b2   : > { %v15231_v28 = vpop.eup %15230  ;;  %v7614_v6 = vadd.f32 %v7613_v29, %v7612_v46  ;;  %14886 = vset.pattern.permute.xlu1 %v21125_v27  ;;  %v6922_v9 = vpop.permute.xlu1 %6921 }
 0x5b3   : > { %v18430_v45 = vmul.f32 %v15231_v28, %v18317_v56  ;;  %v18433_v10 = vmul.f32 %v15231_v28, %v18328_v16  ;;  %v7610_v47 = vrot.slane %v7609_v37, 1  ;;  %10524 = vperm.xlu1 %14886, %v18118_v15   ;;  %v6920_v34 = vpop.permute.xlu0 %6919  ;;  %7005 = vst.msk [vmem:[%s18315_s17 + $0x68] sm:$0xff] %vm6991_vm13, %v6922_v9 }
 0x5b4   : > { %v7615_v39 = vrot.slane %v7614_v6, 4  ;;  %7004 = vst.msk [vmem:[%s18315_s17 + $0x60] sm:$0xff] %vm6991_vm13, %v6920_v34 }
 0x5b5   : > { %21617 = vst [vmem:[#allocation19_spill] sm:$0xff] %v18430_v45  ;;  %21618 = vst [vmem:[#allocation41_spill] sm:$0xff] %v18433_v10  ;;  %v7611_v49 = vadd.f32 %v7610_v47, %v7609_v37  ;;  %14896 = vset.pattern.permute.xlu0 %v21129_v35 }
 0x5b6   : > { %v7616_v56 = vadd.f32 %v7615_v39, %v7614_v6  ;;  %8027 = vperm.xlu0 %14896, %v18162_v43   ;;  %v6926_v60 = vpop.permute.xlu1 %6925 }
 0x5b7   : > { %v15233_v16 = vpop.eup %15232  ;;  %15234 = vrcp.f32 %v7611_v49  ;;  %14888 = vset.pattern.permute.xlu1 %v21129_v35  ;;  %7007 = vst.msk [vmem:[%s18315_s17 + $0x78] sm:$0xff] %vm6991_vm13, %v6926_v60  ;;  %v6924_v46 = vpop.permute.xlu0 %6923 }
 0x5b8   : > { %v18444_v32 = vmul.f32 %v15233_v16, %v18347_v22  ;;  %v18447_v13 = vmul.f32 %v15233_v16, %v18356_v26  ;;  %v7617_v11 = vrot.slane %v7616_v56, 2  ;;  %8018 = vperm.xlu1 %14888, %v18133_v7   ;;  %7006 = vst.msk [vmem:[%s18315_s17 + $0x70] sm:$0xff] %vm6991_vm13, %v6924_v46 }
 0x5ba   : > { %21619 = vst [vmem:[#allocation21_spill] sm:$0xff] %v18444_v32  ;;  %21620 = vst [vmem:[#allocation17_spill] sm:$0xff] %v18447_v13  ;;  %v7618_v37 = vadd.f32 %v7617_v11, %v7616_v56  ;;  %14897 = vset.pattern.permute.xlu0 %v21146_v62 }
 0x5bb   : > { %8870 = vperm.xlu0 %14897, %v18159_v5  }
 0x5bc   : > { %v7619_v29 = vrot.slane %v7618_v37, 1  ;;  %14891 = vset.pattern.permute.xlu1 %v21146_v62 }
 0x5bd   : > { %8867 = vperm.xlu1 %14891, %v18136_v19  }
 0x5be   : > { %v7620_v22 = vadd.f32 %v7619_v29, %v7618_v37 }
 0x5bf   : > { %14901 = vset.pattern.permute.xlu0 %v21125_v27 }
 0x5c0   : > { %15236 = vrcp.f32 %v7620_v22  ;;  %10539 = vperm.xlu0 %14901, %v18162_v43   ;;  %v6930_v28 = vpop.permute.xlu1 %6929  ;;  %v7685_v22 = vmul.f32 %v18105_v55, %v18105_v55 }
 0x5c1   : > { %v15235_v26 = vpop.eup %15234  ;;  %14892 = vset.pattern.permute.xlu1 %v21127_v1  ;;  %7009 = vst.msk [vmem:[%s18315_s17 + $0x88] sm:$0xff] %vm6991_vm13, %v6930_v28 }
 0x5c2   : > { %v18462_v6 = vmul.f32 %v15235_v26, %v18380_v0  ;;  %v18465_v47 = vmul.f32 %v15235_v26, %v18397_v58  ;;  %9698 = vperm.xlu1 %14892, %v18133_v7   ;;  %v6928_v9 = vpop.permute.xlu0 %6927  ;;  %v7686_v26 = vmul.f32 %v18108_v8, %v18108_v8 }
 0x5c3   : > { %7008 = vst.msk [vmem:[%s18315_s17 + $0x80] sm:$0xff] %vm6991_vm13, %v6928_v9  ;;  %v7717_v9 = vsel %vm7236_vm12, %v7685_v22, 0.0 }
 0x5c4   : > { %21621 = vst [vmem:[#allocation44_spill] sm:$0xff] %v18462_v6  ;;  %21622 = vst [vmem:[#allocation43_spill] sm:$0xff] %v18465_v47  ;;  %14903 = vset.pattern.permute.xlu0 %v21129_v35 }
 0x5c5   : > { %8033 = vperm.xlu0 %14903, %v18174_v12  }
 0x5c6   : > { %14893 = vset.pattern.permute.xlu1 %v21125_v27 }
 0x5c7   : > { %10530 = vperm.xlu1 %14893, %v18133_v7  }
 0x5c9   : > { %14904 = vset.pattern.permute.xlu0 %v21146_v62 }
 0x5ca   : > { %v15237_v0 = vpop.eup %15236  ;;  %8876 = vperm.xlu0 %14904, %v18171_v23  }
 0x5cb   : > { %v18479_v58 = vmul.f32 %v15237_v0, %v18419_v2  ;;  %v18481_v34 = vmul.f32 %v15237_v0, %v15229_v38  ;;  %14895 = vset.pattern.permute.xlu1 %v21129_v35  ;;  %v7718_v0 = vsel %vm7236_vm12, %v7686_v26, 0.0 }
 0x5cc   : > { %8024 = vperm.xlu1 %14895, %v18159_v5  }
 0x5cd   : > { %21623 = vst [vmem:[#allocation46_spill] sm:$0xff] %v18479_v58  ;;  %21624 = vst [vmem:[#allocation45_spill] sm:$0xff] %v18481_v34 }
 0x5ce   : > { %14908 = vset.pattern.permute.xlu0 %v21125_v27  ;;  %v6934_v39 = vpop.permute.xlu1 %6933 }
 0x5cf   : > { %10545 = vperm.xlu0 %14908, %v18174_v12   ;;  %7011 = vst.msk [vmem:[%s18315_s17 + $0x98] sm:$0xff] %vm6991_vm13, %v6934_v39  ;;  %v6932_v49 = vpop.permute.xlu0 %6931  ;;  %v7719_v39 = vadd.f32 %v7718_v0, %v7717_v9  ;;  %v7688_v9 = vmul.f32 %v18121_v31, %v18121_v31 }
 0x5d0   : > { %14898 = vset.pattern.permute.xlu1 %v21146_v62  ;;  %7010 = vst.msk [vmem:[%s18315_s17 + $0x90] sm:$0xff] %vm6991_vm13, %v6932_v49 }
 0x5d1   : > { %8873 = vperm.xlu1 %14898, %v18162_v43  }
 0x5d3   : > { %14910 = vset.pattern.permute.xlu0 %v21129_v35 }
 0x5d4   : > { %8039 = vperm.xlu0 %14910, %v18218_v44   ;;  %v6938_v2 = vpop.permute.xlu1 %6937 }
 0x5d5   : > { %14899 = vset.pattern.permute.xlu1 %v21127_v1  ;;  %7013 = vst.msk [vmem:[%s18315_s17 + $0xa8] sm:$0xff] %vm6991_vm13, %v6938_v2 }
 0x5d6   : > { %9704 = vperm.xlu1 %14899, %v18159_v5  }
 0x5d8   : > { %14911 = vset.pattern.permute.xlu0 %v21146_v62 }
 0x5d9   : > { %8882 = vperm.xlu0 %14911, %v18215_v51  }
 0x5da   : > { %9707 = vperm.xlu1 %14899, %v18162_v43   ;;  %v6936_v38 = vpop.permute.xlu0 %6935 }
 0x5db   : > { %7012 = vst.msk [vmem:[%s18315_s17 + $0xa0] sm:$0xff] %vm6991_vm13, %v6936_v38  ;;  %v6942_v56 = vpop.permute.xlu1 %6941  ;;  %v7720_v38 = vrot.slane %v7719_v39, 4 }
 0x5dc   : > { %7015 = vst.msk [vmem:[%s18315_s17 + $0xb8] sm:$0xff] %vm6991_vm13, %v6942_v56 }
 0x5dd   : > { %14915 = vset.pattern.permute.xlu0 %v21125_v27  ;;  %v7721_v56 = vadd.f32 %v7720_v38, %v7719_v39 }
 0x5de   : > { %10551 = vperm.xlu0 %14915, %v18218_v44   ;;  %14900 = vset.pattern.permute.xlu1 %v21125_v27 }
 0x5df   : > { %10536 = vperm.xlu1 %14900, %v18159_v5   ;;  %v6940_v16 = vpop.permute.xlu0 %6939 }
 0x5e0   : > { %7014 = vst.msk [vmem:[%s18315_s17 + $0xb0] sm:$0xff] %vm6991_vm13, %v6940_v16  ;;  %v7722_v16 = vrot.slane %v7721_v56, 2 }
 0x5e2   : > { %14917 = vset.pattern.permute.xlu0 %v21129_v35 }
 0x5e3   : > { %8045 = vperm.xlu0 %14917, %v18228_v20   ;;  %14902 = vset.pattern.permute.xlu1 %v21129_v35 }
 0x5e4   : > { %8030 = vperm.xlu1 %14902, %v18171_v23  }
 0x5e7   : > { %14918 = vset.pattern.permute.xlu0 %v21146_v62 }
 0x5e8   : > { %8888 = vperm.xlu0 %14918, %v18225_v4   ;;  %14905 = vset.pattern.permute.xlu1 %v21146_v62  ;;  %v6946_v60 = vpop.permute.xlu1 %6945 }
 0x5e9   : > { %8879 = vperm.xlu1 %14905, %v18174_v12   ;;  %v6944_v11 = vpop.permute.xlu0 %6943  ;;  %7017 = vst.msk [vmem:[%s18315_s17 + $0xc8] sm:$0xff] %vm6991_vm13, %v6946_v60  ;;  %v7723_v60 = vadd.f32 %v7722_v16, %v7721_v56 }
 0x5ea   : > { %7016 = vst.msk [vmem:[%s18315_s17 + $0xc0] sm:$0xff] %vm6991_vm13, %v6944_v11 }
 0x5ec   : > { %14922 = vset.pattern.permute.xlu0 %v21129_v35  ;;  %v6950_v46 = vpop.permute.xlu1 %6949 }
 0x5ed   : > { %8051 = vperm.xlu0 %14922, %v18265_v17   ;;  %14906 = vset.pattern.permute.xlu1 %v21127_v1  ;;  %v6948_v37 = vpop.permute.xlu0 %6947  ;;  %7019 = vst.msk [vmem:[%s18315_s17 + $0xd8] sm:$0xff] %vm6991_vm13, %v6950_v46  ;;  %v7724_v46 = vrot.slane %v7723_v60, 1 }
 0x5ee   : > { %9713 = vperm.xlu1 %14906, %v18174_v12   ;;  %7018 = vst.msk [vmem:[%s18315_s17 + $0xd0] sm:$0xff] %vm6991_vm13, %v6948_v37 }
 0x5ef   : > { %v7725_v22 = vadd.f32 %v7724_v46, %v7723_v60 }
 0x5f0   : > { %v6954_v29 = vpop.permute.xlu1 %6953 }
 0x5f1   : > { %14923 = vset.pattern.permute.xlu0 %v21146_v62  ;;  %7021 = vst.msk [vmem:[%s18315_s17 + $0xe8] sm:$0xff] %vm6991_vm13, %v6954_v29  ;;  %15238 = vrsqrt.f32 %v7725_v22  ;;  %vm7863_vm14 = vcmp.eq.f32.partialorder %v7725_v22, inf  ;;  %vm7865_vm15 = vcmp.eq.f32.partialorder %v7725_v22, 0.0 }
 0x5f2   : > { %8894 = vperm.xlu0 %14923, %v18262_v59   ;;  %14907 = vset.pattern.permute.xlu1 %v21125_v27 }
 0x5f3   : > { %10542 = vperm.xlu1 %14907, %v18171_v23   ;;  %v6952_v28 = vpop.permute.xlu0 %6951 }
 0x5f4   : > { %7020 = vst.msk [vmem:[%s18315_s17 + $0xe0] sm:$0xff] %vm6991_vm13, %v6952_v28  ;;  %v7687_v28 = vmul.f32 %v18118_v15, %v18118_v15 }
 0x5f6   : > { %14926 = vset.pattern.permute.xlu0 %v21129_v35  ;;  %v7726_v39 = vsel %vm7236_vm12, %v7687_v28, 0.0 }
 0x5f7   : > { %8057 = vperm.xlu0 %14926, %v18323_v52   ;;  %14909 = vset.pattern.permute.xlu1 %v21129_v35 }
 0x5f8   : > { %8036 = vperm.xlu1 %14909, %v18215_v51  }
 0x5f9   : > { %v6958_v49 = vpop.permute.xlu1 %6957 }
 0x5fa   : > { %7023 = vst.msk [vmem:[%s18315_s17 + $0xf8] sm:$0xff] %vm6991_vm13, %v6958_v49  ;;  %v7727_v49 = vsel %vm7236_vm12, %v7688_v9, 0.0 }
 0x5fb   : > { %14927 = vset.pattern.permute.xlu0 %v21146_v62  ;;  %v6956_v2 = vpop.permute.xlu0 %6955  ;;  %v7728_v38 = vadd.f32 %v7727_v49, %v7726_v39  ;;  %v15239_v46 = vpop.eup %15238 }
 0x5fc   : > { %8900 = vperm.xlu0 %14927, %v18320_v21   ;;  %14912 = vset.pattern.permute.xlu1 %v21146_v62  ;;  %7022 = vst.msk [vmem:[%s18315_s17 + $0xf0] sm:$0xff] %vm6991_vm13, %v6956_v2  ;;  %v7862_v39 = vmul.f32 %v15239_v46, %v7725_v22  ;;  %v7690_v46 = vmul.f32 %v18136_v19, %v18136_v19  ;;  %s15398_s17 = smov 24  }
 0x5fd   : > { %8885 = vperm.xlu1 %14912, %v18218_v44   ;;  %v7729_v60 = vrot.slane %v7728_v38, 4 }
 0x5fe   : > { %v7864_v3 = vsel %vm7863_vm14, %v7725_v22, %v7862_v39  ;;  %v7736_v8 = vsel %vm7236_vm12, %v7690_v46, 0.0 }
 0x5ff   : > { %v7730_v49 = vadd.f32 %v7729_v60, %v7728_v38  ;;  %v7866_v60 = vand.u32 2147483648, %v7725_v22 }
 0x600   : > { %14932 = vset.pattern.permute.xlu0 %v21129_v35 }
 0x601   : > { %8063 = vperm.xlu0 %14932, %v18353_v48   ;;  %14913 = vset.pattern.permute.xlu1 %v21127_v1  ;;  %v7731_v14 = vrot.slane %v7730_v49, 2 }
 0x602   : > { %9719 = vperm.xlu1 %14913, %v18218_v44  }
 0x603   : > { %v7732_v39 = vadd.f32 %v7731_v14, %v7730_v49 }
 0x605   : > { %14933 = vset.pattern.permute.xlu0 %v21146_v62 }
 0x606   : > { %8906 = vperm.xlu0 %14933, %v18350_v57   ;;  %14914 = vset.pattern.permute.xlu1 %v21125_v27 }
 0x607   : > { %10548 = vperm.xlu1 %14914, %v18215_v51  }
 0x60a   : > { %14936 = vset.pattern.permute.xlu0 %v21125_v27  ;;  %v18568_v11 = vpop.permute.xlu1 %8009 }
 0x60b   : > { %10572 = vperm.xlu0 %14936, %v18350_v57   ;;  %14916 = vset.pattern.permute.xlu1 %v21129_v35 }
 0x60c   : > { %8042 = vperm.xlu1 %14916, %v18225_v4   ;;  %v18572_v37 = vpop.permute.xlu0 %8006 }
 0x60f   : > { %14939 = vset.pattern.permute.xlu0 %v21129_v35  ;;  %v18577_v29 = vpop.permute.xlu1 %8852 }
 0x610   : > { %8069 = vperm.xlu0 %14939, %v18392_v30   ;;  %14919 = vset.pattern.permute.xlu1 %v21146_v62 }
 0x611   : > { %8891 = vperm.xlu1 %14919, %v18228_v20   ;;  %v18580_v26 = vpop.permute.xlu0 %8855 }
 0x614   : > { %14940 = vset.pattern.permute.xlu0 %v21146_v62 }
 0x615   : > { %8912 = vperm.xlu0 %14940, %v18389_v54   ;;  %14920 = vset.pattern.permute.xlu1 %v21127_v1  ;;  %v18589_v0 = vpop.permute.xlu1 %9689  ;;  %v18627_v1 = vsel %vm7865_vm15, %v7866_v60, %v7864_v3  ;;  %v7733_v3 = vrot.slane %v7732_v39, 1 }
 0x616   : > { %21625 = vst [vmem:[#allocation47_spill] sm:$0xff] %v18589_v0  ;;  %9725 = vperm.xlu1 %14920, %v18228_v20   ;;  %21629 = vst [vmem:[#allocation53_spill] sm:$0xff] %v18627_v1 }
 0x617   : > { %v18594_v2 = vpop.permute.xlu0 %10518 }
 0x618   : > { %21626 = vst [vmem:[#allocation50_spill] sm:$0xff] %v18594_v2 }
 0x619   : > { %14945 = vset.pattern.permute.xlu0 %v21129_v35 }
 0x61a   : > { %8075 = vperm.xlu0 %14945, %v18413_v50   ;;  %14921 = vset.pattern.permute.xlu1 %v21129_v35  ;;  %v18599_v56 = vpop.permute.xlu1 %10521 }
 0x61b   : > { %21627 = vst [vmem:[#allocation49_spill] sm:$0xff] %v18599_v56  ;;  %8048 = vperm.xlu1 %14921, %v18262_v59  }
 0x61c   : > { %v18602_v16 = vpop.permute.xlu0 %8015 }
 0x61e   : > { %14946 = vset.pattern.permute.xlu0 %v21146_v62 }
 0x61f   : > { %8918 = vperm.xlu0 %14946, %v18410_v63   ;;  %14924 = vset.pattern.permute.xlu1 %v21146_v62  ;;  %v18607_v28 = vpop.permute.xlu1 %8012 }
 0x620   : > { %8897 = vperm.xlu1 %14924, %v18265_v17  }
 0x621   : > { %v18610_v9 = vpop.permute.xlu0 %10527 }
 0x622   : > { %21628 = vst [vmem:[#allocation51_spill] sm:$0xff] %v18610_v9  ;;  %v7692_v9 = vmul.f32 %v18162_v43, %v18162_v43 }
 0x623   : > { %14951 = vset.pattern.permute.xlu0 %v21129_v35 }
 0x624   : > { %8081 = vperm.xlu0 %14951, %v18433_v10   ;;  %14925 = vset.pattern.permute.xlu1 %v21129_v35  ;;  %v18615_v33 = vpop.permute.xlu1 %8858  ;;  %v7735_v35 = vsel %vm7236_vm12, %v7689_v24, 0.0  ;;  %v7734_v24 = vadd.f32 %v7733_v3, %v7732_v39 }
 0x625   : > { %8054 = vperm.xlu1 %14925, %v18320_v21   ;;  %v7737_v15 = vadd.f32 %v7736_v8, %v7735_v35  ;;  %v21634_v35 = vmov 2  }
 0x626   : > { %v18622_v38 = vpop.permute.xlu0 %8021  ;;  %15240 = vrsqrt.f32 %v7734_v24  ;;  %vm7870_vm9 = vcmp.eq.f32.partialorder %v7734_v24, inf  ;;  %vm7872_vm10 = vcmp.eq.f32.partialorder %v7734_v24, 0.0 }
 0x627   : > { %v7738_v14 = vrot.slane %v7737_v15, 4 }
 0x628   : > { %14952 = vset.pattern.permute.xlu0 %v21146_v62  ;;  %v18625_v27 = vpop.permute.xlu1 %8861 }
 0x629   : > { %8924 = vperm.xlu0 %14952, %v18430_v45   ;;  %8771 = vperm.xlu1 %14925, %v18627_v1   ;;  %v7739_v8 = vadd.f32 %v7738_v14, %v7737_v15 }
 0x62b   : > { %v18633_v7 = vpop.permute.xlu0 %8864  ;;  %v7740_v39 = vrot.slane %v7739_v8, 2 }
 0x62d   : > { %14957 = vset.pattern.permute.xlu0 %v21630_v53  ;;  %v18636_v22 = vpop.permute.xlu1 %9692  ;;  %14928 = vset.pattern.permute.xlu1 %v21146_v62  ;;  %v7741_v15 = vadd.f32 %v7740_v39, %v7739_v8  ;;  %v21638_v39 = vmov 1  }
 0x62e   : > { %21631 = vst [vmem:[#allocation54_spill] sm:$0xff] %v18636_v22  ;;  %8087 = vperm.xlu0 %14957, %v18447_v13   ;;  %8903 = vperm.xlu1 %14928, %v18323_v52  }
 0x62f   : > { %v7742_v41 = vrot.slane %v7741_v15, 1 }
 0x630   : > { %v18641_v60 = vpop.permute.xlu0 %10533  ;;  %v15241_v14 = vpop.eup %15240 }
 0x631   : > { %21632 = vst [vmem:[#allocation56_spill] sm:$0xff] %v18641_v60  ;;  %v7743_v8 = vadd.f32 %v7742_v41, %v7741_v15 }
 0x632   : > { %14958 = vset.pattern.permute.xlu0 %v21146_v62  ;;  %v18644_v49 = vpop.permute.xlu1 %10524  ;;  %14929 = vset.pattern.permute.xlu1 %v21634_v35 }
 0x633   : > { %21633 = vst [vmem:[#allocation57_spill] sm:$0xff] %v18644_v49  ;;  %8930 = vperm.xlu0 %14958, %v18444_v32   ;;  %9737 = vperm.xlu1 %14929, %v18323_v52   ;;  %15242 = vrsqrt.f32 %v7743_v8  ;;  %v7694_v49 = vmul.f32 %v18174_v12, %v18174_v12  ;;  %vm7877_vm11 = vcmp.eq.f32.partialorder %v7743_v8, inf  ;;  %vm7879_vm13 = vcmp.eq.f32.partialorder %v7743_v8, 0.0 }
 0x635   : > { %v18649_v46 = vpop.permute.xlu0 %8027 }
 0x637   : > { %14962 = vset.pattern.permute.xlu0 %v21630_v53  ;;  %v18652_v25 = vpop.permute.xlu1 %8018  ;;  %14930 = vset.pattern.permute.xlu1 %v21635_v36 }
 0x638   : > { %8093 = vperm.xlu0 %14962, %v18465_v47   ;;  %10566 = vperm.xlu1 %14930, %v18320_v21  }
 0x63a   : > { %v18657_v3 = vpop.permute.xlu0 %8870 }
 0x63c   : > { %14963 = vset.pattern.permute.xlu0 %v21146_v62  ;;  %v18660_v22 = vpop.permute.xlu1 %8867  ;;  %10569 = vperm.xlu1 %14930, %v18323_v52   ;;  %v7869_v62 = vmul.f32 %v15241_v14, %v7734_v24  ;;  %v7873_v14 = vand.u32 2147483648, %v7734_v24 }
 0x63d   : > { %8936 = vperm.xlu0 %14963, %v18462_v6  }
 0x63e   : > { %v7871_v2 = vsel %vm7870_vm9, %v7734_v24, %v7869_v62  ;;  %v7745_v62 = vsel %vm7236_vm12, %v7692_v9, 0.0  ;;  %v15243_v24 = vpop.eup %15242  ;;  %vm8112_vm9 = vcmask 130112  }
 0x63f   : > { %v18664_v42 = vpop.permute.xlu0 %10539  ;;  %v18686_v15 = vsel %vm7872_vm10, %v7873_v14, %v7871_v2  ;;  %v7876_v14 = vmul.f32 %v15243_v24, %v7743_v8 }
 0x640   : > { %21636 = vst [vmem:[#allocation58_spill] sm:$0xff] %v18664_v42  ;;  %14931 = vset.pattern.permute.xlu1 %v21630_v53  ;;  %21640 = vst [vmem:[#allocation61_spill] sm:$0xff] %v18686_v15 }
 0x641   : > { %14966 = vset.pattern.permute.xlu0 %v21630_v53  ;;  %v18668_v0 = vpop.permute.xlu1 %9698  ;;  %8060 = vperm.xlu1 %14931, %v18350_v57  }
 0x642   : > { %21637 = vst [vmem:[#allocation59_spill] sm:$0xff] %v18668_v0  ;;  %8099 = vperm.xlu0 %14966, %v18481_v34   ;;  %v7691_v0 = vmul.f32 %v18159_v5, %v18159_v5 }
 0x644   : > { %v18672_v60 = vpop.permute.xlu0 %8033 }
 0x645   : > { %14934 = vset.pattern.permute.xlu1 %v21638_v39 }
 0x646   : > { %14967 = vset.pattern.permute.xlu0 %v21638_v39  ;;  %v18676_v42 = vpop.permute.xlu1 %10530  ;;  %8909 = vperm.xlu1 %14934, %v18353_v48  }
 0x647   : > { %21639 = vst [vmem:[#allocation60_spill] sm:$0xff] %v18676_v42  ;;  %8942 = vperm.xlu0 %14967, %v18479_v58   ;;  %v7744_v42 = vsel %vm7236_vm12, %v7691_v0, 0.0 }
 0x648   : > { %v7746_v43 = vadd.f32 %v7745_v62, %v7744_v42 }
 0x649   : > { %v18684_v41 = vpop.permute.xlu0 %8876 }
 0x64a   : > { %9623 = vperm.xlu1 %14934, %v18686_v15   ;;  %v7747_v0 = vrot.slane %v7746_v43, 4 }
 0x64b   : > { %14971 = vset.pattern.permute.xlu0 %v21635_v36  ;;  %v18692_v5 = vpop.permute.xlu1 %8024 }
 0x64c   : > { %10557 = vperm.xlu0 %14971, %v18228_v20   ;;  %v7748_v62 = vadd.f32 %v7747_v0, %v7746_v43  ;;  %v7880_v43 = vand.u32 2147483648, %v7743_v8 }
 0x64e   : > { %v18695_v56 = vpop.permute.xlu0 %10545  ;;  %14935 = vset.pattern.permute.xlu1 %v21634_v35  ;;  %v7749_v24 = vrot.slane %v7748_v62, 2 }
 0x64f   : > { %21641 = vst [vmem:[#allocation62_spill] sm:$0xff] %v18695_v56  ;;  %9743 = vperm.xlu1 %14935, %v18353_v48   ;;  %v7693_v56 = vmul.f32 %v18171_v23, %v18171_v23 }
 0x650   : > { %10563 = vperm.xlu0 %14971, %v18265_v17   ;;  %v18700_v2 = vpop.permute.xlu1 %8873 }
 0x651   : > { %v7753_v0 = vsel %vm7236_vm12, %v7693_v56, 0.0 }
 0x653   : > { %v18702_v9 = vpop.permute.xlu0 %8039  ;;  %14937 = vset.pattern.permute.xlu1 %v21635_v36 }
 0x654   : > { %14972 = vset.pattern.permute.xlu0 %v21634_v35  ;;  %10575 = vperm.xlu1 %14937, %v18353_v48  }
 0x655   : > { %9686 = vperm.xlu0 %14972, %v18105_v55   ;;  %v18708_v42 = vpop.permute.xlu1 %9704  ;;  %v7878_v55 = vsel %vm7877_vm11, %v7743_v8, %v7876_v14 }
 0x656   : > { %21642 = vst [vmem:[#allocation63_spill] sm:$0xff] %v18708_v42  ;;  %v7754_v42 = vsel %vm7236_vm12, %v7694_v49, 0.0  ;;  %v18723_v12 = vsel %vm7879_vm13, %v7880_v43, %v7878_v55 }
 0x657   : > { %21644 = vst [vmem:[#allocation65_spill] sm:$0xff] %v18723_v12 }
 0x658   : > { %v18714_v61 = vpop.permute.xlu0 %8882  ;;  %14938 = vset.pattern.permute.xlu1 %v21630_v53 }
 0x659   : > { %9695 = vperm.xlu0 %14972, %v18121_v31   ;;  %v18718_v40 = vpop.permute.xlu1 %9707  ;;  %8066 = vperm.xlu1 %14938, %v18389_v54   ;;  %v7750_v31 = vadd.f32 %v7749_v24, %v7748_v62 }
 0x65a   : > { %21643 = vst [vmem:[#allocation64_spill] sm:$0xff] %v18718_v40  ;;  %v7755_v40 = vadd.f32 %v7754_v42, %v7753_v0 }
 0x65b   : > { %v7751_v56 = vrot.slane %v7750_v31, 1 }
 0x65c   : > { %v7756_v14 = vrot.slane %v7755_v40, 4 }
 0x65d   : > { %9701 = vperm.xlu0 %14972, %v18136_v19   ;;  %v18726_v48 = vpop.permute.xlu0 %10551  ;;  %8779 = vperm.xlu1 %14938, %v18723_v12   ;;  %v7752_v8 = vadd.f32 %v7751_v56, %v7750_v31  ;;  %v7697_v56 = vmul.f32 %v18225_v4, %v18225_v4  ;;  %v7695_v19 = vmul.f32 %v18215_v51, %v18215_v51 }
 0x65e   : > { %21645 = vst [vmem:[#allocation66_spill] sm:$0xff] %v18726_v48  ;;  %v18729_v34 = vpop.permute.xlu1 %10536  ;;  %v7757_v43 = vadd.f32 %v7756_v14, %v7755_v40  ;;  %v7698_v14 = vmul.f32 %v18228_v20, %v18228_v20  ;;  %v7696_v48 = vmul.f32 %v18218_v44, %v18218_v44 }
 0x65f   : > { %21646 = vst [vmem:[#allocation67_spill] sm:$0xff] %v18729_v34  ;;  %15244 = vrsqrt.f32 %v7752_v8  ;;  %v7762_v20 = vsel %vm7236_vm12, %v7695_v19, 0.0  ;;  %vm7884_vm14 = vcmp.eq.f32.partialorder %v7752_v8, inf  ;;  %vm7886_vm15 = vcmp.eq.f32.partialorder %v7752_v8, 0.0 }
 0x660   : > { %v7758_v24 = vrot.slane %v7757_v43, 2  ;;  %v7772_v34 = vsel %vm7236_vm12, %v7698_v14, 0.0 }
 0x661   : > { %9734 = vperm.xlu0 %14972, %v18320_v21   ;;  %14941 = vset.pattern.permute.xlu1 %v21638_v39 }
 0x662   : > { %v18733_v49 = vpop.permute.xlu0 %8045  ;;  %8915 = vperm.xlu1 %14941, %v18392_v30   ;;  %v7759_v31 = vadd.f32 %v7758_v24, %v7757_v43  ;;  %v7771_v24 = vsel %vm7236_vm12, %v7697_v56, 0.0 }
 0x663   : > { %v18736_v55 = vpop.permute.xlu1 %8030  ;;  %v7773_v17 = vadd.f32 %v7772_v34, %v7771_v24 }
 0x665   : > { %9740 = vperm.xlu0 %14972, %v18350_v57   ;;  %v7763_v57 = vsel %vm7236_vm12, %v7696_v48, 0.0  ;;  %v7774_v19 = vrot.slane %v7773_v17, 4 }
 0x666   : > { %14942 = vset.pattern.permute.xlu1 %v21634_v35  ;;  %v7764_v6 = vadd.f32 %v7763_v57, %v7762_v20  ;;  %v7887_v20 = vand.u32 2147483648, %v7752_v8 }
 0x667   : > { %v18740_v42 = vpop.permute.xlu0 %8888  ;;  %9749 = vperm.xlu1 %14942, %v18392_v30  }
 0x668   : > { %v18743_v62 = vpop.permute.xlu1 %8879  ;;  %v7765_v48 = vrot.slane %v7764_v6, 4 }
 0x669   : > { %9746 = vperm.xlu0 %14972, %v18389_v54   ;;  %v15245_v12 = vpop.eup %15244 }
 0x66a   : > { %v7883_v56 = vmul.f32 %v15245_v12, %v7752_v8  ;;  %v7766_v24 = vadd.f32 %v7765_v48, %v7764_v6  ;;  %v18814_v48 = vld [vmem:[%s18792_s3] sm:$0x7] }
 0x66b   : > { %14943 = vset.pattern.permute.xlu1 %v21635_v36 }
 0x66c   : > { %v18747_v0 = vpop.permute.xlu0 %8051  ;;  %10578 = vperm.xlu1 %14943, %v18389_v54  }
 0x66d   : > { %9710 = vperm.xlu0 %14972, %v18171_v23   ;;  %v18751_v40 = vpop.permute.xlu1 %9713 }
 0x66e   : > { %21647 = vst [vmem:[#allocation68_spill] sm:$0xff] %v18751_v40  ;;  %v7760_v40 = vrot.slane %v7759_v31, 1 }
 0x670   : > { %10581 = vperm.xlu1 %14943, %v18392_v30   ;;  %v18774_v44 = vadd.f32 %v7760_v40, %v7759_v31  ;;  %v7885_v40 = vsel %vm7884_vm14, %v7752_v8, %v7883_v56  ;;  %v7775_v31 = vadd.f32 %v7774_v19, %v7773_v17  ;;  %v21653_v56 = vlaneseq  ;;  %v18809_v17 = vld [vmem:[%s18792_s3 + $0x8] sm:$0x7] }
 0x671   : > { %9755 = vperm.xlu0 %14972, %v18413_v50   ;;  %v18763_v23 = vpop.permute.xlu0 %8894  ;;  %v18795_v12 = vsel %vm7886_vm15, %v7887_v20, %v7885_v40  ;;  %v7701_v20 = vmul.f32 %v18320_v21, %v18320_v21 }
 0x672   : > { %21648 = vst [vmem:[#allocation69_spill] sm:$0xff] %v18763_v23  ;;  %v18765_v43 = vpop.permute.xlu1 %10542  ;;  %15246 = vrsqrt.f32 %v18774_v44  ;;  %21652 = vst [vmem:[#allocation73_spill] sm:$0xff] %v18795_v12  ;;  %v7776_v15 = vrot.slane %v7775_v31, 2  ;;  %vm7891_vm10 = vcmp.eq.f32.partialorder %v18774_v44, inf  ;;  %vm7893_vm11 = vcmp.eq.f32.partialorder %v18774_v44, 0.0 }
 0x673   : > { %21649 = vst [vmem:[#allocation70_spill] sm:$0xff] %v18765_v43 }
 0x674   : > { %14944 = vset.pattern.permute.xlu1 %v21630_v53 }
 0x675   : > { %9716 = vperm.xlu0 %14972, %v18215_v51   ;;  %8072 = vperm.xlu1 %14944, %v18410_v63   ;;  %v8102_v51 = vand.u32 127, %v21653_v56 }
 0x676   : > { %v18776_v43 = vpop.permute.xlu0 %8057 }
 0x677   : > { %21650 = vst [vmem:[#allocation71_spill] sm:$0xff] %v18776_v43  ;;  %v18778_v14 = vpop.permute.xlu1 %8036  ;;  %v8107_v40 = vadd.s32 4294967288, %v8102_v51 }
 0x679   : > { %9761 = vperm.xlu0 %14972, %v18433_v10   ;;  %14947 = vset.pattern.permute.xlu1 %v21638_v39  ;;  %v18826_v30 = vsub.s32 %v8107_v40, %v21569_v18 }
 0x67a   : > { %8921 = vperm.xlu1 %14947, %v18413_v50  }
 0x67b   : > { %v18784_v34 = vpop.permute.xlu0 %8900 }
 0x67c   : > { %21651 = vst [vmem:[#allocation72_spill] sm:$0xff] %v18784_v34  ;;  %v18786_v57 = vpop.permute.xlu1 %8885  ;;  %v18800_v34 = vld [vmem:[%s18792_s3 + $0x4] sm:$0x7]  ;;  %v15247_v19 = vpop.eup %15246 }
 0x67d   : > { %9722 = vperm.xlu0 %14972, %v18225_v4   ;;  %v7767_v4 = vrot.slane %v7766_v24, 2  ;;  %v11399_v6 = vrot.slane %v18800_v34, 7 }
 0x67e   : > { %9629 = vperm.xlu1 %14947, %v18795_v12   ;;  %v7890_v12 = vmul.f32 %v15247_v19, %v18774_v44  ;;  %v8111_v19 = vrot.slane %v18568_v11, %v18826_v30 }
 0x67f   : > { %v7768_v32 = vadd.f32 %v7767_v4, %v7766_v24  ;;  %v11400_v21 = vsel %vm1978_vm1, %v11399_v6, %v18814_v48  ;;  %v18840_v4 = vld [vmem:[%s18792_s3 + $0x10] sm:$0x7]  ;;  %v18846_v24 = vsel %vm7236_vm12, %v7701_v20, 0.0 }
 0x680   : > { %v18802_v8 = vpop.permute.xlu0 %8063  ;;  %21658 = vst [vmem:[#allocation78_spill] sm:$0xff] %v18846_v24  ;;  %v7892_v20 = vsel %vm7891_vm10, %v18774_v44, %v7890_v12 }
 0x681   : > { %21654 = vst [vmem:[#allocation74_spill] sm:$0xff] %v18802_v8  ;;  %9767 = vperm.xlu0 %14972, %v18447_v13   ;;  %v18805_v43 = vpop.permute.xlu1 %9719  ;;  %v11401_v8 = vrot.slane %v18809_v17, 6  ;;  %v7777_v13 = vadd.f32 %v7776_v15, %v7775_v31  ;;  %v7702_v31 = vmul.f32 %v18323_v52, %v18323_v52  ;;  %v7769_v6 = vrot.slane %v7768_v32, 1 }
 0x682   : > { %21655 = vst [vmem:[#allocation75_spill] sm:$0xff] %v18805_v43  ;;  %14948 = vset.pattern.permute.xlu1 %v21634_v35  ;;  %v18822_v43 = vld [vmem:[%s18792_s3 + $0xc] sm:$0x7]  ;;  %v8963_v52 = vrot.slane %v18625_v27, %v18826_v30  ;;  %v8121_v27 = vrot.slane %v18602_v16, %v18826_v30 }
 0x683   : > { %9752 = vperm.xlu1 %14948, %v18410_v63   ;;  %v11403_v15 = vrot.slane %v18822_v43, 5  ;;  %v7778_v40 = vrot.slane %v7777_v13, 1 }
 0x685   : > { %9728 = vperm.xlu0 %14972, %v18262_v59   ;;  %v18819_v56 = vpop.permute.xlu0 %8906  ;;  %v18834_v59 = vsub.s32 %v8102_v51, %v21569_v18  ;;  %v11402_v18 = vsel %vm1981_vm2, %v11401_v8, %v11400_v21  ;;  %v11626_v51 = vrot.slane %v18814_v48, 1  ;;  %v18884_v16 = vadd.f32 %v7778_v40, %v7777_v13 }
 0x686   : > { %21656 = vst [vmem:[#allocation76_spill] sm:$0xff] %v18819_v56  ;;  %v18828_v54 = vpop.permute.xlu1 %10548  ;;  %v11630_v13 = vrot.slane %v18822_v43, 6  ;;  %v18901_v40 = vadd.f32 %v7769_v6, %v7768_v32 }
 0x687   : > { %21657 = vst [vmem:[#allocation77_spill] sm:$0xff] %v18828_v54  ;;  %14949 = vset.pattern.permute.xlu1 %v21635_v36  ;;  %v8117_v54 = vrot.slane %v18607_v28, %v18834_v59  ;;  %v8106_v21 = vrot.slane %v18572_v37, %v18834_v59  ;;  %v8950_v8 = vrot.slane %v18577_v29, %v18834_v59  ;;  %v11405_v28 = vrot.slane %v18840_v4, 4 }
 0x688   : > { %10584 = vperm.xlu1 %14949, %v18410_v63   ;;  %v18869_v63 = vld [vmem:[%s18792_s3 + $0x14] sm:$0x7]  ;;  %v8959_v12 = vrot.slane %v18615_v33, %v18834_v59  ;;  %v11404_v37 = vsel %vm1984_vm3, %v11403_v15, %v11402_v18  ;;  %v11628_v29 = vrot.slane %v18809_v17, 7  ;;  %v18890_v15 = vsel %vm7236_vm12, %v7702_v31, 0.0 }
 0x689   : > { %9773 = vperm.xlu0 %14972, %v18465_v47   ;;  %v8954_v47 = vrot.slane %v18580_v26, %v18826_v30  ;;  %v7894_v26 = vand.u32 2147483648, %v18774_v44  ;;  %v8122_v24 = vsel %vm8112_vm9, %v8121_v27, %v8117_v54  ;;  %v18897_v44 = vld [vmem:[%s18792_s3 + $0x18] sm:$0x7]  ;;  %v8126_v31 = vrot.slane %v18652_v25, %v18834_v59 }
 0x68a   : > { %v18857_v56 = vpop.permute.xlu0 %10572  ;;  %v8964_v33 = vsel %vm8112_vm9, %v8963_v52, %v8959_v12  ;;  %v8113_v52 = vsel %vm8112_vm9, %v8111_v19, %v8106_v21  ;;  %15248 = vrsqrt.f32 %v18884_v16  ;;  %v8968_v25 = vrot.slane %v18633_v7, %v18834_v59 }
 0x68b   : > { %21659 = vst [vmem:[#allocation79_spill] sm:$0xff] %v18857_v56  ;;  %v18866_v11 = vpop.permute.xlu1 %8042  ;;  %v11627_v56 = vsel %vm1978_vm1, %v18800_v34, %v11626_v51  ;;  %v18894_v23 = vsel %vm7893_vm11, %v7894_v26, %v7892_v20  ;;  %v11406_v51 = vsel %vm1987_vm4, %v11405_v28, %v11404_v37  ;;  %v8955_v54 = vsel %vm8112_vm9, %v8954_v47, %v8950_v8  ;;  %v18920_v47 = vld [vmem:[%s18792_s3 + $0x1c] sm:$0x7] }
 0x68c   : > { %10587 = vperm.xlu1 %14949, %v18413_v50   ;;  %v11407_v50 = vrot.slane %v18869_v63, 3  ;;  %21660 = vst [vmem:[#allocation80_spill] sm:$0xff] %v18894_v23  ;;  %v11629_v20 = vsel %vm1981_vm2, %v11628_v29, %v11627_v56  ;;  %v8249_v12 = vsel %vm1978_vm1, %v8122_v24, %v8113_v52  ;;  %v8130_v28 = vrot.slane %v18622_v38, %v18826_v30  ;;  %v18956_v52 = vld [vmem:[%s17776_s25] sm:$0xff] }
 0x68d   : > { %9776 = vperm.xlu0 %14972, %v18479_v58   ;;  %v18915_v32 = vsel %vm1978_vm1, %v8964_v33, %v8955_v54  ;;  %v11409_v38 = vrot.slane %v18897_v44, 2  ;;  %v11632_v24 = vrot.slane %v18840_v4, 5  ;;  %v8135_v6 = vrot.slane %v18692_v5, %v18834_v59 }
 0x68e   : > { %v11408_v56 = vsel %vm1990_vm5, %v11407_v50, %v11406_v51  ;;  %v11631_v19 = vsel %vm1984_vm3, %v11630_v13, %v11629_v20  ;;  %v11852_v21 = vrot.slane %v18814_v48, 2  ;;  %v11853_v8 = vrot.slane %v18800_v34, 1 }
 0x68f   : > { %v18892_v18 = vpop.permute.xlu0 %8069  ;;  %v8131_v7 = vsel %vm8112_vm9, %v8130_v28, %v8126_v31  ;;  %v8144_v37 = vrot.slane %v18736_v55, %v18834_v59  ;;  %v11411_v29 = vrot.slane %v18920_v47, 1  ;;  %v11634_v26 = vrot.slane %v18869_v63, 4 }
 0x690   : > { %v18907_v27 = vpop.permute.xlu1 %8891  ;;  %14950 = vset.pattern.permute.xlu1 %v21630_v53  ;;  %v8139_v5 = vrot.slane %v18649_v46, %v18826_v30  ;;  %v8972_v33 = vrot.slane %v18660_v22, %v18826_v30  ;;  %v8153_v34 = vrot.slane %v18778_v14, %v18834_v59  ;;  %v11636_v55 = vrot.slane %v18897_v44, 3 }
 0x691   : > { %14975 = vset.pattern.permute.xlu0 %v21635_v36  ;;  %8078 = vperm.xlu1 %14950, %v18430_v45   ;;  %v8148_v51 = vrot.slane %v18672_v60, %v18826_v30  ;;  %v8162_v13 = vrot.slane %v18866_v11, %v18834_v59  ;;  %v18961_v22 = vsel %vm1993_vm6, %v11409_v38, %v11408_v56  ;;  %15250 = vrsqrt.f32 %v18901_v40 }
 0x692   : > { %10608 = vperm.xlu0 %14975, %v18479_v58   ;;  %v11633_v46 = vsel %vm1987_vm4, %v11632_v24, %v11631_v19  ;;  %v8250_v14 = vsel %vm1981_vm2, %v8131_v7, %v8249_v12  ;;  %v8140_v54 = vsel %vm8112_vm9, %v8139_v5, %v8135_v6  ;;  %v8157_v60 = vrot.slane %v18702_v9, %v18826_v30 }
 0x693   : > { %v11854_v11 = vsel %vm1978_vm1, %v11853_v8, %v11852_v21  ;;  %v8977_v31 = vrot.slane %v18657_v3, %v18834_v59  ;;  %v8981_v20 = vrot.slane %v18700_v2, %v18826_v30  ;;  %v8166_v28 = vrot.slane %v18733_v49, %v18826_v30 }
 0x694   : > { %v18937_v50 = vpop.permute.xlu0 %8912  ;;  %v8149_v12 = vsel %vm8112_vm9, %v8148_v51, %v8144_v37  ;;  %v8973_v56 = vsel %vm8112_vm9, %v8972_v33, %v8968_v25  ;;  %v8986_v9 = vrot.slane %v18684_v41, %v18834_v59  ;;  %v8990_v38 = vrot.slane %v18743_v62, %v18826_v30  ;;  %v18994_v25 = vpop.eup %15248 }
 0x695   : > { %v18947_v48 = vpop.permute.xlu1 %9725  ;;  %8787 = vperm.xlu1 %14950, %v18894_v23   ;;  %v8158_v24 = vsel %vm8112_vm9, %v8157_v60, %v8153_v34  ;;  %v8251_v3 = vsel %vm1984_vm3, %v8140_v54, %v8250_v14  ;;  %v8999_v2 = vrot.slane %v18786_v57, %v18826_v30  ;;  %v8167_v49 = vsel %vm8112_vm9, %v8166_v28, %v8162_v13 }
 0x696   : > { %21661 = vst [vmem:[#allocation81_spill] sm:$0xff] %v18947_v48  ;;  %9939 = vrot.lane.b32.xlu0 %v18956_v52, %s15393_s19  ;;  %v11856_v62 = vrot.slane %v18822_v43, 7  ;;  %v8252_v19 = vsel %vm1987_vm4, %v8149_v12, %v8251_v3  ;;  %v8175_v21 = vrot.slane %v18747_v0, %v18826_v30  ;;  %v9008_v57 = vrot.slane %v18907_v27, %v18826_v30 }
 0x697   : > { %14977 = vset.pattern.permute.xlu0 %v21634_v35  ;;  %v8982_v7 = vsel %vm8112_vm9, %v8981_v20, %v8977_v31  ;;  %v8995_v37 = vrot.slane %v18714_v61, %v18834_v59  ;;  %v8253_v5 = vsel %vm1990_vm5, %v8158_v24, %v8252_v19  ;;  %v11855_v43 = vsel %vm1981_vm2, %v18809_v17, %v11854_v11  ;;  %v21662_v20 = vld [vmem:[#allocation69_spill] sm:$0xff] }
 0x698   : > { %v9004_v33 = vrot.slane %v18740_v42, %v18834_v59  ;;  %v8991_v0 = vsel %vm8112_vm9, %v8990_v38, %v8986_v9  ;;  %v8254_v34 = vsel %vm1993_vm6, %v8167_v49, %v8253_v5  ;;  %v9092_v51 = vsel %vm1981_vm2, %v8973_v56, %v18915_v32 }
 0x699   : > { %v18983_v6 = vpop.permute.xlu0 %8075  ;;  %14953 = vset.pattern.permute.xlu1 %v21638_v39  ;;  %v9000_v13 = vsel %vm8112_vm9, %v8999_v2, %v8995_v37  ;;  %v11858_v42 = vrot.slane %v18840_v4, 6  ;;  %v9093_v17 = vsel %vm1984_vm3, %v8982_v7, %v9092_v51  ;;  %v11857_v32 = vsel %vm1984_vm3, %v11856_v62, %v11855_v43  ;;  %v21663_v2 = vld [vmem:[#allocation73_spill] sm:$0xff] }
 0x69a   : > { %10771 = vrot.lane.b32.xlu0 %v18956_v52, %s15394_s28  ;;  %v8049_v41 = vpop.permute.xlu1 %8048  ;;  %8927 = vperm.xlu1 %14953, %v18433_v10   ;;  %v9009_v54 = vsel %vm8112_vm9, %v9008_v57, %v9004_v33  ;;  %v9094_v31 = vsel %vm1987_vm4, %v8991_v0, %v9093_v17  ;;  %v9013_v28 = vrot.slane %v21662_v20, %v18834_v59  ;;  %v11860_v38 = vrot.slane %v18869_v63, 5  ;;  %v21667_v43 = vld [vmem:[#allocation13_spill] sm:$0xff]  ;;  %v21668_v0 = vld [vmem:[#allocation32_spill] sm:$0xff] }
 0x69b   : > { %v8171_v8 = vrot.slane %v8049_v41, %v18834_v59  ;;  %v9095_v56 = vsel %vm1990_vm5, %v9000_v13, %v9094_v31  ;;  %v11635_v9 = vsel %vm1990_vm5, %v11634_v26, %v11633_v46  ;;  %v11859_v41 = vsel %vm1987_vm4, %v11858_v42, %v11857_v32  ;;  %v21665_v46 = vld [vmem:[#allocation78_spill] sm:$0xff]  ;;  %v15251_v32 = vpop.eup %15250 }
 0x69c   : > { %v9096_v24 = vsel %vm1993_vm6, %v9009_v54, %v9095_v56  ;;  %v11412_v63 = vsel %vm1996_vm7, %v11411_v29, %v18961_v22  ;;  %v11638_v26 = vrot.slane %v18920_v47, 2  ;;  %v11637_v7 = vsel %vm1993_vm6, %v11636_v55, %v11635_v9  ;;  %v21671_v56 = vld [vmem:[#allocation21_spill] sm:$0xff] }
 0x69d   : > { %v8176_v27 = vsel %vm8112_vm9, %v8175_v21, %v8171_v8  ;;  %v7791_v21 = vadd.f32 %v18890_v15, %v21665_v46  ;;  %v11862_v5 = vrot.slane %v18897_v44, 4  ;;  %v11861_v22 = vsel %vm1990_vm5, %v11860_v38, %v11859_v41  ;;  %v21673_v46 = vld [vmem:[#allocation11_spill] sm:$0xff] }
 0x69e   : > { %v8255_v61 = vsel %vm1996_vm7, %v8176_v27, %v8254_v34  ;;  %v19017_v14 = vpop.permute.xlu0 %8918  ;;  %10452 = vperm.xlu0 %14977, %v18627_v1   ;;  %14954 = vset.pattern.permute.xlu1 %v21634_v35  ;;  %v7705_v33 = vmul.f32 %v21667_v43, %v21667_v43  ;;  %v7706_v55 = vmul.f32 %v21668_v0, %v21668_v0  ;;  %v11864_v44 = vrot.slane %v18920_v47, 3 }
 0x69f   : > { %v8263_v60 = vsel %vm878_vm0, %v8255_v61, 0  ;;  %v8898_v11 = vpop.permute.xlu1 %8897  ;;  %9758 = vperm.xlu1 %14954, %v18430_v45   ;;  %v11639_v34 = vsel %vm1996_vm7, %v11638_v26, %v11637_v7  ;;  %v7792_v51 = vrot.slane %v7791_v21, 4  ;;  %v11863_v17 = vsel %vm1993_vm6, %v11862_v5, %v11861_v22  ;;  %v21675_v22 = vld [vmem:[#allocation17_spill] sm:$0xff] }
 0x6a0   : > { %v19030_v12 = vand.u32 4294901760, %v8263_v60  ;;  %v9017_v4 = vrot.slane %v8898_v11, %v18826_v30  ;;  %v7904_v47 = vmul.f32 %v18994_v25, %v18884_v16  ;;  %v7808_v11 = vsel %vm7236_vm12, %v7706_v55, 0.0 }
 0x6a1   : > { %v11865_v31 = vsel %vm1996_vm7, %v11864_v44, %v11863_v17  ;;  %vm7905_vm13 = vcmp.eq.f32.partialorder %v18884_v16, inf  ;;  %v7908_v41 = vand.u32 2147483648, %v18884_v16  ;;  %vm7907_vm14 = vcmp.eq.f32.partialorder %v18884_v16, 0.0 }
 0x6a2   : > { %v9018_v3 = vsel %vm8112_vm9, %v9017_v4, %v9013_v28  ;;  %10461 = vperm.xlu0 %14977, %v21663_v2   ;;  %v19043_v49 = vsub.f32 %v8263_v60, %v19030_v12  ;;  %v7807_v60 = vsel %vm7236_vm12, %v7705_v33, 0.0  ;;  %v7793_v28 = vadd.f32 %v7792_v51, %v7791_v21 }
 0x6a3   : > { %v9097_v62 = vsel %vm1996_vm7, %v9018_v3, %v9096_v24  ;;  %v19047_v19 = vpop.permute.xlu0 %8081  ;;  %14955 = vset.pattern.permute.xlu1 %v21635_v36  ;;  %v7809_v38 = vadd.f32 %v7808_v11, %v7807_v60  ;;  %v7906_v24 = vsel %vm7905_vm13, %v18884_v16, %v7904_v47  ;;  %v7897_v3 = vmul.f32 %v15251_v32, %v18901_v40  ;;  %v21678_v60 = vld [vmem:[#allocation61_spill] sm:$0xff] }
 0x6a4   : > { %21664 = vst [vmem:[#allocation69_spill] sm:$0xff] %v19043_v49  ;;  %v9113_v57 = vsel %vm878_vm0, %v9097_v62, 0  ;;  %v19058_v8 = vpop.permute.xlu1 %8054  ;;  %10590 = vperm.xlu1 %14955, %v18430_v45   ;;  %v21209_v37 = vand.u32 4294901760, %v19043_v49  ;;  %v7794_v62 = vrot.slane %v7793_v28, 2  ;;  %v7708_v21 = vmul.f32 %v21673_v46, %v21673_v46  ;;  %v21684_v46 = vld [vmem:[#allocation65_spill] sm:$0xff] }
 0x6a5   : > { %v19066_v29 = vand.u32 4294901760, %v9113_v57  ;;  %vm7898_vm15 = vcmp.eq.f32.partialorder %v18901_v40, inf  ;;  %v7810_v7 = vrot.slane %v7809_v38, 4  ;;  %v7901_v55 = vand.u32 2147483648, %v18901_v40 }
 0x6a6   : > { %11427 = vrot.lane.b32.xlu0 %v11412_v63, %s15395_s30  ;;  %v8337_v15 = vsub.f32 %v19043_v49, %v21209_v37  ;;  %v21672_v63 = vld [vmem:[#allocation14_spill] sm:$0xff]  ;;  %v7899_v33 = vsel %vm7898_vm15, %v18901_v40, %v7897_v3  ;;  %v7795_v16 = vadd.f32 %v7794_v62, %v7793_v28  ;;  %v7817_v44 = vsel %vm7236_vm12, %v7708_v21, 0.0  ;;  %v21681_v21 = vld [vmem:[#allocation44_spill] sm:$0xff] }
 0x6a7   : > { %21666 = vst [vmem:[#allocation78_spill] sm:$0xff] %v19066_v29  ;;  %v19080_v27 = vsub.f32 %v9113_v57, %v19066_v29  ;;  %v7707_v26 = vmul.f32 %v21672_v63, %v21672_v63  ;;  %v19114_v57 = vsel %vm7907_vm14, %v7908_v41, %v7906_v24  ;;  %vm7900_vm10 = vcmp.eq.f32.partialorder %v18901_v40, 0.0  ;;  %v21685_v63 = vld [vmem:[#allocation43_spill] sm:$0xff] }
 0x6a8   : > { %v19082_v13 = vpop.permute.xlu0 %8924  ;;  %10593 = vperm.xlu1 %14955, %v18433_v10   ;;  %v19085_v61 = vpop.permute.xlu1 %8771  ;;  %v8338_v42 = vand.u32 4294901760, %v8337_v15  ;;  %21674 = vst [vmem:[#allocation84_spill] sm:$0xff] %v19114_v57  ;;  %v19129_v51 = vsel %vm7900_vm10, %v7901_v55, %v7899_v33  ;;  %v7796_v32 = vrot.slane %v7795_v16, 1  ;;  %v7710_v40 = vmul.f32 %v18433_v10, %v18433_v10 }
 0x6a9   : > { %21669 = vst [vmem:[#allocation82_spill] sm:$0xff] %v19080_v27  ;;  %21670 = vst [vmem:[#allocation83_spill] sm:$0xff] %v19085_v61  ;;  %v21208_v54 = vand.u32 4294901760, %v19080_v27 }
 0x6aa   : > { %11654 = vrot.lane.b32.xlu0 %v11639_v34, %s15395_s30  ;;  %13956 = vmatprep.mubr.f32.mxu0 %v8338_v42  ;;  %v7816_v34 = vsel %vm7236_vm12, %v7707_v26, 0.0  ;;  %21677 = vst [vmem:[#allocation86_spill] sm:$0xff] %v19129_v51  ;;  %v7811_v42 = vadd.f32 %v7810_v7, %v7809_v38  ;;  %v19147_v38 = vadd.f32 %v7796_v32, %v7795_v16  ;;  %v7826_v62 = vsel %vm7236_vm12, %v7710_v40, 0.0 }
 0x6ab   : > { %v9187_v20 = vsub.f32 %v19080_v27, %v21208_v54  ;;  %v7818_v17 = vadd.f32 %v7817_v44, %v7816_v34  ;;  %v21682_v34 = vld [vmem:[#allocation39_spill] sm:$0xff] }
 0x6ac   : > { %14956 = vset.pattern.permute.xlu1 %v21630_v53  ;;  %15252 = vrsqrt.f32 %v19147_v38  ;;  %v7699_v44 = vmul.f32 %v21682_v34, %v21682_v34  ;;  %vm7919_vm11 = vcmp.eq.f32.partialorder %v19147_v38, inf  ;;  %vm7921_vm13 = vcmp.eq.f32.partialorder %v19147_v38, 0.0 }
 0x6ad   : > { %v19099_v4 = vpop.permute.xlu0 %8087  ;;  %8084 = vperm.xlu1 %14956, %v21671_v56   ;;  %v19102_v9 = vpop.permute.xlu1 %8903  ;;  %v9188_v25 = vand.u32 4294901760, %v9187_v20  ;;  %v7709_v20 = vmul.f32 %v18430_v45, %v18430_v45  ;;  %v7819_v28 = vrot.slane %v7818_v17, 4  ;;  %v7713_v45 = vmul.f32 %v21681_v21, %v21681_v21 }
 0x6ae   : > { %11880 = vrot.lane.b32.xlu0 %v11865_v31, %s15395_s30  ;;  %v7812_v31 = vrot.slane %v7811_v42, 2  ;;  %v7780_v54 = vsel %vm7236_vm12, %v7699_v44, 0.0 }
 0x6af   : > { %13998 = vmatprep.mubr.f32.mxu1 %v9188_v25  ;;  %v7825_v41 = vsel %vm7236_vm12, %v7709_v20, 0.0  ;;  %v7820_v26 = vadd.f32 %v7819_v28, %v7818_v17  ;;  %v7712_v20 = vmul.f32 %v21675_v22, %v21675_v22 }
 0x6b0   : > { %v7813_v3 = vadd.f32 %v7812_v31, %v7811_v42  ;;  %v7827_v33 = vadd.f32 %v7826_v62, %v7825_v41  ;;  %v21683_v42 = vld [vmem:[#allocation40_spill] sm:$0xff]  ;;  %v7711_v31 = vmul.f32 %v21671_v56, %v21671_v56 }
 0x6b1   : > { %14959 = vset.pattern.permute.xlu1 %v21638_v39  ;;  %v7821_v16 = vrot.slane %v7820_v26, 2  ;;  %v7700_v32 = vmul.f32 %v21683_v42, %v21683_v42  ;;  %v7835_v10 = vsel %vm7236_vm12, %v7712_v20, 0.0 }
 0x6b2   : > { %v19118_v5 = vpop.permute.xlu0 %8930  ;;  %10470 = vperm.xlu0 %14977, %v19114_v57   ;;  %8933 = vperm.xlu1 %14959, %v21675_v22   ;;  %v19122_v15 = vpop.permute.xlu1 %9737  ;;  %v7814_v55 = vrot.slane %v7813_v3, 1  ;;  %v7828_v40 = vrot.slane %v7827_v33, 4  ;;  %v7834_v61 = vsel %vm7236_vm12, %v7711_v31, 0.0 }
 0x6b3   : > { %21676 = vst [vmem:[#allocation85_spill] sm:$0xff] %v19122_v15  ;;  %v7822_v62 = vadd.f32 %v7821_v16, %v7820_v26  ;;  %v7781_v37 = vsel %vm7236_vm12, %v7700_v32, 0.0  ;;  %v7836_v31 = vadd.f32 %v7835_v10, %v7834_v61 }
 0x6b4   : > { %v19174_v41 = vadd.f32 %v7814_v55, %v7813_v3  ;;  %v7829_v0 = vadd.f32 %v7828_v40, %v7827_v33  ;;  %v7714_v3 = vmul.f32 %v21685_v63, %v21685_v63  ;;  %v7782_v44 = vadd.f32 %v7781_v37, %v7780_v54 }
 0x6b5   : > { %v7823_v32 = vrot.slane %v7822_v62, 1  ;;  %v7843_v40 = vsel %vm7236_vm12, %v7713_v45, 0.0  ;;  %v7837_v37 = vrot.slane %v7836_v31, 4 }
 0x6b6   : > { %14981 = vset.pattern.permute.xlu0 %v21635_v36  ;;  %9635 = vperm.xlu1 %14959, %v19129_v51   ;;  %v15253_v26 = vpop.eup %15252  ;;  %15254 = vrsqrt.f32 %v19174_v41  ;;  %v7830_v20 = vrot.slane %v7829_v0, 2  ;;  %v7844_v43 = vsel %vm7236_vm12, %v7714_v3, 0.0  ;;  %v7783_v15 = vrot.slane %v7782_v44, 4 }
 0x6b7   : > { %v19133_v47 = vpop.permute.xlu0 %8093  ;;  %11287 = vperm.xlu0 %14981, %v21678_v60   ;;  %v19136_v11 = vpop.permute.xlu1 %10566  ;;  %v7918_v33 = vmul.f32 %v15253_v26, %v19147_v38  ;;  %v19200_v27 = vadd.f32 %v7823_v32, %v7822_v62  ;;  %v7845_v61 = vadd.f32 %v7844_v43, %v7843_v40  ;;  %v7922_v3 = vand.u32 2147483648, %v19147_v38 }
 0x6b8   : > { %21679 = vst [vmem:[#allocation87_spill] sm:$0xff] %v19136_v11  ;;  %v7831_v54 = vadd.f32 %v7830_v20, %v7829_v0  ;;  %v7784_v26 = vadd.f32 %v7783_v15, %v7782_v44  ;;  %v7838_v62 = vadd.f32 %v7837_v37, %v7836_v31  ;;  %vm7933_vm14 = vcmp.eq.f32.partialorder %v19174_v41, inf  ;;  %v21699_v11 = vld [vmem:[#allocation12_spill] sm:$0xff] }
 0x6b9   : > { %v7920_v45 = vsel %vm7919_vm11, %v19147_v38, %v7918_v33  ;;  %15256 = vrsqrt.f32 %v19200_v27  ;;  %v7846_v40 = vrot.slane %v7845_v61, 4  ;;  %vm7935_vm15 = vcmp.eq.f32.partialorder %v19174_v41, 0.0 }
 0x6ba   : > { %14960 = vset.pattern.permute.xlu1 %v21634_v35  ;;  %v7832_v0 = vrot.slane %v7831_v54, 1  ;;  %v7785_v15 = vrot.slane %v7784_v26, 2  ;;  %v7839_v38 = vrot.slane %v7838_v62, 2  ;;  %vm7940_vm10 = vcmp.eq.f32.partialorder %v19200_v27, inf }
 0x6bb   : > { %11296 = vperm.xlu0 %14981, %v18894_v23   ;;  %9764 = vperm.xlu1 %14960, %v21671_v56   ;;  %v19145_v25 = vpop.permute.xlu1 %10569  ;;  %v7847_v31 = vadd.f32 %v7846_v40, %v7845_v61  ;;  %v7936_v61 = vand.u32 2147483648, %v19174_v41  ;;  %vm7942_vm11 = vcmp.eq.f32.partialorder %v19200_v27, 0.0 }
 0x6bc   : > { %21680 = vst [vmem:[#allocation88_spill] sm:$0xff] %v19145_v25  ;;  %v19149_v24 = vpop.permute.xlu0 %8936  ;;  %v19225_v37 = vadd.f32 %v7832_v0, %v7831_v54  ;;  %v19268_v25 = vld [vmem:[%s17776_s25 + $0x8] sm:$0xff]  ;;  %s15396_s25 = smov 124  }
 0x6bd   : > { %v7848_v40 = vrot.slane %v7847_v31, 2 }
 0x6be   : > { %15258 = vrsqrt.f32 %v19225_v37 }
 0x6bf   : > { %11302 = vperm.xlu0 %14981, %v19114_v57   ;;  %14961 = vset.pattern.permute.xlu1 %v21630_v53 }
 0x6c0   : > { %8090 = vperm.xlu1 %14961, %v21681_v21   ;;  %v19157_v7 = vpop.permute.xlu1 %8060  ;;  %v15255_v32 = vpop.eup %15254 }
 0x6c1   : > { %v19163_v17 = vpop.permute.xlu0 %8099  ;;  %v7932_v44 = vmul.f32 %v15255_v32, %v19174_v41  ;;  %v7840_v32 = vadd.f32 %v7839_v38, %v7838_v62  ;;  %v21697_v38 = vld [vmem:[#allocation24_spill] sm:$0xff] }
 0x6c3   : > { %14983 = vset.pattern.permute.xlu0 %v21638_v39  ;;  %v7841_v62 = vrot.slane %v7840_v32, 1 }
 0x6c4   : > { %9620 = vperm.xlu0 %14983, %v18627_v1   ;;  %8795 = vperm.xlu1 %14961, %v19114_v57  }
 0x6c5   : > { %v19172_v28 = vpop.permute.xlu1 %8909 }
 0x6c6   : > { %v19186_v55 = vpop.permute.xlu0 %8942 }
 0x6c8   : > { %9626 = vperm.xlu0 %14983, %v21684_v46   ;;  %14964 = vset.pattern.permute.xlu1 %v21638_v39 }
 0x6c9   : > { %8939 = vperm.xlu1 %14964, %v21685_v63   ;;  %v19189_v16 = vpop.permute.xlu1 %9623 }
 0x6ca   : > { %21686 = vst [vmem:[#allocation89_spill] sm:$0xff] %v19189_v16 }
 0x6cb   : > { %v19202_v10 = vpop.permute.xlu0 %10557 }
 0x6cc   : > { %9632 = vperm.xlu0 %14983, %v18894_v23   ;;  %21688 = vst [vmem:[#allocation91_spill] sm:$0xff] %v19202_v10  ;;  %v21690_v10 = vld [vmem:[#allocation45_spill] sm:$0xff] }
 0x6cd   : > { %14965 = vset.pattern.permute.xlu1 %v21630_v53 }
 0x6ce   : > { %8096 = vperm.xlu1 %14965, %v18479_v58   ;;  %v19198_v16 = vpop.permute.xlu1 %9743 }
 0x6cf   : > { %21687 = vst [vmem:[#allocation90_spill] sm:$0xff] %v19198_v16  ;;  %v19211_v16 = vsel %vm7921_vm13, %v7922_v3, %v7920_v45  ;;  %v19217_v33 = vpop.permute.xlu0 %10563  ;;  %v7786_v45 = vadd.f32 %v7785_v15, %v7784_v26  ;;  %v7934_v3 = vsel %vm7933_vm14, %v19174_v41, %v7932_v44  ;;  %v7849_v15 = vadd.f32 %v7848_v40, %v7847_v31 }
 0x6d0   : > { %9638 = vperm.xlu0 %14983, %v19114_v57   ;;  %21689 = vst [vmem:[#allocation92_spill] sm:$0xff] %v19211_v16  ;;  %21692 = vst [vmem:[#allocation94_spill] sm:$0xff] %v19217_v33  ;;  %v15257_v33 = vpop.eup %15256  ;;  %v19239_v54 = vsel %vm7935_vm15, %v7936_v61, %v7934_v3  ;;  %v21698_v3 = vld [vmem:[#allocation55_spill] sm:$0xff]  ;;  %vm7947_vm13 = vcmp.eq.f32.partialorder %v19225_v37, inf  ;;  %vm7949_vm14 = vcmp.eq.f32.partialorder %v19225_v37, 0.0 }
 0x6d1   : > { %21695 = vst [vmem:[#allocation97_spill] sm:$0xff] %v19239_v54  ;;  %v7787_v26 = vrot.slane %v7786_v45, 1  ;;  %v7939_v0 = vmul.f32 %v15257_v33, %v19200_v27  ;;  %v7703_v61 = vmul.f32 %v21698_v3, %v21698_v3  ;;  %v19257_v33 = vadd.f32 %v7841_v62, %v7840_v32 }
 0x6d2   : > { %14968 = vset.pattern.permute.xlu1 %v21638_v39  ;;  %v7850_v40 = vrot.slane %v7849_v15, 1 }
 0x6d3   : > { %8945 = vperm.xlu1 %14968, %v21690_v10   ;;  %v19214_v43 = vpop.permute.xlu1 %10575  ;;  %v7941_v31 = vsel %vm7940_vm10, %v19200_v27, %v7939_v0  ;;  %v7798_v32 = vsel %vm7236_vm12, %v7703_v61, 0.0  ;;  %v15259_v0 = vpop.eup %15258  ;;  %vm7954_vm10 = vcmp.eq.f32.partialorder %v19257_v33, inf }
 0x6d4   : > { %21691 = vst [vmem:[#allocation93_spill] sm:$0xff] %v19214_v43  ;;  %9644 = vperm.xlu0 %14983, %v19211_v16   ;;  %v19230_v57 = vpop.permute.xlu0 %9686  ;;  %v7704_v43 = vmul.f32 %v21699_v11, %v21699_v11  ;;  %v21702_v11 = vld [vmem:[#allocation26_spill] sm:$0xff] }
 0x6d5   : > { %21693 = vst [vmem:[#allocation95_spill] sm:$0xff] %v19230_v57  ;;  %v21703_v48 = vand.u32 4294901760, %v21702_v11 }
 0x6d6   : > { %v7799_v62 = vsel %vm7236_vm12, %v7704_v43, 0.0 }
 0x6d7   : > { %14969 = vset.pattern.permute.xlu1 %v21634_v35  ;;  %v19273_v49 = vsub.f32 %v19268_v25, %v21703_v48 }
 0x6d8   : > { %14986 = vset.pattern.permute.xlu0 %v21634_v35  ;;  %9731 = vperm.xlu1 %14969, %v21683_v42   ;;  %v19223_v20 = vpop.permute.xlu1 %8066  ;;  %v19244_v44 = vpop.permute.xlu0 %9695 }
 0x6d9   : > { %10476 = vperm.xlu0 %14986, %v19211_v16   ;;  %21696 = vst [vmem:[#allocation98_spill] sm:$0xff] %v19244_v44  ;;  %v21224_v11 = vand.u32 4294901760, %v19273_v49 }
 0x6db   : > { %v8365_v61 = vsub.f32 %v19273_v49, %v21224_v11 }
 0x6dc   : > { %9770 = vperm.xlu1 %14969, %v21681_v21   ;;  %v19234_v42 = vpop.permute.xlu1 %8779 }
 0x6dd   : > { %21694 = vst [vmem:[#allocation96_spill] sm:$0xff] %v19234_v42  ;;  %14992 = vset.pattern.permute.xlu0 %v21638_v39  ;;  %v19249_v42 = vadd.f32 %v7787_v26, %v7786_v45  ;;  %v7943_v45 = vand.u32 2147483648, %v19200_v27  ;;  %v21700_v26 = vld [vmem:[#allocation28_spill] sm:$0xff]  ;;  %v19290_v27 = vadd.f32 %v7850_v40, %v7849_v15 }
 0x6de   : > { %9650 = vperm.xlu0 %14992, %v19239_v54  }
 0x6df   : > { %15260 = vrsqrt.f32 %v19249_v42  ;;  %vm7912_vm15 = vcmp.eq.f32.partialorder %v19249_v42, inf }
 0x6e0   : > { %14970 = vset.pattern.permute.xlu1 %v21635_v36  ;;  %15262 = vrsqrt.f32 %v19257_v33 }
 0x6e1   : > { %10554 = vperm.xlu1 %14970, %v21697_v38   ;;  %v19247_v41 = vpop.permute.xlu1 %8915  ;;  %v21701_v38 = vand.u32 4294901760, %v21700_v26  ;;  %v19287_v26 = vpop.permute.xlu0 %9701  ;;  %15264 = vrsqrt.f32 %v19290_v27 }
 0x6e2   : > { %14993 = vset.pattern.permute.xlu0 %v21634_v35  ;;  %21706 = vst [vmem:[#allocation99_spill] sm:$0xff] %v19287_v26 }
 0x6e3   : > { %10482 = vperm.xlu0 %14993, %v19239_v54   ;;  %v19265_v3 = vsub.f32 %v18956_v52, %v21701_v38  ;;  %v19280_v52 = vsel %vm7942_vm11, %v7943_v45, %v7941_v31  ;;  %v7946_v31 = vmul.f32 %v15259_v0, %v19225_v37  ;;  %v7800_v45 = vadd.f32 %v7799_v62, %v7798_v32 }
 0x6e4   : > { %21704 = vst [vmem:[#allocation28_spill] sm:$0xff] %v19280_v52  ;;  %vm7956_vm11 = vcmp.eq.f32.partialorder %v19257_v33, 0.0 }
 0x6e5   : > { %10596 = vperm.xlu1 %14970, %v21671_v56   ;;  %v21225_v48 = vand.u32 4294901760, %v19265_v3  ;;  %v19310_v40 = vpack.c.bf16 %v19273_v49, %v19265_v3  ;;  %v19312_v0 = vpop.permute.xlu0 %9734  ;;  %v7948_v32 = vsel %vm7947_vm13, %v19225_v37, %v7946_v31  ;;  %v7801_v62 = vrot.slane %v7800_v45, 4 }
 0x6e6   : > { %v19282_v38 = vpop.permute.xlu1 %9749  ;;  %21709 = vst [vmem:[#allocation102_spill] sm:$0xff] %v19312_v0  ;;  %vm7961_vm13 = vcmp.eq.f32.partialorder %v19290_v27, inf }
 0x6e7   : > { %21705 = vst [vmem:[#allocation26_spill] sm:$0xff] %v19282_v38  ;;  %10485 = vperm.xlu0 %14993, %v19280_v52   ;;  %v8358_v43 = vsub.f32 %v19265_v3, %v21225_v48  ;;  %v8366_v38 = vand.u32 4294901760, %v8365_v61  ;;  %21708 = vst [vmem:[#allocation101_spill] sm:$0xff] %v19310_v40  ;;  %v7715_v61 = vmul.f32 %v18479_v58, %v18479_v58 }
 0x6e9   : > { %10599 = vperm.xlu1 %14970, %v21675_v22   ;;  %v8359_v56 = vand.u32 4294901760, %v8358_v43  ;;  %v7950_v43 = vand.u32 2147483648, %v19225_v37  ;;  %v7802_v22 = vadd.f32 %v7801_v62, %v7800_v45  ;;  %v7852_v58 = vsel %vm7236_vm12, %v7715_v61, 0.0  ;;  %v19333_v0 = vpop.permute.xlu0 %9740 }
 0x6ea   : > { %21712 = vst [vmem:[#allocation105_spill] sm:$0xff] %v19333_v0  ;;  %v7957_v61 = vand.u32 2147483648, %v19257_v33 }
 0x6eb   : > { %14996 = vset.pattern.permute.xlu0 %v21635_v36  ;;  %v19301_v29 = vpop.permute.xlu1 %10578  ;;  %v19306_v15 = vpack.c.bf16 %v8366_v38, %v8359_v56  ;;  %v7716_v56 = vmul.f32 %v21690_v10, %v21690_v10  ;;  %v15261_v38 = vpop.eup %15260  ;;  %v19326_v31 = vsel %vm7949_vm14, %v7950_v43, %v7948_v32  ;;  %v7803_v45 = vrot.slane %v7802_v22, 2 }
 0x6ec   : > { %21707 = vst [vmem:[#allocation100_spill] sm:$0xff] %v19301_v29  ;;  %11317 = vperm.xlu0 %14996, %v19280_v52   ;;  %v15263_v48 = vpop.eup %15262  ;;  %21711 = vst [vmem:[#allocation104_spill] sm:$0xff] %v19326_v31  ;;  %vm7963_vm14 = vcmp.eq.f32.partialorder %v19290_v27, 0.0 }
 0x6ed   : > { %10560 = vperm.xlu1 %14970, %v21682_v34   ;;  %14293 = vmatprep.subr.bf16.mxu0 %v19306_v15  ;;  %v7911_v34 = vmul.f32 %v15261_v38, %v19249_v42  ;;  %v7853_v29 = vsel %vm7236_vm12, %v7716_v56, 0.0  ;;  %v7953_v37 = vmul.f32 %v15263_v48, %v19257_v33  ;;  %v15265_v57 = vpop.eup %15264  ;;  %v7915_v48 = vand.u32 2147483648, %v19249_v42  ;;  %v19349_v38 = vpop.permute.xlu0 %9746 }
 0x6ee   : > { %v7854_v32 = vadd.f32 %v7853_v29, %v7852_v58  ;;  %vm7914_vm12 = vcmp.eq.f32.partialorder %v19249_v42, 0.0  ;;  %v7960_v56 = vmul.f32 %v15265_v57, %v19290_v27  ;;  %21713 = vst [vmem:[#allocation106_spill] sm:$0xff] %v19349_v38  ;;  %v21716_v57 = vand.u32 4294901760, %v19265_v3 }
 0x6ef   : > { %v19322_v11 = vpop.permute.xlu1 %10581  ;;  %v7913_v62 = vsel %vm7912_vm15, %v19249_v42, %v7911_v34  ;;  %v7955_v43 = vsel %vm7954_vm10, %v19257_v33, %v7953_v37  ;;  %v7804_v34 = vadd.f32 %v7803_v45, %v7802_v22  ;;  %v21717_v42 = vand.u32 4294901760, %v19273_v49 }
 0x6f0   : > { %21710 = vst [vmem:[#allocation103_spill] sm:$0xff] %v19322_v11  ;;  %14998 = vset.pattern.permute.xlu0 %v21638_v39  ;;  %v19355_v29 = vsel %vm7914_vm12, %v7915_v48, %v7913_v62  ;;  %v7855_v37 = vrot.slane %v7854_v32, 4  ;;  %v7962_v22 = vsel %vm7961_vm13, %v19290_v27, %v7960_v56  ;;  %v7964_v45 = vand.u32 2147483648, %v19290_v27  ;;  %v862_v48 = vld [vmem:[%s18792_s3 + $0x24] sm:$0x7] }
 0x6f1   : > { %9656 = vperm.xlu0 %14998, %v19326_v31   ;;  %10602 = vperm.xlu1 %14970, %v21681_v21   ;;  %21714 = vst [vmem:[#allocation107_spill] sm:$0xff] %v19355_v29  ;;  %v19365_v21 = vpack.c.bf16 %v21717_v42, %v21716_v57  ;;  %v7805_v62 = vrot.slane %v7804_v34, 1  ;;  %v19375_v49 = vpop.permute.xlu0 %9710  ;;  %v863_v27 = vld [vmem:[%s18792_s3 + $0x28] sm:$0x7]  ;;  %v861_v57 = vld [vmem:[%s18792_s3 + $0x20] sm:$0x7] }
 0x6f2   : > { %21720 = vst [vmem:[#allocation111_spill] sm:$0xff] %v19375_v49  ;;  %v19378_v3 = vsel %vm7963_vm14, %v7964_v45, %v7962_v22  ;;  %v864_v22 = vld [vmem:[%s18792_s3 + $0x2c] sm:$0x7]  ;;  %v11415_v45 = vrot.slane %v863_v27, 6  ;;  %v11866_v0 = vrot.slane %v861_v57, 2  ;;  %vm11465_vm13 = vcmask 97312  }
 0x6f3   : > { %21718 = vst [vmem:[#allocation109_spill] sm:$0xff] %v19365_v21  ;;  %21721 = vst [vmem:[#allocation112_spill] sm:$0xff] %v19378_v3  ;;  %v11867_v21 = vrot.slane %v862_v48, 1  ;;  %v11644_v40 = vrot.slane %v864_v22, 6 }
 0x6f4   : > { %v19336_v11 = vpop.permute.xlu1 %8072 }
 0x6f5   : > { %14999 = vset.pattern.permute.xlu0 %v21634_v35  ;;  %10605 = vperm.xlu1 %14970, %v21685_v63   ;;  %v19358_v63 = vsel %vm7956_vm11, %v7957_v61, %v7955_v43  ;;  %v7856_v43 = vadd.f32 %v7855_v37, %v7854_v32  ;;  %v19383_v61 = vadd.f32 %v7805_v62, %v7804_v34  ;;  %v11413_v37 = vrot.slane %v862_v48, 7  ;;  %v19392_v42 = vpop.permute.xlu0 %9755 }
 0x6f6   : > { %10488 = vperm.xlu0 %14999, %v19326_v31   ;;  %21715 = vst [vmem:[#allocation108_spill] sm:$0xff] %v19358_v63  ;;  %21723 = vst [vmem:[#allocation114_spill] sm:$0xff] %v19392_v42  ;;  %v11417_v42 = vrot.slane %v864_v22, 5  ;;  %v866_v31 = vld [vmem:[%s18792_s3 + $0x34] sm:$0x7] }
 0x6f7   : > { %v7857_v32 = vrot.slane %v7856_v43, 2  ;;  %15266 = vrsqrt.f32 %v19383_v61  ;;  %vm7926_vm15 = vcmp.eq.f32.partialorder %v19383_v61, inf  ;;  %vm7928_vm10 = vcmp.eq.f32.partialorder %v19383_v61, 0.0 }
 0x6f9   : > { %14973 = vset.pattern.permute.xlu1 %v21638_v39  ;;  %v19352_v58 = vpop.permute.xlu1 %8921  ;;  %v7858_v34 = vadd.f32 %v7857_v32, %v7856_v43  ;;  %v11642_v32 = vrot.slane %v863_v27, 7 }
 0x6fa   : > { %15003 = vset.pattern.permute.xlu0 %v21635_v36  ;;  %9641 = vperm.xlu1 %14973, %v19355_v29  }
 0x6fb   : > { %11323 = vperm.xlu0 %15003, %v19358_v63  }
 0x6fd   : > { %v19370_v33 = vpop.permute.xlu1 %9629 }
 0x6fe   : > { %21719 = vst [vmem:[#allocation110_spill] sm:$0xff] %v19370_v33  ;;  %14974 = vset.pattern.permute.xlu1 %v21634_v35  ;;  %v11414_v33 = vsel %vm1978_vm1, %v11413_v37, %v861_v57 }
 0x6ff   : > { %15005 = vset.pattern.permute.xlu0 %v21638_v39  ;;  %9779 = vperm.xlu1 %14974, %v21690_v10   ;;  %v11416_v43 = vsel %vm1981_vm2, %v11415_v45, %v11414_v33 }
 0x700   : > { %9662 = vperm.xlu0 %15005, %v19378_v3   ;;  %v11640_v3 = vrot.slane %v861_v57, 1  ;;  %v11418_v26 = vsel %vm1984_vm3, %v11417_v42, %v11416_v43 }
 0x701   : > { %v15267_v45 = vpop.eup %15266 }
 0x702   : > { %v19385_v56 = vpop.permute.xlu1 %9752  ;;  %v11641_v38 = vsel %vm1978_vm1, %v862_v48, %v11640_v3  ;;  %v11421_v3 = vrot.slane %v866_v31, 3  ;;  %v11868_v48 = vsel %vm1978_vm1, %v11867_v21, %v11866_v0 }
 0x703   : > { %21722 = vst [vmem:[#allocation113_spill] sm:$0xff] %v19385_v56  ;;  %14976 = vset.pattern.permute.xlu1 %v21635_v36  ;;  %v7859_v56 = vrot.slane %v7858_v34, 1  ;;  %v11643_v33 = vsel %vm1981_vm2, %v11642_v32, %v11641_v38  ;;  %v7925_v38 = vmul.f32 %v15267_v45, %v19383_v61  ;;  %v868_v32 = vld [vmem:[%s18792_s3 + $0x3c] sm:$0x7]  ;;  %v11869_v0 = vsel %vm1981_vm2, %v863_v27, %v11868_v48 }
 0x704   : > { %15006 = vset.pattern.permute.xlu0 %v21635_v36  ;;  %10611 = vperm.xlu1 %14976, %v21690_v10   ;;  %v865_v10 = vld [vmem:[%s18792_s3 + $0x30] sm:$0x7] }
 0x705   : > { %11305 = vperm.xlu0 %15006, %v19355_v29   ;;  %v11419_v49 = vrot.slane %v865_v10, 4  ;;  %v19416_v44 = vadd.f32 %v7859_v56, %v7858_v34  ;;  %v11646_v42 = vrot.slane %v865_v10, 5  ;;  %v11645_v56 = vsel %vm1984_vm3, %v11644_v40, %v11643_v33 }
 0x706   : > { %v11870_v34 = vrot.slane %v864_v22, 7  ;;  %v11425_v22 = vrot.slane %v868_v32, 1  ;;  %v7927_v45 = vsel %vm7926_vm15, %v19383_v61, %v7925_v38  ;;  %v11652_v38 = vrot.slane %v868_v32, 2 }
 0x707   : > { %v19397_v62 = vpop.permute.xlu1 %10584  ;;  %v11420_v57 = vsel %vm1987_vm4, %v11419_v49, %v11418_v26  ;;  %15268 = vrsqrt.f32 %v19416_v44  ;;  %v11647_v40 = vsel %vm1987_vm4, %v11646_v42, %v11645_v56  ;;  %v11872_v49 = vrot.slane %v865_v10, 6 }
 0x708   : > { %21724 = vst [vmem:[#allocation115_spill] sm:$0xff] %v19397_v62  ;;  %9941 = vrot.lane.b32.xlu1 %v19268_v25, %s15393_s19  ;;  %v19407_v62 = vpop.permute.xlu0 %9716  ;;  %v11871_v33 = vsel %vm1984_vm3, %v11870_v34, %v11869_v0  ;;  %v11874_v42 = vrot.slane %v866_v31, 5  ;;  %vm7968_vm12 = vcmp.eq.f32.partialorder %v19416_v44, inf  ;;  %vm7970_vm11 = vcmp.eq.f32.partialorder %v19416_v44, 0.0 }
 0x709   : > { %15007 = vset.pattern.permute.xlu0 %v21630_v53  ;;  %14978 = vset.pattern.permute.xlu1 %v21634_v35  ;;  %21725 = vst [vmem:[#allocation116_spill] sm:$0xff] %v19407_v62  ;;  %v11648_v62 = vrot.slane %v866_v31, 4  ;;  %v11873_v10 = vsel %vm1987_vm4, %v11872_v49, %v11871_v33  ;;  %v11878_v49 = vrot.slane %v868_v32, 3 }
 0x70a   : > { %8775 = vperm.xlu0 %15007, %v21678_v60   ;;  %v11875_v31 = vsel %vm1990_vm5, %v11874_v42, %v11873_v10 }
 0x70b   : > { %v19409_v37 = vpop.permute.xlu1 %10587 }
 0x70c   : > { %21726 = vst [vmem:[#allocation117_spill] sm:$0xff] %v19409_v37  ;;  %10773 = vrot.lane.b32.xlu1 %v19268_v25, %s15394_s28  ;;  %v867_v37 = vld [vmem:[%s18792_s3 + $0x38] sm:$0x7]  ;;  %v19426_v43 = vpop.permute.xlu0 %9761  ;;  %s12511_s3 = sshll.u32 %s20762_s1, 4 }
 0x70d   : > { %v11423_v21 = vrot.slane %v867_v37, 2  ;;  %v11876_v0 = vrot.slane %v867_v37, 4  ;;  %s687_s19 = scalar_lea.vmem [#allocation2], %s12511_s3 }
 0x70e   : > { %8783 = vperm.xlu0 %15007, %v21663_v2   ;;  %s12223_s28 = sshll.u32 %s687_s19, 4  ;;  %s20777_s28 = int_to_ptr.vmem [resolvable:$true] %s12223_s28 }
 0x70f   : > { %v11877_v33 = vsel %vm1993_vm6, %v11876_v0, %v11875_v31  ;;  %s15272_s4 = scalar_lea.vmem %s20777_s28, 256 }
 0x710   : > { %10455 = vperm.xlu1 %14978, %v21678_v60   ;;  %v19423_v25 = vpop.permute.xlu1 %8078  ;;  %v11422_v60 = vsel %vm1990_vm5, %v11421_v3, %v11420_v57  ;;  %v11650_v3 = vrot.slane %v867_v37, 3  ;;  %v19444_v48 = vpop.permute.xlu0 %9722  ;;  %v7929_v57 = vand.u32 2147483648, %v19383_v61  ;;  %p15273_p12 = scmp.ne.s32.totalorder %s20777_s28, %s15272_s4 }
 0x711   : > { %v11424_v27 = vsel %vm1993_vm6, %v11423_v21, %v11422_v60 }
 0x712   : > { %8791 = vperm.xlu0 %15007, %v19129_v51   ;;  %v19451_v56 = vsel %vm7928_vm10, %v7929_v57, %v7927_v45  ;;  %v11426_v60 = vsel %vm1996_vm7, %v11425_v22, %v11424_v27  ;;  %p15274_p13 = pnand %p15273_p12, %p15528_p4 }
 0x713   : > { %21728 = vst [vmem:[#allocation119_spill] sm:$0xff] %v19451_v56 }
 0x714   : > { %10458 = vperm.xlu1 %14978, %v21684_v46   ;;  %v19436_v26 = vpop.permute.xlu1 %8787  ;;  %v19460_v61 = vpop.permute.xlu0 %9767  ;;  %p15275_p0 = pneg %p15274_p13 }
 0x715   : > { %21727 = vst [vmem:[#allocation118_spill] sm:$0xff] %v19436_v26  ;;  %v11649_v26 = vsel %vm1990_vm5, %v11648_v62, %v11647_v40  ;;  %v15269_v62 = vpop.eup %15268 }
 0x716   : > { %8799 = vperm.xlu0 %15007, %v19355_v29   ;;  %v11651_v21 = vsel %vm1993_vm6, %v11650_v3, %v11649_v26  ;;  %v7967_v37 = vmul.f32 %v15269_v62, %v19416_v44  ;;  %v11879_v26 = vsel %vm1996_vm7, %v11878_v49, %v11877_v33  ;;  %v7971_v3 = vand.u32 2147483648, %v19416_v44 }
 0x717   : > { %v11653_v40 = vsel %vm1996_vm7, %v11652_v38, %v11651_v21 }
 0x718   : > { %10464 = vperm.xlu1 %14978, %v18894_v23   ;;  %v7969_v32 = vsel %vm7968_vm12, %v19416_v44, %v7967_v37  ;;  %v19474_v45 = vpop.permute.xlu0 %9728  ;;  %v8180_v37 = vrot.slane %v19058_v8, %v18834_v59 }
 0x719   : > { %v19453_v34 = vpop.permute.xlu1 %8927  ;;  %v19481_v57 = vsel %vm7970_vm11, %v7971_v3, %v7969_v32  ;;  %v21732_v32 = vld [vmem:[#allocation71_spill] sm:$0xff] }
 0x71a   : > { %8807 = vperm.xlu0 %15007, %v19451_v56   ;;  %21729 = vst [vmem:[#allocation120_spill] sm:$0xff] %v19481_v57  ;;  %v8184_v3 = vrot.slane %v21732_v32, %v18826_v30  ;;  %v8207_v32 = vrot.slane %v19336_v11, %v18834_v59 }
 0x71c   : > { %11429 = vrot.lane.b32.xlu1 %v11426_v60, %s15395_s30  ;;  %v19487_v10 = vpop.permute.xlu0 %9773 }
 0x71d   : > { %14979 = vset.pattern.permute.xlu1 %v21635_v36 }
 0x71e   : > { %8815 = vperm.xlu0 %15007, %v19280_v52   ;;  %v19465_v22 = vpop.permute.xlu1 %9758 }
 0x720   : > { %11656 = vrot.lane.b32.xlu1 %v11653_v40, %s15395_s30  ;;  %v19491_v38 = vpop.permute.xlu0 %9776 }
 0x722   : > { %8823 = vperm.xlu0 %15007, %v19358_v63  }
 0x723   : > { %v19476_v27 = vpop.permute.xlu1 %10590 }
 0x724   : > { %11882 = vrot.lane.b32.xlu1 %v11879_v26, %s15395_s30  ;;  %v19497_v21 = vpop.permute.xlu0 %10608  ;;  %v8189_v26 = vrot.slane %v19157_v7, %v18834_v59  ;;  %v8202_v7 = vrot.slane %v18892_v18, %v18826_v30  ;;  %v8220_v18 = vrot.slane %v19047_v19, %v18826_v30 }
 0x726   : > { %8831 = vperm.xlu0 %15007, %v19481_v57  }
 0x727   : > { %v19484_v42 = vpop.permute.xlu1 %10593 }
 0x728   : > { %11284 = vperm.xlu1 %14979, %v18627_v1   ;;  %v19506_v31 = vpop.permute.xlu0 %9939 }
 0x72a   : > { %15013 = vset.pattern.permute.xlu0 %v21635_v36 }
 0x72c   : > { %11290 = vperm.xlu1 %14979, %v21684_v46   ;;  %v8085_v60 = vpop.permute.xlu1 %8084  ;;  %v19510_v49 = vpop.permute.xlu0 %10771  ;;  %v9026_v46 = vrot.slane %v19102_v9, %v18826_v30  ;;  %v8185_v9 = vsel %vm8112_vm9, %v8184_v3, %v8180_v37 }
 0x730   : > { %11293 = vperm.xlu1 %14979, %v21663_v2   ;;  %v21735_v2 = vld [vmem:[#allocation76_spill] sm:$0xff]  ;;  %v19544_v1 = vpop.permute.xlu0 %10452 }
 0x731   : > { %v19494_v44 = vpop.permute.xlu1 %8933  ;;  %v9031_v8 = vrot.slane %v21735_v2, %v18834_v59  ;;  %v8216_v2 = vrot.slane %v19423_v25, %v18834_v59  ;;  %21736 = vst [vmem:[#allocation71_spill] sm:$0xff] %v19544_v1  ;;  %v9035_v25 = vrot.slane %v19172_v28, %v18826_v30 }
 0x734   : > { %14980 = vset.pattern.permute.xlu1 %v21634_v35  ;;  %v19579_v3 = vpop.permute.xlu0 %10461 }
 0x735   : > { %10467 = vperm.xlu1 %14980, %v19129_v51   ;;  %v19500_v0 = vpop.permute.xlu1 %9635 }
 0x736   : > { %21730 = vst [vmem:[#allocation121_spill] sm:$0xff] %v19500_v0  ;;  %v21733_v0 = vld [vmem:[#allocation72_spill] sm:$0xff] }
 0x739   : > { %14982 = vset.pattern.permute.xlu1 %v21635_v36 }
 0x73a   : > { %11299 = vperm.xlu1 %14982, %v19129_v51   ;;  %v19504_v62 = vpop.permute.xlu1 %9764  ;;  %v21734_v51 = vld [vmem:[#allocation74_spill] sm:$0xff] }
 0x73b   : > { %v8193_v23 = vrot.slane %v21734_v51, %v18826_v30  ;;  %v8211_v51 = vrot.slane %v18983_v6, %v18826_v30 }
 0x73d   : > { %v8194_v11 = vsel %vm8112_vm9, %v8193_v23, %v8189_v26  ;;  %v8229_v23 = vrot.slane %v19099_v4, %v18826_v30  ;;  %v8212_v37 = vsel %vm8112_vm9, %v8211_v51, %v8207_v32  ;;  %v8247_v4 = vrot.slane %v19163_v17, %v18826_v30 }
 0x73e   : > { %14984 = vset.pattern.permute.xlu1 %v21634_v35  ;;  %v8256_v28 = vsel %vm1978_vm1, %v8194_v11, %v8185_v9  ;;  %v9036_v26 = vsel %vm8112_vm9, %v9035_v25, %v9031_v8  ;;  %v9067_v51 = vrot.slane %v19118_v5, %v18834_v59 }
 0x73f   : > { %10473 = vperm.xlu1 %14984, %v19355_v29   ;;  %v8091_v40 = vpop.permute.xlu1 %8090  ;;  %v9022_v29 = vrot.slane %v21733_v0, %v18834_v59  ;;  %v9040_v0 = vrot.slane %v18937_v50, %v18834_v59  ;;  %v8225_v50 = vrot.slane %v8085_v60, %v18834_v59  ;;  %v9044_v60 = vrot.slane %v19247_v41, %v18826_v30 }
 0x740   : > { %v8234_v57 = vrot.slane %v8091_v40, %v18834_v59  ;;  %v9053_v40 = vrot.slane %v19352_v58, %v18826_v30  ;;  %v9062_v41 = vrot.slane %v19453_v34, %v18826_v30  ;;  %v9071_v58 = vrot.slane %v19494_v44, %v18826_v30 }
 0x741   : > { %v9027_v19 = vsel %vm8112_vm9, %v9026_v46, %v9022_v29  ;;  %v8230_v29 = vsel %vm8112_vm9, %v8229_v23, %v8225_v50  ;;  %v9076_v44 = vrot.slane %v19149_v24, %v18834_v59 }
 0x743   : > { %14985 = vset.pattern.permute.xlu1 %v21630_v53  ;;  %v19513_v33 = vpop.permute.xlu1 %8795 }
 0x744   : > { %21731 = vst [vmem:[#allocation122_spill] sm:$0xff] %v19513_v33  ;;  %8803 = vperm.xlu1 %14985, %v19211_v16   ;;  %v8198_v33 = vrot.slane %v19223_v20, %v18834_v59  ;;  %v9049_v20 = vrot.slane %v19017_v14, %v18834_v59  ;;  %v9058_v14 = vrot.slane %v19082_v13, %v18834_v59 }
 0x745   : > { %v8238_v13 = vrot.slane %v19133_v47, %v18826_v30 }
 0x746   : > { %v8203_v1 = vsel %vm8112_vm9, %v8202_v7, %v8198_v33  ;;  %v8221_v33 = vsel %vm8112_vm9, %v8220_v18, %v8216_v2  ;;  %v9063_v18 = vsel %vm8112_vm9, %v9062_v41, %v9058_v14  ;;  %v9085_v14 = vrot.slane %v19186_v55, %v18834_v59 }
 0x747   : > { %v8257_v46 = vsel %vm1981_vm2, %v8203_v1, %v8256_v28  ;;  %v8239_v7 = vsel %vm8112_vm9, %v8238_v13, %v8234_v57  ;;  %v9045_v1 = vsel %vm8112_vm9, %v9044_v60, %v9040_v0  ;;  %v9054_v57 = vsel %vm8112_vm9, %v9053_v40, %v9049_v20  ;;  %v19610_v60 = vpop.permute.xlu0 %11427 }
 0x748   : > { %14987 = vset.pattern.permute.xlu1 %v21635_v36  ;;  %v8940_v6 = vpop.permute.xlu1 %8939  ;;  %v8258_v47 = vsel %vm1984_vm3, %v8212_v37, %v8257_v46  ;;  %v9098_v0 = vsel %vm1978_vm1, %v9036_v26, %v9027_v19 }
 0x749   : > { %11308 = vperm.xlu1 %14987, %v19211_v16   ;;  %v8259_v34 = vsel %vm1987_vm4, %v8221_v33, %v8258_v47  ;;  %v9080_v32 = vrot.slane %v8940_v6, %v18826_v30  ;;  %v9099_v50 = vsel %vm1981_vm2, %v9045_v1, %v9098_v0  ;;  %v9072_v6 = vsel %vm8112_vm9, %v9071_v58, %v9067_v51  ;;  %v21737_v47 = vld [vmem:[#allocation57_spill] sm:$0xff] }
 0x74a   : > { %v8260_v2 = vsel %vm1990_vm5, %v8230_v29, %v8259_v34  ;;  %v9100_v24 = vsel %vm1984_vm3, %v9054_v57, %v9099_v50  ;;  %v10625_v58 = vrot.slane %v21737_v47, %v18834_v59  ;;  %v21738_v34 = vld [vmem:[#allocation49_spill] sm:$0xff]  ;;  %v21742_v50 = vld [vmem:[#allocation56_spill] sm:$0xff]  ;;  %v21748_v47 = vld [vmem:[#allocation98_spill] sm:$0xff] }
 0x74b   : > { %v8261_v9 = vsel %vm1993_vm6, %v8239_v7, %v8260_v2  ;;  %v9081_v20 = vsel %vm8112_vm9, %v9080_v32, %v9076_v44  ;;  %v9101_v19 = vsel %vm1987_vm4, %v9063_v18, %v9100_v24  ;;  %v19633_v7 = vpop.permute.xlu0 %11654  ;;  %v10620_v32 = vrot.slane %v21738_v34, %v18826_v30  ;;  %v21740_v44 = vld [vmem:[#allocation60_spill] sm:$0xff]  ;;  %v21741_v18 = vld [vmem:[#allocation50_spill] sm:$0xff]  ;;  %v21743_v24 = vld [vmem:[#allocation67_spill] sm:$0xff] }
 0x74c   : > { %v9102_v28 = vsel %vm1990_vm5, %v9072_v6, %v9101_v19  ;;  %v10634_v57 = vrot.slane %v21740_v44, %v18834_v59  ;;  %v10638_v6 = vrot.slane %v21742_v50, %v18826_v30  ;;  %v21745_v19 = vld [vmem:[#allocation16_spill] sm:$0xff]  ;;  %v21751_v34 = vld [vmem:[#allocation54_spill] sm:$0xff]  ;;  %v21752_v44 = vld [vmem:[#allocation99_spill] sm:$0xff] }
 0x74d   : > { %14988 = vset.pattern.permute.xlu1 %v21638_v39  ;;  %v8097_v17 = vpop.permute.xlu1 %8096  ;;  %v9103_v40 = vsel %vm1993_vm6, %v9081_v20, %v9102_v28  ;;  %v10643_v20 = vrot.slane %v21743_v24, %v18834_v59 }
 0x74e   : > { %v8243_v8 = vrot.slane %v8097_v17, %v18834_v59  ;;  %9647 = vperm.xlu1 %14988, %v19451_v56  }
 0x750   : > { %v8248_v11 = vsel %vm8112_vm9, %v8247_v4, %v8243_v8  ;;  %v21739_v8 = vld [vmem:[#allocation51_spill] sm:$0xff] }
 0x751   : > { %v8262_v5 = vsel %vm1996_vm7, %v8248_v11, %v8261_v9  ;;  %v10629_v51 = vrot.slane %v21739_v8, %v18826_v30  ;;  %v10616_v9 = vrot.slane %v21741_v18, %v18834_v59  ;;  %v9793_v8 = vrot.slane %v21751_v34, %v18834_v59 }
 0x752   : > { %v8265_v25 = vsel %vm878_vm0, %v8262_v5, 0  ;;  %14989 = vset.pattern.permute.xlu1 %v21634_v35  ;;  %v8946_v23 = vpop.permute.xlu1 %8945 }
 0x753   : > { %v19612_v37 = vand.u32 4294901760, %v8265_v25  ;;  %v9089_v13 = vrot.slane %v8946_v23, %v18826_v30  ;;  %10479 = vperm.xlu1 %14989, %v19451_v56   ;;  %v10630_v5 = vsel %vm8112_vm9, %v10629_v51, %v10625_v58  ;;  %v9797_v58 = vrot.slane %v21748_v47, %v18826_v30 }
 0x755   : > { %v19619_v33 = vsub.f32 %v8265_v25, %v19612_v37  ;;  %v9090_v4 = vsel %vm8112_vm9, %v9089_v13, %v9085_v14  ;;  %v21744_v25 = vld [vmem:[#allocation47_spill] sm:$0xff] }
 0x756   : > { %v9104_v55 = vsel %vm1996_vm7, %v9090_v4, %v9103_v40  ;;  %v9788_v23 = vrot.slane %v21744_v25, %v18826_v30  ;;  %v21746_v13 = vld [vmem:[#allocation15_spill] sm:$0xff]  ;;  %v10621_v40 = vsel %vm8112_vm9, %v10620_v32, %v10616_v9  ;;  %v21747_v4 = vld [vmem:[#allocation58_spill] sm:$0xff]  ;;  %v9806_v32 = vrot.slane %v21752_v44, %v18826_v30  ;;  %v21759_v44 = vld [vmem:[#allocation64_spill] sm:$0xff] }
 0x757   : > { %v9115_v46 = vsel %vm878_vm0, %v9104_v55, 0  ;;  %14990 = vset.pattern.permute.xlu1 %v21635_v36  ;;  %v19625_v41 = vpop.permute.xlu1 %9731  ;;  %v21253_v29 = vand.u32 4294901760, %v19619_v33  ;;  %v19668_v28 = vpack.c.bf16 %v21746_v13, %v21745_v19  ;;  %v10647_v55 = vrot.slane %v21747_v4, %v18826_v30  ;;  %v21755_v25 = vld [vmem:[#allocation95_spill] sm:$0xff] }
 0x758   : > { %v19628_v26 = vand.u32 4294901760, %v9115_v46  ;;  %11311 = vperm.xlu1 %14990, %v19451_v56   ;;  %v10757_v51 = vsel %vm1978_vm1, %v10630_v5, %v10621_v40  ;;  %v9784_v4 = vrot.slane %v21755_v25, %v18834_v59  ;;  %v21756_v40 = vld [vmem:[#allocation62_spill] sm:$0xff] }
 0x759   : > { %v8347_v17 = vsub.f32 %v19619_v33, %v21253_v29  ;;  %v10648_v50 = vsel %vm8112_vm9, %v10647_v55, %v10643_v20  ;;  %v10656_v47 = vrot.slane %v21756_v40, %v18826_v30  ;;  %v21758_v20 = vld [vmem:[#allocation63_spill] sm:$0xff]  ;;  %v21760_v25 = vld [vmem:[#allocation30_spill] sm:$0xff] }
 0x75a   : > { %v19639_v1 = vsub.f32 %v9115_v46, %v19628_v26  ;;  %v10639_v46 = vsel %vm8112_vm9, %v10638_v6, %v10634_v57  ;;  %v21753_v57 = vld [vmem:[#allocation59_spill] sm:$0xff]  ;;  %v21754_v6 = vld [vmem:[#allocation70_spill] sm:$0xff]  ;;  %v9811_v55 = vrot.slane %v21758_v20, %v18834_v59 }
 0x75b   : > { %v19647_v2 = vpop.permute.xlu1 %9770  ;;  %v8348_v0 = vand.u32 4294901760, %v8347_v17  ;;  %v19676_v17 = vpop.permute.xlu0 %11880  ;;  %v9802_v9 = vrot.slane %v21753_v57, %v18834_v59  ;;  %v10652_v24 = vrot.slane %v21754_v6, %v18834_v59  ;;  %v10758_v5 = vsel %vm1981_vm2, %v10639_v46, %v10757_v51  ;;  %v21761_v46 = vld [vmem:[#allocation78_spill] sm:$0xff] }
 0x75c   : > { %14991 = vset.pattern.permute.xlu1 %v21630_v53  ;;  %v21252_v11 = vand.u32 4294901760, %v19639_v1  ;;  %21749 = vst [vmem:[#allocation72_spill] sm:$0xff] %v19676_v17  ;;  %v9815_v57 = vrot.slane %v21759_v44, %v18826_v30  ;;  %v9798_v6 = vsel %vm8112_vm9, %v9797_v58, %v9793_v8  ;;  %v21762_v51 = vld [vmem:[#allocation66_spill] sm:$0xff]  ;;  %v21764_v58 = vld [vmem:[#allocation68_spill] sm:$0xff] }
 0x75d   : > { %8811 = vperm.xlu1 %14991, %v19239_v54   ;;  %13957 = vmatmul.mubr.f32.vlgmr.msra.gmra.mrb[36].mxu0 %v8348_v0  ;;  %v10665_v40 = vrot.slane %v21762_v51, %v18826_v30  ;;  %v9824_v8 = vrot.slane %v21764_v58, %v18826_v30  ;;  %v10657_v44 = vsel %vm8112_vm9, %v10656_v47, %v10652_v24  ;;  %v21765_v51 = vld [vmem:[#allocation116_spill] sm:$0xff] }
 0x75e   : > { %13963 = vmatprep.mubr.f32.mxu0 %v19030_v12  ;;  %14295 = vmatpush3.bf16.msra.mxu0 %v19306_v15  ;;  %v9197_v14 = vsub.f32 %v19639_v1, %v21252_v11  ;;  %v21750_v15 = vld [vmem:[#allocation101_spill] sm:$0xff]  ;;  %v9807_v11 = vsel %vm8112_vm9, %v9806_v32, %v9802_v9  ;;  %v9829_v17 = vrot.slane %v21765_v51, %v18834_v59  ;;  %v21772_v51 = vand.u32 4294901760, %v21746_v13 }
 0x75f   : > { %14297 = vmatprep.subr.bf16.mxu0 %v21750_v15  ;;  %v9851_v47 = vrot.slane %v19625_v41, %v18826_v30 }
 0x760   : > { %v19684_v0 = vpop.permute.xlu1 %10554  ;;  %v9198_v18 = vand.u32 4294901760, %v9197_v14  ;;  %v21757_v14 = vld [vmem:[#allocation77_spill] sm:$0xff] }
 0x761   : > { %14994 = vset.pattern.permute.xlu1 %v21635_v36  ;;  %v10661_v34 = vrot.slane %v21757_v14, %v18834_v59  ;;  %v10759_v14 = vsel %vm1984_vm3, %v10648_v50, %v10758_v5  ;;  %v19722_v50 = vpop.permute.xlu0 %10470  ;;  %v9838_v5 = vrot.slane %v19444_v48, %v18834_v59  ;;  %v21769_v48 = vld [vmem:[#allocation81_spill] sm:$0xff] }
 0x762   : > { %11314 = vperm.xlu1 %14994, %v19239_v54   ;;  %13999 = vmatmul.mubr.f32.vlgmr.msra.gmra.mrb[34].mxu1 %v9198_v18  ;;  %v21763_v18 = vld [vmem:[#allocation111_spill] sm:$0xff]  ;;  %21766 = vst [vmem:[#allocation74_spill] sm:$0xff] %v19722_v50 }
 0x763   : > { %14319 = vmatpush3.bf16.msra.mxu1 %v21760_v25  ;;  %14005 = vmatprep.mubr.f32.mxu1 %v21761_v46  ;;  %v9820_v29 = vrot.slane %v21763_v18, %v18834_v59  ;;  %v9789_v25 = vsel %vm8112_vm9, %v9788_v23, %v9784_v4  ;;  %v10666_v32 = vsel %vm8112_vm9, %v10665_v40, %v10661_v34  ;;  %v21767_v18 = vld [vmem:[#allocation69_spill] sm:$0xff]  ;;  %v21768_v23 = vld [vmem:[#allocation75_spill] sm:$0xff] }
 0x764   : > { %14321 = vmatprep.subr.bf16.mxu1 %v19668_v28  ;;  %v19714_v20 = vpop.permute.xlu1 %10596  ;;  %v9925_v9 = vsel %vm1978_vm1, %v9798_v6, %v9789_v25  ;;  %v9833_v24 = vrot.slane %v21768_v23, %v18826_v30  ;;  %v10760_v34 = vsel %vm1987_vm4, %v10657_v44, %v10759_v14  ;;  %v9842_v6 = vrot.slane %v21769_v48, %v18826_v30  ;;  %v21770_v25 = vld [vmem:[#allocation27_spill] sm:$0xff]  ;;  %v21774_v23 = vld [vmem:[#allocation93_spill] sm:$0xff] }
 0x765   : > { %13964 = vmatmul.mubr.f32.vlgmr.msra.gmra.mrb[36].mxu0 %v19612_v37  ;;  %v9926_v4 = vsel %vm1981_vm2, %v9807_v11, %v9925_v9  ;;  %v9825_v40 = vsel %vm8112_vm9, %v9824_v8, %v9820_v29  ;;  %v21771_v11 = vand.u32 4294901760, %v21745_v19  ;;  %v9816_v9 = vsel %vm8112_vm9, %v9815_v57, %v9811_v55  ;;  %v21773_v29 = vld [vmem:[#allocation88_spill] sm:$0xff]  ;;  %v19764_v57 = vpop.permute.xlu0 %11287 }
 0x766   : > { %14995 = vset.pattern.permute.xlu1 %v21638_v39  ;;  %13970 = vmatprep.mubr.f32.mxu0 %v21767_v18  ;;  %v9834_v14 = vsel %vm8112_vm9, %v9833_v24, %v9829_v17  ;;  %v9847_v44 = vrot.slane %v19474_v45, %v18834_v59  ;;  %v10692_v8 = vrot.slane %v21773_v29, %v18826_v30 }
 0x767   : > { %9653 = vperm.xlu1 %14995, %v19280_v52   ;;  %14299 = vmatpush3.bf16.msra.mxu0 %v21750_v15  ;;  %v19749_v41 = vpack.c.bf16 %v21772_v51, %v21771_v11  ;;  %v10761_v15 = vsel %vm1990_vm5, %v10666_v32, %v10760_v34  ;;  %v10701_v48 = vrot.slane %v21774_v23, %v18826_v30  ;;  %v21776_v32 = vld [vmem:[#allocation79_spill] sm:$0xff] }
 0x768   : > { %v19742_v58 = vpop.permute.xlu1 %10599  ;;  %14301 = vmatprep.subr.bf16.mxu0 %v21770_v25  ;;  %v9927_v19 = vsel %vm1984_vm3, %v9816_v9, %v9926_v4  ;;  %v9843_v13 = vsel %vm8112_vm9, %v9842_v6, %v9838_v5  ;;  %21775 = vst [vmem:[#allocation76_spill] sm:$0xff] %v19764_v57  ;;  %v9852_v17 = vsel %vm8112_vm9, %v9851_v47, %v9847_v44  ;;  %v21777_v5 = vld [vmem:[#allocation87_spill] sm:$0xff]  ;;  %v21778_v6 = vld [vmem:[#allocation82_spill] sm:$0xff]  ;;  %v21781_v9 = vld [vmem:[#allocation104_spill] sm:$0xff] }
 0x769   : > { %v9928_v55 = vsel %vm1987_vm4, %v9825_v40, %v9927_v19  ;;  %v10670_v45 = vrot.slane %v19684_v0, %v18834_v59  ;;  %v10697_v24 = vrot.slane %v21776_v32, %v18834_v59  ;;  %v10688_v4 = vrot.slane %v21777_v5, %v18834_v59  ;;  %v21779_v40 = vld [vmem:[#allocation42_spill] sm:$0xff]  ;;  %v21780_v11 = vld [vmem:[#allocation91_spill] sm:$0xff] }
 0x76a   : > { %14006 = vmatmul.mubr.f32.vlgmr.msra.gmra.mrb[34].mxu1 %v19628_v26  ;;  %v9929_v34 = vsel %vm1990_vm5, %v9834_v14, %v9928_v55  ;;  %v10674_v0 = vrot.slane %v21780_v11, %v18826_v30  ;;  %v21782_v14 = vld [vmem:[#allocation94_spill] sm:$0xff]  ;;  %v21783_v32 = vand.u32 4294901760, %v21767_v18 }
 0x76b   : > { %14323 = vmatpush3.bf16.msra.mxu1 %v19668_v28  ;;  %14997 = vset.pattern.permute.xlu1 %v21630_v53  ;;  %v9930_v28 = vsel %vm1993_vm6, %v9843_v13, %v9929_v34  ;;  %v10683_v29 = vrot.slane %v21782_v14, %v18826_v30  ;;  %v10702_v23 = vsel %vm8112_vm9, %v10701_v48, %v10697_v24  ;;  %v21784_v13 = vld [vmem:[#allocation85_spill] sm:$0xff]  ;;  %v21788_v18 = vld [vmem:[#allocation26_spill] sm:$0xff] }
 0x76c   : > { %14012 = vmatprep.mubr.f32.mxu1 %v21778_v6  ;;  %14325 = vmatprep.subr.bf16.mxu1 %v21779_v40  ;;  %v10561_v47 = vpop.permute.xlu1 %10560  ;;  %v9931_v55 = vsel %vm1996_vm7, %v9852_v17, %v9930_v28  ;;  %v9860_v5 = vrot.slane %v21784_v13, %v18826_v30  ;;  %v10693_v34 = vsel %vm8112_vm9, %v10692_v8, %v10688_v4  ;;  %v21786_v48 = vld [vmem:[#allocation109_spill] sm:$0xff]  ;;  %v21790_v4 = vld [vmem:[#allocation103_spill] sm:$0xff] }
 0x76d   : > { %8819 = vperm.xlu1 %14997, %v21781_v9   ;;  %v10679_v44 = vrot.slane %v10561_v47, %v18834_v59  ;;  %13971 = vmatmul.mubr.f32.vlgmr.msra.gmra.mrb[36].mxu0 %v19619_v33  ;;  %v21785_v47 = vld [vmem:[#allocation90_spill] sm:$0xff]  ;;  %v10675_v14 = vsel %vm8112_vm9, %v10674_v0, %v10670_v45  ;;  %v21787_v24 = vld [vmem:[#allocation105_spill] sm:$0xff]  ;;  %v9878_v28 = vrot.slane %v21788_v18, %v18826_v30  ;;  %v21791_v0 = vand.u32 4294901760, %v19506_v31 }
 0x76e   : > { %13977 = vmatprep.mubr.f32.mxu0 %v21783_v32  ;;  %14303 = vmatpush3.bf16.msra.mxu0 %v21770_v25  ;;  %v9869_v11 = vrot.slane %v21785_v47, %v18826_v30  ;;  %v9865_v17 = vrot.slane %v21787_v24, %v18834_v59  ;;  %v21789_v32 = vld [vmem:[#allocation106_spill] sm:$0xff]  ;;  %v10764_v8 = vsel %vm1978_vm1, %v10702_v23, %v10693_v34  ;;  %v19817_v24 = vpop.permute.xlu0 %11296  ;;  %v9945_v18 = vsel %vm878_vm0, %v9931_v55, 0  ;;  %v21796_v55 = vld [vmem:[#allocation113_spill] sm:$0xff] }
 0x76f   : > { %14305 = vmatprep.subr.bf16.mxu0 %v21786_v48  ;;  %v9874_v19 = vrot.slane %v21789_v32, %v18834_v59  ;;  %v10684_v13 = vsel %vm8112_vm9, %v10683_v29, %v10679_v44  ;;  %v10710_v45 = vrot.slane %v21790_v4, %v18826_v30  ;;  %v19815_v47 = vsub.f32 %v19506_v31, %v21791_v0  ;;  %v21793_v44 = vld [vmem:[#allocation102_spill] sm:$0xff]  ;;  %v21795_v4 = vld [vmem:[#allocation100_spill] sm:$0xff] }
 0x770   : > { %v19807_v51 = vpop.permute.xlu1 %10602  ;;  %21792 = vst [vmem:[#allocation57_spill] sm:$0xff] %v19817_v24  ;;  %v9856_v29 = vrot.slane %v21793_v44, %v18834_v59  ;;  %v21794_v32 = vand.u32 4294901760, %v19510_v49  ;;  %v10762_v34 = vsel %vm1993_vm6, %v10675_v14, %v10761_v15  ;;  %v10706_v0 = vrot.slane %v21795_v4, %v18834_v59  ;;  %v21798_v14 = vld [vmem:[#allocation117_spill] sm:$0xff] }
 0x771   : > { %15000 = vset.pattern.permute.xlu1 %v21635_v36  ;;  %v9883_v50 = vrot.slane %v21796_v55, %v18834_v59  ;;  %v10763_v24 = vsel %vm1996_vm7, %v10684_v13, %v10762_v34  ;;  %v21797_v44 = vand.u32 4294901760, %v21778_v6  ;;  %v9879_v15 = vsel %vm8112_vm9, %v9878_v28, %v9874_v19  ;;  %v21799_v13 = vld [vmem:[#allocation114_spill] sm:$0xff]  ;;  %v21801_v28 = vld [vmem:[#allocation115_spill] sm:$0xff] }
 0x772   : > { %v19826_v23 = vsub.f32 %v19510_v49, %v21794_v32  ;;  %11320 = vperm.xlu1 %15000, %v21781_v9   ;;  %14013 = vmatmul.mubr.f32.vlgmr.msra.gmra.mrb[34].mxu1 %v19639_v1  ;;  %v9870_v32 = vsel %vm8112_vm9, %v9869_v11, %v9865_v17  ;;  %v10719_v9 = vrot.slane %v21798_v14, %v18826_v30  ;;  %v19843_v52 = vand.u32 4294901760, %v9945_v18 }
 0x773   : > { %14327 = vmatpush3.bf16.msra.mxu1 %v21779_v40  ;;  %14019 = vmatprep.mubr.f32.mxu1 %v21797_v44  ;;  %v9887_v34 = vrot.slane %v21799_v13, %v18826_v30  ;;  %v10711_v55 = vsel %vm8112_vm9, %v10710_v45, %v10706_v0  ;;  %v21263_v6 = vand.u32 4294901760, %v19815_v47  ;;  %v9892_v11 = vrot.slane %v19465_v22, %v18834_v59  ;;  %v19867_v0 = vpop.permute.xlu0 %11302 }
 0x774   : > { %14329 = vmatprep.subr.bf16.mxu1 %v19749_v41  ;;  %v19846_v4 = vpop.permute.xlu1 %10605  ;;  %v21800_v19 = vand.u32 4294901760, %v19619_v33  ;;  %v9861_v17 = vsel %vm8112_vm9, %v9860_v5, %v9856_v29  ;;  %v10715_v44 = vrot.slane %v21801_v28, %v18834_v59  ;;  %v21262_v14 = vand.u32 4294901760, %v19826_v23  ;;  %21802 = vst [vmem:[#allocation49_spill] sm:$0xff] %v19867_v0 }
 0x775   : > { %v10777_v54 = vsel %vm878_vm0, %v10763_v24, 0  ;;  %v9932_v45 = vsel %vm1978_vm1, %v9870_v32, %v9861_v17  ;;  %v9896_v22 = vrot.slane %v19426_v43, %v18826_v30  ;;  %v9888_v33 = vsel %vm8112_vm9, %v9887_v34, %v9883_v50 }
 0x776   : > { %13978 = vmatmul.mubr.f32.vlgmr.msra.gmra.mrb[36].mxu0 %v21800_v19  ;;  %15001 = vset.pattern.permute.xlu1 %v21638_v39  ;;  %v9933_v5 = vsel %vm1981_vm2, %v9879_v15, %v9932_v45  ;;  %v10765_v24 = vsel %vm1981_vm2, %v10711_v55, %v10764_v8  ;;  %v10720_v29 = vsel %vm8112_vm9, %v10719_v9, %v10715_v44  ;;  %v19886_v15 = vand.u32 4294901760, %v10777_v54 }
 0x777   : > { %13984 = vmatprep.mubr.f32.mxu0 %v19030_v12  ;;  %9659 = vperm.xlu1 %15001, %v19358_v63   ;;  %v19876_v32 = vsub.f32 %v9945_v18, %v19843_v52  ;;  %v19881_v43 = vsub.f32 %v19815_v47, %v21263_v6  ;;  %v9897_v50 = vsel %vm8112_vm9, %v9896_v22, %v9892_v11  ;;  %v21804_v55 = vand.u32 4294901760, %v19639_v1  ;;  %v19920_v17 = vpop.permute.xlu0 %9620  ;;  %v21806_v22 = vld [vmem:[#allocation48_spill] sm:$0xff] }
 0x778   : > { %14307 = vmatpush3.bf16.msra.mxu0 %v21786_v48  ;;  %v9901_v48 = vrot.slane %v19504_v62, %v18834_v59  ;;  %v9905_v9 = vrot.slane %v19460_v61, %v18826_v30  ;;  %v9934_v18 = vsel %vm1984_vm3, %v9888_v33, %v9933_v5  ;;  %v19896_v13 = vsub.f32 %v19826_v23, %v21262_v14 }
 0x779   : > { %14309 = vmatprep.subr.bf16.mxu0 %v21770_v25  ;;  %v19888_v8 = vpop.permute.xlu1 %9641  ;;  %v9910_v34 = vrot.slane %v19647_v2, %v18834_v59  ;;  %v9914_v62 = vrot.slane %v19487_v10, %v18826_v30  ;;  %v9919_v11 = vrot.slane %v19491_v38, %v18834_v59  ;;  %v10766_v61 = vsel %vm1984_vm3, %v10720_v29, %v10765_v24  ;;  %v21807_v24 = vld [vmem:[#allocation55_spill] sm:$0xff] }
 0x77a   : > { %21803 = vst [vmem:[#allocation51_spill] sm:$0xff] %v19888_v8  ;;  %14020 = vmatmul.mubr.f32.vlgmr.msra.gmra.mrb[34].mxu1 %v21804_v55  ;;  %v10751_v19 = vrot.slane %v19497_v21, %v18834_v59  ;;  %v9935_v2 = vsel %vm1987_vm4, %v9897_v50, %v9934_v18  ;;  %v10728_v1 = vrot.slane %v19484_v42, %v18826_v30  ;;  %v21261_v10 = vand.u32 4294901760, %v19876_v32  ;;  %v21808_v50 = vld [vmem:[#allocation13_spill] sm:$0xff]  ;;  %v21809_v55 = vld [vmem:[#allocation112_spill] sm:$0xff] }
 0x77b   : > { %15002 = vset.pattern.permute.xlu1 %v21634_v35  ;;  %14331 = vmatpush3.bf16.msra.mxu1 %v19749_v41  ;;  %v10724_v38 = vrot.slane %v19476_v27, %v18834_v59  ;;  %v9906_v41 = vsel %vm8112_vm9, %v9905_v9, %v9901_v48  ;;  %21805 = vst [vmem:[#allocation60_spill] sm:$0xff] %v19920_v17 }
 0x77c   : > { %10491 = vperm.xlu1 %15002, %v19358_v63   ;;  %14026 = vmatprep.mubr.f32.mxu1 %v21761_v46  ;;  %v19925_v21 = vsub.f32 %v10777_v54, %v19886_v15  ;;  %v9915_v28 = vsel %vm8112_vm9, %v9914_v62, %v9910_v34  ;;  %v10737_v44 = vrot.slane %v19742_v58, %v18826_v30  ;;  %v21829_v63 = vand.u32 4294901760, %v19510_v49 }
 0x77d   : > { %14333 = vmatprep.subr.bf16.mxu1 %v21779_v40  ;;  %v11449_v33 = vmul.f32 %v19610_v60, %v21806_v22  ;;  %v10746_v54 = vrot.slane %v19846_v4, %v18826_v30  ;;  %v11451_v29 = vmul.f32 %v19610_v60, %v21807_v24  ;;  %v11453_v58 = vmul.f32 %v19610_v60, %v21808_v50 }
 0x77e   : > { %13985 = vmatmul.mubr.f32.vlgmr.msra.gmra.mrb[36].mxu0 %v19612_v37  ;;  %v9780_v27 = vpop.permute.xlu1 %9779  ;;  %v10733_v48 = vrot.slane %v19714_v20, %v18834_v59  ;;  %v10019_v4 = vsub.f32 %v19876_v32, %v21261_v10  ;;  %v10742_v18 = vrot.slane %v19807_v51, %v18834_v59  ;;  %v21260_v62 = vand.u32 4294901760, %v19925_v21 }
 0x77f   : > { %13991 = vmatprep.mubr.f32.mxu0 %v19030_v12  ;;  %14311 = vmatpush3.bf16.msra.mxu0 %v21770_v25  ;;  %v9923_v5 = vrot.slane %v9780_v27, %v18826_v30  ;;  %v10729_v12 = vsel %vm8112_vm9, %v10728_v1, %v10724_v38  ;;  %v9936_v25 = vsel %vm1990_vm5, %v9906_v41, %v9935_v2  ;;  %v21811_v38 = vld [vmem:[#allocation19_spill] sm:$0xff] }
 0x780   : > { %15004 = vset.pattern.permute.xlu1 %v21630_v53  ;;  %v9937_v9 = vsel %vm1993_vm6, %v9915_v28, %v9936_v25  ;;  %v10738_v2 = vsel %vm8112_vm9, %v10737_v44, %v10733_v48  ;;  %v21810_v53 = vld [vmem:[#allocation14_spill] sm:$0xff]  ;;  %v11457_v41 = vmul.f32 %v19610_v60, %v21811_v38  ;;  %v19964_v28 = vpop.permute.xlu0 %9626  ;;  %v10747_v59 = vsel %vm8112_vm9, %v10746_v54, %v10742_v18  ;;  %v21813_v44 = vld [vmem:[#allocation21_spill] sm:$0xff] }
 0x781   : > { %v9924_v34 = vsel %vm8112_vm9, %v9923_v5, %v9919_v11  ;;  %8827 = vperm.xlu1 %15004, %v21809_v55   ;;  %v11455_v1 = vmul.f32 %v19610_v60, %v21810_v53  ;;  %21812 = vst [vmem:[#allocation50_spill] sm:$0xff] %v19964_v28  ;;  %v11459_v27 = vmul.f32 %v19610_v60, %v21813_v44  ;;  %v21814_v5 = vld [vmem:[#allocation44_spill] sm:$0xff]  ;;  %v10020_v54 = vand.u32 4294901760, %v10019_v4 }
 0x782   : > { %v9938_v20 = vsel %vm1996_vm7, %v9924_v34, %v9937_v9  ;;  %14027 = vmatmul.mubr.f32.vlgmr.msra.gmra.mrb[34].mxu1 %v19628_v26  ;;  %v11461_v25 = vmul.f32 %v19610_v60, %v21814_v5  ;;  %v10767_v48 = vsel %vm1987_vm4, %v10729_v12, %v10766_v61  ;;  %v19987_v61 = vsel %vm11465_vm13, %v11449_v33, 0.0 }
 0x783   : > { %v9947_v51 = vsel %vm878_vm0, %v9938_v20, 0  ;;  %14335 = vmatpush3.bf16.msra.mxu1 %v21779_v40  ;;  %14033 = vmatprep.mubr.f32.mxu1 %v21761_v46  ;;  %v10612_v11 = vpop.permute.xlu1 %10611  ;;  %v10768_v18 = vsel %vm1990_vm5, %v10738_v2, %v10767_v48  ;;  %v10851_v46 = vsub.f32 %v19925_v21, %v21260_v62  ;;  %v21815_v40 = vld [vmem:[#allocation46_spill] sm:$0xff]  ;;  %v20000_v48 = vsel %vm11465_vm13, %v11453_v58, 0.0 }
 0x784   : > { %v19975_v9 = vand.u32 4294901760, %v9947_v51  ;;  %v10755_v34 = vrot.slane %v10612_v11, %v18826_v30  ;;  %v11463_v20 = vmul.f32 %v19610_v60, %v21815_v40  ;;  %v10769_v12 = vsel %vm1993_vm6, %v10747_v59, %v10768_v18 }
 0x785   : > { %15008 = vset.pattern.permute.xlu1 %v21634_v35  ;;  %v20003_v33 = vsel %vm11465_vm13, %v11455_v1, 0.0  ;;  %v20006_v59 = vsel %vm11465_vm13, %v11457_v41, 0.0  ;;  %v10852_v58 = vand.u32 4294901760, %v10851_v46  ;;  %v21819_v62 = vand.u32 4294901760, %v19506_v31  ;;  %v21820_v46 = vld [vmem:[#allocation36_spill] sm:$0xff] }
 0x786   : > { %13992 = vmatmul.mubr.f32.vlgmr.msra.gmra.mrb[36].mxu0 %v19612_v37  ;;  %v19991_v30 = vsub.f32 %v9947_v51, %v19975_v9  ;;  %v10756_v4 = vsel %vm8112_vm9, %v10755_v34, %v10751_v19  ;;  %10494 = vperm.xlu1 %15008, %v21809_v55   ;;  %v19996_v37 = vsel %vm11465_vm13, %v11451_v29, 0.0  ;;  %v20011_v29 = vsel %vm11465_vm13, %v11459_v27, 0.0 }
 0x787   : > { %14040 = vmatprep.mubr.f32.mxu0 %v10020_v54  ;;  %v10770_v2 = vsel %vm1996_vm7, %v10756_v4, %v10769_v12  ;;  %v9942_v11 = vpop.permute.xlu1 %9941  ;;  %v20013_v54 = vpop.permute.xlu0 %9632  ;;  %v21817_v12 = vld [vmem:[#allocation29_spill] sm:$0xff]  ;;  %v21818_v4 = vld [vmem:[#allocation34_spill] sm:$0xff]  ;;  %v20030_v27 = vsel %vm11465_vm13, %v11461_v25, 0.0  ;;  %v11437_v14 = vmul.f32 %v19610_v60, %v21820_v46 }
 0x788   : > { %v10779_v19 = vsel %vm878_vm0, %v10770_v2, 0  ;;  %v9953_v51 = vand.u32 4294901760, %v9942_v11  ;;  %v21264_v34 = vand.u32 4294901760, %v19991_v30  ;;  %21816 = vst [vmem:[#allocation56_spill] sm:$0xff] %v20013_v54  ;;  %v11433_v1 = vmul.f32 %v19610_v60, %v21817_v12  ;;  %v21826_v54 = vld [vmem:[#allocation39_spill] sm:$0xff] }
 0x789   : > { %v20015_v18 = vand.u32 4294901760, %v10779_v19  ;;  %v11435_v41 = vmul.f32 %v19610_v60, %v21818_v4  ;;  %v11447_v28 = vmul.f32 %v19610_v60, %v21826_v54 }
 0x78a   : > { %v20023_v2 = vpack.c.bf16 %v9953_v51, %v21819_v62  ;;  %v20025_v10 = vsub.f32 %v9942_v11, %v9953_v51  ;;  %15009 = vset.pattern.permute.xlu1 %v21635_v36  ;;  %14034 = vmatmul.mubr.f32.vlgmr.msra.gmra.mrb[34].mxu1 %v19628_v26  ;;  %v10029_v62 = vsub.f32 %v19991_v30, %v21264_v34  ;;  %v20042_v11 = vsel %vm11465_vm13, %v11463_v20, 0.0  ;;  %v21822_v26 = vld [vmem:[#allocation37_spill] sm:$0xff]  ;;  %v21825_v20 = vld [vmem:[#allocation24_spill] sm:$0xff] }
 0x78b   : > { %v20035_v6 = vsub.f32 %v10779_v19, %v20015_v18  ;;  %11326 = vperm.xlu1 %15009, %v21809_v55   ;;  %14082 = vmatprep.mubr.f32.mxu1 %v10852_v58  ;;  %v10774_v31 = vpop.permute.xlu1 %10773  ;;  %21821 = vst [vmem:[#allocation67_spill] sm:$0xff] %v20042_v11  ;;  %v11439_v25 = vmul.f32 %v19610_v60, %v21822_v26  ;;  %v21823_v19 = vld [vmem:[#allocation18_spill] sm:$0xff]  ;;  %v21824_v58 = vld [vmem:[#allocation23_spill] sm:$0xff]  ;;  %v20059_v51 = vsel %vm11465_vm13, %v11433_v1, 0.0  ;;  %v20070_v57 = vpop.permute.xlu0 %9638 }
 0x78c   : > { %v10785_v45 = vand.u32 4294901760, %v10774_v31  ;;  %14337 = vmatprep.subr.bf16.mxu0 %v20023_v2  ;;  %v11441_v42 = vmul.f32 %v19610_v60, %v21823_v19  ;;  %v11443_v0 = vmul.f32 %v19610_v60, %v21824_v58  ;;  %v11445_v8 = vmul.f32 %v19610_v60, %v21825_v20  ;;  %21827 = vst [vmem:[#allocation47_spill] sm:$0xff] %v20059_v51 }
 0x78d   : > { %14339 = vmatpush3.bf16.msra.mxu0 %v20023_v2  ;;  %v21828_v17 = vand.u32 4294901760, %v20025_v10  ;;  %v10030_v34 = vand.u32 4294901760, %v10029_v62  ;;  %21830 = vst [vmem:[#allocation16_spill] sm:$0xff] %v20070_v57  ;;  %v21831_v60 = vand.u32 4294901760, %v20035_v6  ;;  %v20077_v51 = vsel %vm11465_vm13, %v11435_v41, 0.0 }
 0x78e   : > { %v20066_v56 = vpack.c.bf16 %v10785_v45, %v21829_v63  ;;  %v20068_v16 = vsub.f32 %v10774_v31, %v10785_v45  ;;  %v20083_v63 = vsel %vm11465_vm13, %v11439_v25, 0.0  ;;  %v21832_v45 = vld [vmem:[#allocation120_spill] sm:$0xff]  ;;  %v20088_v31 = vsel %vm11465_vm13, %v11441_v42, 0.0 }
 0x78f   : > { %v10047_v55 = vsub.f32 %v20025_v10, %v21828_v17  ;;  %15010 = vset.pattern.permute.xlu1 %v21638_v39  ;;  %v10456_v11 = vpop.permute.xlu1 %10455  ;;  %v10861_v1 = vsub.f32 %v20035_v6, %v21831_v60  ;;  %v20080_v17 = vsel %vm11465_vm13, %v11437_v14, 0.0  ;;  %v20091_v62 = vsel %vm11465_vm13, %v11443_v0, 0.0 }
 0x790   : > { %v21274_v49 = vand.u32 4294901760, %v20068_v16  ;;  %9665 = vperm.xlu1 %15010, %v21832_v45   ;;  %14041 = vmatmul.mubr.f32.vlgmr.msra.gmra.mrb[38].mxu0 %v10030_v34  ;;  %v20096_v41 = vsel %vm11465_vm13, %v11445_v8, 0.0  ;;  %v11676_v25 = vmul.f32 %v19633_v7, %v21806_v22  ;;  %v21833_v0 = vand.u32 4294901760, %v19881_v43 }
 0x791   : > { %v10048_v39 = vand.u32 4294901760, %v10047_v55  ;;  %14361 = vmatprep.subr.bf16.mxu1 %v20066_v56  ;;  %14047 = vmatprep.mubr.f32.mxu0 %v19843_v52  ;;  %v10862_v14 = vand.u32 4294901760, %v10861_v1  ;;  %v11678_v55 = vmul.f32 %v19633_v7, %v21807_v24  ;;  %v20109_v60 = vsel %vm11465_vm13, %v11447_v28, 0.0  ;;  %v21834_v1 = vld [vmem:[#allocation71_spill] sm:$0xff] }
 0x792   : > { %v10879_v42 = vsub.f32 %v20068_v16, %v21274_v49  ;;  %14363 = vmatpush3.bf16.msra.mxu1 %v20066_v56  ;;  %v11680_v8 = vmul.f32 %v19633_v7, %v21808_v50  ;;  %v10499_v57 = vsel %vm1978_vm1, %v10456_v11, %v21834_v1  ;;  %v11682_v24 = vmul.f32 %v19633_v7, %v21810_v53  ;;  %v20127_v1 = vpop.permute.xlu0 %9644  ;;  %v21861_v50 = vld [vmem:[#allocation45_spill] sm:$0xff] }
 0x793   : > { %v14340_v34 = vpack.c.bf16 %v10048_v39, %v21833_v0  ;;  %v10459_v22 = vpop.permute.xlu1 %10458  ;;  %v11684_v49 = vmul.f32 %v19633_v7, %v21811_v38  ;;  %v11686_v43 = vmul.f32 %v19633_v7, %v21813_v44  ;;  %v11688_v0 = vmul.f32 %v19633_v7, %v21814_v5  ;;  %21835 = vst [vmem:[#allocation15_spill] sm:$0xff] %v20127_v1  ;;  %v21860_v38 = vld [vmem:[#allocation43_spill] sm:$0xff] }
 0x794   : > { %15011 = vset.pattern.permute.xlu1 %v21634_v35  ;;  %v10500_v28 = vsel %vm1981_vm2, %v10459_v22, %v10499_v57  ;;  %v10880_v39 = vand.u32 4294901760, %v10879_v42  ;;  %v11690_v11 = vmul.f32 %v19633_v7, %v21815_v40  ;;  %v14344_v44 = vpack.c.bf16 %v20025_v10, %v19815_v47 }
 0x795   : > { %14341 = vmatprep.subr.bf16.mxu0 %v14340_v34  ;;  %10497 = vperm.xlu1 %15011, %v21832_v45   ;;  %v20133_v35 = vsel %vm11465_vm13, %v11676_v25, 0.0  ;;  %v20136_v57 = vsel %vm11465_vm13, %v11678_v55, 0.0  ;;  %v11660_v22 = vmul.f32 %v19633_v7, %v21817_v12  ;;  %v21836_v42 = vand.u32 4294901760, %v19896_v13 }
 0x796   : > { %14083 = vmatmul.mubr.f32.vlgmr.msra.gmra.mrb[36].mxu1 %v10862_v14  ;;  %14343 = vmatpush3.bf16.msra.mxu0 %v14340_v34  ;;  %v20144_v14 = vsel %vm11465_vm13, %v11680_v8, 0.0  ;;  %v11662_v5 = vmul.f32 %v19633_v7, %v21818_v4  ;;  %v11664_v25 = vmul.f32 %v19633_v7, %v21820_v46  ;;  %v10501_v55 = vsel %vm1984_vm3, %v19579_v3, %v10500_v28 }
 0x797   : > { %14089 = vmatprep.mubr.f32.mxu1 %v19886_v15  ;;  %v14364_v40 = vpack.c.bf16 %v10880_v39, %v21836_v42  ;;  %21837 = vst [vmem:[#allocation58_spill] sm:$0xff] %v20144_v14  ;;  %14345 = vmatprep.subr.bf16.mxu0 %v14344_v44  ;;  %v10465_v12 = vpop.permute.xlu1 %10464  ;;  %v20153_v34 = vsel %vm11465_vm13, %v11682_v24, 0.0  ;;  %v11666_v13 = vmul.f32 %v19633_v7, %v21822_v26  ;;  %v20163_v42 = vsel %vm11465_vm13, %v11684_v49, 0.0  ;;  %v21859_v26 = vld [vmem:[#allocation17_spill] sm:$0xff] }
 0x798   : > { %21838 = vst [vmem:[#allocation98_spill] sm:$0xff] %v20153_v34  ;;  %v11668_v8 = vmul.f32 %v19633_v7, %v21823_v19  ;;  %v20160_v39 = vsel %vm1987_vm4, %v10465_v12, %v10501_v55  ;;  %21839 = vst [vmem:[#allocation101_spill] sm:$0xff] %v20163_v42  ;;  %v20166_v46 = vsel %vm11465_vm13, %v11686_v43, 0.0  ;;  %v11670_v3 = vmul.f32 %v19633_v7, %v21824_v58  ;;  %v20198_v55 = vpop.permute.xlu0 %10476 }
 0x799   : > { %14365 = vmatprep.subr.bf16.mxu1 %v14364_v40  ;;  %21840 = vst [vmem:[#allocation54_spill] sm:$0xff] %v20166_v46  ;;  %15012 = vset.pattern.permute.xlu1 %v21635_v36  ;;  %v20173_v24 = vsel %vm11465_vm13, %v11688_v0, 0.0  ;;  %v20176_v12 = vsel %vm11465_vm13, %v11690_v11, 0.0  ;;  %v20180_v49 = vmul.f32 %v19633_v7, %v21825_v20  ;;  %v20184_v43 = vmul.f32 %v19633_v7, %v21826_v54 }
 0x79a   : > { %14048 = vmatmul.mubr.f32.vlgmr.msra.gmra.mrb[38].mxu0 %v19975_v9  ;;  %21841 = vst [vmem:[#allocation99_spill] sm:$0xff] %v20173_v24  ;;  %21842 = vst [vmem:[#allocation59_spill] sm:$0xff] %v20176_v12  ;;  %11329 = vperm.xlu1 %15012, %v21832_v45   ;;  %v14368_v36 = vpack.c.bf16 %v20068_v16, %v19826_v23  ;;  %v20190_v28 = vsel %vm11465_vm13, %v11660_v22, 0.0  ;;  %v20193_v0 = vsel %vm11465_vm13, %v11662_v5, 0.0  ;;  %v20196_v11 = vsel %vm11465_vm13, %v11664_v25, 0.0 }
 0x79b   : > { %14347 = vmatpush3.bf16.msra.mxu0 %v14344_v44  ;;  %21843 = vst [vmem:[#allocation70_spill] sm:$0xff] %v20190_v28  ;;  %21844 = vst [vmem:[#allocation95_spill] sm:$0xff] %v20193_v0  ;;  %14054 = vmatprep.mubr.f32.mxu0 %v19876_v32  ;;  %v20201_v7 = vpop.permute.xlu1 %11429  ;;  %v21847_v44 = vand.u32 4294901760, %v19815_v47  ;;  %v21848_v54 = vand.u32 4294901760, %v20025_v10  ;;  %v21849_v22 = vand.u32 4294901760, %v19826_v23  ;;  %v21850_v5 = vand.u32 4294901760, %v20068_v16 }
 0x79c   : > { %21845 = vst [vmem:[#allocation62_spill] sm:$0xff] %v20196_v11  ;;  %21846 = vst [vmem:[#allocation77_spill] sm:$0xff] %v20198_v55  ;;  %14367 = vmatpush3.bf16.msra.mxu1 %v14364_v40  ;;  %v20216_v25 = vsel %vm11465_vm13, %v11666_v13, 0.0  ;;  %v20219_v19 = vsel %vm11465_vm13, %v11668_v8, 0.0  ;;  %14349 = vmatprep.subr.bf16.mxu0 %v20023_v2  ;;  %v21853_v47 = vld [vmem:[#allocation52_spill] sm:$0xff]  ;;  %v21857_v13 = vld [vmem:[#allocation11_spill] sm:$0xff]  ;;  %v11460_v4 = vmul.f32 %v20201_v7, %v21859_v26  ;;  %v20257_v12 = vpop.permute.xlu0 %9650 }
 0x79d   : > { %v20207_v20 = vpack.c.bf16 %v21848_v54, %v21847_v44  ;;  %v20213_v58 = vpack.c.bf16 %v21850_v5, %v21849_v22  ;;  %21851 = vst [vmem:[#allocation63_spill] sm:$0xff] %v20216_v25  ;;  %21852 = vst [vmem:[#allocation64_spill] sm:$0xff] %v20219_v19  ;;  %14369 = vmatprep.subr.bf16.mxu1 %v14368_v36  ;;  %v11450_v10 = vmul.f32 %v20201_v7, %v21853_v47  ;;  %v21854_v40 = vld [vmem:[#allocation12_spill] sm:$0xff]  ;;  %v21858_v8 = vld [vmem:[#allocation41_spill] sm:$0xff] }
 0x79e   : > { %v11452_v54 = vmul.f32 %v20201_v7, %v21854_v40  ;;  %v21855_v23 = vld [vmem:[#allocation32_spill] sm:$0xff]  ;;  %v20229_v44 = vsel %vm11465_vm13, %v11670_v3, 0.0  ;;  %v11456_v22 = vmul.f32 %v20201_v7, %v21857_v13  ;;  %v11458_v5 = vmul.f32 %v20201_v7, %v21858_v8  ;;  %21862 = vst [vmem:[#allocation78_spill] sm:$0xff] %v20257_v12 }
 0x79f   : > { %v11454_v16 = vmul.f32 %v20201_v7, %v21855_v23  ;;  %21856 = vst [vmem:[#allocation30_spill] sm:$0xff] %v20229_v44  ;;  %v11462_v53 = vmul.f32 %v20201_v7, %v21860_v38  ;;  %14090 = vmatmul.mubr.f32.vlgmr.msra.gmra.mrb[36].mxu1 %v20015_v18  ;;  %v11464_v1 = vmul.f32 %v20201_v7, %v21861_v50  ;;  %v11539_v3 = vsel %vm11465_vm13, %v11450_v10, 0.0  ;;  %v20246_v19 = vpop.permute.xlu1 %11656 }
 0x7a0   : > { %v11548_v55 = vsel %vm11465_vm13, %v11452_v54, 0.0  ;;  %14371 = vmatpush3.bf16.msra.mxu1 %v14368_v36  ;;  %14096 = vmatprep.mubr.f32.mxu1 %v19925_v21  ;;  %v11540_v25 = vadd.f32 %v11539_v3, %v19987_v61  ;;  %v11566_v28 = vsel %vm11465_vm13, %v11456_v22, 0.0  ;;  %v11575_v54 = vsel %vm11465_vm13, %v11458_v5, 0.0 }
 0x7a1   : > { %v11557_v44 = vsel %vm11465_vm13, %v11454_v16, 0.0  ;;  %v11549_v11 = vadd.f32 %v11548_v55, %v19996_v37  ;;  %14373 = vmatprep.subr.bf16.mxu1 %v20066_v56  ;;  %v11567_v10 = vadd.f32 %v11566_v28, %v20003_v33  ;;  %v11584_v36 = vsel %vm11465_vm13, %v11460_v4, 0.0 }
 0x7a2   : > { %v11558_v0 = vadd.f32 %v11557_v44, %v20000_v48  ;;  %v11593_v16 = vsel %vm11465_vm13, %v11462_v53, 0.0  ;;  %14055 = vmatmul.mubr.f32.vlgmr.msra.gmra.mrb[38].mxu0 %v19991_v30  ;;  %v11541_v61 = vrot.slane %v11540_v25, 4  ;;  %v11576_v48 = vadd.f32 %v11575_v54, %v20006_v59 }
 0x7a3   : > { %v11550_v37 = vrot.slane %v11549_v11, 4  ;;  %14351 = vmatpush3.bf16.msra.mxu0 %v20023_v2  ;;  %v21863_v44 = vand.u32 4294901760, %v19876_v32  ;;  %v11568_v33 = vrot.slane %v11567_v10, 4  ;;  %v11585_v28 = vadd.f32 %v11584_v36, %v20011_v29  ;;  %v20268_v22 = vpop.permute.xlu1 %11882  ;;  %v21865_v32 = vld [vmem:[#allocation67_spill] sm:$0xff] }
 0x7a4   : > { %v11559_v55 = vrot.slane %v11558_v0, 4  ;;  %v11594_v4 = vadd.f32 %v11593_v16, %v20030_v27  ;;  %v11602_v53 = vsel %vm11465_vm13, %v11464_v1, 0.0  ;;  %14353 = vmatprep.subr.bf16.mxu0 %v20207_v20  ;;  %21864 = vst [vmem:[#allocation66_spill] sm:$0xff] %v20268_v22  ;;  %v11542_v5 = vadd.f32 %v11541_v61, %v11540_v25  ;;  %v20272_v22 = vpop.permute.xlu0 %10482 }
 0x7a5   : > { %14061 = vmatprep.mubr.f32.mxu0 %v21863_v44  ;;  %v11551_v3 = vadd.f32 %v11550_v37, %v11549_v11  ;;  %v11577_v59 = vrot.slane %v11576_v48, 4  ;;  %v11569_v54 = vadd.f32 %v11568_v33, %v11567_v10  ;;  %v11586_v24 = vrot.slane %v11585_v28, 4  ;;  %21866 = vst [vmem:[#allocation111_spill] sm:$0xff] %v20272_v22 }
 0x7a6   : > { %v11560_v12 = vadd.f32 %v11559_v55, %v11558_v0  ;;  %v11595_v46 = vrot.slane %v11594_v4, 4  ;;  %v11603_v44 = vadd.f32 %v11602_v53, %v21865_v32  ;;  %v11543_v42 = vrot.slane %v11542_v5, 2  ;;  %v21868_v55 = vld [vmem:[#allocation76_spill] sm:$0xff] }
 0x7a7   : > { %v11552_v34 = vrot.slane %v11551_v3, 2  ;;  %v11578_v36 = vadd.f32 %v11577_v59, %v11576_v48  ;;  %14097 = vmatmul.mubr.f32.vlgmr.msra.gmra.mrb[36].mxu1 %v20035_v6  ;;  %v11570_v27 = vrot.slane %v11569_v54, 2  ;;  %v11587_v1 = vadd.f32 %v11586_v24, %v11585_v28  ;;  %v11285_v11 = vpop.permute.xlu1 %11284 }
 0x7a8   : > { %v11561_v29 = vrot.slane %v11560_v12, 2  ;;  %v11596_v16 = vadd.f32 %v11595_v46, %v11594_v4  ;;  %v11604_v14 = vrot.slane %v11603_v44, 4  ;;  %14375 = vmatpush3.bf16.msra.mxu1 %v20066_v56  ;;  %v21867_v0 = vand.u32 4294901760, %v19925_v21 }
 0x7a9   : > { %v11544_v25 = vadd.f32 %v11543_v42, %v11542_v5  ;;  %v11553_v10 = vadd.f32 %v11552_v34, %v11551_v3  ;;  %v11579_v37 = vrot.slane %v11578_v36, 2  ;;  %14377 = vmatprep.subr.bf16.mxu1 %v20213_v58  ;;  %v11331_v48 = vsel %vm1978_vm1, %v21868_v55, %v11285_v11 }
 0x7aa   : > { %14103 = vmatprep.mubr.f32.mxu1 %v21867_v0  ;;  %v11562_v61 = vadd.f32 %v11561_v29, %v11560_v12  ;;  %v11571_v24 = vadd.f32 %v11570_v27, %v11569_v54  ;;  %v11588_v46 = vrot.slane %v11587_v1, 2  ;;  %v11597_v33 = vrot.slane %v11596_v16, 2 }
 0x7ab   : > { %v21869_v28 = vand.u32 4294901760, %v19991_v30  ;;  %v11545_v4 = vrot.slane %v11544_v25, 1  ;;  %v11554_v53 = vrot.slane %v11553_v10, 1  ;;  %v11580_v59 = vadd.f32 %v11579_v37, %v11578_v36  ;;  %v11291_v3 = vpop.permute.xlu1 %11290  ;;  %v20286_v37 = vpop.permute.xlu0 %10485 }
 0x7ac   : > { %v11563_v21 = vrot.slane %v11562_v61, 1  ;;  %v11572_v34 = vrot.slane %v11571_v24, 1  ;;  %v11589_v42 = vadd.f32 %v11588_v46, %v11587_v1  ;;  %v11598_v12 = vadd.f32 %v11597_v33, %v11596_v16  ;;  %21870 = vst [vmem:[#allocation68_spill] sm:$0xff] %v20286_v37  ;;  %v21872_v16 = vld [vmem:[#allocation119_spill] sm:$0xff]  ;;  %v21875_v33 = vld [vmem:[#allocation28_spill] sm:$0xff] }
 0x7ad   : > { %14062 = vmatmul.mubr.f32.vlgmr.msra.gmra.mrb[38].mxu0 %v21869_v28  ;;  %v11605_v5 = vadd.f32 %v11604_v14, %v11603_v44  ;;  %v11546_v54 = vadd.f32 %v11545_v4, %v11544_v25  ;;  %v11555_v32 = vadd.f32 %v11554_v53, %v11553_v10  ;;  %v11581_v30 = vrot.slane %v11580_v59, 1  ;;  %v21871_v28 = vld [vmem:[#allocation92_spill] sm:$0xff] }
 0x7ae   : > { %14355 = vmatpush3.bf16.msra.mxu0 %v20207_v20  ;;  %14068 = vmatprep.mubr.f32.mxu0 %v19843_v52  ;;  %v11564_v29 = vadd.f32 %v11563_v21, %v11562_v61  ;;  %v11332_v27 = vsel %vm1981_vm2, %v11291_v3, %v11331_v48  ;;  %v11573_v0 = vadd.f32 %v11572_v34, %v11571_v24  ;;  %v11590_v11 = vrot.slane %v11589_v42, 1  ;;  %v21874_v61 = vld [vmem:[#allocation97_spill] sm:$0xff]  ;;  %v21876_v53 = vld [vmem:[#allocation104_spill] sm:$0xff] }
 0x7af   : > { %14357 = vmatprep.subr.bf16.mxu0 %v20023_v2  ;;  %v11599_v36 = vrot.slane %v11598_v12, 1  ;;  %v11582_v20 = vadd.f32 %v11581_v30, %v11580_v59  ;;  %v11606_v55 = vrot.slane %v11605_v5, 2  ;;  %v11618_v1 = vmul.f32 %v11546_v54, %v21871_v28  ;;  %v11294_v24 = vpop.permute.xlu1 %11293  ;;  %v21880_v30 = vld [vmem:[#allocation31_spill] sm:$0xff] }
 0x7b0   : > { %v11619_v14 = vmul.f32 %v11555_v32, %v21872_v16  ;;  %v21873_v44 = vand.u32 4294901760, %v20035_v6  ;;  %v11591_v25 = vadd.f32 %v11590_v11, %v11589_v42  ;;  %v11620_v46 = vmul.f32 %v11564_v29, %v21874_v61  ;;  %v21877_v42 = vld [vmem:[#allocation108_spill] sm:$0xff]  ;;  %v21879_v29 = vld [vmem:[#allocation33_spill] sm:$0xff]  ;;  %v21881_v11 = vld [vmem:[#allocation35_spill] sm:$0xff] }
 0x7b1   : > { %v11600_v10 = vadd.f32 %v11599_v36, %v11598_v12  ;;  %v11621_v48 = vmul.f32 %v11573_v0, %v21875_v33  ;;  %v11607_v4 = vadd.f32 %v11606_v55, %v11605_v5  ;;  %v11622_v21 = vmul.f32 %v11582_v20, %v21876_v53  ;;  %v21882_v20 = vld [vmem:[#allocation38_spill] sm:$0xff] }
 0x7b2   : > { %14104 = vmatmul.mubr.f32.vlgmr.msra.gmra.mrb[36].mxu1 %v21873_v44  ;;  %v12101_v59 = vsel %vm1978_vm1, %v11619_v14, %v11618_v1  ;;  %v20300_v6 = vsel %vm11465_vm13, %v20180_v49, 0.0  ;;  %v20304_v34 = vsel %vm1984_vm3, %v11294_v24, %v11332_v27  ;;  %v11623_v12 = vmul.f32 %v11591_v25, %v21877_v42  ;;  %v20326_v14 = vpop.permute.xlu0 %11317 }
 0x7b3   : > { %14379 = vmatpush3.bf16.msra.mxu1 %v20213_v58  ;;  %14110 = vmatprep.mubr.f32.mxu1 %v19886_v15  ;;  %v21878_v58 = vld [vmem:[#allocation112_spill] sm:$0xff]  ;;  %v12102_v54 = vsel %vm1981_vm2, %v11620_v46, %v12101_v59  ;;  %v11608_v5 = vrot.slane %v11607_v4, 1  ;;  %v11434_v49 = vmul.f32 %v20201_v7, %v21879_v29  ;;  %v11436_v0 = vmul.f32 %v20201_v7, %v21880_v30 }
 0x7b4   : > { %14381 = vmatprep.subr.bf16.mxu1 %v20066_v56  ;;  %v11624_v3 = vmul.f32 %v11600_v10, %v21878_v58  ;;  %v12103_v32 = vsel %vm1984_vm3, %v11621_v48, %v12102_v54  ;;  %v11438_v36 = vmul.f32 %v20201_v7, %v21881_v11  ;;  %v11440_v55 = vmul.f32 %v20201_v7, %v21882_v20  ;;  %v21885_v10 = vld [vmem:[#allocation22_spill] sm:$0xff]  ;;  %v10468_v48 = vpop.permute.xlu1 %10467  ;;  %v21887_v54 = vld [vmem:[#allocation40_spill] sm:$0xff] }
 0x7b5   : > { %14069 = vmatmul.mubr.f32.vlgmr.msra.gmra.mrb[38].mxu0 %v19975_v9  ;;  %v12104_v27 = vsel %vm1987_vm4, %v11622_v21, %v12103_v32  ;;  %v20324_v1 = vsel %vm11465_vm13, %v20184_v43, 0.0  ;;  %21883 = vst [vmem:[#allocation116_spill] sm:$0xff] %v20326_v14  ;;  %v11609_v44 = vadd.f32 %v11608_v5, %v11607_v4  ;;  %v11444_v46 = vmul.f32 %v20201_v7, %v21885_v10  ;;  %v21886_v21 = vld [vmem:[#allocation25_spill] sm:$0xff]  ;;  %v21889_v5 = vld [vmem:[#allocation47_spill] sm:$0xff] }
 0x7b6   : > { %14359 = vmatpush3.bf16.msra.mxu0 %v20023_v2  ;;  %14075 = vmatprep.mubr.f32.mxu0 %v19843_v52  ;;  %v12105_v25 = vsel %vm1990_vm5, %v11623_v12, %v12104_v27  ;;  %v21884_v2 = vld [vmem:[#allocation20_spill] sm:$0xff]  ;;  %v11446_v59 = vmul.f32 %v20201_v7, %v21886_v21  ;;  %v11448_v43 = vmul.f32 %v20201_v7, %v21887_v54  ;;  %v11467_v32 = vsel %vm11465_vm13, %v11434_v49, 0.0 }
 0x7b7   : > { %v11442_v52 = vmul.f32 %v20201_v7, %v21884_v2  ;;  %v12106_v24 = vsel %vm1993_vm6, %v11624_v3, %v12105_v25  ;;  %v20341_v4 = vsel %vm1990_vm5, %v10468_v48, %v20160_v39  ;;  %v11625_v12 = vmul.f32 %v11609_v44, %v21832_v45 }
 0x7b8   : > { %21888 = vst [vmem:[#allocation69_spill] sm:$0xff] %v20341_v4  ;;  %v11468_v27 = vadd.f32 %v11467_v32, %v21889_v5  ;;  %v11476_v37 = vsel %vm11465_vm13, %v11436_v0, 0.0  ;;  %v11485_v25 = vsel %vm11465_vm13, %v11438_v36, 0.0  ;;  %v11494_v7 = vsel %vm11465_vm13, %v11440_v55, 0.0 }
 0x7b9   : > { %v11477_v3 = vadd.f32 %v11476_v37, %v20077_v51  ;;  %v11503_v49 = vsel %vm11465_vm13, %v11442_v52, 0.0  ;;  %v12107_v39 = vsel %vm1996_vm7, %v11625_v12, %v12106_v24  ;;  %v11486_v48 = vadd.f32 %v11485_v25, %v20080_v17  ;;  %v11300_v17 = vpop.permute.xlu1 %11299 }
 0x7ba   : > { %14111 = vmatmul.mubr.f32.vlgmr.msra.gmra.mrb[36].mxu1 %v20015_v18  ;;  %v11469_v44 = vrot.slane %v11468_v27, 4  ;;  %v11495_v0 = vadd.f32 %v11494_v7, %v20083_v63  ;;  %12110 = vrot.lane.b32.xlu1 %v12107_v39, %s15396_s25  ;;  %v11504_v37 = vadd.f32 %v11503_v49, %v20088_v31  ;;  %v11512_v36 = vsel %vm11465_vm13, %v11444_v46, 0.0 }
 0x7bb   : > { %14383 = vmatpush3.bf16.msra.mxu1 %v20066_v56  ;;  %14117 = vmatprep.mubr.f32.mxu1 %v19886_v15  ;;  %v11478_v51 = vrot.slane %v11477_v3, 4  ;;  %v11521_v55 = vsel %vm11465_vm13, %v11446_v59, 0.0  ;;  %v20360_v56 = vpop.permute.xlu0 %9656  ;;  %v11487_v52 = vrot.slane %v11486_v48, 4  ;;  %v11513_v32 = vadd.f32 %v11512_v36, %v20091_v62 }
 0x7bc   : > { %21890 = vst [vmem:[#allocation75_spill] sm:$0xff] %v20360_v56  ;;  %v11470_v15 = vadd.f32 %v11469_v44, %v11468_v27  ;;  %v11496_v24 = vrot.slane %v11495_v0, 4  ;;  %v11505_v12 = vrot.slane %v11504_v37, 4  ;;  %v11522_v5 = vadd.f32 %v11521_v55, %v20096_v41 }
 0x7bd   : > { %14076 = vmatmul.mubr.f32.vlgmr.msra.gmra.mrb[38].mxu0 %v19975_v9  ;;  %v11479_v63 = vadd.f32 %v11478_v51, %v11477_v3  ;;  %v11530_v31 = vsel %vm11465_vm13, %v11448_v43, 0.0  ;;  %v11488_v46 = vadd.f32 %v11487_v52, %v11486_v48  ;;  %v11514_v59 = vrot.slane %v11513_v32, 4 }
 0x7be   : > { %v11471_v25 = vrot.slane %v11470_v15, 2  ;;  %v11497_v7 = vadd.f32 %v11496_v24, %v11495_v0  ;;  %v11506_v39 = vadd.f32 %v11505_v12, %v11504_v37  ;;  %v11523_v27 = vrot.slane %v11522_v5, 4  ;;  %v20368_v41 = vpop.permute.xlu1 %10473 }
 0x7bf   : > { %v11480_v49 = vrot.slane %v11479_v63, 2  ;;  %v11531_v44 = vadd.f32 %v11530_v31, %v20109_v60  ;;  %v11489_v62 = vrot.slane %v11488_v46, 2  ;;  %v11515_v9 = vadd.f32 %v11514_v59, %v11513_v32  ;;  %21891 = vst [vmem:[#allocation81_spill] sm:$0xff] %v20368_v41  ;;  %v20370_v43 = vpop.permute.xlu0 %10488 }
 0x7c0   : > { %v11472_v56 = vadd.f32 %v11471_v25, %v11470_v15  ;;  %v11498_v36 = vrot.slane %v11497_v7, 2  ;;  %v11507_v3 = vrot.slane %v11506_v39, 2  ;;  %v11524_v51 = vadd.f32 %v11523_v27, %v11522_v5  ;;  %21892 = vst [vmem:[#allocation27_spill] sm:$0xff] %v20370_v43  ;;  %v21893_v43 = vld [vmem:[#allocation53_spill] sm:$0xff] }
 0x7c1   : > { %v11481_v4 = vadd.f32 %v11480_v49, %v11479_v63  ;;  %v11532_v14 = vrot.slane %v11531_v44, 4  ;;  %v11490_v0 = vadd.f32 %v11489_v62, %v11488_v46  ;;  %v11516_v55 = vrot.slane %v11515_v9, 2 }
 0x7c2   : > { %14118 = vmatmul.mubr.f32.vlgmr.msra.gmra.mrb[36].mxu1 %v20015_v18  ;;  %v11473_v48 = vrot.slane %v11472_v56, 1  ;;  %v11499_v37 = vadd.f32 %v11498_v36, %v11497_v7  ;;  %v11508_v60 = vadd.f32 %v11507_v3, %v11506_v39  ;;  %v11525_v15 = vrot.slane %v11524_v51, 2  ;;  %v21894_v36 = vld [vmem:[#allocation61_spill] sm:$0xff] }
 0x7c3   : > { %v11482_v52 = vrot.slane %v11481_v4, 1  ;;  %v11533_v24 = vadd.f32 %v11532_v14, %v11531_v44  ;;  %v11491_v32 = vrot.slane %v11490_v0, 1  ;;  %v11517_v31 = vadd.f32 %v11516_v55, %v11515_v9  ;;  %v20373_v46 = vpop.permute.xlu1 %8803  ;;  %v21896_v9 = vld [vmem:[#allocation65_spill] sm:$0xff] }
 0x7c4   : > { %v11474_v12 = vadd.f32 %v11473_v48, %v11472_v56  ;;  %v11500_v63 = vrot.slane %v11499_v37, 1  ;;  %v11509_v25 = vrot.slane %v11508_v60, 1  ;;  %v11526_v59 = vadd.f32 %v11525_v15, %v11524_v51  ;;  %v20376_v56 = vpop.permute.xlu0 %11323  ;;  %v21897_v3 = vld [vmem:[#allocation73_spill] sm:$0xff] }
 0x7c5   : > { %v11483_v5 = vadd.f32 %v11482_v52, %v11481_v4  ;;  %v11534_v18 = vrot.slane %v11533_v24, 2  ;;  %v11492_v49 = vadd.f32 %v11491_v32, %v11490_v0  ;;  %v11518_v41 = vrot.slane %v11517_v31, 1  ;;  %21895 = vst [vmem:[#allocation88_spill] sm:$0xff] %v20376_v56  ;;  %v21898_v48 = vld [vmem:[#allocation57_spill] sm:$0xff]  ;;  %v21899_v52 = vld [vmem:[#allocation80_spill] sm:$0xff] }
 0x7c6   : > { %v11501_v27 = vadd.f32 %v11500_v63, %v11499_v37  ;;  %v11610_v22 = vmul.f32 %v11474_v12, %v21893_v43  ;;  %v11510_v7 = vadd.f32 %v11509_v25, %v11508_v60  ;;  %v11527_v62 = vrot.slane %v11526_v59, 1 }
 0x7c7   : > { %v11535_v39 = vadd.f32 %v11534_v18, %v11533_v24  ;;  %v11611_v14 = vmul.f32 %v11483_v5, %v21894_v36  ;;  %v11519_v44 = vadd.f32 %v11518_v41, %v11517_v31  ;;  %v11612_v4 = vmul.f32 %v11492_v49, %v21896_v9  ;;  %v21900_v24 = vld [vmem:[#allocation86_spill] sm:$0xff]  ;;  %v21902_v5 = vld [vmem:[#allocation84_spill] sm:$0xff] }
 0x7c8   : > { %v11613_v51 = vmul.f32 %v11501_v27, %v21897_v3  ;;  %v11334_v0 = vsel %vm1987_vm4, %v21898_v48, %v20304_v34  ;;  %v11528_v37 = vadd.f32 %v11527_v62, %v11526_v59  ;;  %v11614_v15 = vmul.f32 %v11510_v7, %v21899_v52  ;;  %v20396_v18 = vpop.permute.xlu1 %11308  ;;  %v21903_v7 = vld [vmem:[#allocation107_spill] sm:$0xff] }
 0x7c9   : > { %v11536_v55 = vrot.slane %v11535_v39, 1  ;;  %v12094_v60 = vsel %vm1978_vm1, %v11611_v14, %v11610_v22  ;;  %v11615_v12 = vmul.f32 %v11519_v44, %v21900_v24  ;;  %v20388_v41 = vsel %vm1990_vm5, %v11300_v17, %v11334_v0 }
 0x7ca   : > { %v12095_v32 = vsel %vm1981_vm2, %v11612_v4, %v12094_v60  ;;  %21901 = vst [vmem:[#allocation93_spill] sm:$0xff] %v20388_v41  ;;  %v11677_v63 = vmul.f32 %v20246_v19, %v21853_v47  ;;  %v11616_v25 = vmul.f32 %v11528_v37, %v21902_v5  ;;  %v11679_v59 = vmul.f32 %v20246_v19, %v21854_v40  ;;  %v20411_v4 = vpop.permute.xlu0 %9662 }
 0x7cb   : > { %v11537_v31 = vadd.f32 %v11536_v55, %v11535_v39  ;;  %v12096_v34 = vsel %vm1984_vm3, %v11613_v51, %v12095_v32  ;;  %v11681_v49 = vmul.f32 %v20246_v19, %v21855_v23  ;;  %v11683_v17 = vmul.f32 %v20246_v19, %v21857_v13  ;;  %v21904_v32 = vld [vmem:[#allocation58_spill] sm:$0xff] }
 0x7cc   : > { %v12097_v22 = vsel %vm1987_vm4, %v11614_v15, %v12096_v34  ;;  %v11685_v27 = vmul.f32 %v20246_v19, %v21858_v8  ;;  %v11687_v14 = vmul.f32 %v20246_v19, %v21859_v26  ;;  %v11689_v44 = vmul.f32 %v20246_v19, %v21860_v38  ;;  %v21909_v38 = vld [vmem:[#allocation99_spill] sm:$0xff] }
 0x7cd   : > { %v11617_v62 = vmul.f32 %v11537_v31, %v21903_v7  ;;  %v12098_v39 = vsel %vm1990_vm5, %v11615_v12, %v12097_v22  ;;  %v11691_v48 = vmul.f32 %v20246_v19, %v21861_v50  ;;  %v11765_v0 = vsel %vm11465_vm13, %v11677_v63, 0.0  ;;  %v20427_v22 = vpop.permute.xlu1 %9647 }
 0x7ce   : > { %v12099_v51 = vsel %vm1993_vm6, %v11616_v25, %v12098_v39  ;;  %v11774_v37 = vsel %vm11465_vm13, %v11679_v59, 0.0  ;;  %v11766_v15 = vadd.f32 %v11765_v0, %v20133_v35  ;;  %v11783_v12 = vsel %vm11465_vm13, %v11681_v49, 0.0  ;;  %v21905_v39 = vld [vmem:[#allocation98_spill] sm:$0xff] }
 0x7cf   : > { %v12100_v55 = vsel %vm1996_vm7, %v11617_v62, %v12099_v51  ;;  %v11775_v60 = vadd.f32 %v11774_v37, %v20136_v57  ;;  %v11784_v31 = vadd.f32 %v11783_v12, %v21904_v32  ;;  %v11792_v25 = vsel %vm11465_vm13, %v11683_v17, 0.0  ;;  %v21906_v51 = vld [vmem:[#allocation101_spill] sm:$0xff]  ;;  %v21907_v49 = vld [vmem:[#allocation54_spill] sm:$0xff] }
 0x7d0   : > { %12108 = vrot.lane.b32.xlu0 %v12100_v55, %s15396_s25  ;;  %v11801_v34 = vsel %vm11465_vm13, %v11685_v27, 0.0  ;;  %v11810_v63 = vsel %vm11465_vm13, %v11687_v14, 0.0  ;;  %v11767_v59 = vrot.slane %v11766_v15, 4  ;;  %v11793_v35 = vadd.f32 %v11792_v25, %v21905_v39  ;;  %v20434_v14 = vpop.permute.xlu0 %11305  ;;  %v21910_v25 = vld [vmem:[#allocation59_spill] sm:$0xff]  ;;  %s20781_s25 = scalar_lea.vmem [#allocation4], %s12511_s3 }
 0x7d1   : > { %v11776_v62 = vrot.slane %v11775_v60, 4  ;;  %v11802_v57 = vadd.f32 %v11801_v34, %v21906_v51  ;;  %v11785_v0 = vrot.slane %v11784_v31, 4  ;;  %v11811_v37 = vadd.f32 %v11810_v63, %v21907_v49  ;;  %21908 = vst [vmem:[#allocation79_spill] sm:$0xff] %v20434_v14 }
 0x7d2   : > { %v11819_v55 = vsel %vm11465_vm13, %v11689_v44, 0.0  ;;  %v11828_v12 = vsel %vm11465_vm13, %v11691_v48, 0.0  ;;  %v11768_v17 = vadd.f32 %v11767_v59, %v11766_v15  ;;  %v11794_v27 = vrot.slane %v11793_v35, 4  ;;  %v20438_v49 = vpop.permute.xlu1 %10479 }
 0x7d3   : > { %v11777_v32 = vadd.f32 %v11776_v62, %v11775_v60  ;;  %v11803_v56 = vrot.slane %v11802_v57, 4  ;;  %v11786_v41 = vadd.f32 %v11785_v0, %v11784_v31  ;;  %v11812_v50 = vrot.slane %v11811_v37, 4 }
 0x7d4   : > { %v11820_v26 = vadd.f32 %v11819_v55, %v21909_v38  ;;  %v11829_v39 = vadd.f32 %v11828_v12, %v21910_v25  ;;  %v11769_v34 = vrot.slane %v11768_v17, 2  ;;  %v11795_v8 = vadd.f32 %v11794_v27, %v11793_v35  ;;  %v20440_v35 = vpop.permute.xlu0 %8775 }
 0x7d5   : > { %v11778_v51 = vrot.slane %v11777_v32, 2  ;;  %v11804_v63 = vadd.f32 %v11803_v56, %v11802_v57  ;;  %v11787_v44 = vrot.slane %v11786_v41, 2  ;;  %v11813_v48 = vadd.f32 %v11812_v50, %v11811_v37  ;;  %21911 = vst [vmem:[#allocation87_spill] sm:$0xff] %v20440_v35 }
 0x7d6   : > { %v11821_v15 = vrot.slane %v11820_v26, 4  ;;  %v11830_v60 = vrot.slane %v11829_v39, 4  ;;  %v11770_v59 = vadd.f32 %v11769_v34, %v11768_v17  ;;  %v11796_v13 = vrot.slane %v11795_v8, 2 }
 0x7d7   : > { %v11779_v62 = vadd.f32 %v11778_v51, %v11777_v32  ;;  %v11805_v14 = vrot.slane %v11804_v63, 2  ;;  %v11788_v31 = vadd.f32 %v11787_v44, %v11786_v41  ;;  %v11814_v0 = vrot.slane %v11813_v48, 2  ;;  %v20442_v37 = vpop.permute.xlu1 %11311 }
 0x7d8   : > { %v11822_v23 = vadd.f32 %v11821_v15, %v11820_v26  ;;  %v11831_v38 = vadd.f32 %v11830_v60, %v11829_v39  ;;  %v11771_v55 = vrot.slane %v11770_v59, 1  ;;  %v11797_v25 = vadd.f32 %v11796_v13, %v11795_v8 }
 0x7d9   : > { %v11780_v12 = vrot.slane %v11779_v62, 1  ;;  %v11806_v40 = vadd.f32 %v11805_v14, %v11804_v63  ;;  %v11789_v56 = vrot.slane %v11788_v31, 1  ;;  %v11815_v57 = vadd.f32 %v11814_v0, %v11813_v48 }
 0x7da   : > { %v11823_v27 = vrot.slane %v11822_v23, 2  ;;  %v11832_v50 = vrot.slane %v11831_v38, 2  ;;  %v11772_v17 = vadd.f32 %v11771_v55, %v11770_v59  ;;  %v11798_v34 = vrot.slane %v11797_v25, 1 }
 0x7db   : > { %v11781_v32 = vadd.f32 %v11780_v12, %v11779_v62  ;;  %v11807_v51 = vrot.slane %v11806_v40, 1  ;;  %v11790_v41 = vadd.f32 %v11789_v56, %v11788_v31  ;;  %v11816_v44 = vrot.slane %v11815_v57, 1 }
 0x7dc   : > { %v11824_v26 = vadd.f32 %v11823_v27, %v11822_v23  ;;  %v11833_v39 = vadd.f32 %v11832_v50, %v11831_v38  ;;  %v11799_v15 = vadd.f32 %v11798_v34, %v11797_v25  ;;  %v11844_v13 = vmul.f32 %v11772_v17, %v21871_v28  ;;  %v20452_v38 = vpop.permute.xlu1 %8811 }
 0x7dd   : > { %v11808_v60 = vadd.f32 %v11807_v51, %v11806_v40  ;;  %v11845_v8 = vmul.f32 %v11781_v32, %v21872_v16  ;;  %v11817_v14 = vadd.f32 %v11816_v44, %v11815_v57  ;;  %v11846_v0 = vmul.f32 %v11790_v41, %v21874_v61  ;;  %v20454_v40 = vpop.permute.xlu0 %8783 }
 0x7de   : > { %v11825_v63 = vrot.slane %v11824_v26, 1  ;;  %v11834_v48 = vrot.slane %v11833_v39, 1  ;;  %v11847_v59 = vmul.f32 %v11799_v15, %v21875_v33  ;;  %v11661_v23 = vmul.f32 %v20246_v19, %v21879_v29  ;;  %21912 = vst [vmem:[#allocation82_spill] sm:$0xff] %v20454_v40 }
 0x7df   : > { %v11848_v62 = vmul.f32 %v11808_v60, %v21876_v53  ;;  %v12137_v31 = vsel %vm1978_vm1, %v11845_v8, %v11844_v13  ;;  %v11849_v25 = vmul.f32 %v11817_v14, %v21877_v42  ;;  %v11663_v27 = vmul.f32 %v20246_v19, %v21880_v30 }
 0x7e0   : > { %v11826_v55 = vadd.f32 %v11825_v63, %v11824_v26  ;;  %v11835_v12 = vadd.f32 %v11834_v48, %v11833_v39  ;;  %v12138_v56 = vsel %vm1981_vm2, %v11846_v0, %v12137_v31  ;;  %v11665_v50 = vmul.f32 %v20246_v19, %v21881_v11  ;;  %v21913_v0 = vld [vmem:[#allocation70_spill] sm:$0xff] }
 0x7e1   : > { %v12139_v57 = vsel %vm1984_vm3, %v11847_v59, %v12138_v56  ;;  %v11667_v17 = vmul.f32 %v20246_v19, %v21882_v20  ;;  %v11669_v41 = vmul.f32 %v20246_v19, %v21884_v2  ;;  %v11671_v26 = vmul.f32 %v20246_v19, %v21885_v10  ;;  %v20481_v63 = vpop.permute.xlu1 %11314 }
 0x7e2   : > { %v11850_v32 = vmul.f32 %v11826_v55, %v21878_v58  ;;  %v11851_v34 = vmul.f32 %v11835_v12, %v21832_v45  ;;  %v12140_v51 = vsel %vm1987_vm4, %v11848_v62, %v12139_v57  ;;  %v11673_v39 = vmul.f32 %v20246_v19, %v21886_v21  ;;  %v21914_v62 = vld [vmem:[#allocation95_spill] sm:$0xff]  ;;  %v21915_v55 = vld [vmem:[#allocation62_spill] sm:$0xff] }
 0x7e3   : > { %v12141_v44 = vsel %vm1990_vm5, %v11849_v25, %v12140_v51  ;;  %v11675_v15 = vmul.f32 %v20246_v19, %v21887_v54  ;;  %v11693_v13 = vsel %vm11465_vm13, %v11661_v23, 0.0  ;;  %v11702_v8 = vsel %vm11465_vm13, %v11663_v27, 0.0  ;;  %v20487_v25 = vpop.permute.xlu0 %8791 }
 0x7e4   : > { %v12142_v60 = vsel %vm1993_vm6, %v11850_v32, %v12141_v44  ;;  %v11711_v14 = vsel %vm11465_vm13, %v11665_v50, 0.0  ;;  %v11694_v59 = vadd.f32 %v11693_v13, %v21913_v0  ;;  %v11703_v31 = vadd.f32 %v11702_v8, %v21914_v62  ;;  %21916 = vst [vmem:[#allocation42_spill] sm:$0xff] %v20487_v25  ;;  %v21918_v44 = vld [vmem:[#allocation64_spill] sm:$0xff]  ;;  %v21919_v13 = vld [vmem:[#allocation30_spill] sm:$0xff] }
 0x7e5   : > { %v12143_v48 = vsel %vm1996_vm7, %v11851_v34, %v12142_v60  ;;  %v11712_v12 = vadd.f32 %v11711_v14, %v21915_v55  ;;  %v11720_v19 = vsel %vm11465_vm13, %v11667_v17, 0.0  ;;  %v11729_v23 = vsel %vm11465_vm13, %v11669_v41, 0.0  ;;  %v21917_v34 = vld [vmem:[#allocation63_spill] sm:$0xff] }
 0x7e6   : > { %12146 = vrot.lane.b32.xlu1 %v12143_v48, %s15395_s30  ;;  %v11738_v56 = vsel %vm11465_vm13, %v11671_v26, 0.0  ;;  %v11747_v57 = vsel %vm11465_vm13, %v11673_v39, 0.0  ;;  %v11695_v27 = vrot.slane %v11694_v59, 4  ;;  %v11704_v50 = vrot.slane %v11703_v31, 4  ;;  %v20499_v26 = vpop.permute.xlu1 %9653 }
 0x7e7   : > { %v11713_v32 = vrot.slane %v11712_v12, 4  ;;  %v11721_v51 = vadd.f32 %v11720_v19, %v21917_v34  ;;  %v11730_v60 = vadd.f32 %v11729_v23, %v21918_v44  ;;  %v11739_v8 = vadd.f32 %v11738_v56, %v21919_v13  ;;  %v20502_v56 = vpop.permute.xlu0 %8799 }
 0x7e8   : > { %v11748_v14 = vadd.f32 %v11747_v57, %v20300_v6  ;;  %v11756_v48 = vsel %vm11465_vm13, %v11675_v15, 0.0  ;;  %v11696_v17 = vadd.f32 %v11695_v27, %v11694_v59  ;;  %v11705_v0 = vadd.f32 %v11704_v50, %v11703_v31  ;;  %21920 = vst [vmem:[#allocation91_spill] sm:$0xff] %v20502_v56 }
 0x7e9   : > { %v11714_v41 = vadd.f32 %v11713_v32, %v11712_v12  ;;  %v11722_v62 = vrot.slane %v11721_v51, 4  ;;  %v11731_v39 = vrot.slane %v11730_v60, 4  ;;  %v11740_v55 = vrot.slane %v11739_v8, 4 }
 0x7ea   : > { %v11749_v25 = vrot.slane %v11748_v14, 4  ;;  %v11757_v40 = vadd.f32 %v11756_v48, %v20324_v1  ;;  %v11697_v19 = vrot.slane %v11696_v17, 2  ;;  %v11706_v34 = vrot.slane %v11705_v0, 2 }
 0x7eb   : > { %v11715_v23 = vrot.slane %v11714_v41, 2  ;;  %v11723_v44 = vadd.f32 %v11722_v62, %v11721_v51  ;;  %v11732_v6 = vadd.f32 %v11731_v39, %v11730_v60  ;;  %v11741_v57 = vadd.f32 %v11740_v55, %v11739_v8 }
 0x7ec   : > { %v11750_v15 = vadd.f32 %v11749_v25, %v11748_v14  ;;  %v11758_v59 = vrot.slane %v11757_v40, 4  ;;  %v11698_v31 = vadd.f32 %v11697_v19, %v11696_v17  ;;  %v11707_v12 = vadd.f32 %v11706_v34, %v11705_v0  ;;  %v8820_v53 = vpop.permute.xlu1 %8819  ;;  %v8808_v0 = vpop.permute.xlu0 %8807 }
 0x7ed   : > { %v11716_v27 = vadd.f32 %v11715_v23, %v11714_v41  ;;  %v11724_v50 = vrot.slane %v11723_v44, 2  ;;  %v11733_v32 = vrot.slane %v11732_v6, 2  ;;  %v11742_v13 = vrot.slane %v11741_v57, 2 }
 0x7ee   : > { %v11751_v35 = vrot.slane %v11750_v15, 2  ;;  %v11759_v45 = vadd.f32 %v11758_v59, %v11757_v40  ;;  %v11699_v58 = vrot.slane %v11698_v31, 1  ;;  %v11708_v1 = vrot.slane %v11707_v12, 1 }
 0x7ef   : > { %v11717_v48 = vrot.slane %v11716_v27, 1  ;;  %v11725_v42 = vadd.f32 %v11724_v50, %v11723_v44  ;;  %v11734_v51 = vadd.f32 %v11733_v32, %v11732_v6  ;;  %v11743_v62 = vadd.f32 %v11742_v13, %v11741_v57  ;;  %v21921_v50 = vld [vmem:[#allocation77_spill] sm:$0xff] }
 0x7f0   : > { %v11752_v56 = vadd.f32 %v11751_v35, %v11750_v15  ;;  %v11760_v60 = vrot.slane %v11759_v45, 2  ;;  %v11700_v8 = vadd.f32 %v11699_v58, %v11698_v31  ;;  %v11709_v25 = vadd.f32 %v11708_v1, %v11707_v12  ;;  %v8816_v1 = vpop.permute.xlu0 %8815 }
 0x7f1   : > { %v11718_v14 = vadd.f32 %v11717_v48, %v11716_v27  ;;  %v11726_v17 = vrot.slane %v11725_v42, 1  ;;  %v11735_v41 = vrot.slane %v11734_v51, 1  ;;  %v11744_v39 = vrot.slane %v11743_v62, 1  ;;  %v11321_v15 = vpop.permute.xlu1 %11320 }
 0x7f2   : > { %v11753_v55 = vrot.slane %v11752_v56, 1  ;;  %v11761_v19 = vadd.f32 %v11760_v60, %v11759_v45  ;;  %v11836_v40 = vmul.f32 %v11700_v8, %v21893_v43  ;;  %v11837_v23 = vmul.f32 %v11709_v25, %v21894_v36 }
 0x7f3   : > { %v11727_v34 = vadd.f32 %v11726_v17, %v11725_v42  ;;  %v11838_v44 = vmul.f32 %v11718_v14, %v21896_v9  ;;  %v11736_v6 = vadd.f32 %v11735_v41, %v11734_v51  ;;  %v11745_v57 = vadd.f32 %v11744_v39, %v11743_v62  ;;  %v21922_v62 = vld [vmem:[#allocation111_spill] sm:$0xff]  ;;  %v21924_v39 = vld [vmem:[#allocation68_spill] sm:$0xff] }
 0x7f4   : > { %v11762_v35 = vrot.slane %v11761_v19, 1  ;;  %v11754_v58 = vadd.f32 %v11753_v55, %v11752_v56  ;;  %v12130_v59 = vsel %vm1978_vm1, %v11837_v23, %v11836_v40  ;;  %v8840_v45 = vsel %vm1978_vm1, %v8808_v0, %v20373_v46  ;;  %v21926_v40 = vld [vmem:[#allocation74_spill] sm:$0xff] }
 0x7f5   : > { %v11839_v12 = vmul.f32 %v11727_v34, %v21897_v3  ;;  %v11840_v27 = vmul.f32 %v11736_v6, %v21899_v52  ;;  %v12131_v42 = vsel %vm1981_vm2, %v11838_v44, %v12130_v59  ;;  %v10506_v32 = vsel %vm1978_vm1, %v20438_v49, %v21921_v50  ;;  %v21925_v34 = vld [vmem:[#allocation69_spill] sm:$0xff]  ;;  %v21931_v50 = vld [vmem:[#allocation78_spill] sm:$0xff] }
 0x7f6   : > { %v11763_v31 = vadd.f32 %v11762_v35, %v11761_v19  ;;  %v11338_v56 = vsel %vm1978_vm1, %v20442_v37, %v20396_v18  ;;  %v8841_v13 = vsel %vm1981_vm2, %v20452_v38, %v8840_v45  ;;  %v11841_v48 = vmul.f32 %v11745_v57, %v21900_v24  ;;  %v21923_v37 = vld [vmem:[#allocation116_spill] sm:$0xff]  ;;  %v9660_v25 = vpop.permute.xlu1 %9659  ;;  %v8824_v57 = vpop.permute.xlu0 %8823  ;;  %v21930_v45 = vld [vmem:[#allocation89_spill] sm:$0xff] }
 0x7f7   : > { %v12132_v51 = vsel %vm1984_vm3, %v11839_v12, %v12131_v42  ;;  %v10507_v46 = vsel %vm1981_vm2, %v21922_v62, %v10506_v32  ;;  %v11339_v60 = vsel %vm1981_vm2, %v20481_v63, %v11338_v56  ;;  %v11842_v49 = vmul.f32 %v11754_v58, %v21902_v5  ;;  %v21933_v62 = vld [vmem:[#allocation110_spill] sm:$0xff] }
 0x7f8   : > { %v12133_v8 = vsel %vm1987_vm4, %v11840_v27, %v12132_v51  ;;  %v8842_v18 = vsel %vm1984_vm3, %v8816_v1, %v8841_v13  ;;  %v11340_v38 = vsel %vm1984_vm3, %v21923_v37, %v11339_v60  ;;  %v11843_v14 = vmul.f32 %v11763_v31, %v21903_v7  ;;  %v21928_v31 = vld [vmem:[#allocation15_spill] sm:$0xff]  ;;  %v21929_v27 = vld [vmem:[#allocation60_spill] sm:$0xff]  ;;  %v21932_v13 = vld [vmem:[#allocation50_spill] sm:$0xff] }
 0x7f9   : > { %v12134_v17 = vsel %vm1990_vm5, %v11841_v48, %v12133_v8  ;;  %v8843_v0 = vsel %vm1987_vm4, %v8820_v53, %v8842_v18  ;;  %v20536_v41 = vsel %vm1987_vm4, %v11321_v15, %v11340_v38  ;;  %v20541_v55 = vsel %vm1984_vm3, %v21924_v39, %v10507_v46  ;;  %v21927_v53 = vld [vmem:[#allocation81_spill] sm:$0xff]  ;;  %v21935_v18 = vld [vmem:[#allocation56_spill] sm:$0xff] }
 0x7fa   : > { %v12135_v63 = vsel %vm1993_vm6, %v11842_v49, %v12134_v17  ;;  %v10504_v23 = vsel %vm1993_vm6, %v21926_v40, %v21925_v34  ;;  %v8844_v35 = vsel %vm1990_vm5, %v8824_v57, %v8843_v0  ;;  %v9674_v12 = vsel %vm1978_vm1, %v20427_v22, %v21928_v31  ;;  %v8832_v51 = vpop.permute.xlu0 %8831  ;;  %v21934_v22 = vld [vmem:[#allocation75_spill] sm:$0xff]  ;;  %v21938_v0 = vld [vmem:[#allocation48_spill] sm:$0xff]  ;;  %v21941_v40 = vld [vmem:[#allocation13_spill] sm:$0xff] }
 0x7fb   : > { %v12136_v19 = vsel %vm1996_vm7, %v11843_v14, %v12135_v63  ;;  %v20548_v44 = vpop.permute.xlu1 %10491  ;;  %v20552_v6 = vsel %vm1996_vm7, %v21927_v53, %v10504_v23  ;;  %v9667_v42 = vsel %vm1978_vm1, %v21930_v45, %v21929_v27  ;;  %v9675_v32 = vsel %vm1981_vm2, %v21931_v50, %v9674_v12  ;;  %v21939_v63 = vld [vmem:[#allocation72_spill] sm:$0xff]  ;;  %v21942_v53 = vld [vmem:[#allocation14_spill] sm:$0xff]  ;;  %v21945_v12 = vld [vmem:[#allocation21_spill] sm:$0xff] }
 0x7fc   : > { %12144 = vrot.lane.b32.xlu0 %v12136_v19, %s15395_s30  ;;  %v9668_v1 = vsel %vm1981_vm2, %v21932_v13, %v9667_v42  ;;  %v9676_v48 = vsel %vm1984_vm3, %v20499_v26, %v9675_v32  ;;  %v11902_v39 = vmul.f32 %v21939_v63, %v21938_v0  ;;  %v21940_v19 = vld [vmem:[#allocation55_spill] sm:$0xff]  ;;  %v11906_v23 = vmul.f32 %v21939_v63, %v21941_v40  ;;  %v21946_v45 = vld [vmem:[#allocation16_spill] sm:$0xff]  ;;  %v21947_v13 = vld [vmem:[#allocation66_spill] sm:$0xff]  ;;  %s21301_s30 = sshll.u32 %s15374_s24, 8 }
 0x7fd   : > { %v9669_v46 = vsel %vm1984_vm3, %v21933_v62, %v9668_v1  ;;  %v9677_v60 = vsel %vm1987_vm4, %v21934_v22, %v9676_v48  ;;  %v11904_v34 = vmul.f32 %v21939_v63, %v21940_v19  ;;  %v11908_v57 = vmul.f32 %v21939_v63, %v21942_v53  ;;  %v21948_v48 = vld [vmem:[#allocation44_spill] sm:$0xff]  ;;  %s20791_s2 = scalar_lea.hbm %s20903_s14, %s21301_s30 }
 0x7fe   : > { %v9670_v37 = vsel %vm1987_vm4, %v21935_v18, %v9669_v46  ;;  %v9678_v38 = vsel %vm1990_vm5, %v9660_v25, %v9677_v60  ;;  %v11912_v27 = vmul.f32 %v21939_v63, %v21945_v12  ;;  %v11903_v1 = vmul.f32 %v21947_v13, %v21853_v47  ;;  %v21949_v46 = vld [vmem:[#allocation51_spill] sm:$0xff]  ;;  %v21950_v60 = vld [vmem:[#allocation12_spill] sm:$0xff] }
 0x7ff   : > { %v11887_v47 = vmul.f32 %v21947_v13, %v21879_v29  ;;  %v11999_v0 = vsel %vm11465_vm13, %v11904_v34, 0.0  ;;  %v12008_v19 = vsel %vm11465_vm13, %v11906_v23, 0.0  ;;  %v12017_v40 = vsel %vm11465_vm13, %v11908_v57, 0.0 }
 0x800   : > { %v8828_v15 = vpop.permute.xlu1 %8827  ;;  %v11991_v29 = vsel %vm11465_vm13, %v11903_v1, 0.0  ;;  %v20633_v23 = vsel %vm11465_vm13, %v11912_v27, 0.0  ;;  %v21957_v1 = vld [vmem:[#allocation11_spill] sm:$0xff] }
 0x801   : > { %v8845_v58 = vsel %vm1993_vm6, %v8828_v15, %v8844_v35  ;;  %v21943_v35 = vld [vmem:[#allocation121_spill] sm:$0xff]  ;;  %v9679_v15 = vsel %vm1993_vm6, %v20411_v4, %v9678_v38  ;;  %v11990_v38 = vsel %vm11465_vm13, %v11902_v39, 0.0  ;;  %v11909_v27 = vmul.f32 %v21947_v13, %v21957_v1 }
 0x802   : > { %v8846_v8 = vsel %vm1996_vm7, %v8832_v51, %v8845_v58  ;;  %v9671_v25 = vsel %vm1990_vm5, %v21943_v35, %v9670_v37  ;;  %v21944_v58 = vld [vmem:[#allocation19_spill] sm:$0xff]  ;;  %v11914_v51 = vmul.f32 %v21939_v63, %v21948_v48  ;;  %v21953_v35 = vld [vmem:[#allocation32_spill] sm:$0xff]  ;;  %v11992_v48 = vadd.f32 %v11991_v29, %v11990_v38 }
 0x803   : > { %v11910_v31 = vmul.f32 %v21939_v63, %v21944_v58  ;;  %v9672_v42 = vsel %vm1993_vm6, %v21946_v45, %v9671_v25  ;;  %v11907_v39 = vmul.f32 %v21947_v13, %v21953_v35  ;;  %v21954_v25 = vld [vmem:[#allocation29_spill] sm:$0xff]  ;;  %v21956_v45 = vld [vmem:[#allocation36_spill] sm:$0xff]  ;;  %v11895_v1 = vmul.f32 %v21947_v13, %v21884_v2 }
 0x804   : > { %v9673_v22 = vsel %vm1996_vm7, %v21949_v46, %v9672_v42  ;;  %v20636_v57 = vsel %vm11465_vm13, %v11914_v51, 0.0  ;;  %v11890_v42 = vmul.f32 %v21939_v63, %v21956_v45  ;;  %v21961_v35 = vld [vmem:[#allocation24_spill] sm:$0xff]  ;;  %v12018_v45 = vsel %vm11465_vm13, %v11909_v27, 0.0 }
 0x805   : > { %v20556_v59 = vpop.permute.xlu1 %10494  ;;  %v12026_v53 = vsel %vm11465_vm13, %v11910_v31, 0.0  ;;  %v11891_v31 = vmul.f32 %v21947_v13, %v21881_v11  ;;  %v11898_v29 = vmul.f32 %v21939_v63, %v21961_v35  ;;  %v11897_v35 = vmul.f32 %v21947_v13, %v21885_v10 }
 0x806   : > { %v11899_v10 = vmul.f32 %v21947_v13, %v21886_v21 }
 0x807   : > { %v11937_v38 = vsel %vm11465_vm13, %v11891_v31, 0.0  ;;  %v11972_v27 = vsel %vm11465_vm13, %v11898_v29, 0.0  ;;  %v21966_v29 = vld [vmem:[#allocation45_spill] sm:$0xff] }
 0x80a   : > { %v20566_v56 = vpop.permute.xlu1 %11326 }
 0x80f   : > { %v9666_v26 = vpop.permute.xlu1 %9665 }
 0x810   : > { %v9680_v32 = vsel %vm1996_vm7, %v9666_v26, %v9679_v15  ;;  %v11889_v26 = vmul.f32 %v21947_v13, %v21880_v30  ;;  %v11886_v30 = vmul.f32 %v21939_v63, %v21954_v25  ;;  %v21955_v15 = vld [vmem:[#allocation34_spill] sm:$0xff]  ;;  %v11936_v25 = vsel %vm11465_vm13, %v11890_v42, 0.0 }
 0x811   : > { %v11888_v58 = vmul.f32 %v21939_v63, %v21955_v15  ;;  %v11938_v31 = vadd.f32 %v11937_v38, %v11936_v25 }
 0x859   : > { %v13993_v49 = vpop.f32.mrb[36].mxu0 }
 0x85a   : > { %v20580_v14 = vmul.f32 %v13993_v49, %v8846_v8  ;;  %v20582_v17 = vpop.f32.mrb[37].mxu0  ;;  %v11905_v49 = vmul.f32 %v21947_v13, %v21950_v60  ;;  %v21951_v8 = vld [vmem:[#allocation46_spill] sm:$0xff]  ;;  %v11918_v60 = vsel %vm11465_vm13, %v11886_v30, 0.0  ;;  %v21963_v30 = vld [vmem:[#allocation41_spill] sm:$0xff] }
 0x85b   : > { %21937 = vst [vmem:[#allocation85_spill] sm:$0xff] %v20582_v17  ;;  %v11916_v18 = vmul.f32 %v21939_v63, %v21951_v8  ;;  %v21960_v8 = vld [vmem:[#allocation23_spill] sm:$0xff]  ;;  %v11911_v15 = vmul.f32 %v21947_v13, %v21963_v30 }
 0x85c   : > { %21936 = vst [vmem:[#allocation94_spill] sm:$0xff] %v20580_v14  ;;  %v12000_v34 = vsel %vm11465_vm13, %v11905_v49, 0.0  ;;  %v11927_v49 = vsel %vm11465_vm13, %v11888_v58, 0.0  ;;  %v11993_v58 = vrot.slane %v11992_v48, 4 }
 0x85d   : > { %v14035_v50 = vpop.f32.mrb[34].mxu1  ;;  %v20641_v12 = vsel %vm11465_vm13, %v11916_v18, 0.0  ;;  %v12001_v46 = vadd.f32 %v12000_v34, %v11999_v0  ;;  %v11896_v18 = vmul.f32 %v21939_v63, %v21960_v8  ;;  %v21962_v0 = vld [vmem:[#allocation39_spill] sm:$0xff]  ;;  %v12027_v38 = vsel %vm11465_vm13, %v11911_v15, 0.0 }
 0x85e   : > { %v9684_v62 = vmul.f32 %v14035_v50, %v9680_v32  ;;  %v9609_v4 = vpop.f32.mrb[35].mxu1  ;;  %v11919_v50 = vsel %vm11465_vm13, %v11887_v47, 0.0  ;;  %v11928_v32 = vsel %vm11465_vm13, %v11889_v26, 0.0  ;;  %v11893_v26 = vmul.f32 %v21947_v13, %v21882_v20 }
 0x85f   : > { %v9683_v37 = vmul.f32 %v9673_v22, %v9609_v4  ;;  %v21959_v4 = vld [vmem:[#allocation18_spill] sm:$0xff]  ;;  %v12009_v22 = vsel %vm11465_vm13, %v11907_v39, 0.0  ;;  %v11929_v47 = vadd.f32 %v11928_v32, %v11927_v49  ;;  %v11900_v39 = vmul.f32 %v21939_v63, %v21962_v0 }
 0x860   : > { %11353 = vrot.lane.b32.xlu1 %v9684_v62, %s21952_s27  ;;  %v21958_v62 = vld [vmem:[#allocation37_spill] sm:$0xff]  ;;  %v11894_v11 = vmul.f32 %v21939_v63, %v21959_v4  ;;  %v12010_v34 = vadd.f32 %v12009_v22, %v12008_v19  ;;  %v11963_v42 = vsel %vm11465_vm13, %v11896_v18, 0.0  ;;  %v12019_v49 = vadd.f32 %v12018_v45, %v12017_v40  ;;  %v21965_v22 = vld [vmem:[#allocation43_spill] sm:$0xff] }
 0x861   : > { %11351 = vrot.lane.b32.xlu0 %v9683_v37, %s21952_s27  ;;  %v11892_v51 = vmul.f32 %v21939_v63, %v21958_v62  ;;  %v11920_v37 = vadd.f32 %v11919_v50, %v11918_v60  ;;  %v12002_v50 = vrot.slane %v12001_v46, 4  ;;  %v11930_v63 = vrot.slane %v11929_v47, 4  ;;  %v21964_v4 = vld [vmem:[#allocation17_spill] sm:$0xff] }
 0x862   : > { %v11954_v20 = vsel %vm11465_vm13, %v11894_v11, 0.0  ;;  %v11913_v60 = vmul.f32 %v21947_v13, %v21964_v4  ;;  %v11946_v19 = vsel %vm11465_vm13, %v11893_v26, 0.0  ;;  %v11994_v8 = vadd.f32 %v11993_v58, %v11992_v48 }
 0x863   : > { %v11945_v32 = vsel %vm11465_vm13, %v11892_v51, 0.0  ;;  %v11921_v62 = vrot.slane %v11920_v37, 4  ;;  %v11915_v51 = vmul.f32 %v21947_v13, %v21965_v22  ;;  %v12011_v11 = vrot.slane %v12010_v34, 4 }
 0x864   : > { %v12003_v2 = vadd.f32 %v12002_v50, %v12001_v46  ;;  %v11939_v18 = vrot.slane %v11938_v31, 4  ;;  %v11981_v0 = vsel %vm11465_vm13, %v11900_v39, 0.0  ;;  %v11931_v40 = vadd.f32 %v11930_v63, %v11929_v47 }
 0x865   : > { %v11922_v25 = vadd.f32 %v11921_v62, %v11920_v37  ;;  %v11947_v30 = vadd.f32 %v11946_v19, %v11945_v32  ;;  %v11955_v26 = vsel %vm11465_vm13, %v11895_v1, 0.0  ;;  %v11917_v45 = vmul.f32 %v21947_v13, %v21966_v29 }
 0x866   : > { %v12020_v4 = vrot.slane %v12019_v49, 4  ;;  %v12028_v48 = vadd.f32 %v12027_v38, %v12026_v53  ;;  %v12036_v58 = vsel %vm11465_vm13, %v11913_v60, 0.0  ;;  %v11995_v15 = vrot.slane %v11994_v8, 2 }
 0x867   : > { %v12012_v46 = vadd.f32 %v12011_v11, %v12010_v34  ;;  %v12045_v50 = vsel %vm11465_vm13, %v11915_v51, 0.0  ;;  %v12004_v39 = vrot.slane %v12003_v2, 2  ;;  %v11940_v37 = vadd.f32 %v11939_v18, %v11938_v31 }
 0x868   : > { %v11956_v47 = vadd.f32 %v11955_v26, %v11954_v20  ;;  %v11964_v32 = vsel %vm11465_vm13, %v11897_v35, 0.0  ;;  %v12037_v1 = vadd.f32 %v12036_v58, %v20633_v23  ;;  %v11923_v62 = vrot.slane %v11922_v25, 2 }
 0x869   : > { %v11932_v63 = vrot.slane %v11931_v40, 2  ;;  %v11948_v19 = vrot.slane %v11947_v30, 4  ;;  %v12021_v53 = vadd.f32 %v12020_v4, %v12019_v49  ;;  %v12029_v22 = vrot.slane %v12028_v48, 4 }
 0x86a   : > { %v12046_v60 = vadd.f32 %v12045_v50, %v20636_v57  ;;  %v11901_v34 = vmul.f32 %v21947_v13, %v21887_v54  ;;  %v12013_v51 = vrot.slane %v12012_v46, 2  ;;  %v12054_v21 = vsel %vm11465_vm13, %v11917_v45, 0.0 }
 0x86b   : > { %v11965_v11 = vadd.f32 %v11964_v32, %v11963_v42  ;;  %v11973_v31 = vsel %vm11465_vm13, %v11899_v10, 0.0  ;;  %v11996_v20 = vadd.f32 %v11995_v15, %v11994_v8  ;;  %v12005_v38 = vadd.f32 %v12004_v39, %v12003_v2 }
 0x86c   : > { %v11941_v35 = vrot.slane %v11940_v37, 2  ;;  %v11957_v23 = vrot.slane %v11956_v47, 4  ;;  %v12038_v18 = vrot.slane %v12037_v1, 4  ;;  %v11924_v26 = vadd.f32 %v11923_v62, %v11922_v25 }
 0x86d   : > { %v11933_v29 = vadd.f32 %v11932_v63, %v11931_v40  ;;  %v11949_v49 = vadd.f32 %v11948_v19, %v11947_v30  ;;  %v12022_v4 = vrot.slane %v12021_v53, 2  ;;  %v12030_v58 = vadd.f32 %v12029_v22, %v12028_v48 }
 0x86e   : > { %v11974_v57 = vadd.f32 %v11973_v31, %v11972_v27  ;;  %v11982_v50 = vsel %vm11465_vm13, %v11901_v34, 0.0  ;;  %v12014_v54 = vadd.f32 %v12013_v51, %v12012_v46  ;;  %v12047_v13 = vrot.slane %v12046_v60, 4 }
 0x86f   : > { %v12055_v45 = vadd.f32 %v12054_v21, %v20641_v12  ;;  %v11966_v42 = vrot.slane %v11965_v11, 4  ;;  %v11997_v32 = vrot.slane %v11996_v20, 1  ;;  %v12006_v10 = vrot.slane %v12005_v38, 1 }
 0x870   : > { %v11942_v8 = vadd.f32 %v11941_v35, %v11940_v37  ;;  %v11958_v2 = vadd.f32 %v11957_v23, %v11956_v47  ;;  %v11925_v15 = vrot.slane %v11924_v26, 1  ;;  %v11934_v39 = vrot.slane %v11933_v29, 1 }
 0x871   : > { %v11950_v14 = vrot.slane %v11949_v49, 2  ;;  %v11983_v25 = vadd.f32 %v11982_v50, %v11981_v0  ;;  %v12023_v40 = vadd.f32 %v12022_v4, %v12021_v53  ;;  %v12031_v30 = vrot.slane %v12030_v58, 2 }
 0x872   : > { %v12039_v62 = vadd.f32 %v12038_v18, %v12037_v1  ;;  %v11975_v48 = vrot.slane %v11974_v57, 4  ;;  %v12015_v27 = vrot.slane %v12014_v54, 1  ;;  %v12048_v63 = vadd.f32 %v12047_v13, %v12046_v60 }
 0x873   : > { %v12056_v19 = vrot.slane %v12055_v45, 4  ;;  %v11967_v46 = vadd.f32 %v11966_v42, %v11965_v11  ;;  %v11998_v22 = vadd.f32 %v11997_v32, %v11996_v20  ;;  %v12007_v34 = vadd.f32 %v12006_v10, %v12005_v38 }
 0x874   : > { %v11943_v12 = vrot.slane %v11942_v8, 1  ;;  %v11959_v51 = vrot.slane %v11958_v2, 2  ;;  %v11926_v21 = vadd.f32 %v11925_v15, %v11924_v26  ;;  %v11935_v31 = vadd.f32 %v11934_v39, %v11933_v29 }
 0x875   : > { %v11951_v37 = vadd.f32 %v11950_v14, %v11949_v49  ;;  %v11984_v47 = vrot.slane %v11983_v25, 4  ;;  %v12024_v35 = vrot.slane %v12023_v40, 1  ;;  %v12032_v23 = vadd.f32 %v12031_v30, %v12030_v58 }
 0x876   : > { %v12040_v17 = vrot.slane %v12039_v62, 2  ;;  %v11976_v0 = vadd.f32 %v11975_v48, %v11974_v57  ;;  %v12016_v53 = vadd.f32 %v12015_v27, %v12014_v54  ;;  %v12049_v4 = vrot.slane %v12048_v63, 2 }
 0x877   : > { %v12057_v1 = vadd.f32 %v12056_v19, %v12055_v45  ;;  %v11968_v18 = vrot.slane %v11967_v46, 2  ;;  %v12070_v60 = vmul.f32 %v11998_v22, %v21871_v28  ;;  %v12071_v11 = vmul.f32 %v12007_v34, %v21872_v16 }
 0x878   : > { %v11944_v20 = vadd.f32 %v11943_v12, %v11942_v8  ;;  %v11960_v38 = vadd.f32 %v11959_v51, %v11958_v2  ;;  %v11952_v50 = vrot.slane %v11951_v37, 1  ;;  %v11985_v13 = vadd.f32 %v11984_v47, %v11983_v25  ;;  %v10498_v25 = vpop.permute.xlu1 %10497 }
 0x879   : > { %v12062_v26 = vmul.f32 %v11926_v21, %v21893_v43  ;;  %v12063_v14 = vmul.f32 %v11935_v31, %v21894_v36  ;;  %v12041_v29 = vadd.f32 %v12040_v17, %v12039_v62  ;;  %v11977_v49 = vrot.slane %v11976_v0, 2  ;;  %v21967_v17 = vld [vmem:[#allocation27_spill] sm:$0xff]  ;;  %v21968_v31 = vld [vmem:[#allocation104_spill] sm:$0xff] }
 0x87a   : > { %v12025_v58 = vadd.f32 %v12024_v35, %v12023_v40  ;;  %v12033_v57 = vrot.slane %v12032_v23, 1  ;;  %v12072_v54 = vmul.f32 %v12016_v53, %v21874_v61  ;;  %v11969_v45 = vadd.f32 %v11968_v18, %v11967_v46  ;;  %v21970_v53 = vld [vmem:[#allocation49_spill] sm:$0xff] }
 0x87b   : > { %v12058_v42 = vrot.slane %v12057_v1, 2  ;;  %v12173_v28 = vsel %vm1978_vm1, %v12071_v11, %v12070_v60  ;;  %v11961_v32 = vrot.slane %v11960_v38, 1  ;;  %v12064_v16 = vmul.f32 %v11944_v20, %v21896_v9 }
 0x87c   : > { %v12050_v10 = vadd.f32 %v12049_v4, %v12048_v63  ;;  %v11953_v8 = vadd.f32 %v11952_v50, %v11951_v37  ;;  %v11986_v2 = vrot.slane %v11985_v13, 2  ;;  %v12166_v43 = vsel %vm1978_vm1, %v12063_v14, %v12062_v26 }
 0x87d   : > { %v12042_v15 = vrot.slane %v12041_v29, 1  ;;  %v11978_v36 = vadd.f32 %v11977_v49, %v11976_v0  ;;  %v10509_v39 = vsel %vm1987_vm4, %v21967_v17, %v20541_v55  ;;  %v12034_v61 = vadd.f32 %v12033_v57, %v12032_v23  ;;  %v21969_v0 = vld [vmem:[#allocation93_spill] sm:$0xff]  ;;  %v21973_v57 = vld [vmem:[#allocation79_spill] sm:$0xff] }
 0x87e   : > { %v12174_v40 = vsel %vm1981_vm2, %v12072_v54, %v12173_v28  ;;  %v11970_v30 = vrot.slane %v11969_v45, 1  ;;  %v12059_v62 = vadd.f32 %v12058_v42, %v12057_v1  ;;  %v12073_v48 = vmul.f32 %v12025_v58, %v21875_v33  ;;  %v11330_v1 = vpop.permute.xlu1 %11329 }
 0x87f   : > { %v11962_v9 = vadd.f32 %v11961_v32, %v11960_v38  ;;  %v12167_v27 = vsel %vm1981_vm2, %v12064_v16, %v12166_v43  ;;  %v10510_v63 = vsel %vm1990_vm5, %v20548_v44, %v10509_v39  ;;  %v12051_v19 = vrot.slane %v12050_v10, 1  ;;  %v21971_v38 = vld [vmem:[#allocation88_spill] sm:$0xff] }
 0x880   : > { %v11987_v46 = vadd.f32 %v11986_v2, %v11985_v13  ;;  %v12065_v22 = vmul.f32 %v11953_v8, %v21897_v3  ;;  %v10511_v55 = vsel %vm1993_vm6, %v20556_v59, %v10510_v63  ;;  %v12043_v34 = vadd.f32 %v12042_v15, %v12041_v29  ;;  %v21972_v13 = vld [vmem:[#allocation108_spill] sm:$0xff] }
 0x881   : > { %v12175_v12 = vsel %vm1984_vm3, %v12073_v48, %v12174_v40  ;;  %v11979_v51 = vrot.slane %v11978_v36, 1  ;;  %v10512_v33 = vsel %vm1996_vm7, %v10498_v25, %v10511_v55  ;;  %v12074_v37 = vmul.f32 %v12034_v61, %v21968_v31  ;;  %v21974_v32 = vld [vmem:[#allocation112_spill] sm:$0xff]  ;;  %v20750_v61 = vpop.permute.xlu0 %12108  ;;  %v21976_v40 = vld [vmem:[#allocation83_spill] sm:$0xff] }
 0x882   : > { %v11971_v47 = vadd.f32 %v11970_v30, %v11969_v45  ;;  %v12168_v35 = vsel %vm1984_vm3, %v12065_v22, %v12167_v27  ;;  %v11336_v3 = vsel %vm1993_vm6, %v21970_v53, %v21969_v0  ;;  %v12060_v4 = vrot.slane %v12059_v62, 1  ;;  %v21975_v43 = vld [vmem:[#allocation120_spill] sm:$0xff]  ;;  %v21977_v30 = vld [vmem:[#allocation87_spill] sm:$0xff]  ;;  %v21980_v22 = vld [vmem:[#allocation118_spill] sm:$0xff] }
 0x883   : > { %v12066_v59 = vmul.f32 %v11962_v9, %v21899_v52  ;;  %v12052_v60 = vadd.f32 %v12051_v19, %v12050_v10  ;;  %v12176_v11 = vsel %vm1987_vm4, %v12074_v37, %v12175_v12  ;;  %v11988_v20 = vrot.slane %v11987_v46, 1  ;;  %v21978_v9 = vld [vmem:[#allocation96_spill] sm:$0xff]  ;;  %v21981_v12 = vld [vmem:[#allocation42_spill] sm:$0xff] }
 0x884   : > { %v11342_v50 = vsel %vm1990_vm5, %v21971_v38, %v20536_v41  ;;  %v12075_v26 = vmul.f32 %v12043_v34, %v21972_v13  ;;  %v11980_v14 = vadd.f32 %v11979_v51, %v11978_v36  ;;  %v11337_v54 = vsel %vm1996_vm7, %v21973_v57, %v11336_v3  ;;  %v21985_v0 = vld [vmem:[#allocation94_spill] sm:$0xff] }
 0x885   : > { %v12169_v29 = vsel %vm1987_vm4, %v12066_v59, %v12168_v35  ;;  %v11343_v52 = vsel %vm1993_vm6, %v20566_v56, %v11342_v50  ;;  %v12061_v41 = vadd.f32 %v12060_v4, %v12059_v62  ;;  %v12076_v16 = vmul.f32 %v12052_v60, %v21974_v32  ;;  %v20757_v63 = vpop.permute.xlu0 %12144 }
 0x886   : > { %v11344_v58 = vsel %vm1996_vm7, %v11330_v1, %v11343_v52  ;;  %v12177_v45 = vsel %vm1990_vm5, %v12075_v26, %v12176_v11  ;;  %v11989_v10 = vadd.f32 %v11988_v20, %v11987_v46  ;;  %v12068_v2 = vmul.f32 %v11980_v14, %v21902_v5  ;;  %v12111_v5 = vpop.permute.xlu1 %12110 }
 0x887   : > { %v12077_v15 = vmul.f32 %v12061_v41, %v21975_v43  ;;  %v8833_v62 = vsel %vm1978_vm1, %v21977_v30, %v21976_v40  ;;  %vm11377_vm1 = vcmask 195584  }
 0x888   : > { %v12069_v17 = vmul.f32 %v11989_v10, %v21903_v7  ;;  %v8834_v27 = vsel %vm1981_vm2, %v21978_v9, %v8833_v62  ;;  %v21979_v7 = vld [vmem:[#allocation82_spill] sm:$0xff]  ;;  %vm11380_vm2 = vcmask 261120  }
 0x889   : > { %v8835_v19 = vsel %vm1984_vm3, %v21979_v7, %v8834_v27 }
 0x88a   : > { %v12147_v48 = vpop.permute.xlu1 %12146  ;;  %v8836_v55 = vsel %vm1987_vm4, %v21980_v22, %v8835_v19 }
 0x88b   : > { %v8837_v51 = vsel %vm1990_vm5, %v21981_v12, %v8836_v55  ;;  %v12187_v20 = vsel %vm2490_vm8, %v12111_v5, %v12147_v48 }
 0x890   : > { %v14077_v21 = vpop.f32.mrb[38].mxu0 }
 0x891   : > { %v10516_v44 = vmul.f32 %v14077_v21, %v10512_v33  ;;  %v10441_v23 = vpop.f32.mrb[39].mxu0  ;;  %v21982_v33 = vld [vmem:[#allocation122_spill] sm:$0xff] }
 0x892   : > { %v10515_v18 = vmul.f32 %v20552_v6, %v10441_v23  ;;  %v12067_v6 = vmul.f32 %v11971_v47, %v21900_v24  ;;  %v12178_v24 = vsel %vm1993_vm6, %v12076_v16, %v12177_v45  ;;  %v8838_v31 = vsel %vm1993_vm6, %v21982_v33, %v8837_v51  ;;  %v21983_v47 = vld [vmem:[#allocation91_spill] sm:$0xff] }
 0x893   : > { %11361 = vrot.lane.b32.xlu1 %v10516_v44, %s15397_s29  ;;  %v12179_v39 = vsel %vm1996_vm7, %v12077_v15, %v12178_v24  ;;  %v8839_v35 = vsel %vm1996_vm7, %v21983_v47, %v8838_v31  ;;  %v21984_v44 = vld [vmem:[#allocation85_spill] sm:$0xff] }
 0x894   : > { %11359 = vrot.lane.b32.xlu0 %v10515_v18, %s15397_s29  ;;  %v12170_v8 = vsel %vm1990_vm5, %v12067_v6, %v12169_v29  ;;  %v8849_v23 = vmul.f32 %v8839_v35, %v21984_v44  ;;  %s12241_s29 = sshll.u32 %s20781_s25, 4  ;;  %s20794_s29 = int_to_ptr.vmem [resolvable:$true] %s12241_s29 }
 0x895   : > { %v14119_v49 = vpop.f32.mrb[36].mxu1  ;;  %v12171_v36 = vsel %vm1993_vm6, %v12068_v2, %v12170_v8 }
 0x896   : > { %v11348_v42 = vmul.f32 %v14119_v49, %v11344_v58  ;;  %v11273_v28 = vpop.f32.mrb[37].mxu1  ;;  %v12172_v25 = vsel %vm1996_vm7, %v12069_v17, %v12171_v36 }
 0x897   : > { %v11347_v56 = vmul.f32 %v11337_v54, %v11273_v28 }
 0x898   : > { %11369 = vrot.lane.b32.xlu1 %v11348_v42, %s15398_s17 }
 0x899   : > { %11367 = vrot.lane.b32.xlu0 %v11347_v56, %s15398_s17  ;;  %s15276_s17 = sshll.u32 %s15400_s5, 4  ;;  %s15277_s17 = int_to_ptr.vmem [resolvable:$false] %s15276_s17 }
 0x89a   : > { %p15279_p1 = scmp.lt.s32.totalorder %s20777_s28, %s15277_s17 }
 0x89c   : > { %12182 = vrot.lane.b32.xlu1 %v12179_v39, %s15399_s20 }
 0x89d   : > { %12180 = vrot.lane.b32.xlu0 %v12172_v25, %s15399_s20  ;;  %s15278_s20 = scalar_lea.vmem %s15277_s17, 512 }
 0x89e   : > { %p15280_p2 = scmp.lt.s32.totalorder %s15278_s20, %s15272_s4 }
 0x8a0   : > { %p15281_p3 = por %p15280_p2, %p15279_p1 }
 0x8a2   : > { %p15282_p5 = pnand %p15281_p3, %p15275_p0 }
 0x8d2   : > { %v11354_v46 = vpop.permute.xlu1 %11353 }
 0x8d3   : > { %v11352_v34 = vpop.permute.xlu0 %11351  ;;  %v11374_v53 = vsel %vm2490_vm8, %v21985_v0, %v11354_v46 }
 0x8d4   : > { %v11373_v3 = vsel %vm2490_vm8, %v8849_v23, %v11352_v34 }
 0x905   : > { %v11362_v21 = vpop.permute.xlu1 %11361 }
 0x906   : > { %v11360_v37 = vpop.permute.xlu0 %11359  ;;  %v11376_v4 = vsel %vm878_vm0, %v11374_v53, %v11362_v21 }
 0x907   : > { %v11375_v1 = vsel %vm878_vm0, %v11373_v3, %v11360_v37 }
 0x90a   : > { %v11370_v59 = vpop.permute.xlu1 %11369 }
 0x90b   : > { %v11379_v18 = vsel %vm11377_vm1, %v11376_v4, %v11370_v59  ;;  %v11368_v60 = vpop.permute.xlu0 %11367 }
 0x90c   : > { %11382 = vst.msk [vmem:[%s687_s19 + $0x8] sm:$0xff] %vm11380_vm2, %v11379_v18  ;;  %v11378_v11 = vsel %vm11377_vm1, %v11375_v1, %v11368_v60 }
 0x90d   : > { %11381 = vst.msk [vmem:[%s687_s19] sm:$0xff] %vm11380_vm2, %v11378_v11 }
 0x90e   : > { %v12183_v38 = vpop.permute.xlu1 %12182 }
 0x90f   : > { %15285 = shalt.err (!%p15282_p5)
}
 0x910   : > { %s15286_s19 = scalar_lea.hbm %s20791_s2, 256  ;;  %s15290_s5 = scalar_lea.hbm %s20903_s14, 512 }
 0x911   : > { %p15287_p6 = scmp.ne.s32.totalorder %s20791_s2, %s15286_s19  ;;  %p15291_p10 = scmp.lt.u32.totalorder %s20791_s2, %s20903_s14 }
 0x912   : > { %p15292_p11 = scmp.lt.u32.totalorder %s15290_s5, %s15286_s19  ;;  %p15294_p13 = scmp.lt.u32.totalorder %s15286_s19, %s20791_s2 }
 0x913   : > { %p15288_p7 = pnand %p15287_p6, %p15528_p4 }
 0x914   : > { %p15293_p12 = por %p15292_p11, %p15291_p10 }
 0x915   : > { %p15289_p9 = pneg %p15288_p7 }
 0x916   : > { %p15295_p0 = por %p15294_p13, %p15293_p12 }
 0x918   : > { %p15296_p1 = pnand %p15295_p0, %p15289_p9 }
 0x91a   : > { %15299 = shalt.err (!%p15296_p1)
}
 0x91b   : > { %s15401_s4 = smov 128   ;;  %s21986_s20 = scalar_lea.sflag [#allocation3], %s20762_s1  ;;  %v12186_v50 = vsel %vm2490_vm8, %v20750_v61, %v20757_v63  ;;  %v12189_v13 = vsel %vm878_vm0, %v12187_v20, %v12183_v38  ;;  %v12181_v26 = vpop.permute.xlu0 %12180 }
 0x91c   : > { %14798 = dma.vmem_to_hbm [thread:$0]  (%p15528_p4), %s20777_s28, 256, %s20791_s2, %s21986_s20, %s15401_s4, %s15401_s4, %s21952_s27   ;;  %v12188_v14 = vsel %vm878_vm0, %v12186_v50, %v12181_v26 }
 0x91d   : > { %s21987_s6 = sshll.u32 %s15374_s24, 8  ;;  %12191 = vst.msk [vmem:[%s20781_s25 + $0x8] sm:$0xff] %vm11377_vm1, %v12189_v13  ;;  %12190 = vst.msk [vmem:[%s20781_s25] sm:$0xff] %vm11377_vm1, %v12188_v14  ;;  %s12198_s2 = scalar_lea.sflag [#allocation5], %s20762_s1 }
 0x91e   : > { %s20833_s19 = scalar_lea.hbm %s20904_s15, %s21987_s6  ;;  %s15300_s28 = scalar_lea.vmem %s20794_s29, 256 }
 0x91f   : > { %p15301_p2 = scmp.ne.s32.totalorder %s20794_s29, %s15300_s28  ;;  %s15402_s5 = smov [#allocation4]  }
 0x920   : > { %s15304_s17 = sshll.u32 %s15402_s5, 4  ;;  %s15305_s17 = int_to_ptr.vmem [resolvable:$false] %s15304_s17 }
 0x921   : > { %p15302_p3 = pnand %p15301_p2, %p15528_p4  ;;  %s15306_s24 = scalar_lea.vmem %s15305_s17, 512 }
 0x922   : > { %p15307_p6 = scmp.lt.s32.totalorder %s20794_s29, %s15305_s17  ;;  %p15308_p7 = scmp.lt.s32.totalorder %s15306_s24, %s15300_s28 }
 0x923   : > { %p15303_p5 = pneg %p15302_p3 }
 0x924   : > { %p15309_p9 = por %p15308_p7, %p15307_p6 }
 0x926   : > { %p15310_p10 = pnand %p15309_p9, %p15303_p5 }
 0x928   : > { %15313 = shalt.err (!%p15310_p10)
}
 0x929   : > { %s15314_s25 = scalar_lea.hbm %s20833_s19, 256  ;;  %s15318_s30 = scalar_lea.hbm %s20904_s15, 512 }
 0x92a   : > { %p15315_p11 = scmp.ne.s32.totalorder %s20833_s19, %s15314_s25  ;;  %p15319_p0 = scmp.lt.u32.totalorder %s20833_s19, %s20904_s15 }
 0x92b   : > { %p15320_p1 = scmp.lt.u32.totalorder %s15318_s30, %s15314_s25  ;;  %p15322_p3 = scmp.lt.u32.totalorder %s15314_s25, %s20833_s19 }
 0x92c   : > { %p15316_p12 = pnand %p15315_p11, %p15528_p4 }
 0x92d   : > { %p15321_p2 = por %p15320_p1, %p15319_p0 }
 0x92e   : > { %p15317_p13 = pneg %p15316_p12 }
 0x92f   : > { %p15323_p5 = por %p15322_p3, %p15321_p2 }
 0x931   : > { %p15324_p6 = pnand %p15323_p5, %p15317_p13 }
 0x933   : > { %15327 = shalt.err (!%p15324_p6)
}
 0x934   : > { %14799 = dma.vmem_to_hbm [thread:$0]  (%p15528_p4), %s20794_s29, 256, %s20833_s19, %s12198_s2, %s15401_s4, %s15401_s4, %s21952_s27  }
 0x935 PF: > { %p14809_p7 = scmp.ge.s32.totalorder %s15382_s26, 2  ;;  %s12260_s28 = sand.u32 1, %s15362_s21  }
 0x936   : > { %s12261_s17 = scalar_lea.sflag [#allocation3], %s12260_s28 }
 0x937   : > { %p14803_p9 = pnand %p14809_p7, %p15535_p8 }
 0x939   : > { %15353 = dma.done.wait (!%p14803_p9), %s12261_s17, 256  }
 0x93a   : > { %15355 = vsyncadd (!%p14803_p9), %s12261_s17, 4294967040  ;;  %s12270_s0 = scalar_lea.sflag [#allocation5], %s12260_s28 }
 0x93b   : > { %15357 = dma.done.wait (!%p14803_p9), %s12270_s0, 256  }
 0x93c   : > { %15359 = vsyncadd (!%p14803_p9), %s12270_s0, 4294967040  ;;  %s33_s26 = sadd.s32 1, %s15382_s26   ;;  %s21988_s27 = sld [smem:[#allocation10_spill]] }
 0x93d   : > { %p30_p10 = scmp.ge.s32.totalorder %s33_s26, 4   ;;  %s21989_s24 = sld [smem:[#allocation8_spill]] }
 0x93e   : > { %s21990_s25 = sld [smem:[#allocation9_spill]]  ;;  %s21991_s21 = smov %s15366_s22 }
 0x93f   : > { %s21992_s22 = smov %s15370_s23  ;;  %32 = sbr.rel (!%p30_p10) target bundleno = 14 (0xe), region = 161 }
 0x942   : > { %s21993_s23 = smov %s21988_s27 }
 0x946   :  { %12288 = vsyncpa [#allocation3], 1 }
 0x947   :  { %12290 = vsyncpa [#allocation3 + $0x1], 1 }
 0x948   :  { %12291 = vsyncpa [#allocation5], 1 }
 0x949   :  { %12293 = vsyncpa [#allocation5 + $0x1], 1 }

</bundles_post_ra>
